<compile_context>
chip_gen: v7x
topology: tpu7x:2x2x1
jax: 0.10.0
libtpu: 0.0.40
codegen_flags: <defaults>
</compile_context>

<pallas_src>
import jax
import jax.numpy as jnp
from jax.experimental import pallas as pl
from jax.experimental.pallas import tpu as pltpu


def _fixed(shape):
    """Whole-array BlockSpec (same block for every grid step)."""
    n = len(shape)
    return pl.BlockSpec(shape, lambda *_: (0,) * n)


# --------------------------------------------------------------------------
# In-kernel building blocks
# --------------------------------------------------------------------------
def _gru_direction(xp_ref, xp_off, whh, bhn, n_steps, rows, H, *, reverse,
                   h_ref, h_off):
    """One direction of a fused-gate GRU, fully unrolled.

    xp_ref: (n_steps*rows, >= xp_off+3H) precomputed x@W_ih + b (gate order [r|z|n],
            this direction's gates at lanes [xp_off, xp_off+3H)).
    whh:    (H, 3H) fused hidden weights (f32).
    bhn:    (1, H)  b_hh of the n gate (stays inside the r * (.) term).
    h_ref:  (n_steps*rows, 2H) packed hidden-state scratch; this direction writes
            lanes [h_off, h_off+H).
    Returns the final hidden state (rows, H).
    """
    bhn_b = jnp.broadcast_to(bhn, (rows, H))          # hoisted out of the loop
    h = jnp.zeros((rows, H), jnp.float32)
    for k in range(n_steps):
        t = n_steps - 1 - k if reverse else k
        xp_t = xp_ref[t * rows:(t + 1) * rows, xp_off:xp_off + 3 * H]   # (rows, 3H)
        hp = jnp.dot(h, whh, preferred_element_type=jnp.float32)        # (rows, 3H)
        rz = jax.nn.sigmoid(xp_t[:, :2 * H] + hp[:, :2 * H])            # fused r,z
        r = rz[:, :H]
        z = rz[:, H:]
        n = jnp.tanh(xp_t[:, 2 * H:] + r * (hp[:, 2 * H:] + bhn_b))
        h = (1.0 - z) * n + z * h
        h_ref[t * rows:(t + 1) * rows, h_off:h_off + H] = h
    return h


def _attention_pool(h_ref, attn_w, attn_b, ctx, n_steps, rows):
    """SentiStream attention: tanh(h@W+b) -> tanh(<.,ctx>) -> softmax over steps
    -> weighted sum of the packed [fwd|bwd] hidden states.

    h_ref: (n_steps*rows, 2H) packed hidden states (f32).
    attn_w: (2H, 2H) bf16; attn_b / ctx: (1, 2H) f32.  Returns (rows, 2H) f32.
    """
    H2 = attn_b.shape[-1]
    h_all = h_ref[...]                                                   # (n*rows, 2H)
    # Hoisted attention projection: ONE bf16 GEMM over all steps & both directions.
    u = jnp.tanh(jnp.dot(h_all.astype(jnp.bfloat16), attn_w,
                         preferred_element_type=jnp.float32) + attn_b)   # (n*rows, 2H)
    # Context scores; softmax runs on a (rows, n_steps) matrix (multi-lane vregs)
    # instead of 1-lane (n, rows, 1) columns.
    s_col = jnp.sum(u * ctx, axis=-1, keepdims=True)                     # (n*rows, 1)
    s = jnp.tanh(jnp.concatenate(
        [s_col[t * rows:(t + 1) * rows, :] for t in range(n_steps)], axis=1))
    s = s - jnp.max(s, axis=-1, keepdims=True)
    e = jnp.exp(s)
    attn = e * pl.reciprocal(jnp.sum(e, axis=-1, keepdims=True), approx=True)
    # Weighted sum over steps on full-2H-lane tiles (fwd & bwd halves together).
    out = jnp.zeros((rows, H2), jnp.float32)
    for t in range(n_steps):
        out = out + attn[:, t:t + 1] * h_all[t * rows:(t + 1) * rows, :]
    return out


# --------------------------------------------------------------------------
# Kernels
# --------------------------------------------------------------------------
def word_stage_kernel(x_ref, wih_ref, bx_ref, whh_f_ref, whh_b_ref,
                      bhn_f_ref, bhn_b_ref, attn_w_ref, attn_b_ref, ctx_ref,
                      wctx_ref, xp_sc, h_sc):
    Mc, H2 = wctx_ref.shape
    Hw = H2 // 2
    T = xp_sc.shape[0] // Mc

    # Input projections for ALL steps and BOTH directions in one bf16 GEMM.
    xp_sc[...] = (jnp.dot(x_ref[...], wih_ref[...],
                          preferred_element_type=jnp.float32) + bx_ref[...])

    _gru_direction(xp_sc, 0, whh_f_ref[...], bhn_f_ref[...], T, Mc, Hw,
                   reverse=False, h_ref=h_sc, h_off=0)
    _gru_direction(xp_sc, 3 * Hw, whh_b_ref[...], bhn_b_ref[...], T, Mc, Hw,
                   reverse=True, h_ref=h_sc, h_off=Hw)

    wctx_ref[...] = _attention_pool(h_sc, attn_w_ref[...], attn_b_ref[...],
                                    ctx_ref[...], T, Mc)


def sent_stage_kernel(wctx_ref, wih_ref, bx_ref, whh_f_ref, whh_b_ref,
                      bhn_f_ref, bhn_b_ref, attn_w_ref, attn_b_ref, ctx_ref,
                      fcw_ref, fcb_ref, y_ref, hout_ref, sp_sc, hs_sc):
    B = y_ref.shape[0]
    Hs = hs_sc.shape[1] // 2
    S = sp_sc.shape[0] // B

    # Sentence-GRU input projection: one bf16 GEMM ([fwd|bwd] features x (2Hw, 6Hs)).
    sp_sc[...] = (jnp.dot(wctx_ref[...].astype(jnp.bfloat16), wih_ref[...],
                          preferred_element_type=jnp.float32) + bx_ref[...])

    h_sf = _gru_direction(sp_sc, 0, whh_f_ref[...], bhn_f_ref[...], S, B, Hs,
                          reverse=False, h_ref=hs_sc, h_off=0)
    h_sb = _gru_direction(sp_sc, 3 * Hs, whh_b_ref[...], bhn_b_ref[...], S, B, Hs,
                          reverse=True, h_ref=hs_sc, h_off=Hs)

    sctx = _attention_pool(hs_sc, attn_w_ref[...], attn_b_ref[...],
                           ctx_ref[...], S, B)                           # (B, 2Hs)

    # Final logits: VPU multiply + lane reduce (avoids an N=1 MXU matmul).
    logits = jnp.sum(sctx * fcw_ref[...], axis=-1, keepdims=True) + fcb_ref[...]
    y_ref[...] = jax.nn.sigmoid(logits)                                  # HAN sigmoid
    hout_ref[0] = h_sf
    hout_ref[1] = h_sb


# --------------------------------------------------------------------------
# Wrapper
# --------------------------------------------------------------------------
def han_forward(tokens, params, *, word_hidden, sent_hidden, word_chunks=2):
    B, S, T = tokens.shape
    D = params["embeddings"].shape[1]
    Hw, Hs = word_hidden, sent_hidden
    M = S * B

    G = word_chunks
    if M % G != 0 or (M // G) % 8 != 0:
        G = 1
    Mc = M // G

    emb = jnp.take(params["embeddings"], tokens, axis=0).astype(jnp.float32)  # (B,S,T,D)
    # TODO(synk): reference applies nn.Dropout(0.1) (fresh module => training mode)
    # on the embeddings; omitted (identity) since its RNG stream cannot be reproduced.
    # Fold sentences into the word-GRU batch (global row m = s*B + b), then split
    # into G row-chunks for the parallel word-stage grid (step-major within a chunk).
    x = jnp.transpose(emb, (2, 1, 0, 3)).reshape(T, M, D)
    x = x.reshape(T, G, Mc, D).transpose(1, 0, 2, 3).reshape(G, T * Mc, D)
    x = x.astype(jnp.bfloat16)           # bulk GEMM operands in bf16, f32 accumulation

    wp, sp = params["word"], params["sent"]
    # Explicit VMEM budget (v7x has 64 MiB per TC; scratch here is < 1 MiB).
    vmem_budget = 32 * 1024 * 1024

    # ---------------- word stage: grid over row chunks (parallel) ----------------
    wctx = pl.pallas_call(
        word_stage_kernel,
        out_shape=jax.ShapeDtypeStruct((M, 2 * Hw), jnp.float32),
        grid_spec=pltpu.PrefetchScalarGridSpec(
            num_scalar_prefetch=0,
            grid=(G,),
            in_specs=[
                pl.BlockSpec((None, T * Mc, D), lambda g: (g, 0, 0)),
                _fixed((D, 6 * Hw)), _fixed((1, 6 * Hw)),
                _fixed((Hw, 3 * Hw)), _fixed((Hw, 3 * Hw)),
                _fixed((1, Hw)), _fixed((1, Hw)),
                _fixed((2 * Hw, 2 * Hw)), _fixed((1, 2 * Hw)), _fixed((1, 2 * Hw)),
            ],
            out_specs=pl.BlockSpec((Mc, 2 * Hw), lambda g: (g, 0)),
            scratch_shapes=[
                pltpu.VMEM((T * Mc, 6 * Hw), jnp.float32),   # input projections (both dirs)
                pltpu.VMEM((T * Mc, 2 * Hw), jnp.float32),   # packed fwd|bwd hidden states
            ],
        ),
        compiler_params=pltpu.CompilerParams(
            dimension_semantics=("parallel",), vmem_limit_bytes=vmem_budget),
    )(x, wp["w_ih"], wp["b_x"], wp["whh_f"], wp["whh_b"], wp["bhn_f"], wp["bhn_b"],
      wp["attn_w"], wp["attn_b"], wp["ctx"])

    # ---------------- sentence stage ----------------
    y, h_out = pl.pallas_call(
        sent_stage_kernel,
        out_shape=(jax.ShapeDtypeStruct((B, 1), jnp.float32),
                   jax.ShapeDtypeStruct((2, B, Hs), jnp.float32)),
        grid_spec=pltpu.PrefetchScalarGridSpec(
            num_scalar_prefetch=0,
            grid=(1,),
            in_specs=[
                _fixed((M, 2 * Hw)),
                _fixed((2 * Hw, 6 * Hs)), _fixed((1, 6 * Hs)),
                _fixed((Hs, 3 * Hs)), _fixed((Hs, 3 * Hs)),
                _fixed((1, Hs)), _fixed((1, Hs)),
                _fixed((2 * Hs, 2 * Hs)), _fixed((1, 2 * Hs)), _fixed((1, 2 * Hs)),
                _fixed((1, 2 * Hs)), _fixed((1, 1)),
            ],
            out_specs=(_fixed((B, 1)), _fixed((2, B, Hs))),
            scratch_shapes=[
                pltpu.VMEM((M, 6 * Hs), jnp.float32),        # sentence input projections
                pltpu.VMEM((M, 2 * Hs), jnp.float32),        # packed fwd|bwd hidden states
            ],
        ),
        compiler_params=pltpu.CompilerParams(
            dimension_semantics=("arbitrary",), vmem_limit_bytes=vmem_budget),
    )(wctx, sp["w_ih"], sp["b_x"], sp["whh_f"], sp["whh_b"], sp["bhn_f"], sp["bhn_b"],
      sp["attn_w"], sp["attn_b"], sp["ctx"], sp["fc_w"], sp["fc_b"])

    return y, h_out


# --------------------------------------------------------------------------
# Parameter construction (packed layouts the kernels expect)
# --------------------------------------------------------------------------
def _uniform(key, shape, bound):
    return jax.random.uniform(key, shape, jnp.float32, -bound, bound)


def _gru_dir_params(key, d_in, h):
    """PyTorch-style GRU params for one direction, fused gate order [r|z|n]."""
    k1, k2, k3, k4 = jax.random.split(key, 4)
    bound = float(h) ** -0.5
    w_ih = _uniform(k1, (d_in, 3 * h), bound)
    w_hh = _uniform(k2, (h, 3 * h), bound)
    b_ih = _uniform(k3, (1, 3 * h), bound)
    b_hh = _uniform(k4, (1, 3 * h), bound)
    # Pre-sum b_ih + b_hh for the r,z gates; b_hh of n stays inside the r*(.) term.
    b_x = jnp.concatenate([b_ih[:, :2 * h] + b_hh[:, :2 * h], b_ih[:, 2 * h:]], axis=1)
    return w_ih, w_hh, b_x, b_hh[:, 2 * h:]


def _attn_net_params(key, d_in, h, with_fc):
    ks = jax.random.split(key, 6)
    wf_ih, wf_hh, wf_bx, wf_bhn = _gru_dir_params(ks[0], d_in, h)
    wb_ih, wb_hh, wb_bx, wb_bhn = _gru_dir_params(ks[1], d_in, h)
    p = dict(
        # Fused fwd|bwd input projection; bf16 operand for the bulk MXU GEMM.
        w_ih=jnp.concatenate([wf_ih, wb_ih], axis=1).astype(jnp.bfloat16),  # (d_in, 6h)
        b_x=jnp.concatenate([wf_bx, wb_bx], axis=1),                        # (1, 6h)
        whh_f=wf_hh, whh_b=wb_hh,                                           # f32 recurrence
        bhn_f=wf_bhn, bhn_b=wb_bhn,
        attn_w=(jax.random.normal(ks[2], (2 * h, 2 * h), jnp.float32) * 0.05
                ).astype(jnp.bfloat16),
        attn_b=jnp.zeros((1, 2 * h), jnp.float32),
        ctx=jax.random.normal(ks[3], (1, 2 * h), jnp.float32) * 0.05,       # context_weight.T
    )
    if with_fc:
        bound = float(2 * h) ** -0.5
        p["fc_w"] = _uniform(ks[4], (1, 2 * h), bound)   # row vector for the VPU lane-reduce
        p["fc_b"] = _uniform(ks[5], (1, 1), bound)
    return p


def init_params(key, vocab, embed_dim, word_hidden, sent_hidden):
    k_emb, k_word, k_sent = jax.random.split(key, 3)
    emb = jax.random.normal(k_emb, (vocab, embed_dim), jnp.float32) * 0.1
    # Row 0 = pad/unk (zeros), as in WordAttentionNet.__init__.
    emb = jnp.concatenate([jnp.zeros((1, embed_dim), jnp.float32), emb], axis=0)
    return {
        "embeddings": emb,
        "word": _attn_net_params(k_word, embed_dim, word_hidden, with_fc=False),
        "sent": _attn_net_params(k_sent, 2 * word_hidden, sent_hidden, with_fc=True),
    }


if __name__ == "__main__":
    key = jax.random.PRNGKey(0)
    B, S, T = 8, 8, 12           # batch, max_sent_length, max_word_length
    vocab, D, Hw, Hs = 100, 32, 32, 32

    k_params, k_tok = jax.random.split(key)
    params = init_params(k_params, vocab, D, Hw, Hs)
    tokens = jax.random.randint(k_tok, (B, S, T), 0, vocab + 1, dtype=jnp.int32)

    # Initial GRU hidden states are zeros (HAN.reset_hidden_state); folded into the kernels.
    y, h_out = han_forward(tokens, params, word_hidden=Hw, sent_hidden=Hs)
    y = jax.block_until_ready(y)
    h_out = jax.block_until_ready(h_out)

    assert y.shape == (B, 1), y.shape
    assert h_out.shape == (2, B, Hs), h_out.shape
    assert bool(jnp.all(jnp.isfinite(y)))
    assert bool(jnp.all((y > 0.0) & (y < 1.0)))
    print("KERNEL_OK")
</pallas_src>

<mosaic_0001>
module attributes {stable_mosaic.version = 11 : i64} {
  func.func @word_stage_kernel(%arg0: i32, %arg1: memref<1x384x32xbf16, #tpu.memory_space<vmem>>, %arg2: memref<32x192xbf16, #tpu.memory_space<vmem>>, %arg3: memref<1x192xf32, #tpu.memory_space<vmem>>, %arg4: memref<32x96xf32, #tpu.memory_space<vmem>>, %arg5: memref<32x96xf32, #tpu.memory_space<vmem>>, %arg6: memref<1x32xf32, #tpu.memory_space<vmem>>, %arg7: memref<1x32xf32, #tpu.memory_space<vmem>>, %arg8: memref<64x64xbf16, #tpu.memory_space<vmem>>, %arg9: memref<1x64xf32, #tpu.memory_space<vmem>>, %arg10: memref<1x64xf32, #tpu.memory_space<vmem>>, %arg11: memref<32x64xf32, #tpu.memory_space<vmem>>, %arg12: memref<384x192xf32, #tpu.memory_space<vmem>>, %arg13: memref<384x64xf32, #tpu.memory_space<vmem>>) attributes {dimension_semantics = [#tpu.dimension_semantics<parallel>], iteration_bounds = array<i64: 2>, scalar_prefetch = 0 : i64, scratch_operands = 2 : i64, tpu.core_type = #tpu.core_type<tc>, window_params = [{transform_indices = @transform_0, window_bounds = array<i64: 1, 384, 32>}, {pipeline_mode = #tpu.pipeline_mode<synchronous>, transform_indices = @transform_1, window_bounds = array<i64: 32, 192>}, {pipeline_mode = #tpu.pipeline_mode<synchronous>, transform_indices = @transform_2, window_bounds = array<i64: 1, 192>}, {pipeline_mode = #tpu.pipeline_mode<synchronous>, transform_indices = @transform_3, window_bounds = array<i64: 32, 96>}, {pipeline_mode = #tpu.pipeline_mode<synchronous>, transform_indices = @transform_4, window_bounds = array<i64: 32, 96>}, {pipeline_mode = #tpu.pipeline_mode<synchronous>, transform_indices = @transform_5, window_bounds = array<i64: 1, 32>}, {pipeline_mode = #tpu.pipeline_mode<synchronous>, transform_indices = @transform_6, window_bounds = array<i64: 1, 32>}, {pipeline_mode = #tpu.pipeline_mode<synchronous>, transform_indices = @transform_7, window_bounds = array<i64: 64, 64>}, {pipeline_mode = #tpu.pipeline_mode<synchronous>, transform_indices = @transform_8, window_bounds = array<i64: 1, 64>}, {pipeline_mode = #tpu.pipeline_mode<synchronous>, transform_indices = @transform_9, window_bounds = array<i64: 1, 64>}, {transform_indices = @transform_10, window_bounds = array<i64: 32, 64>}]} {
    %c0 = arith.constant 0 : index
    %c0_0 = arith.constant 0 : index
    %c0_1 = arith.constant 0 : index
    %0 = vector.load %arg1[%c0, %c0_0, %c0_1] : memref<1x384x32xbf16, #tpu.memory_space<vmem>>, vector<1x384x32xbf16>
    %1 = vector.shape_cast %0 : vector<1x384x32xbf16> to vector<384x32xbf16>
    %c0_2 = arith.constant 0 : index
    %c0_3 = arith.constant 0 : index
    %2 = vector.load %arg2[%c0_2, %c0_3] : memref<32x192xbf16, #tpu.memory_space<vmem>>, vector<32x192xbf16>
    %cst = arith.constant dense<0.000000e+00> : vector<384x192xf32>
    %3 = tpu.matmul %1, %2, %cst {dimension_numbers = #tpu.dot_dimension_numbers<[1], [0], [0], [1], [0, 0, 1, 1], [], []>} : vector<384x32xbf16>, vector<32x192xbf16>, vector<384x192xf32> -> vector<384x192xf32>
    %c0_4 = arith.constant 0 : index
    %c0_5 = arith.constant 0 : index
    %4 = vector.load %arg3[%c0_4, %c0_5] : memref<1x192xf32, #tpu.memory_space<vmem>>, vector<1x192xf32>
    %5 = vector.broadcast %4 : vector<1x192xf32> to vector<384x192xf32>
    %6 = arith.addf %3, %5 : vector<384x192xf32>
    %c0_6 = arith.constant 0 : index
    %c0_7 = arith.constant 0 : index
    %7 = vector.load %arg12[%c0_6, %c0_7] : memref<384x192xf32, #tpu.memory_space<vmem>>, vector<384x192xf32>
    tpu.vector_store %arg12[%c0_6, %c0_7], %6 {strides = array<i32>} : memref<384x192xf32, #tpu.memory_space<vmem>>, vector<384x192xf32>,
    %c0_8 = arith.constant 0 : index
    %c0_9 = arith.constant 0 : index
    %8 = vector.load %arg4[%c0_8, %c0_9] : memref<32x96xf32, #tpu.memory_space<vmem>>, vector<32x96xf32>
    %c0_10 = arith.constant 0 : index
    %c0_11 = arith.constant 0 : index
    %9 = vector.load %arg6[%c0_10, %c0_11] : memref<1x32xf32, #tpu.memory_space<vmem>>, vector<1x32xf32>
    %10 = vector.shape_cast %9 : vector<1x32xf32> to vector<1x32xf32>
    %11 = vector.broadcast %10 : vector<1x32xf32> to vector<32x32xf32>
    %cst_12 = arith.constant 0.000000e+00 : f32
    %12 = vector.broadcast %cst_12 : f32 to vector<32x32xf32>
    %c0_13 = arith.constant 0 : index
    %c0_14 = arith.constant 0 : index
    %13 = vector.load %arg12[%c0_13, %c0_14] : memref<384x192xf32, #tpu.memory_space<vmem>>, vector<32x96xf32>
    %cst_15 = arith.constant dense<0.000000e+00> : vector<32x96xf32>
    %14 = tpu.matmul %12, %8, %cst_15 {dimension_numbers = #tpu.dot_dimension_numbers<[1], [0], [0], [1], [0, 0, 1, 1], [], []>} : vector<32x32xf32>, vector<32x96xf32>, vector<32x96xf32> -> vector<32x96xf32>
    %15 = vector.extract_strided_slice %13 {offsets = [0, 0], sizes = [32, 64], strides = [1, 1]} : vector<32x96xf32> to vector<32x64xf32>
    %16 = vector.extract_strided_slice %14 {offsets = [0, 0], sizes = [32, 64], strides = [1, 1]} : vector<32x96xf32> to vector<32x64xf32>
    %17 = arith.addf %15, %16 : vector<32x64xf32>
    %18 = arith.negf %17 : vector<32x64xf32>
    %19 = math.exp %18 : vector<32x64xf32>
    %cst_16 = arith.constant 1.000000e+00 : f32
    %20 = vector.broadcast %cst_16 : f32 to vector<32x64xf32>
    %21 = arith.addf %20, %19 : vector<32x64xf32>
    %22 = arith.divf %20, %21 : vector<32x64xf32>
    %23 = vector.extract_strided_slice %22 {offsets = [0, 0], sizes = [32, 32], strides = [1, 1]} : vector<32x64xf32> to vector<32x32xf32>
    %24 = vector.extract_strided_slice %22 {offsets = [0, 32], sizes = [32, 32], strides = [1, 1]} : vector<32x64xf32> to vector<32x32xf32>
    %25 = vector.extract_strided_slice %13 {offsets = [0, 64], sizes = [32, 32], strides = [1, 1]} : vector<32x96xf32> to vector<32x32xf32>
    %26 = vector.extract_strided_slice %14 {offsets = [0, 64], sizes = [32, 32], strides = [1, 1]} : vector<32x96xf32> to vector<32x32xf32>
    %27 = arith.addf %26, %11 : vector<32x32xf32>
    %28 = arith.mulf %23, %27 : vector<32x32xf32>
    %29 = arith.addf %25, %28 : vector<32x32xf32>
    %30 = math.tanh %29 : vector<32x32xf32>
    %cst_17 = arith.constant 1.000000e+00 : f32
    %31 = vector.broadcast %cst_17 : f32 to vector<32x32xf32>
    %32 = arith.subf %31, %24 : vector<32x32xf32>
    %33 = arith.mulf %32, %30 : vector<32x32xf32>
    %34 = arith.mulf %24, %12 : vector<32x32xf32>
    %35 = arith.addf %33, %34 : vector<32x32xf32>
    %c0_18 = arith.constant 0 : index
    %c0_19 = arith.constant 0 : index
    %36 = vector.load %arg13[%c0_18, %c0_19] : memref<384x64xf32, #tpu.memory_space<vmem>>, vector<32x32xf32>
    tpu.vector_store %arg13[%c0_18, %c0_19], %35 {strides = array<i32>} : memref<384x64xf32, #tpu.memory_space<vmem>>, vector<32x32xf32>,
    %c32 = arith.constant 32 : index
    %c0_20 = arith.constant 0 : index
    %37 = vector.load %arg12[%c32, %c0_20] : memref<384x192xf32, #tpu.memory_space<vmem>>, vector<32x96xf32>
    %cst_21 = arith.constant dense<0.000000e+00> : vector<32x96xf32>
    %38 = tpu.matmul %35, %8, %cst_21 {dimension_numbers = #tpu.dot_dimension_numbers<[1], [0], [0], [1], [0, 0, 1, 1], [], []>} : vector<32x32xf32>, vector<32x96xf32>, vector<32x96xf32> -> vector<32x96xf32>
    %39 = vector.extract_strided_slice %37 {offsets = [0, 0], sizes = [32, 64], strides = [1, 1]} : vector<32x96xf32> to vector<32x64xf32>
    %40 = vector.extract_strided_slice %38 {offsets = [0, 0], sizes = [32, 64], strides = [1, 1]} : vector<32x96xf32> to vector<32x64xf32>
    %41 = arith.addf %39, %40 : vector<32x64xf32>
    %42 = arith.negf %41 : vector<32x64xf32>
    %43 = math.exp %42 : vector<32x64xf32>
    %cst_22 = arith.constant 1.000000e+00 : f32
    %44 = vector.broadcast %cst_22 : f32 to vector<32x64xf32>
    %45 = arith.addf %44, %43 : vector<32x64xf32>
    %46 = arith.divf %44, %45 : vector<32x64xf32>
    %47 = vector.extract_strided_slice %46 {offsets = [0, 0], sizes = [32, 32], strides = [1, 1]} : vector<32x64xf32> to vector<32x32xf32>
    %48 = vector.extract_strided_slice %46 {offsets = [0, 32], sizes = [32, 32], strides = [1, 1]} : vector<32x64xf32> to vector<32x32xf32>
    %49 = vector.extract_strided_slice %37 {offsets = [0, 64], sizes = [32, 32], strides = [1, 1]} : vector<32x96xf32> to vector<32x32xf32>
    %50 = vector.extract_strided_slice %38 {offsets = [0, 64], sizes = [32, 32], strides = [1, 1]} : vector<32x96xf32> to vector<32x32xf32>
    %51 = arith.addf %50, %11 : vector<32x32xf32>
    %52 = arith.mulf %47, %51 : vector<32x32xf32>
    %53 = arith.addf %49, %52 : vector<32x32xf32>
    %54 = math.tanh %53 : vector<32x32xf32>
    %cst_23 = arith.constant 1.000000e+00 : f32
    %55 = vector.broadcast %cst_23 : f32 to vector<32x32xf32>
    %56 = arith.subf %55, %48 : vector<32x32xf32>
    %57 = arith.mulf %56, %54 : vector<32x32xf32>
    %58 = arith.mulf %48, %35 : vector<32x32xf32>
    %59 = arith.addf %57, %58 : vector<32x32xf32>
    %c32_24 = arith.constant 32 : index
    %c0_25 = arith.constant 0 : index
    %60 = vector.load %arg13[%c32_24, %c0_25] : memref<384x64xf32, #tpu.memory_space<vmem>>, vector<32x32xf32>
    tpu.vector_store %arg13[%c32_24, %c0_25], %59 {strides = array<i32>} : memref<384x64xf32, #tpu.memory_space<vmem>>, vector<32x32xf32>,
    %c64 = arith.constant 64 : index
    %c0_26 = arith.constant 0 : index
    %61 = vector.load %arg12[%c64, %c0_26] : memref<384x192xf32, #tpu.memory_space<vmem>>, vector<32x96xf32>
    %cst_27 = arith.constant dense<0.000000e+00> : vector<32x96xf32>
    %62 = tpu.matmul %59, %8, %cst_27 {dimension_numbers = #tpu.dot_dimension_numbers<[1], [0], [0], [1], [0, 0, 1, 1], [], []>} : vector<32x32xf32>, vector<32x96xf32>, vector<32x96xf32> -> vector<32x96xf32>
    %63 = vector.extract_strided_slice %61 {offsets = [0, 0], sizes = [32, 64], strides = [1, 1]} : vector<32x96xf32> to vector<32x64xf32>
    %64 = vector.extract_strided_slice %62 {offsets = [0, 0], sizes = [32, 64], strides = [1, 1]} : vector<32x96xf32> to vector<32x64xf32>
    %65 = arith.addf %63, %64 : vector<32x64xf32>
    %66 = arith.negf %65 : vector<32x64xf32>
    %67 = math.exp %66 : vector<32x64xf32>
    %cst_28 = arith.constant 1.000000e+00 : f32
    %68 = vector.broadcast %cst_28 : f32 to vector<32x64xf32>
    %69 = arith.addf %68, %67 : vector<32x64xf32>
    %70 = arith.divf %68, %69 : vector<32x64xf32>
    %71 = vector.extract_strided_slice %70 {offsets = [0, 0], sizes = [32, 32], strides = [1, 1]} : vector<32x64xf32> to vector<32x32xf32>
    %72 = vector.extract_strided_slice %70 {offsets = [0, 32], sizes = [32, 32], strides = [1, 1]} : vector<32x64xf32> to vector<32x32xf32>
    %73 = vector.extract_strided_slice %61 {offsets = [0, 64], sizes = [32, 32], strides = [1, 1]} : vector<32x96xf32> to vector<32x32xf32>
    %74 = vector.extract_strided_slice %62 {offsets = [0, 64], sizes = [32, 32], strides = [1, 1]} : vector<32x96xf32> to vector<32x32xf32>
    %75 = arith.addf %74, %11 : vector<32x32xf32>
    %76 = arith.mulf %71, %75 : vector<32x32xf32>
    %77 = arith.addf %73, %76 : vector<32x32xf32>
    %78 = math.tanh %77 : vector<32x32xf32>
    %cst_29 = arith.constant 1.000000e+00 : f32
    %79 = vector.broadcast %cst_29 : f32 to vector<32x32xf32>
    %80 = arith.subf %79, %72 : vector<32x32xf32>
    %81 = arith.mulf %80, %78 : vector<32x32xf32>
    %82 = arith.mulf %72, %59 : vector<32x32xf32>
    %83 = arith.addf %81, %82 : vector<32x32xf32>
    %c64_30 = arith.constant 64 : index
    %c0_31 = arith.constant 0 : index
    %84 = vector.load %arg13[%c64_30, %c0_31] : memref<384x64xf32, #tpu.memory_space<vmem>>, vector<32x32xf32>
    tpu.vector_store %arg13[%c64_30, %c0_31], %83 {strides = array<i32>} : memref<384x64xf32, #tpu.memory_space<vmem>>, vector<32x32xf32>,
    %c96 = arith.constant 96 : index
    %c0_32 = arith.constant 0 : index
    %85 = vector.load %arg12[%c96, %c0_32] : memref<384x192xf32, #tpu.memory_space<vmem>>, vector<32x96xf32>
    %cst_33 = arith.constant dense<0.000000e+00> : vector<32x96xf32>
    %86 = tpu.matmul %83, %8, %cst_33 {dimension_numbers = #tpu.dot_dimension_numbers<[1], [0], [0], [1], [0, 0, 1, 1], [], []>} : vector<32x32xf32>, vector<32x96xf32>, vector<32x96xf32> -> vector<32x96xf32>
    %87 = vector.extract_strided_slice %85 {offsets = [0, 0], sizes = [32, 64], strides = [1, 1]} : vector<32x96xf32> to vector<32x64xf32>
    %88 = vector.extract_strided_slice %86 {offsets = [0, 0], sizes = [32, 64], strides = [1, 1]} : vector<32x96xf32> to vector<32x64xf32>
    %89 = arith.addf %87, %88 : vector<32x64xf32>
    %90 = arith.negf %89 : vector<32x64xf32>
    %91 = math.exp %90 : vector<32x64xf32>
    %cst_34 = arith.constant 1.000000e+00 : f32
    %92 = vector.broadcast %cst_34 : f32 to vector<32x64xf32>
    %93 = arith.addf %92, %91 : vector<32x64xf32>
    %94 = arith.divf %92, %93 : vector<32x64xf32>
    %95 = vector.extract_strided_slice %94 {offsets = [0, 0], sizes = [32, 32], strides = [1, 1]} : vector<32x64xf32> to vector<32x32xf32>
    %96 = vector.extract_strided_slice %94 {offsets = [0, 32], sizes = [32, 32], strides = [1, 1]} : vector<32x64xf32> to vector<32x32xf32>
    %97 = vector.extract_strided_slice %85 {offsets = [0, 64], sizes = [32, 32], strides = [1, 1]} : vector<32x96xf32> to vector<32x32xf32>
    %98 = vector.extract_strided_slice %86 {offsets = [0, 64], sizes = [32, 32], strides = [1, 1]} : vector<32x96xf32> to vector<32x32xf32>
    %99 = arith.addf %98, %11 : vector<32x32xf32>
    %100 = arith.mulf %95, %99 : vector<32x32xf32>
    %101 = arith.addf %97, %100 : vector<32x32xf32>
    %102 = math.tanh %101 : vector<32x32xf32>
    %cst_35 = arith.constant 1.000000e+00 : f32
    %103 = vector.broadcast %cst_35 : f32 to vector<32x32xf32>
    %104 = arith.subf %103, %96 : vector<32x32xf32>
    %105 = arith.mulf %104, %102 : vector<32x32xf32>
    %106 = arith.mulf %96, %83 : vector<32x32xf32>
    %107 = arith.addf %105, %106 : vector<32x32xf32>
    %c96_36 = arith.constant 96 : index
    %c0_37 = arith.constant 0 : index
    %108 = vector.load %arg13[%c96_36, %c0_37] : memref<384x64xf32, #tpu.memory_space<vmem>>, vector<32x32xf32>
    tpu.vector_store %arg13[%c96_36, %c0_37], %107 {strides = array<i32>} : memref<384x64xf32, #tpu.memory_space<vmem>>, vector<32x32xf32>,
    %c128 = arith.constant 128 : index
    %c0_38 = arith.constant 0 : index
    %109 = vector.load %arg12[%c128, %c0_38] : memref<384x192xf32, #tpu.memory_space<vmem>>, vector<32x96xf32>
    %cst_39 = arith.constant dense<0.000000e+00> : vector<32x96xf32>
    %110 = tpu.matmul %107, %8, %cst_39 {dimension_numbers = #tpu.dot_dimension_numbers<[1], [0], [0], [1], [0, 0, 1, 1], [], []>} : vector<32x32xf32>, vector<32x96xf32>, vector<32x96xf32> -> vector<32x96xf32>
    %111 = vector.extract_strided_slice %109 {offsets = [0, 0], sizes = [32, 64], strides = [1, 1]} : vector<32x96xf32> to vector<32x64xf32>
    %112 = vector.extract_strided_slice %110 {offsets = [0, 0], sizes = [32, 64], strides = [1, 1]} : vector<32x96xf32> to vector<32x64xf32>
    %113 = arith.addf %111, %112 : vector<32x64xf32>
    %114 = arith.negf %113 : vector<32x64xf32>
    %115 = math.exp %114 : vector<32x64xf32>
    %cst_40 = arith.constant 1.000000e+00 : f32
    %116 = vector.broadcast %cst_40 : f32 to vector<32x64xf32>
    %117 = arith.addf %116, %115 : vector<32x64xf32>
    %118 = arith.divf %116, %117 : vector<32x64xf32>
    %119 = vector.extract_strided_slice %118 {offsets = [0, 0], sizes = [32, 32], strides = [1, 1]} : vector<32x64xf32> to vector<32x32xf32>
    %120 = vector.extract_strided_slice %118 {offsets = [0, 32], sizes = [32, 32], strides = [1, 1]} : vector<32x64xf32> to vector<32x32xf32>
    %121 = vector.extract_strided_slice %109 {offsets = [0, 64], sizes = [32, 32], strides = [1, 1]} : vector<32x96xf32> to vector<32x32xf32>
    %122 = vector.extract_strided_slice %110 {offsets = [0, 64], sizes = [32, 32], strides = [1, 1]} : vector<32x96xf32> to vector<32x32xf32>
    %123 = arith.addf %122, %11 : vector<32x32xf32>
    %124 = arith.mulf %119, %123 : vector<32x32xf32>
    %125 = arith.addf %121, %124 : vector<32x32xf32>
    %126 = math.tanh %125 : vector<32x32xf32>
    %cst_41 = arith.constant 1.000000e+00 : f32
    %127 = vector.broadcast %cst_41 : f32 to vector<32x32xf32>
    %128 = arith.subf %127, %120 : vector<32x32xf32>
    %129 = arith.mulf %128, %126 : vector<32x32xf32>
    %130 = arith.mulf %120, %107 : vector<32x32xf32>
    %131 = arith.addf %129, %130 : vector<32x32xf32>
    %c128_42 = arith.constant 128 : index
    %c0_43 = arith.constant 0 : index
    %132 = vector.load %arg13[%c128_42, %c0_43] : memref<384x64xf32, #tpu.memory_space<vmem>>, vector<32x32xf32>
    tpu.vector_store %arg13[%c128_42, %c0_43], %131 {strides = array<i32>} : memref<384x64xf32, #tpu.memory_space<vmem>>, vector<32x32xf32>,
    %c160 = arith.constant 160 : index
    %c0_44 = arith.constant 0 : index
    %133 = vector.load %arg12[%c160, %c0_44] : memref<384x192xf32, #tpu.memory_space<vmem>>, vector<32x96xf32>
    %cst_45 = arith.constant dense<0.000000e+00> : vector<32x96xf32>
    %134 = tpu.matmul %131, %8, %cst_45 {dimension_numbers = #tpu.dot_dimension_numbers<[1], [0], [0], [1], [0, 0, 1, 1], [], []>} : vector<32x32xf32>, vector<32x96xf32>, vector<32x96xf32> -> vector<32x96xf32>
    %135 = vector.extract_strided_slice %133 {offsets = [0, 0], sizes = [32, 64], strides = [1, 1]} : vector<32x96xf32> to vector<32x64xf32>
    %136 = vector.extract_strided_slice %134 {offsets = [0, 0], sizes = [32, 64], strides = [1, 1]} : vector<32x96xf32> to vector<32x64xf32>
    %137 = arith.addf %135, %136 : vector<32x64xf32>
    %138 = arith.negf %137 : vector<32x64xf32>
    %139 = math.exp %138 : vector<32x64xf32>
    %cst_46 = arith.constant 1.000000e+00 : f32
    %140 = vector.broadcast %cst_46 : f32 to vector<32x64xf32>
    %141 = arith.addf %140, %139 : vector<32x64xf32>
    %142 = arith.divf %140, %141 : vector<32x64xf32>
    %143 = vector.extract_strided_slice %142 {offsets = [0, 0], sizes = [32, 32], strides = [1, 1]} : vector<32x64xf32> to vector<32x32xf32>
    %144 = vector.extract_strided_slice %142 {offsets = [0, 32], sizes = [32, 32], strides = [1, 1]} : vector<32x64xf32> to vector<32x32xf32>
    %145 = vector.extract_strided_slice %133 {offsets = [0, 64], sizes = [32, 32], strides = [1, 1]} : vector<32x96xf32> to vector<32x32xf32>
    %146 = vector.extract_strided_slice %134 {offsets = [0, 64], sizes = [32, 32], strides = [1, 1]} : vector<32x96xf32> to vector<32x32xf32>
    %147 = arith.addf %146, %11 : vector<32x32xf32>
    %148 = arith.mulf %143, %147 : vector<32x32xf32>
    %149 = arith.addf %145, %148 : vector<32x32xf32>
    %150 = math.tanh %149 : vector<32x32xf32>
    %cst_47 = arith.constant 1.000000e+00 : f32
    %151 = vector.broadcast %cst_47 : f32 to vector<32x32xf32>
    %152 = arith.subf %151, %144 : vector<32x32xf32>
    %153 = arith.mulf %152, %150 : vector<32x32xf32>
    %154 = arith.mulf %144, %131 : vector<32x32xf32>
    %155 = arith.addf %153, %154 : vector<32x32xf32>
    %c160_48 = arith.constant 160 : index
    %c0_49 = arith.constant 0 : index
    %156 = vector.load %arg13[%c160_48, %c0_49] : memref<384x64xf32, #tpu.memory_space<vmem>>, vector<32x32xf32>
    tpu.vector_store %arg13[%c160_48, %c0_49], %155 {strides = array<i32>} : memref<384x64xf32, #tpu.memory_space<vmem>>, vector<32x32xf32>,
    %c192 = arith.constant 192 : index
    %c0_50 = arith.constant 0 : index
    %157 = vector.load %arg12[%c192, %c0_50] : memref<384x192xf32, #tpu.memory_space<vmem>>, vector<32x96xf32>
    %cst_51 = arith.constant dense<0.000000e+00> : vector<32x96xf32>
    %158 = tpu.matmul %155, %8, %cst_51 {dimension_numbers = #tpu.dot_dimension_numbers<[1], [0], [0], [1], [0, 0, 1, 1], [], []>} : vector<32x32xf32>, vector<32x96xf32>, vector<32x96xf32> -> vector<32x96xf32>
    %159 = vector.extract_strided_slice %157 {offsets = [0, 0], sizes = [32, 64], strides = [1, 1]} : vector<32x96xf32> to vector<32x64xf32>
    %160 = vector.extract_strided_slice %158 {offsets = [0, 0], sizes = [32, 64], strides = [1, 1]} : vector<32x96xf32> to vector<32x64xf32>
    %161 = arith.addf %159, %160 : vector<32x64xf32>
    %162 = arith.negf %161 : vector<32x64xf32>
    %163 = math.exp %162 : vector<32x64xf32>
    %cst_52 = arith.constant 1.000000e+00 : f32
    %164 = vector.broadcast %cst_52 : f32 to vector<32x64xf32>
    %165 = arith.addf %164, %163 : vector<32x64xf32>
    %166 = arith.divf %164, %165 : vector<32x64xf32>
    %167 = vector.extract_strided_slice %166 {offsets = [0, 0], sizes = [32, 32], strides = [1, 1]} : vector<32x64xf32> to vector<32x32xf32>
    %168 = vector.extract_strided_slice %166 {offsets = [0, 32], sizes = [32, 32], strides = [1, 1]} : vector<32x64xf32> to vector<32x32xf32>
    %169 = vector.extract_strided_slice %157 {offsets = [0, 64], sizes = [32, 32], strides = [1, 1]} : vector<32x96xf32> to vector<32x32xf32>
    %170 = vector.extract_strided_slice %158 {offsets = [0, 64], sizes = [32, 32], strides = [1, 1]} : vector<32x96xf32> to vector<32x32xf32>
    %171 = arith.addf %170, %11 : vector<32x32xf32>
    %172 = arith.mulf %167, %171 : vector<32x32xf32>
    %173 = arith.addf %169, %172 : vector<32x32xf32>
    %174 = math.tanh %173 : vector<32x32xf32>
    %cst_53 = arith.constant 1.000000e+00 : f32
    %175 = vector.broadcast %cst_53 : f32 to vector<32x32xf32>
    %176 = arith.subf %175, %168 : vector<32x32xf32>
    %177 = arith.mulf %176, %174 : vector<32x32xf32>
    %178 = arith.mulf %168, %155 : vector<32x32xf32>
    %179 = arith.addf %177, %178 : vector<32x32xf32>
    %c192_54 = arith.constant 192 : index
    %c0_55 = arith.constant 0 : index
    %180 = vector.load %arg13[%c192_54, %c0_55] : memref<384x64xf32, #tpu.memory_space<vmem>>, vector<32x32xf32>
    tpu.vector_store %arg13[%c192_54, %c0_55], %179 {strides = array<i32>} : memref<384x64xf32, #tpu.memory_space<vmem>>, vector<32x32xf32>,
    %c224 = arith.constant 224 : index
    %c0_56 = arith.constant 0 : index
    %181 = vector.load %arg12[%c224, %c0_56] : memref<384x192xf32, #tpu.memory_space<vmem>>, vector<32x96xf32>
    %cst_57 = arith.constant dense<0.000000e+00> : vector<32x96xf32>
    %182 = tpu.matmul %179, %8, %cst_57 {dimension_numbers = #tpu.dot_dimension_numbers<[1], [0], [0], [1], [0, 0, 1, 1], [], []>} : vector<32x32xf32>, vector<32x96xf32>, vector<32x96xf32> -> vector<32x96xf32>
    %183 = vector.extract_strided_slice %181 {offsets = [0, 0], sizes = [32, 64], strides = [1, 1]} : vector<32x96xf32> to vector<32x64xf32>
    %184 = vector.extract_strided_slice %182 {offsets = [0, 0], sizes = [32, 64], strides = [1, 1]} : vector<32x96xf32> to vector<32x64xf32>
    %185 = arith.addf %183, %184 : vector<32x64xf32>
    %186 = arith.negf %185 : vector<32x64xf32>
    %187 = math.exp %186 : vector<32x64xf32>
    %cst_58 = arith.constant 1.000000e+00 : f32
    %188 = vector.broadcast %cst_58 : f32 to vector<32x64xf32>
    %189 = arith.addf %188, %187 : vector<32x64xf32>
    %190 = arith.divf %188, %189 : vector<32x64xf32>
    %191 = vector.extract_strided_slice %190 {offsets = [0, 0], sizes = [32, 32], strides = [1, 1]} : vector<32x64xf32> to vector<32x32xf32>
    %192 = vector.extract_strided_slice %190 {offsets = [0, 32], sizes = [32, 32], strides = [1, 1]} : vector<32x64xf32> to vector<32x32xf32>
    %193 = vector.extract_strided_slice %181 {offsets = [0, 64], sizes = [32, 32], strides = [1, 1]} : vector<32x96xf32> to vector<32x32xf32>
    %194 = vector.extract_strided_slice %182 {offsets = [0, 64], sizes = [32, 32], strides = [1, 1]} : vector<32x96xf32> to vector<32x32xf32>
    %195 = arith.addf %194, %11 : vector<32x32xf32>
    %196 = arith.mulf %191, %195 : vector<32x32xf32>
    %197 = arith.addf %193, %196 : vector<32x32xf32>
    %198 = math.tanh %197 : vector<32x32xf32>
    %cst_59 = arith.constant 1.000000e+00 : f32
    %199 = vector.broadcast %cst_59 : f32 to vector<32x32xf32>
    %200 = arith.subf %199, %192 : vector<32x32xf32>
    %201 = arith.mulf %200, %198 : vector<32x32xf32>
    %202 = arith.mulf %192, %179 : vector<32x32xf32>
    %203 = arith.addf %201, %202 : vector<32x32xf32>
    %c224_60 = arith.constant 224 : index
    %c0_61 = arith.constant 0 : index
    %204 = vector.load %arg13[%c224_60, %c0_61] : memref<384x64xf32, #tpu.memory_space<vmem>>, vector<32x32xf32>
    tpu.vector_store %arg13[%c224_60, %c0_61], %203 {strides = array<i32>} : memref<384x64xf32, #tpu.memory_space<vmem>>, vector<32x32xf32>,
    %c256 = arith.constant 256 : index
    %c0_62 = arith.constant 0 : index
    %205 = vector.load %arg12[%c256, %c0_62] : memref<384x192xf32, #tpu.memory_space<vmem>>, vector<32x96xf32>
    %cst_63 = arith.constant dense<0.000000e+00> : vector<32x96xf32>
    %206 = tpu.matmul %203, %8, %cst_63 {dimension_numbers = #tpu.dot_dimension_numbers<[1], [0], [0], [1], [0, 0, 1, 1], [], []>} : vector<32x32xf32>, vector<32x96xf32>, vector<32x96xf32> -> vector<32x96xf32>
    %207 = vector.extract_strided_slice %205 {offsets = [0, 0], sizes = [32, 64], strides = [1, 1]} : vector<32x96xf32> to vector<32x64xf32>
    %208 = vector.extract_strided_slice %206 {offsets = [0, 0], sizes = [32, 64], strides = [1, 1]} : vector<32x96xf32> to vector<32x64xf32>
    %209 = arith.addf %207, %208 : vector<32x64xf32>
    %210 = arith.negf %209 : vector<32x64xf32>
    %211 = math.exp %210 : vector<32x64xf32>
    %cst_64 = arith.constant 1.000000e+00 : f32
    %212 = vector.broadcast %cst_64 : f32 to vector<32x64xf32>
    %213 = arith.addf %212, %211 : vector<32x64xf32>
    %214 = arith.divf %212, %213 : vector<32x64xf32>
    %215 = vector.extract_strided_slice %214 {offsets = [0, 0], sizes = [32, 32], strides = [1, 1]} : vector<32x64xf32> to vector<32x32xf32>
    %216 = vector.extract_strided_slice %214 {offsets = [0, 32], sizes = [32, 32], strides = [1, 1]} : vector<32x64xf32> to vector<32x32xf32>
    %217 = vector.extract_strided_slice %205 {offsets = [0, 64], sizes = [32, 32], strides = [1, 1]} : vector<32x96xf32> to vector<32x32xf32>
    %218 = vector.extract_strided_slice %206 {offsets = [0, 64], sizes = [32, 32], strides = [1, 1]} : vector<32x96xf32> to vector<32x32xf32>
    %219 = arith.addf %218, %11 : vector<32x32xf32>
    %220 = arith.mulf %215, %219 : vector<32x32xf32>
    %221 = arith.addf %217, %220 : vector<32x32xf32>
    %222 = math.tanh %221 : vector<32x32xf32>
    %cst_65 = arith.constant 1.000000e+00 : f32
    %223 = vector.broadcast %cst_65 : f32 to vector<32x32xf32>
    %224 = arith.subf %223, %216 : vector<32x32xf32>
    %225 = arith.mulf %224, %222 : vector<32x32xf32>
    %226 = arith.mulf %216, %203 : vector<32x32xf32>
    %227 = arith.addf %225, %226 : vector<32x32xf32>
    %c256_66 = arith.constant 256 : index
    %c0_67 = arith.constant 0 : index
    %228 = vector.load %arg13[%c256_66, %c0_67] : memref<384x64xf32, #tpu.memory_space<vmem>>, vector<32x32xf32>
    tpu.vector_store %arg13[%c256_66, %c0_67], %227 {strides = array<i32>} : memref<384x64xf32, #tpu.memory_space<vmem>>, vector<32x32xf32>,
    %c288 = arith.constant 288 : index
    %c0_68 = arith.constant 0 : index
    %229 = vector.load %arg12[%c288, %c0_68] : memref<384x192xf32, #tpu.memory_space<vmem>>, vector<32x96xf32>
    %cst_69 = arith.constant dense<0.000000e+00> : vector<32x96xf32>
    %230 = tpu.matmul %227, %8, %cst_69 {dimension_numbers = #tpu.dot_dimension_numbers<[1], [0], [0], [1], [0, 0, 1, 1], [], []>} : vector<32x32xf32>, vector<32x96xf32>, vector<32x96xf32> -> vector<32x96xf32>
    %231 = vector.extract_strided_slice %229 {offsets = [0, 0], sizes = [32, 64], strides = [1, 1]} : vector<32x96xf32> to vector<32x64xf32>
    %232 = vector.extract_strided_slice %230 {offsets = [0, 0], sizes = [32, 64], strides = [1, 1]} : vector<32x96xf32> to vector<32x64xf32>
    %233 = arith.addf %231, %232 : vector<32x64xf32>
    %234 = arith.negf %233 : vector<32x64xf32>
    %235 = math.exp %234 : vector<32x64xf32>
    %cst_70 = arith.constant 1.000000e+00 : f32
    %236 = vector.broadcast %cst_70 : f32 to vector<32x64xf32>
    %237 = arith.addf %236, %235 : vector<32x64xf32>
    %238 = arith.divf %236, %237 : vector<32x64xf32>
    %239 = vector.extract_strided_slice %238 {offsets = [0, 0], sizes = [32, 32], strides = [1, 1]} : vector<32x64xf32> to vector<32x32xf32>
    %240 = vector.extract_strided_slice %238 {offsets = [0, 32], sizes = [32, 32], strides = [1, 1]} : vector<32x64xf32> to vector<32x32xf32>
    %241 = vector.extract_strided_slice %229 {offsets = [0, 64], sizes = [32, 32], strides = [1, 1]} : vector<32x96xf32> to vector<32x32xf32>
    %242 = vector.extract_strided_slice %230 {offsets = [0, 64], sizes = [32, 32], strides = [1, 1]} : vector<32x96xf32> to vector<32x32xf32>
    %243 = arith.addf %242, %11 : vector<32x32xf32>
    %244 = arith.mulf %239, %243 : vector<32x32xf32>
    %245 = arith.addf %241, %244 : vector<32x32xf32>
    %246 = math.tanh %245 : vector<32x32xf32>
    %cst_71 = arith.constant 1.000000e+00 : f32
    %247 = vector.broadcast %cst_71 : f32 to vector<32x32xf32>
    %248 = arith.subf %247, %240 : vector<32x32xf32>
    %249 = arith.mulf %248, %246 : vector<32x32xf32>
    %250 = arith.mulf %240, %227 : vector<32x32xf32>
    %251 = arith.addf %249, %250 : vector<32x32xf32>
    %c288_72 = arith.constant 288 : index
    %c0_73 = arith.constant 0 : index
    %252 = vector.load %arg13[%c288_72, %c0_73] : memref<384x64xf32, #tpu.memory_space<vmem>>, vector<32x32xf32>
    tpu.vector_store %arg13[%c288_72, %c0_73], %251 {strides = array<i32>} : memref<384x64xf32, #tpu.memory_space<vmem>>, vector<32x32xf32>,
    %c320 = arith.constant 320 : index
    %c0_74 = arith.constant 0 : index
    %253 = vector.load %arg12[%c320, %c0_74] : memref<384x192xf32, #tpu.memory_space<vmem>>, vector<32x96xf32>
    %cst_75 = arith.constant dense<0.000000e+00> : vector<32x96xf32>
    %254 = tpu.matmul %251, %8, %cst_75 {dimension_numbers = #tpu.dot_dimension_numbers<[1], [0], [0], [1], [0, 0, 1, 1], [], []>} : vector<32x32xf32>, vector<32x96xf32>, vector<32x96xf32> -> vector<32x96xf32>
    %255 = vector.extract_strided_slice %253 {offsets = [0, 0], sizes = [32, 64], strides = [1, 1]} : vector<32x96xf32> to vector<32x64xf32>
    %256 = vector.extract_strided_slice %254 {offsets = [0, 0], sizes = [32, 64], strides = [1, 1]} : vector<32x96xf32> to vector<32x64xf32>
    %257 = arith.addf %255, %256 : vector<32x64xf32>
    %258 = arith.negf %257 : vector<32x64xf32>
    %259 = math.exp %258 : vector<32x64xf32>
    %cst_76 = arith.constant 1.000000e+00 : f32
    %260 = vector.broadcast %cst_76 : f32 to vector<32x64xf32>
    %261 = arith.addf %260, %259 : vector<32x64xf32>
    %262 = arith.divf %260, %261 : vector<32x64xf32>
    %263 = vector.extract_strided_slice %262 {offsets = [0, 0], sizes = [32, 32], strides = [1, 1]} : vector<32x64xf32> to vector<32x32xf32>
    %264 = vector.extract_strided_slice %262 {offsets = [0, 32], sizes = [32, 32], strides = [1, 1]} : vector<32x64xf32> to vector<32x32xf32>
    %265 = vector.extract_strided_slice %253 {offsets = [0, 64], sizes = [32, 32], strides = [1, 1]} : vector<32x96xf32> to vector<32x32xf32>
    %266 = vector.extract_strided_slice %254 {offsets = [0, 64], sizes = [32, 32], strides = [1, 1]} : vector<32x96xf32> to vector<32x32xf32>
    %267 = arith.addf %266, %11 : vector<32x32xf32>
    %268 = arith.mulf %263, %267 : vector<32x32xf32>
    %269 = arith.addf %265, %268 : vector<32x32xf32>
    %270 = math.tanh %269 : vector<32x32xf32>
    %cst_77 = arith.constant 1.000000e+00 : f32
    %271 = vector.broadcast %cst_77 : f32 to vector<32x32xf32>
    %272 = arith.subf %271, %264 : vector<32x32xf32>
    %273 = arith.mulf %272, %270 : vector<32x32xf32>
    %274 = arith.mulf %264, %251 : vector<32x32xf32>
    %275 = arith.addf %273, %274 : vector<32x32xf32>
    %c320_78 = arith.constant 320 : index
    %c0_79 = arith.constant 0 : index
    %276 = vector.load %arg13[%c320_78, %c0_79] : memref<384x64xf32, #tpu.memory_space<vmem>>, vector<32x32xf32>
    tpu.vector_store %arg13[%c320_78, %c0_79], %275 {strides = array<i32>} : memref<384x64xf32, #tpu.memory_space<vmem>>, vector<32x32xf32>,
    %c352 = arith.constant 352 : index
    %c0_80 = arith.constant 0 : index
    %277 = vector.load %arg12[%c352, %c0_80] : memref<384x192xf32, #tpu.memory_space<vmem>>, vector<32x96xf32>
    %cst_81 = arith.constant dense<0.000000e+00> : vector<32x96xf32>
    %278 = tpu.matmul %275, %8, %cst_81 {dimension_numbers = #tpu.dot_dimension_numbers<[1], [0], [0], [1], [0, 0, 1, 1], [], []>} : vector<32x32xf32>, vector<32x96xf32>, vector<32x96xf32> -> vector<32x96xf32>
    %279 = vector.extract_strided_slice %277 {offsets = [0, 0], sizes = [32, 64], strides = [1, 1]} : vector<32x96xf32> to vector<32x64xf32>
    %280 = vector.extract_strided_slice %278 {offsets = [0, 0], sizes = [32, 64], strides = [1, 1]} : vector<32x96xf32> to vector<32x64xf32>
    %281 = arith.addf %279, %280 : vector<32x64xf32>
    %282 = arith.negf %281 : vector<32x64xf32>
    %283 = math.exp %282 : vector<32x64xf32>
    %cst_82 = arith.constant 1.000000e+00 : f32
    %284 = vector.broadcast %cst_82 : f32 to vector<32x64xf32>
    %285 = arith.addf %284, %283 : vector<32x64xf32>
    %286 = arith.divf %284, %285 : vector<32x64xf32>
    %287 = vector.extract_strided_slice %286 {offsets = [0, 0], sizes = [32, 32], strides = [1, 1]} : vector<32x64xf32> to vector<32x32xf32>
    %288 = vector.extract_strided_slice %286 {offsets = [0, 32], sizes = [32, 32], strides = [1, 1]} : vector<32x64xf32> to vector<32x32xf32>
    %289 = vector.extract_strided_slice %277 {offsets = [0, 64], sizes = [32, 32], strides = [1, 1]} : vector<32x96xf32> to vector<32x32xf32>
    %290 = vector.extract_strided_slice %278 {offsets = [0, 64], sizes = [32, 32], strides = [1, 1]} : vector<32x96xf32> to vector<32x32xf32>
    %291 = arith.addf %290, %11 : vector<32x32xf32>
    %292 = arith.mulf %287, %291 : vector<32x32xf32>
    %293 = arith.addf %289, %292 : vector<32x32xf32>
    %294 = math.tanh %293 : vector<32x32xf32>
    %cst_83 = arith.constant 1.000000e+00 : f32
    %295 = vector.broadcast %cst_83 : f32 to vector<32x32xf32>
    %296 = arith.subf %295, %288 : vector<32x32xf32>
    %297 = arith.mulf %296, %294 : vector<32x32xf32>
    %298 = arith.mulf %288, %275 : vector<32x32xf32>
    %299 = arith.addf %297, %298 : vector<32x32xf32>
    %c352_84 = arith.constant 352 : index
    %c0_85 = arith.constant 0 : index
    %300 = vector.load %arg13[%c352_84, %c0_85] : memref<384x64xf32, #tpu.memory_space<vmem>>, vector<32x32xf32>
    tpu.vector_store %arg13[%c352_84, %c0_85], %299 {strides = array<i32>} : memref<384x64xf32, #tpu.memory_space<vmem>>, vector<32x32xf32>,
    %c0_86 = arith.constant 0 : index
    %c0_87 = arith.constant 0 : index
    %301 = vector.load %arg5[%c0_86, %c0_87] : memref<32x96xf32, #tpu.memory_space<vmem>>, vector<32x96xf32>
    %c0_88 = arith.constant 0 : index
    %c0_89 = arith.constant 0 : index
    %302 = vector.load %arg7[%c0_88, %c0_89] : memref<1x32xf32, #tpu.memory_space<vmem>>, vector<1x32xf32>
    %303 = vector.shape_cast %302 : vector<1x32xf32> to vector<1x32xf32>
    %304 = vector.broadcast %303 : vector<1x32xf32> to vector<32x32xf32>
    %cst_90 = arith.constant 0.000000e+00 : f32
    %305 = vector.broadcast %cst_90 : f32 to vector<32x32xf32>
    %c352_91 = arith.constant 352 : index
    %c96_92 = arith.constant 96 : index
    %306 = vector.load %arg12[%c352_91, %c96_92] : memref<384x192xf32, #tpu.memory_space<vmem>>, vector<32x96xf32>
    %cst_93 = arith.constant dense<0.000000e+00> : vector<32x96xf32>
    %307 = tpu.matmul %305, %301, %cst_93 {dimension_numbers = #tpu.dot_dimension_numbers<[1], [0], [0], [1], [0, 0, 1, 1], [], []>} : vector<32x32xf32>, vector<32x96xf32>, vector<32x96xf32> -> vector<32x96xf32>
    %308 = vector.extract_strided_slice %306 {offsets = [0, 0], sizes = [32, 64], strides = [1, 1]} : vector<32x96xf32> to vector<32x64xf32>
    %309 = vector.extract_strided_slice %307 {offsets = [0, 0], sizes = [32, 64], strides = [1, 1]} : vector<32x96xf32> to vector<32x64xf32>
    %310 = arith.addf %308, %309 : vector<32x64xf32>
    %311 = arith.negf %310 : vector<32x64xf32>
    %312 = math.exp %311 : vector<32x64xf32>
    %cst_94 = arith.constant 1.000000e+00 : f32
    %313 = vector.broadcast %cst_94 : f32 to vector<32x64xf32>
    %314 = arith.addf %313, %312 : vector<32x64xf32>
    %315 = arith.divf %313, %314 : vector<32x64xf32>
    %316 = vector.extract_strided_slice %315 {offsets = [0, 0], sizes = [32, 32], strides = [1, 1]} : vector<32x64xf32> to vector<32x32xf32>
    %317 = vector.extract_strided_slice %315 {offsets = [0, 32], sizes = [32, 32], strides = [1, 1]} : vector<32x64xf32> to vector<32x32xf32>
    %318 = vector.extract_strided_slice %306 {offsets = [0, 64], sizes = [32, 32], strides = [1, 1]} : vector<32x96xf32> to vector<32x32xf32>
    %319 = vector.extract_strided_slice %307 {offsets = [0, 64], sizes = [32, 32], strides = [1, 1]} : vector<32x96xf32> to vector<32x32xf32>
    %320 = arith.addf %319, %304 : vector<32x32xf32>
    %321 = arith.mulf %316, %320 : vector<32x32xf32>
    %322 = arith.addf %318, %321 : vector<32x32xf32>
    %323 = math.tanh %322 : vector<32x32xf32>
    %cst_95 = arith.constant 1.000000e+00 : f32
    %324 = vector.broadcast %cst_95 : f32 to vector<32x32xf32>
    %325 = arith.subf %324, %317 : vector<32x32xf32>
    %326 = arith.mulf %325, %323 : vector<32x32xf32>
    %327 = arith.mulf %317, %305 : vector<32x32xf32>
    %328 = arith.addf %326, %327 : vector<32x32xf32>
    %c352_96 = arith.constant 352 : index
    %c32_97 = arith.constant 32 : index
    %329 = vector.load %arg13[%c352_96, %c32_97] : memref<384x64xf32, #tpu.memory_space<vmem>>, vector<32x32xf32>
    tpu.vector_store %arg13[%c352_96, %c32_97], %328 {strides = array<i32>} : memref<384x64xf32, #tpu.memory_space<vmem>>, vector<32x32xf32>,
    %c320_98 = arith.constant 320 : index
    %c96_99 = arith.constant 96 : index
    %330 = vector.load %arg12[%c320_98, %c96_99] : memref<384x192xf32, #tpu.memory_space<vmem>>, vector<32x96xf32>
    %cst_100 = arith.constant dense<0.000000e+00> : vector<32x96xf32>
    %331 = tpu.matmul %328, %301, %cst_100 {dimension_numbers = #tpu.dot_dimension_numbers<[1], [0], [0], [1], [0, 0, 1, 1], [], []>} : vector<32x32xf32>, vector<32x96xf32>, vector<32x96xf32> -> vector<32x96xf32>
    %332 = vector.extract_strided_slice %330 {offsets = [0, 0], sizes = [32, 64], strides = [1, 1]} : vector<32x96xf32> to vector<32x64xf32>
    %333 = vector.extract_strided_slice %331 {offsets = [0, 0], sizes = [32, 64], strides = [1, 1]} : vector<32x96xf32> to vector<32x64xf32>
    %334 = arith.addf %332, %333 : vector<32x64xf32>
    %335 = arith.negf %334 : vector<32x64xf32>
    %336 = math.exp %335 : vector<32x64xf32>
    %cst_101 = arith.constant 1.000000e+00 : f32
    %337 = vector.broadcast %cst_101 : f32 to vector<32x64xf32>
    %338 = arith.addf %337, %336 : vector<32x64xf32>
    %339 = arith.divf %337, %338 : vector<32x64xf32>
    %340 = vector.extract_strided_slice %339 {offsets = [0, 0], sizes = [32, 32], strides = [1, 1]} : vector<32x64xf32> to vector<32x32xf32>
    %341 = vector.extract_strided_slice %339 {offsets = [0, 32], sizes = [32, 32], strides = [1, 1]} : vector<32x64xf32> to vector<32x32xf32>
    %342 = vector.extract_strided_slice %330 {offsets = [0, 64], sizes = [32, 32], strides = [1, 1]} : vector<32x96xf32> to vector<32x32xf32>
    %343 = vector.extract_strided_slice %331 {offsets = [0, 64], sizes = [32, 32], strides = [1, 1]} : vector<32x96xf32> to vector<32x32xf32>
    %344 = arith.addf %343, %304 : vector<32x32xf32>
    %345 = arith.mulf %340, %344 : vector<32x32xf32>
    %346 = arith.addf %342, %345 : vector<32x32xf32>
    %347 = math.tanh %346 : vector<32x32xf32>
    %cst_102 = arith.constant 1.000000e+00 : f32
    %348 = vector.broadcast %cst_102 : f32 to vector<32x32xf32>
    %349 = arith.subf %348, %341 : vector<32x32xf32>
    %350 = arith.mulf %349, %347 : vector<32x32xf32>
    %351 = arith.mulf %341, %328 : vector<32x32xf32>
    %352 = arith.addf %350, %351 : vector<32x32xf32>
    %c320_103 = arith.constant 320 : index
    %c32_104 = arith.constant 32 : index
    %353 = vector.load %arg13[%c320_103, %c32_104] : memref<384x64xf32, #tpu.memory_space<vmem>>, vector<32x32xf32>
    tpu.vector_store %arg13[%c320_103, %c32_104], %352 {strides = array<i32>} : memref<384x64xf32, #tpu.memory_space<vmem>>, vector<32x32xf32>,
    %c288_105 = arith.constant 288 : index
    %c96_106 = arith.constant 96 : index
    %354 = vector.load %arg12[%c288_105, %c96_106] : memref<384x192xf32, #tpu.memory_space<vmem>>, vector<32x96xf32>
    %cst_107 = arith.constant dense<0.000000e+00> : vector<32x96xf32>
    %355 = tpu.matmul %352, %301, %cst_107 {dimension_numbers = #tpu.dot_dimension_numbers<[1], [0], [0], [1], [0, 0, 1, 1], [], []>} : vector<32x32xf32>, vector<32x96xf32>, vector<32x96xf32> -> vector<32x96xf32>
    %356 = vector.extract_strided_slice %354 {offsets = [0, 0], sizes = [32, 64], strides = [1, 1]} : vector<32x96xf32> to vector<32x64xf32>
    %357 = vector.extract_strided_slice %355 {offsets = [0, 0], sizes = [32, 64], strides = [1, 1]} : vector<32x96xf32> to vector<32x64xf32>
    %358 = arith.addf %356, %357 : vector<32x64xf32>
    %359 = arith.negf %358 : vector<32x64xf32>
    %360 = math.exp %359 : vector<32x64xf32>
    %cst_108 = arith.constant 1.000000e+00 : f32
    %361 = vector.broadcast %cst_108 : f32 to vector<32x64xf32>
    %362 = arith.addf %361, %360 : vector<32x64xf32>
    %363 = arith.divf %361, %362 : vector<32x64xf32>
    %364 = vector.extract_strided_slice %363 {offsets = [0, 0], sizes = [32, 32], strides = [1, 1]} : vector<32x64xf32> to vector<32x32xf32>
    %365 = vector.extract_strided_slice %363 {offsets = [0, 32], sizes = [32, 32], strides = [1, 1]} : vector<32x64xf32> to vector<32x32xf32>
    %366 = vector.extract_strided_slice %354 {offsets = [0, 64], sizes = [32, 32], strides = [1, 1]} : vector<32x96xf32> to vector<32x32xf32>
    %367 = vector.extract_strided_slice %355 {offsets = [0, 64], sizes = [32, 32], strides = [1, 1]} : vector<32x96xf32> to vector<32x32xf32>
    %368 = arith.addf %367, %304 : vector<32x32xf32>
    %369 = arith.mulf %364, %368 : vector<32x32xf32>
    %370 = arith.addf %366, %369 : vector<32x32xf32>
    %371 = math.tanh %370 : vector<32x32xf32>
    %cst_109 = arith.constant 1.000000e+00 : f32
    %372 = vector.broadcast %cst_109 : f32 to vector<32x32xf32>
    %373 = arith.subf %372, %365 : vector<32x32xf32>
    %374 = arith.mulf %373, %371 : vector<32x32xf32>
    %375 = arith.mulf %365, %352 : vector<32x32xf32>
    %376 = arith.addf %374, %375 : vector<32x32xf32>
    %c288_110 = arith.constant 288 : index
    %c32_111 = arith.constant 32 : index
    %377 = vector.load %arg13[%c288_110, %c32_111] : memref<384x64xf32, #tpu.memory_space<vmem>>, vector<32x32xf32>
    tpu.vector_store %arg13[%c288_110, %c32_111], %376 {strides = array<i32>} : memref<384x64xf32, #tpu.memory_space<vmem>>, vector<32x32xf32>,
    %c256_112 = arith.constant 256 : index
    %c96_113 = arith.constant 96 : index
    %378 = vector.load %arg12[%c256_112, %c96_113] : memref<384x192xf32, #tpu.memory_space<vmem>>, vector<32x96xf32>
    %cst_114 = arith.constant dense<0.000000e+00> : vector<32x96xf32>
    %379 = tpu.matmul %376, %301, %cst_114 {dimension_numbers = #tpu.dot_dimension_numbers<[1], [0], [0], [1], [0, 0, 1, 1], [], []>} : vector<32x32xf32>, vector<32x96xf32>, vector<32x96xf32> -> vector<32x96xf32>
    %380 = vector.extract_strided_slice %378 {offsets = [0, 0], sizes = [32, 64], strides = [1, 1]} : vector<32x96xf32> to vector<32x64xf32>
    %381 = vector.extract_strided_slice %379 {offsets = [0, 0], sizes = [32, 64], strides = [1, 1]} : vector<32x96xf32> to vector<32x64xf32>
    %382 = arith.addf %380, %381 : vector<32x64xf32>
    %383 = arith.negf %382 : vector<32x64xf32>
    %384 = math.exp %383 : vector<32x64xf32>
    %cst_115 = arith.constant 1.000000e+00 : f32
    %385 = vector.broadcast %cst_115 : f32 to vector<32x64xf32>
    %386 = arith.addf %385, %384 : vector<32x64xf32>
    %387 = arith.divf %385, %386 : vector<32x64xf32>
    %388 = vector.extract_strided_slice %387 {offsets = [0, 0], sizes = [32, 32], strides = [1, 1]} : vector<32x64xf32> to vector<32x32xf32>
    %389 = vector.extract_strided_slice %387 {offsets = [0, 32], sizes = [32, 32], strides = [1, 1]} : vector<32x64xf32> to vector<32x32xf32>
    %390 = vector.extract_strided_slice %378 {offsets = [0, 64], sizes = [32, 32], strides = [1, 1]} : vector<32x96xf32> to vector<32x32xf32>
    %391 = vector.extract_strided_slice %379 {offsets = [0, 64], sizes = [32, 32], strides = [1, 1]} : vector<32x96xf32> to vector<32x32xf32>
    %392 = arith.addf %391, %304 : vector<32x32xf32>
    %393 = arith.mulf %388, %392 : vector<32x32xf32>
    %394 = arith.addf %390, %393 : vector<32x32xf32>
    %395 = math.tanh %394 : vector<32x32xf32>
    %cst_116 = arith.constant 1.000000e+00 : f32
    %396 = vector.broadcast %cst_116 : f32 to vector<32x32xf32>
    %397 = arith.subf %396, %389 : vector<32x32xf32>
    %398 = arith.mulf %397, %395 : vector<32x32xf32>
    %399 = arith.mulf %389, %376 : vector<32x32xf32>
    %400 = arith.addf %398, %399 : vector<32x32xf32>
    %c256_117 = arith.constant 256 : index
    %c32_118 = arith.constant 32 : index
    %401 = vector.load %arg13[%c256_117, %c32_118] : memref<384x64xf32, #tpu.memory_space<vmem>>, vector<32x32xf32>
    tpu.vector_store %arg13[%c256_117, %c32_118], %400 {strides = array<i32>} : memref<384x64xf32, #tpu.memory_space<vmem>>, vector<32x32xf32>,
    %c224_119 = arith.constant 224 : index
    %c96_120 = arith.constant 96 : index
    %402 = vector.load %arg12[%c224_119, %c96_120] : memref<384x192xf32, #tpu.memory_space<vmem>>, vector<32x96xf32>
    %cst_121 = arith.constant dense<0.000000e+00> : vector<32x96xf32>
    %403 = tpu.matmul %400, %301, %cst_121 {dimension_numbers = #tpu.dot_dimension_numbers<[1], [0], [0], [1], [0, 0, 1, 1], [], []>} : vector<32x32xf32>, vector<32x96xf32>, vector<32x96xf32> -> vector<32x96xf32>
    %404 = vector.extract_strided_slice %402 {offsets = [0, 0], sizes = [32, 64], strides = [1, 1]} : vector<32x96xf32> to vector<32x64xf32>
    %405 = vector.extract_strided_slice %403 {offsets = [0, 0], sizes = [32, 64], strides = [1, 1]} : vector<32x96xf32> to vector<32x64xf32>
    %406 = arith.addf %404, %405 : vector<32x64xf32>
    %407 = arith.negf %406 : vector<32x64xf32>
    %408 = math.exp %407 : vector<32x64xf32>
    %cst_122 = arith.constant 1.000000e+00 : f32
    %409 = vector.broadcast %cst_122 : f32 to vector<32x64xf32>
    %410 = arith.addf %409, %408 : vector<32x64xf32>
    %411 = arith.divf %409, %410 : vector<32x64xf32>
    %412 = vector.extract_strided_slice %411 {offsets = [0, 0], sizes = [32, 32], strides = [1, 1]} : vector<32x64xf32> to vector<32x32xf32>
    %413 = vector.extract_strided_slice %411 {offsets = [0, 32], sizes = [32, 32], strides = [1, 1]} : vector<32x64xf32> to vector<32x32xf32>
    %414 = vector.extract_strided_slice %402 {offsets = [0, 64], sizes = [32, 32], strides = [1, 1]} : vector<32x96xf32> to vector<32x32xf32>
    %415 = vector.extract_strided_slice %403 {offsets = [0, 64], sizes = [32, 32], strides = [1, 1]} : vector<32x96xf32> to vector<32x32xf32>
    %416 = arith.addf %415, %304 : vector<32x32xf32>
    %417 = arith.mulf %412, %416 : vector<32x32xf32>
    %418 = arith.addf %414, %417 : vector<32x32xf32>
    %419 = math.tanh %418 : vector<32x32xf32>
    %cst_123 = arith.constant 1.000000e+00 : f32
    %420 = vector.broadcast %cst_123 : f32 to vector<32x32xf32>
    %421 = arith.subf %420, %413 : vector<32x32xf32>
    %422 = arith.mulf %421, %419 : vector<32x32xf32>
    %423 = arith.mulf %413, %400 : vector<32x32xf32>
    %424 = arith.addf %422, %423 : vector<32x32xf32>
    %c224_124 = arith.constant 224 : index
    %c32_125 = arith.constant 32 : index
    %425 = vector.load %arg13[%c224_124, %c32_125] : memref<384x64xf32, #tpu.memory_space<vmem>>, vector<32x32xf32>
    tpu.vector_store %arg13[%c224_124, %c32_125], %424 {strides = array<i32>} : memref<384x64xf32, #tpu.memory_space<vmem>>, vector<32x32xf32>,
    %c192_126 = arith.constant 192 : index
    %c96_127 = arith.constant 96 : index
    %426 = vector.load %arg12[%c192_126, %c96_127] : memref<384x192xf32, #tpu.memory_space<vmem>>, vector<32x96xf32>
    %cst_128 = arith.constant dense<0.000000e+00> : vector<32x96xf32>
    %427 = tpu.matmul %424, %301, %cst_128 {dimension_numbers = #tpu.dot_dimension_numbers<[1], [0], [0], [1], [0, 0, 1, 1], [], []>} : vector<32x32xf32>, vector<32x96xf32>, vector<32x96xf32> -> vector<32x96xf32>
    %428 = vector.extract_strided_slice %426 {offsets = [0, 0], sizes = [32, 64], strides = [1, 1]} : vector<32x96xf32> to vector<32x64xf32>
    %429 = vector.extract_strided_slice %427 {offsets = [0, 0], sizes = [32, 64], strides = [1, 1]} : vector<32x96xf32> to vector<32x64xf32>
    %430 = arith.addf %428, %429 : vector<32x64xf32>
    %431 = arith.negf %430 : vector<32x64xf32>
    %432 = math.exp %431 : vector<32x64xf32>
    %cst_129 = arith.constant 1.000000e+00 : f32
    %433 = vector.broadcast %cst_129 : f32 to vector<32x64xf32>
    %434 = arith.addf %433, %432 : vector<32x64xf32>
    %435 = arith.divf %433, %434 : vector<32x64xf32>
    %436 = vector.extract_strided_slice %435 {offsets = [0, 0], sizes = [32, 32], strides = [1, 1]} : vector<32x64xf32> to vector<32x32xf32>
    %437 = vector.extract_strided_slice %435 {offsets = [0, 32], sizes = [32, 32], strides = [1, 1]} : vector<32x64xf32> to vector<32x32xf32>
    %438 = vector.extract_strided_slice %426 {offsets = [0, 64], sizes = [32, 32], strides = [1, 1]} : vector<32x96xf32> to vector<32x32xf32>
    %439 = vector.extract_strided_slice %427 {offsets = [0, 64], sizes = [32, 32], strides = [1, 1]} : vector<32x96xf32> to vector<32x32xf32>
    %440 = arith.addf %439, %304 : vector<32x32xf32>
    %441 = arith.mulf %436, %440 : vector<32x32xf32>
    %442 = arith.addf %438, %441 : vector<32x32xf32>
    %443 = math.tanh %442 : vector<32x32xf32>
    %cst_130 = arith.constant 1.000000e+00 : f32
    %444 = vector.broadcast %cst_130 : f32 to vector<32x32xf32>
    %445 = arith.subf %444, %437 : vector<32x32xf32>
    %446 = arith.mulf %445, %443 : vector<32x32xf32>
    %447 = arith.mulf %437, %424 : vector<32x32xf32>
    %448 = arith.addf %446, %447 : vector<32x32xf32>
    %c192_131 = arith.constant 192 : index
    %c32_132 = arith.constant 32 : index
    %449 = vector.load %arg13[%c192_131, %c32_132] : memref<384x64xf32, #tpu.memory_space<vmem>>, vector<32x32xf32>
    tpu.vector_store %arg13[%c192_131, %c32_132], %448 {strides = array<i32>} : memref<384x64xf32, #tpu.memory_space<vmem>>, vector<32x32xf32>,
    %c160_133 = arith.constant 160 : index
    %c96_134 = arith.constant 96 : index
    %450 = vector.load %arg12[%c160_133, %c96_134] : memref<384x192xf32, #tpu.memory_space<vmem>>, vector<32x96xf32>
    %cst_135 = arith.constant dense<0.000000e+00> : vector<32x96xf32>
    %451 = tpu.matmul %448, %301, %cst_135 {dimension_numbers = #tpu.dot_dimension_numbers<[1], [0], [0], [1], [0, 0, 1, 1], [], []>} : vector<32x32xf32>, vector<32x96xf32>, vector<32x96xf32> -> vector<32x96xf32>
    %452 = vector.extract_strided_slice %450 {offsets = [0, 0], sizes = [32, 64], strides = [1, 1]} : vector<32x96xf32> to vector<32x64xf32>
    %453 = vector.extract_strided_slice %451 {offsets = [0, 0], sizes = [32, 64], strides = [1, 1]} : vector<32x96xf32> to vector<32x64xf32>
    %454 = arith.addf %452, %453 : vector<32x64xf32>
    %455 = arith.negf %454 : vector<32x64xf32>
    %456 = math.exp %455 : vector<32x64xf32>
    %cst_136 = arith.constant 1.000000e+00 : f32
    %457 = vector.broadcast %cst_136 : f32 to vector<32x64xf32>
    %458 = arith.addf %457, %456 : vector<32x64xf32>
    %459 = arith.divf %457, %458 : vector<32x64xf32>
    %460 = vector.extract_strided_slice %459 {offsets = [0, 0], sizes = [32, 32], strides = [1, 1]} : vector<32x64xf32> to vector<32x32xf32>
    %461 = vector.extract_strided_slice %459 {offsets = [0, 32], sizes = [32, 32], strides = [1, 1]} : vector<32x64xf32> to vector<32x32xf32>
    %462 = vector.extract_strided_slice %450 {offsets = [0, 64], sizes = [32, 32], strides = [1, 1]} : vector<32x96xf32> to vector<32x32xf32>
    %463 = vector.extract_strided_slice %451 {offsets = [0, 64], sizes = [32, 32], strides = [1, 1]} : vector<32x96xf32> to vector<32x32xf32>
    %464 = arith.addf %463, %304 : vector<32x32xf32>
    %465 = arith.mulf %460, %464 : vector<32x32xf32>
    %466 = arith.addf %462, %465 : vector<32x32xf32>
    %467 = math.tanh %466 : vector<32x32xf32>
    %cst_137 = arith.constant 1.000000e+00 : f32
    %468 = vector.broadcast %cst_137 : f32 to vector<32x32xf32>
    %469 = arith.subf %468, %461 : vector<32x32xf32>
    %470 = arith.mulf %469, %467 : vector<32x32xf32>
    %471 = arith.mulf %461, %448 : vector<32x32xf32>
    %472 = arith.addf %470, %471 : vector<32x32xf32>
    %c160_138 = arith.constant 160 : index
    %c32_139 = arith.constant 32 : index
    %473 = vector.load %arg13[%c160_138, %c32_139] : memref<384x64xf32, #tpu.memory_space<vmem>>, vector<32x32xf32>
    tpu.vector_store %arg13[%c160_138, %c32_139], %472 {strides = array<i32>} : memref<384x64xf32, #tpu.memory_space<vmem>>, vector<32x32xf32>,
    %c128_140 = arith.constant 128 : index
    %c96_141 = arith.constant 96 : index
    %474 = vector.load %arg12[%c128_140, %c96_141] : memref<384x192xf32, #tpu.memory_space<vmem>>, vector<32x96xf32>
    %cst_142 = arith.constant dense<0.000000e+00> : vector<32x96xf32>
    %475 = tpu.matmul %472, %301, %cst_142 {dimension_numbers = #tpu.dot_dimension_numbers<[1], [0], [0], [1], [0, 0, 1, 1], [], []>} : vector<32x32xf32>, vector<32x96xf32>, vector<32x96xf32> -> vector<32x96xf32>
    %476 = vector.extract_strided_slice %474 {offsets = [0, 0], sizes = [32, 64], strides = [1, 1]} : vector<32x96xf32> to vector<32x64xf32>
    %477 = vector.extract_strided_slice %475 {offsets = [0, 0], sizes = [32, 64], strides = [1, 1]} : vector<32x96xf32> to vector<32x64xf32>
    %478 = arith.addf %476, %477 : vector<32x64xf32>
    %479 = arith.negf %478 : vector<32x64xf32>
    %480 = math.exp %479 : vector<32x64xf32>
    %cst_143 = arith.constant 1.000000e+00 : f32
    %481 = vector.broadcast %cst_143 : f32 to vector<32x64xf32>
    %482 = arith.addf %481, %480 : vector<32x64xf32>
    %483 = arith.divf %481, %482 : vector<32x64xf32>
    %484 = vector.extract_strided_slice %483 {offsets = [0, 0], sizes = [32, 32], strides = [1, 1]} : vector<32x64xf32> to vector<32x32xf32>
    %485 = vector.extract_strided_slice %483 {offsets = [0, 32], sizes = [32, 32], strides = [1, 1]} : vector<32x64xf32> to vector<32x32xf32>
    %486 = vector.extract_strided_slice %474 {offsets = [0, 64], sizes = [32, 32], strides = [1, 1]} : vector<32x96xf32> to vector<32x32xf32>
    %487 = vector.extract_strided_slice %475 {offsets = [0, 64], sizes = [32, 32], strides = [1, 1]} : vector<32x96xf32> to vector<32x32xf32>
    %488 = arith.addf %487, %304 : vector<32x32xf32>
    %489 = arith.mulf %484, %488 : vector<32x32xf32>
    %490 = arith.addf %486, %489 : vector<32x32xf32>
    %491 = math.tanh %490 : vector<32x32xf32>
    %cst_144 = arith.constant 1.000000e+00 : f32
    %492 = vector.broadcast %cst_144 : f32 to vector<32x32xf32>
    %493 = arith.subf %492, %485 : vector<32x32xf32>
    %494 = arith.mulf %493, %491 : vector<32x32xf32>
    %495 = arith.mulf %485, %472 : vector<32x32xf32>
    %496 = arith.addf %494, %495 : vector<32x32xf32>
    %c128_145 = arith.constant 128 : index
    %c32_146 = arith.constant 32 : index
    %497 = vector.load %arg13[%c128_145, %c32_146] : memref<384x64xf32, #tpu.memory_space<vmem>>, vector<32x32xf32>
    tpu.vector_store %arg13[%c128_145, %c32_146], %496 {strides = array<i32>} : memref<384x64xf32, #tpu.memory_space<vmem>>, vector<32x32xf32>,
    %c96_147 = arith.constant 96 : index
    %c96_148 = arith.constant 96 : index
    %498 = vector.load %arg12[%c96_147, %c96_148] : memref<384x192xf32, #tpu.memory_space<vmem>>, vector<32x96xf32>
    %cst_149 = arith.constant dense<0.000000e+00> : vector<32x96xf32>
    %499 = tpu.matmul %496, %301, %cst_149 {dimension_numbers = #tpu.dot_dimension_numbers<[1], [0], [0], [1], [0, 0, 1, 1], [], []>} : vector<32x32xf32>, vector<32x96xf32>, vector<32x96xf32> -> vector<32x96xf32>
    %500 = vector.extract_strided_slice %498 {offsets = [0, 0], sizes = [32, 64], strides = [1, 1]} : vector<32x96xf32> to vector<32x64xf32>
    %501 = vector.extract_strided_slice %499 {offsets = [0, 0], sizes = [32, 64], strides = [1, 1]} : vector<32x96xf32> to vector<32x64xf32>
    %502 = arith.addf %500, %501 : vector<32x64xf32>
    %503 = arith.negf %502 : vector<32x64xf32>
    %504 = math.exp %503 : vector<32x64xf32>
    %cst_150 = arith.constant 1.000000e+00 : f32
    %505 = vector.broadcast %cst_150 : f32 to vector<32x64xf32>
    %506 = arith.addf %505, %504 : vector<32x64xf32>
    %507 = arith.divf %505, %506 : vector<32x64xf32>
    %508 = vector.extract_strided_slice %507 {offsets = [0, 0], sizes = [32, 32], strides = [1, 1]} : vector<32x64xf32> to vector<32x32xf32>
    %509 = vector.extract_strided_slice %507 {offsets = [0, 32], sizes = [32, 32], strides = [1, 1]} : vector<32x64xf32> to vector<32x32xf32>
    %510 = vector.extract_strided_slice %498 {offsets = [0, 64], sizes = [32, 32], strides = [1, 1]} : vector<32x96xf32> to vector<32x32xf32>
    %511 = vector.extract_strided_slice %499 {offsets = [0, 64], sizes = [32, 32], strides = [1, 1]} : vector<32x96xf32> to vector<32x32xf32>
    %512 = arith.addf %511, %304 : vector<32x32xf32>
    %513 = arith.mulf %508, %512 : vector<32x32xf32>
    %514 = arith.addf %510, %513 : vector<32x32xf32>
    %515 = math.tanh %514 : vector<32x32xf32>
    %cst_151 = arith.constant 1.000000e+00 : f32
    %516 = vector.broadcast %cst_151 : f32 to vector<32x32xf32>
    %517 = arith.subf %516, %509 : vector<32x32xf32>
    %518 = arith.mulf %517, %515 : vector<32x32xf32>
    %519 = arith.mulf %509, %496 : vector<32x32xf32>
    %520 = arith.addf %518, %519 : vector<32x32xf32>
    %c96_152 = arith.constant 96 : index
    %c32_153 = arith.constant 32 : index
    %521 = vector.load %arg13[%c96_152, %c32_153] : memref<384x64xf32, #tpu.memory_space<vmem>>, vector<32x32xf32>
    tpu.vector_store %arg13[%c96_152, %c32_153], %520 {strides = array<i32>} : memref<384x64xf32, #tpu.memory_space<vmem>>, vector<32x32xf32>,
    %c64_154 = arith.constant 64 : index
    %c96_155 = arith.constant 96 : index
    %522 = vector.load %arg12[%c64_154, %c96_155] : memref<384x192xf32, #tpu.memory_space<vmem>>, vector<32x96xf32>
    %cst_156 = arith.constant dense<0.000000e+00> : vector<32x96xf32>
    %523 = tpu.matmul %520, %301, %cst_156 {dimension_numbers = #tpu.dot_dimension_numbers<[1], [0], [0], [1], [0, 0, 1, 1], [], []>} : vector<32x32xf32>, vector<32x96xf32>, vector<32x96xf32> -> vector<32x96xf32>
    %524 = vector.extract_strided_slice %522 {offsets = [0, 0], sizes = [32, 64], strides = [1, 1]} : vector<32x96xf32> to vector<32x64xf32>
    %525 = vector.extract_strided_slice %523 {offsets = [0, 0], sizes = [32, 64], strides = [1, 1]} : vector<32x96xf32> to vector<32x64xf32>
    %526 = arith.addf %524, %525 : vector<32x64xf32>
    %527 = arith.negf %526 : vector<32x64xf32>
    %528 = math.exp %527 : vector<32x64xf32>
    %cst_157 = arith.constant 1.000000e+00 : f32
    %529 = vector.broadcast %cst_157 : f32 to vector<32x64xf32>
    %530 = arith.addf %529, %528 : vector<32x64xf32>
    %531 = arith.divf %529, %530 : vector<32x64xf32>
    %532 = vector.extract_strided_slice %531 {offsets = [0, 0], sizes = [32, 32], strides = [1, 1]} : vector<32x64xf32> to vector<32x32xf32>
    %533 = vector.extract_strided_slice %531 {offsets = [0, 32], sizes = [32, 32], strides = [1, 1]} : vector<32x64xf32> to vector<32x32xf32>
    %534 = vector.extract_strided_slice %522 {offsets = [0, 64], sizes = [32, 32], strides = [1, 1]} : vector<32x96xf32> to vector<32x32xf32>
    %535 = vector.extract_strided_slice %523 {offsets = [0, 64], sizes = [32, 32], strides = [1, 1]} : vector<32x96xf32> to vector<32x32xf32>
    %536 = arith.addf %535, %304 : vector<32x32xf32>
    %537 = arith.mulf %532, %536 : vector<32x32xf32>
    %538 = arith.addf %534, %537 : vector<32x32xf32>
    %539 = math.tanh %538 : vector<32x32xf32>
    %cst_158 = arith.constant 1.000000e+00 : f32
    %540 = vector.broadcast %cst_158 : f32 to vector<32x32xf32>
    %541 = arith.subf %540, %533 : vector<32x32xf32>
    %542 = arith.mulf %541, %539 : vector<32x32xf32>
    %543 = arith.mulf %533, %520 : vector<32x32xf32>
    %544 = arith.addf %542, %543 : vector<32x32xf32>
    %c64_159 = arith.constant 64 : index
    %c32_160 = arith.constant 32 : index
    %545 = vector.load %arg13[%c64_159, %c32_160] : memref<384x64xf32, #tpu.memory_space<vmem>>, vector<32x32xf32>
    tpu.vector_store %arg13[%c64_159, %c32_160], %544 {strides = array<i32>} : memref<384x64xf32, #tpu.memory_space<vmem>>, vector<32x32xf32>,
    %c32_161 = arith.constant 32 : index
    %c96_162 = arith.constant 96 : index
    %546 = vector.load %arg12[%c32_161, %c96_162] : memref<384x192xf32, #tpu.memory_space<vmem>>, vector<32x96xf32>
    %cst_163 = arith.constant dense<0.000000e+00> : vector<32x96xf32>
    %547 = tpu.matmul %544, %301, %cst_163 {dimension_numbers = #tpu.dot_dimension_numbers<[1], [0], [0], [1], [0, 0, 1, 1], [], []>} : vector<32x32xf32>, vector<32x96xf32>, vector<32x96xf32> -> vector<32x96xf32>
    %548 = vector.extract_strided_slice %546 {offsets = [0, 0], sizes = [32, 64], strides = [1, 1]} : vector<32x96xf32> to vector<32x64xf32>
    %549 = vector.extract_strided_slice %547 {offsets = [0, 0], sizes = [32, 64], strides = [1, 1]} : vector<32x96xf32> to vector<32x64xf32>
    %550 = arith.addf %548, %549 : vector<32x64xf32>
    %551 = arith.negf %550 : vector<32x64xf32>
    %552 = math.exp %551 : vector<32x64xf32>
    %cst_164 = arith.constant 1.000000e+00 : f32
    %553 = vector.broadcast %cst_164 : f32 to vector<32x64xf32>
    %554 = arith.addf %553, %552 : vector<32x64xf32>
    %555 = arith.divf %553, %554 : vector<32x64xf32>
    %556 = vector.extract_strided_slice %555 {offsets = [0, 0], sizes = [32, 32], strides = [1, 1]} : vector<32x64xf32> to vector<32x32xf32>
    %557 = vector.extract_strided_slice %555 {offsets = [0, 32], sizes = [32, 32], strides = [1, 1]} : vector<32x64xf32> to vector<32x32xf32>
    %558 = vector.extract_strided_slice %546 {offsets = [0, 64], sizes = [32, 32], strides = [1, 1]} : vector<32x96xf32> to vector<32x32xf32>
    %559 = vector.extract_strided_slice %547 {offsets = [0, 64], sizes = [32, 32], strides = [1, 1]} : vector<32x96xf32> to vector<32x32xf32>
    %560 = arith.addf %559, %304 : vector<32x32xf32>
    %561 = arith.mulf %556, %560 : vector<32x32xf32>
    %562 = arith.addf %558, %561 : vector<32x32xf32>
    %563 = math.tanh %562 : vector<32x32xf32>
    %cst_165 = arith.constant 1.000000e+00 : f32
    %564 = vector.broadcast %cst_165 : f32 to vector<32x32xf32>
    %565 = arith.subf %564, %557 : vector<32x32xf32>
    %566 = arith.mulf %565, %563 : vector<32x32xf32>
    %567 = arith.mulf %557, %544 : vector<32x32xf32>
    %568 = arith.addf %566, %567 : vector<32x32xf32>
    %c32_166 = arith.constant 32 : index
    %c32_167 = arith.constant 32 : index
    %569 = vector.load %arg13[%c32_166, %c32_167] : memref<384x64xf32, #tpu.memory_space<vmem>>, vector<32x32xf32>
    tpu.vector_store %arg13[%c32_166, %c32_167], %568 {strides = array<i32>} : memref<384x64xf32, #tpu.memory_space<vmem>>, vector<32x32xf32>,
    %c0_168 = arith.constant 0 : index
    %c96_169 = arith.constant 96 : index
    %570 = vector.load %arg12[%c0_168, %c96_169] : memref<384x192xf32, #tpu.memory_space<vmem>>, vector<32x96xf32>
    %cst_170 = arith.constant dense<0.000000e+00> : vector<32x96xf32>
    %571 = tpu.matmul %568, %301, %cst_170 {dimension_numbers = #tpu.dot_dimension_numbers<[1], [0], [0], [1], [0, 0, 1, 1], [], []>} : vector<32x32xf32>, vector<32x96xf32>, vector<32x96xf32> -> vector<32x96xf32>
    %572 = vector.extract_strided_slice %570 {offsets = [0, 0], sizes = [32, 64], strides = [1, 1]} : vector<32x96xf32> to vector<32x64xf32>
    %573 = vector.extract_strided_slice %571 {offsets = [0, 0], sizes = [32, 64], strides = [1, 1]} : vector<32x96xf32> to vector<32x64xf32>
    %574 = arith.addf %572, %573 : vector<32x64xf32>
    %575 = arith.negf %574 : vector<32x64xf32>
    %576 = math.exp %575 : vector<32x64xf32>
    %cst_171 = arith.constant 1.000000e+00 : f32
    %577 = vector.broadcast %cst_171 : f32 to vector<32x64xf32>
    %578 = arith.addf %577, %576 : vector<32x64xf32>
    %579 = arith.divf %577, %578 : vector<32x64xf32>
    %580 = vector.extract_strided_slice %579 {offsets = [0, 0], sizes = [32, 32], strides = [1, 1]} : vector<32x64xf32> to vector<32x32xf32>
    %581 = vector.extract_strided_slice %579 {offsets = [0, 32], sizes = [32, 32], strides = [1, 1]} : vector<32x64xf32> to vector<32x32xf32>
    %582 = vector.extract_strided_slice %570 {offsets = [0, 64], sizes = [32, 32], strides = [1, 1]} : vector<32x96xf32> to vector<32x32xf32>
    %583 = vector.extract_strided_slice %571 {offsets = [0, 64], sizes = [32, 32], strides = [1, 1]} : vector<32x96xf32> to vector<32x32xf32>
    %584 = arith.addf %583, %304 : vector<32x32xf32>
    %585 = arith.mulf %580, %584 : vector<32x32xf32>
    %586 = arith.addf %582, %585 : vector<32x32xf32>
    %587 = math.tanh %586 : vector<32x32xf32>
    %cst_172 = arith.constant 1.000000e+00 : f32
    %588 = vector.broadcast %cst_172 : f32 to vector<32x32xf32>
    %589 = arith.subf %588, %581 : vector<32x32xf32>
    %590 = arith.mulf %589, %587 : vector<32x32xf32>
    %591 = arith.mulf %581, %568 : vector<32x32xf32>
    %592 = arith.addf %590, %591 : vector<32x32xf32>
    %c0_173 = arith.constant 0 : index
    %c32_174 = arith.constant 32 : index
    %593 = vector.load %arg13[%c0_173, %c32_174] : memref<384x64xf32, #tpu.memory_space<vmem>>, vector<32x32xf32>
    tpu.vector_store %arg13[%c0_173, %c32_174], %592 {strides = array<i32>} : memref<384x64xf32, #tpu.memory_space<vmem>>, vector<32x32xf32>,
    %c0_175 = arith.constant 0 : index
    %c0_176 = arith.constant 0 : index
    %594 = vector.load %arg8[%c0_175, %c0_176] : memref<64x64xbf16, #tpu.memory_space<vmem>>, vector<64x64xbf16>
    %c0_177 = arith.constant 0 : index
    %c0_178 = arith.constant 0 : index
    %595 = vector.load %arg9[%c0_177, %c0_178] : memref<1x64xf32, #tpu.memory_space<vmem>>, vector<1x64xf32>
    %c0_179 = arith.constant 0 : index
    %c0_180 = arith.constant 0 : index
    %596 = vector.load %arg10[%c0_179, %c0_180] : memref<1x64xf32, #tpu.memory_space<vmem>>, vector<1x64xf32>
    %c0_181 = arith.constant 0 : index
    %c0_182 = arith.constant 0 : index
    %597 = vector.load %arg13[%c0_181, %c0_182] : memref<384x64xf32, #tpu.memory_space<vmem>>, vector<384x64xf32>
    %598 = arith.truncf %597 : vector<384x64xf32> to vector<384x64xbf16>
    %cst_183 = arith.constant dense<0.000000e+00> : vector<384x64xf32>
    %599 = tpu.matmul %598, %594, %cst_183 {dimension_numbers = #tpu.dot_dimension_numbers<[1], [0], [0], [1], [0, 0, 1, 1], [], []>} : vector<384x64xbf16>, vector<64x64xbf16>, vector<384x64xf32> -> vector<384x64xf32>
    %600 = vector.broadcast %595 : vector<1x64xf32> to vector<384x64xf32>
    %601 = arith.addf %599, %600 : vector<384x64xf32>
    %602 = math.tanh %601 : vector<384x64xf32>
    %603 = vector.broadcast %596 : vector<1x64xf32> to vector<384x64xf32>
    %604 = arith.mulf %602, %603 : vector<384x64xf32>
    %cst_184 = arith.constant dense<0.000000e+00> : vector<384xf32>
    %605 = vector.multi_reduction <add>, %604, %cst_184 [1] : vector<384x64xf32> to vector<384xf32>
    %606 = vector.shape_cast %605 : vector<384xf32> to vector<384x1xf32>
    %607 = vector.extract_strided_slice %606 {offsets = [0, 0], sizes = [32, 1], strides = [1, 1]} : vector<384x1xf32> to vector<32x1xf32>
    %608 = vector.extract_strided_slice %606 {offsets = [32, 0], sizes = [32, 1], strides = [1, 1]} : vector<384x1xf32> to vector<32x1xf32>
    %609 = vector.extract_strided_slice %606 {offsets = [64, 0], sizes = [32, 1], strides = [1, 1]} : vector<384x1xf32> to vector<32x1xf32>
    %610 = vector.extract_strided_slice %606 {offsets = [96, 0], sizes = [32, 1], strides = [1, 1]} : vector<384x1xf32> to vector<32x1xf32>
    %611 = vector.extract_strided_slice %606 {offsets = [128, 0], sizes = [32, 1], strides = [1, 1]} : vector<384x1xf32> to vector<32x1xf32>
    %612 = vector.extract_strided_slice %606 {offsets = [160, 0], sizes = [32, 1], strides = [1, 1]} : vector<384x1xf32> to vector<32x1xf32>
    %613 = vector.extract_strided_slice %606 {offsets = [192, 0], sizes = [32, 1], strides = [1, 1]} : vector<384x1xf32> to vector<32x1xf32>
    %614 = vector.extract_strided_slice %606 {offsets = [224, 0], sizes = [32, 1], strides = [1, 1]} : vector<384x1xf32> to vector<32x1xf32>
    %615 = vector.extract_strided_slice %606 {offsets = [256, 0], sizes = [32, 1], strides = [1, 1]} : vector<384x1xf32> to vector<32x1xf32>
    %616 = vector.extract_strided_slice %606 {offsets = [288, 0], sizes = [32, 1], strides = [1, 1]} : vector<384x1xf32> to vector<32x1xf32>
    %617 = vector.extract_strided_slice %606 {offsets = [320, 0], sizes = [32, 1], strides = [1, 1]} : vector<384x1xf32> to vector<32x1xf32>
    %618 = vector.extract_strided_slice %606 {offsets = [352, 0], sizes = [32, 1], strides = [1, 1]} : vector<384x1xf32> to vector<32x1xf32>
    %619 = tpu.concatenate %607, %608, %609, %610, %611, %612, %613, %614, %615, %616, %617, %618 in 1 : vector<32x1xf32>, vector<32x1xf32>, vector<32x1xf32>, vector<32x1xf32>, vector<32x1xf32>, vector<32x1xf32>, vector<32x1xf32>, vector<32x1xf32>, vector<32x1xf32>, vector<32x1xf32>, vector<32x1xf32>, vector<32x1xf32> -> vector<32x12xf32>
    %620 = math.tanh %619 : vector<32x12xf32>
    %cst_185 = arith.constant dense<0xFF800000> : vector<32xf32>
    %621 = vector.multi_reduction <maximumf>, %620, %cst_185 [1] : vector<32x12xf32> to vector<32xf32>
    %622 = vector.shape_cast %621 : vector<32xf32> to vector<32x1xf32>
    %623 = vector.broadcast %622 : vector<32x1xf32> to vector<32x12xf32>
    %624 = arith.subf %620, %623 : vector<32x12xf32>
    %625 = math.exp %624 : vector<32x12xf32>
    %cst_186 = arith.constant dense<0.000000e+00> : vector<32xf32>
    %626 = vector.multi_reduction <add>, %625, %cst_186 [1] : vector<32x12xf32> to vector<32xf32>
    %627 = vector.shape_cast %626 : vector<32xf32> to vector<32x1xf32>
    %628 = tpu.reciprocal %627 {approx = true} : vector<32x1xf32> -> vector<32x1xf32>
    %629 = vector.broadcast %628 : vector<32x1xf32> to vector<32x12xf32>
    %630 = arith.mulf %625, %629 : vector<32x12xf32>
    %cst_187 = arith.constant 0.000000e+00 : f32
    %631 = vector.broadcast %cst_187 : f32 to vector<32x64xf32>
    %632 = vector.extract_strided_slice %630 {offsets = [0, 0], sizes = [32, 1], strides = [1, 1]} : vector<32x12xf32> to vector<32x1xf32>
    %633 = vector.extract_strided_slice %597 {offsets = [0, 0], sizes = [32, 64], strides = [1, 1]} : vector<384x64xf32> to vector<32x64xf32>
    %634 = vector.broadcast %632 : vector<32x1xf32> to vector<32x64xf32>
    %635 = arith.mulf %634, %633 : vector<32x64xf32>
    %636 = arith.addf %631, %635 : vector<32x64xf32>
    %637 = vector.extract_strided_slice %630 {offsets = [0, 1], sizes = [32, 1], strides = [1, 1]} : vector<32x12xf32> to vector<32x1xf32>
    %638 = vector.extract_strided_slice %597 {offsets = [32, 0], sizes = [32, 64], strides = [1, 1]} : vector<384x64xf32> to vector<32x64xf32>
    %639 = vector.broadcast %637 : vector<32x1xf32> to vector<32x64xf32>
    %640 = arith.mulf %639, %638 : vector<32x64xf32>
    %641 = arith.addf %636, %640 : vector<32x64xf32>
    %642 = vector.extract_strided_slice %630 {offsets = [0, 2], sizes = [32, 1], strides = [1, 1]} : vector<32x12xf32> to vector<32x1xf32>
    %643 = vector.extract_strided_slice %597 {offsets = [64, 0], sizes = [32, 64], strides = [1, 1]} : vector<384x64xf32> to vector<32x64xf32>
    %644 = vector.broadcast %642 : vector<32x1xf32> to vector<32x64xf32>
    %645 = arith.mulf %644, %643 : vector<32x64xf32>
    %646 = arith.addf %641, %645 : vector<32x64xf32>
    %647 = vector.extract_strided_slice %630 {offsets = [0, 3], sizes = [32, 1], strides = [1, 1]} : vector<32x12xf32> to vector<32x1xf32>
    %648 = vector.extract_strided_slice %597 {offsets = [96, 0], sizes = [32, 64], strides = [1, 1]} : vector<384x64xf32> to vector<32x64xf32>
    %649 = vector.broadcast %647 : vector<32x1xf32> to vector<32x64xf32>
    %650 = arith.mulf %649, %648 : vector<32x64xf32>
    %651 = arith.addf %646, %650 : vector<32x64xf32>
    %652 = vector.extract_strided_slice %630 {offsets = [0, 4], sizes = [32, 1], strides = [1, 1]} : vector<32x12xf32> to vector<32x1xf32>
    %653 = vector.extract_strided_slice %597 {offsets = [128, 0], sizes = [32, 64], strides = [1, 1]} : vector<384x64xf32> to vector<32x64xf32>
    %654 = vector.broadcast %652 : vector<32x1xf32> to vector<32x64xf32>
    %655 = arith.mulf %654, %653 : vector<32x64xf32>
    %656 = arith.addf %651, %655 : vector<32x64xf32>
    %657 = vector.extract_strided_slice %630 {offsets = [0, 5], sizes = [32, 1], strides = [1, 1]} : vector<32x12xf32> to vector<32x1xf32>
    %658 = vector.extract_strided_slice %597 {offsets = [160, 0], sizes = [32, 64], strides = [1, 1]} : vector<384x64xf32> to vector<32x64xf32>
    %659 = vector.broadcast %657 : vector<32x1xf32> to vector<32x64xf32>
    %660 = arith.mulf %659, %658 : vector<32x64xf32>
    %661 = arith.addf %656, %660 : vector<32x64xf32>
    %662 = vector.extract_strided_slice %630 {offsets = [0, 6], sizes = [32, 1], strides = [1, 1]} : vector<32x12xf32> to vector<32x1xf32>
    %663 = vector.extract_strided_slice %597 {offsets = [192, 0], sizes = [32, 64], strides = [1, 1]} : vector<384x64xf32> to vector<32x64xf32>
    %664 = vector.broadcast %662 : vector<32x1xf32> to vector<32x64xf32>
    %665 = arith.mulf %664, %663 : vector<32x64xf32>
    %666 = arith.addf %661, %665 : vector<32x64xf32>
    %667 = vector.extract_strided_slice %630 {offsets = [0, 7], sizes = [32, 1], strides = [1, 1]} : vector<32x12xf32> to vector<32x1xf32>
    %668 = vector.extract_strided_slice %597 {offsets = [224, 0], sizes = [32, 64], strides = [1, 1]} : vector<384x64xf32> to vector<32x64xf32>
    %669 = vector.broadcast %667 : vector<32x1xf32> to vector<32x64xf32>
    %670 = arith.mulf %669, %668 : vector<32x64xf32>
    %671 = arith.addf %666, %670 : vector<32x64xf32>
    %672 = vector.extract_strided_slice %630 {offsets = [0, 8], sizes = [32, 1], strides = [1, 1]} : vector<32x12xf32> to vector<32x1xf32>
    %673 = vector.extract_strided_slice %597 {offsets = [256, 0], sizes = [32, 64], strides = [1, 1]} : vector<384x64xf32> to vector<32x64xf32>
    %674 = vector.broadcast %672 : vector<32x1xf32> to vector<32x64xf32>
    %675 = arith.mulf %674, %673 : vector<32x64xf32>
    %676 = arith.addf %671, %675 : vector<32x64xf32>
    %677 = vector.extract_strided_slice %630 {offsets = [0, 9], sizes = [32, 1], strides = [1, 1]} : vector<32x12xf32> to vector<32x1xf32>
    %678 = vector.extract_strided_slice %597 {offsets = [288, 0], sizes = [32, 64], strides = [1, 1]} : vector<384x64xf32> to vector<32x64xf32>
    %679 = vector.broadcast %677 : vector<32x1xf32> to vector<32x64xf32>
    %680 = arith.mulf %679, %678 : vector<32x64xf32>
    %681 = arith.addf %676, %680 : vector<32x64xf32>
    %682 = vector.extract_strided_slice %630 {offsets = [0, 10], sizes = [32, 1], strides = [1, 1]} : vector<32x12xf32> to vector<32x1xf32>
    %683 = vector.extract_strided_slice %597 {offsets = [320, 0], sizes = [32, 64], strides = [1, 1]} : vector<384x64xf32> to vector<32x64xf32>
    %684 = vector.broadcast %682 : vector<32x1xf32> to vector<32x64xf32>
    %685 = arith.mulf %684, %683 : vector<32x64xf32>
    %686 = arith.addf %681, %685 : vector<32x64xf32>
    %687 = vector.extract_strided_slice %630 {offsets = [0, 11], sizes = [32, 1], strides = [1, 1]} : vector<32x12xf32> to vector<32x1xf32>
    %688 = vector.extract_strided_slice %597 {offsets = [352, 0], sizes = [32, 64], strides = [1, 1]} : vector<384x64xf32> to vector<32x64xf32>
    %689 = vector.broadcast %687 : vector<32x1xf32> to vector<32x64xf32>
    %690 = arith.mulf %689, %688 : vector<32x64xf32>
    %691 = arith.addf %686, %690 : vector<32x64xf32>
    %c0_188 = arith.constant 0 : index
    %c0_189 = arith.constant 0 : index
    %692 = vector.load %arg11[%c0_188, %c0_189] : memref<32x64xf32, #tpu.memory_space<vmem>>, vector<32x64xf32>
    tpu.vector_store %arg11[%c0_188, %c0_189], %691 {strides = array<i32>} : memref<32x64xf32, #tpu.memory_space<vmem>>, vector<32x64xf32>,
    return
  }
  func.func @transform_0(%arg0: i32) -> (i32, i32, i32) {
    %c0_i32 = arith.constant 0 : i32
    %c0_i32_0 = arith.constant 0 : i32
    %c0_i32_1 = arith.constant 0 : i32
    return %arg0, %c0_i32, %c0_i32_0 : i32, i32, i32
  }
  func.func @transform_1(%arg0: i32) -> (i32, i32) {
    %c0_i32 = arith.constant 0 : i32
    %c0_i32_0 = arith.constant 0 : i32
    %c0_i32_1 = arith.constant 0 : i32
    return %c0_i32, %c0_i32_0 : i32, i32
  }
  func.func @transform_2(%arg0: i32) -> (i32, i32) {
    %c0_i32 = arith.constant 0 : i32
    %c0_i32_0 = arith.constant 0 : i32
    %c0_i32_1 = arith.constant 0 : i32
    return %c0_i32, %c0_i32_0 : i32, i32
  }
  func.func @transform_3(%arg0: i32) -> (i32, i32) {
    %c0_i32 = arith.constant 0 : i32
    %c0_i32_0 = arith.constant 0 : i32
    %c0_i32_1 = arith.constant 0 : i32
    return %c0_i32, %c0_i32_0 : i32, i32
  }
  func.func @transform_4(%arg0: i32) -> (i32, i32) {
    %c0_i32 = arith.constant 0 : i32
    %c0_i32_0 = arith.constant 0 : i32
    %c0_i32_1 = arith.constant 0 : i32
    return %c0_i32, %c0_i32_0 : i32, i32
  }
  func.func @transform_5(%arg0: i32) -> (i32, i32) {
    %c0_i32 = arith.constant 0 : i32
    %c0_i32_0 = arith.constant 0 : i32
    %c0_i32_1 = arith.constant 0 : i32
    return %c0_i32, %c0_i32_0 : i32, i32
  }
  func.func @transform_6(%arg0: i32) -> (i32, i32) {
    %c0_i32 = arith.constant 0 : i32
    %c0_i32_0 = arith.constant 0 : i32
    %c0_i32_1 = arith.constant 0 : i32
    return %c0_i32, %c0_i32_0 : i32, i32
  }
  func.func @transform_7(%arg0: i32) -> (i32, i32) {
    %c0_i32 = arith.constant 0 : i32
    %c0_i32_0 = arith.constant 0 : i32
    %c0_i32_1 = arith.constant 0 : i32
    return %c0_i32, %c0_i32_0 : i32, i32
  }
  func.func @transform_8(%arg0: i32) -> (i32, i32) {
    %c0_i32 = arith.constant 0 : i32
    %c0_i32_0 = arith.constant 0 : i32
    %c0_i32_1 = arith.constant 0 : i32
    return %c0_i32, %c0_i32_0 : i32, i32
  }
  func.func @transform_9(%arg0: i32) -> (i32, i32) {
    %c0_i32 = arith.constant 0 : i32
    %c0_i32_0 = arith.constant 0 : i32
    %c0_i32_1 = arith.constant 0 : i32
    return %c0_i32, %c0_i32_0 : i32, i32
  }
  func.func @transform_10(%arg0: i32) -> (i32, i32) {
    %c0_i32 = arith.constant 0 : i32
    %c0_i32_0 = arith.constant 0 : i32
    return %arg0, %c0_i32 : i32, i32
  }
}

</mosaic_0001>

<bundles_post_ra>
// kernel: tpu_custom_call.1
= control target key start
LH: loop header
LB: loop body
LE: loop exit
PB: predicated region body
PF: predicated region fallthrough
CT: control target
= control target key end

     0   :  { %15 = vsyncpa [#allocation5], 0  ;;  %s12903_s0 = inlined_call_operand.vmem [shape: bf16[2,384,32], index: 0, kind: input, shape index: {}]   ;;  %s12904_s1 = inlined_call_operand.vmem [shape: bf16[32,192], index: 1, kind: input, shape index: {}]   ;;  %s12905_s2 = inlined_call_operand.vmem [shape: f32[1,192], index: 2, kind: input, shape index: {}]   ;;  %s12906_s3 = inlined_call_operand.vmem [shape: f32[32,96], index: 3, kind: input, shape index: {}]   ;;  %s12907_s4 = inlined_call_operand.vmem [shape: f32[32,96], index: 4, kind: input, shape index: {}]   ;;  %s12908_s5 = inlined_call_operand.vmem [shape: f32[1,32], index: 5, kind: input, shape index: {}]   ;;  %s12909_s6 = inlined_call_operand.vmem [shape: f32[1,32], index: 6, kind: input, shape index: {}]   ;;  %s12910_s7 = inlined_call_operand.vmem [shape: bf16[64,64], index: 7, kind: input, shape index: {}]   ;;  %s12911_s8 = inlined_call_operand.vmem [shape: f32[1,64], index: 8, kind: input, shape index: {}]   ;;  %s12912_s9 = inlined_call_operand.vmem [shape: f32[1,64], index: 9, kind: input, shape index: {}]   ;;  %s12913_s10 = inlined_call_operand.hbm [shape: f32[64,64], index: 10, kind: output, shape index: {}]  }
   0x1   :  { %17 = vsyncpa [#allocation5 + $0x1], 0  ;;  %s10481_s13 = smov 0   ;;  %s10483_s14 = smov 0  }
   0x2   :  { %s10485_s15 = smov 0   ;;  %s10487_s16 = smov 0  }
   0x3 LB: > { %s10502_s17 = sadd.s32 4294967295, %s10405_s16   ;;  %s8128_s18 = sadd.s32 4294967294, %s10405_s16   ;;  %s10405_s16 = sphi %s10487_s16, %s12955_s16   ;;  %s10401_s15 = sphi %s10485_s15, %s12954_s15   ;;  %s10397_s14 = sphi %s10483_s14, %s12953_s14   ;;  %s10393_s13 = sphi %s10481_s13, %s12952_s13  }
   0x4   : > { %s10506_s19 = sadd.s32 1, %s10405_s16   ;;  %s245_s20 = sadd.s32 1, %s10401_s15 }
   0x5   : > { %s242_s21 = ssub.s32 %s10405_s16, %s10506_s19  ;;  %p255_p0 = scmp.ne.s32.totalorder %s10401_s15, %s10397_s14 }
   0x6   : > { %p243_p1 = scmp.eq.s32.totalorder %s242_s21, 0  ;;  %p256_p2 = scmp.eq.s32.totalorder %s10502_s17, 1 }
   0x7   : > { %p261_p3 = scmp.ne.s32.totalorder %s10397_s14, %s10393_s13  ;;  %p262_p4 = scmp.eq.s32.totalorder %s8128_s18, 1 }
   0x8   : > { %s10517_s22 = scalar_select %p243_p1, %s10401_s15, %s245_s20  }
   0x9   : > { %p10519_p5 = por %p256_p2, %p255_p0  ;;  %p10523_p6 = por %p262_p4, %p261_p3 }
   0xa   : > { %p8131_p7 = scmp.ge.s32.totalorder %s10405_s16, 1  ;;  %p315_p8 = scmp.lt.s32.totalorder %s10405_s16, 3 }
   0xc   : > { %p316_p9 = pnand %p8131_p7, %p315_p8 }
   0xe   : > { %319 = sbr.rel (%p316_p9) target bundleno = 16288 (0x3fa0), region = 60 }
  0x15   : > { %v9369_v0 = vld [vmem:[%s12904_s1 + $0x4] ss:$8 sps:$4 sm:$0xff]   ;;  %p353_p10 = scmp.lt.s32.totalorder %s10502_s17, 1  ;;  %v9371_v1 = vld [vmem:[%s12904_s1] ss:$8 sps:$4 sm:$0xff]   ;;  %v12914_v2 = vmov 0   ;;  %v414_v21 = vlaneseq }
  0x16   : > { %849 = vmatprep.mubr.bf16.mxu1 %v12914_v2  ;;  %669 = vmatprep.mubr.bf16.mxu0 %v12914_v2  ;;  %v9372_v3 = vld [vmem:[%s12904_s1 + $0x14] ss:$8 sps:$4 sm:$0xff]   ;;  %v1007_v4 = vld [vmem:[%s12906_s3] sm:$0xff]  ;;  %v9374_v5 = vld [vmem:[%s12904_s1 + $0x10] ss:$8 sps:$4 sm:$0xff]   ;;  %s10408_s21 = smov 64  }
  0x17   : > { %9260 = vmatprep.subr.bf16.mxu1 %v9369_v0  ;;  %s354_s11 = scalar_select %p353_p10, %s10502_s17, 1  ;;  %637 = vmatprep.subr.bf16.mxu0 %v9369_v0  ;;  %v1008_v6 = vld [vmem:[%s12906_s3 + $0x8] sm:$0xff]  ;;  %v1009_v8 = vld [vmem:[%s12906_s3 + $0x10] sm:$0xff]  ;;  %v8186_v9 = vld [vmem:[%s12908_s5] ss:$0 sm:$0xff]  ;;  %vm564_vm0 = vcmask 261120  }
  0x18   : > { %9262 = vmatpush1.bf16.msra.mxu1 %v9371_v1  ;;  %638 = vmatpush1.bf16.msra.mxu0 %v9371_v1  ;;  %v10551_v7 = vpack.c.bf16 %v1008_v6, %v1007_v4  ;;  %v1010_v10 = vld [vmem:[%s12906_s3 + $0x18] sm:$0xff]  ;;  %v10409_v20 = vmov 0.0   ;;  %v415_v22 = vshrl.u32 %v414_v21, 7  ;;  %v412_v24 = vld [vmem:[%s12905_s2] sm:$0x3]  ;;  %vm911_vm1 = vcmask 523264  }
  0x19   : > { %9261 = vmatprep.subr.bf16.mxu1 %v9372_v3  ;;  %s9264_s27 = smul.u32 192, %s354_s11  ;;  %639 = vmatprep.subr.bf16.mxu0 %v9372_v3  ;;  %v10571_v12 = vpack.c.bf16 %v1010_v10, %v1009_v8  ;;  %s10410_s29 = smov 96   ;;  %vm3989_vm2 = vcmask 523520   ;;  %vm7652_vm3 = vcmask 7168   ;;  %vm7657_vm4 = vcmask 15360  }
  0x1a   : > { %1137 = vrot.lane.b32.xlu0 %v8186_v9, %s10408_s21  ;;  %9322 = vset.pattern.permute.xlu1 %v12914_v2  ;;  %v416_v23 = vsub.s32 0, %v415_v22  ;;  %v420_v25 = vsub.s32 1, %v415_v22  ;;  %s10411_s12 = smov 32   ;;  %vm7662_vm5 = vcmask 23552   ;;  %vm7667_vm6 = vcmask 31744   ;;  %s350_s18 = sand.u32 1, %s10397_s14  }
  0x1b   : > { %s10567_s26 = scalar_lea.vmem %s12903_s0, %s9264_s27  ;;  %vm7672_vm7 = vcmask 39936   ;;  %vm7677_vm8 = vcmask 48128   ;;  %vm7682_vm9 = vcmask 56320   ;;  %vm7687_vm10 = vcmask 64512   ;;  %s8132_s20 = sshll.u32 %s350_s18, 5 }
  0x1c   : > { %9263 = vmatpush1.bf16.msra.mxu1 %v9374_v5  ;;  %v9375_v11 = vld [vmem:[%s10567_s26 + $0x90] sm:$0xff]   ;;  %640 = vmatpush1.bf16.msra.mxu0 %v9374_v5  ;;  %v9380_v13 = vld [vmem:[%s10567_s26] sm:$0xff]   ;;  %v9376_v14 = vld [vmem:[%s10567_s26 + $0x98] sm:$0xff]   ;;  %v10610_v26 = vrot.slane %v412_v24, %v416_v23  ;;  %v10612_v27 = vrot.slane %v412_v24, %v420_v25  ;;  %vm7692_vm11 = vcmask 72704   ;;  %vm7697_vm12 = vcmask 80896   ;;  %s12831_s11 = scalar_lea.vmem [#allocation4], %s8132_s20 }
  0x1d   : > { %9069 = vmatprep.subr.bf16.mxu1 %v10551_v7  ;;  %v9382_v15 = vld [vmem:[%s10567_s26 + $0x8] sm:$0xff]   ;;  %v9377_v16 = vld [vmem:[%s10567_s26 + $0xa0] sm:$0xff]   ;;  %v9379_v18 = vld [vmem:[%s10567_s26 + $0xb0] sm:$0xff]   ;;  %vm7702_vm13 = vcmask 89088   ;;  %vm7711_vm14 = vcmask 97280   ;;  %s8066_s25 = sshll.u32 %s12831_s11, 4  ;;  %s12856_s25 = int_to_ptr.vmem [resolvable:$true] %s8066_s25 }
  0x1e   : > { %v9378_v17 = vld [vmem:[%s10567_s26 + $0xa8] sm:$0xff]   ;;  %v9381_v19 = vld [vmem:[%s10567_s26 + $0xb8] sm:$0xff]   ;;  %s10343_s30 = scalar_lea.vmem %s12856_s25, 512 }
  0x1f   : > { %8180 = vmatmul.mubr.msk.bf16.vlgmr.msra.gmra.mrb[0].mxu1 %vm564_vm0, %v9375_v11  ;;  %8162 = vmatmul.mubr.msk.bf16.vlgmr.msra.gmra.mrb[0].mxu0 %vm564_vm0, %v9380_v13  ;;  %p10344_p11 = scmp.ne.s32.totalorder %s12856_s25, %s10343_s30 }
  0x20   : > { %9071 = vmatpush3.bf16.msra.mxu1 %v10551_v7  ;;  %859 = vmatprep.mubr.bf16.mxu1 %v12914_v2 }
  0x21   : > { %9073 = vmatprep.subr.bf16.mxu1 %v10571_v12  ;;  %679 = vmatprep.mubr.bf16.mxu0 %v12914_v2  ;;  %p10345_p12 = pnand %p10344_p11, %p10519_p5 }
  0x23   : > { %p10346_p13 = pneg %p10345_p12 }
  0x24   : > { %9075 = vmatpush3.bf16.msra.mxu1 %v10571_v12 }
  0x25   : > { %9077 = vmatprep.subr.bf16.mxu1 %v10551_v7 }
  0x27   : > { %8181 = vmatmul.mubr.msk.bf16.gmra.mrb[4].mxu1 %vm564_vm0, %v9376_v14  ;;  %8163 = vmatmul.mubr.msk.bf16.gmra.mrb[4].mxu0 %vm564_vm0, %v9382_v15 }
  0x28   : > { %869 = vmatprep.mubr.bf16.mxu1 %v12914_v2  ;;  %689 = vmatprep.mubr.bf16.mxu0 %v12914_v2 }
  0x2f   : > { %8182 = vmatmul.mubr.msk.bf16.gmra.mrb[8].mxu1 %vm564_vm0, %v9377_v16 }
  0x30   : > { %879 = vmatprep.mubr.bf16.mxu1 %v12914_v2 }
  0x37   : > { %8183 = vmatmul.mubr.msk.bf16.gmra.mrb[12].mxu1 %vm564_vm0, %v9378_v17 }
  0x38   : > { %889 = vmatprep.mubr.bf16.mxu1 %v12914_v2 }
  0x3f   : > { %8184 = vmatmul.mubr.msk.bf16.gmra.mrb[16].mxu1 %vm564_vm0, %v9379_v18 }
  0x40   : > { %899 = vmatprep.mubr.bf16.mxu1 %v12914_v2 }
  0x47   : > { %8185 = vmatmul.mubr.msk.bf16.gmra.mrb[20].mxu1 %vm564_vm0, %v9381_v19 }
  0x48   : > { %8684 = vmatprep.mubr.f32.mxu1 %v10409_v20 }
  0x4f   : > { %8685 = vmatmul.mubr.f32.vlgmr.msra.gmra.mrb[24].mxu1 %v10409_v20 }
  0x50   : > { %8687 = vmatprep.mubr.f32.mxu1 %v10409_v20  ;;  %9079 = vmatpush3.bf16.msra.mxu1 %v10551_v7 }
  0x51   : > { %9081 = vmatprep.subr.bf16.mxu1 %v10571_v12 }
  0x53   : > { %8688 = vmatmul.mubr.f32.gmra.mrb[26].mxu1 %v10409_v20 }
  0x54   : > { %9083 = vmatpush3.bf16.msra.mxu1 %v10571_v12 }
  0x55   : > { %9085 = vmatprep.subr.bf16.mxu1 %v10551_v7 }
  0xf2   : > { %v851_v28 = vpop.f32.mrb[0].mxu1  ;;  %v671_v36 = vpop.f32.mrb[0].mxu0 }
  0xf3   : > { %v852_v29 = vadd.f32 %v851_v28, %v10610_v26  ;;  %v853_v30 = vpop.f32.mrb[1].mxu1  ;;  %v10620_v37 = vadd.f32 %v671_v36, %v10610_v26  ;;  %v673_v38 = vpop.f32.mrb[1].mxu0 }
  0xf4   : > { %v854_v31 = vadd.f32 %v853_v30, %v10612_v27  ;;  %v855_v32 = vpop.f32.mrb[2].mxu1  ;;  %v674_v39 = vadd.f32 %v673_v38, %v10612_v27  ;;  %v675_v40 = vpop.f32.mrb[2].mxu0 }
  0xf5   : > { %983 = vst [vmem:[#allocation2 + $0x240] sm:$0xff] %v852_v29  ;;  %v856_v33 = vadd.f32 %v855_v32, %v10610_v26  ;;  %v857_v34 = vpop.f32.mrb[3].mxu1  ;;  %910 = vst [vmem:[#allocation2] sm:$0xff] %v10620_v37  ;;  %v10626_v41 = vadd.f32 %v675_v40, %v10610_v26  ;;  %v677_v42 = vpop.f32.mrb[3].mxu0 }
  0xf6   : > { %984 = vst.msk [vmem:[#allocation2 + $0x248] sm:$0xff] %vm911_vm1, %v854_v31  ;;  %v858_v35 = vadd.f32 %v857_v34, %v10612_v27  ;;  %912 = vst.msk [vmem:[#allocation2 + $0x8] sm:$0xff] %vm911_vm1, %v674_v39  ;;  %v678_v44 = vadd.f32 %v677_v42, %v10612_v27  ;;  %v10674_v34 = vpop.permute.xlu0 %1137 }
  0xf7   : > { %985 = vst [vmem:[#allocation2 + $0x250] sm:$0xff] %v856_v33  ;;  %913 = vst [vmem:[#allocation2 + $0x10] sm:$0xff] %v10626_v41 }
  0xf8   : > { %986 = vst.msk [vmem:[#allocation2 + $0x258] sm:$0xff] %vm911_vm1, %v858_v35  ;;  %914 = vst.msk [vmem:[#allocation2 + $0x18] sm:$0xff] %vm911_vm1, %v678_v44 }
  0xfa   : > { %v861_v43 = vpop.f32.mrb[4].mxu1  ;;  %v681_v52 = vpop.f32.mrb[4].mxu0 }
  0xfb   : > { %v862_v45 = vadd.f32 %v861_v43, %v10610_v26  ;;  %v863_v46 = vpop.f32.mrb[5].mxu1  ;;  %v10638_v53 = vadd.f32 %v681_v52, %v10610_v26  ;;  %v683_v54 = vpop.f32.mrb[5].mxu0 }
  0xfc   : > { %v864_v47 = vadd.f32 %v863_v46, %v10612_v27  ;;  %v865_v48 = vpop.f32.mrb[6].mxu1  ;;  %v684_v55 = vadd.f32 %v683_v54, %v10612_v27  ;;  %v685_v56 = vpop.f32.mrb[6].mxu0 }
  0xfd   : > { %987 = vst [vmem:[#allocation2 + $0x260] sm:$0xff] %v862_v45  ;;  %v866_v49 = vadd.f32 %v865_v48, %v10610_v26  ;;  %v867_v50 = vpop.f32.mrb[7].mxu1  ;;  %915 = vst [vmem:[#allocation2 + $0x20] sm:$0xff] %v10638_v53  ;;  %v10644_v57 = vadd.f32 %v685_v56, %v10610_v26  ;;  %v687_v58 = vpop.f32.mrb[7].mxu0 }
  0xfe   : > { %988 = vst.msk [vmem:[#allocation2 + $0x268] sm:$0xff] %vm911_vm1, %v864_v47  ;;  %v868_v51 = vadd.f32 %v867_v50, %v10612_v27  ;;  %916 = vst.msk [vmem:[#allocation2 + $0x28] sm:$0xff] %vm911_vm1, %v684_v55  ;;  %v688_v60 = vadd.f32 %v687_v58, %v10612_v27 }
  0xff   : > { %989 = vst [vmem:[#allocation2 + $0x270] sm:$0xff] %v866_v49  ;;  %917 = vst [vmem:[#allocation2 + $0x30] sm:$0xff] %v10644_v57 }
 0x100   : > { %990 = vst.msk [vmem:[#allocation2 + $0x278] sm:$0xff] %vm911_vm1, %v868_v51  ;;  %918 = vst.msk [vmem:[#allocation2 + $0x38] sm:$0xff] %vm911_vm1, %v688_v60 }
 0x102   : > { %v871_v59 = vpop.f32.mrb[8].mxu1 }
 0x103   : > { %v872_v61 = vadd.f32 %v871_v59, %v10610_v26  ;;  %v873_v62 = vpop.f32.mrb[9].mxu1 }
 0x104   : > { %v874_v63 = vadd.f32 %v873_v62, %v10612_v27  ;;  %v875_v0 = vpop.f32.mrb[10].mxu1 }
 0x105   : > { %991 = vst [vmem:[#allocation2 + $0x280] sm:$0xff] %v872_v61  ;;  %v876_v1 = vadd.f32 %v875_v0, %v10610_v26  ;;  %v877_v3 = vpop.f32.mrb[11].mxu1 }
 0x106   : > { %992 = vst.msk [vmem:[#allocation2 + $0x288] sm:$0xff] %vm911_vm1, %v874_v63  ;;  %v878_v4 = vadd.f32 %v877_v3, %v10612_v27 }
 0x107   : > { %993 = vst [vmem:[#allocation2 + $0x290] sm:$0xff] %v876_v1 }
 0x108   : > { %994 = vst.msk [vmem:[#allocation2 + $0x298] sm:$0xff] %vm911_vm1, %v878_v4 }
 0x10a   : > { %v881_v5 = vpop.f32.mrb[12].mxu1 }
 0x10b   : > { %v882_v6 = vadd.f32 %v881_v5, %v10610_v26  ;;  %v883_v8 = vpop.f32.mrb[13].mxu1 }
 0x10c   : > { %v884_v9 = vadd.f32 %v883_v8, %v10612_v27  ;;  %v885_v10 = vpop.f32.mrb[14].mxu1 }
 0x10d   : > { %995 = vst [vmem:[#allocation2 + $0x2a0] sm:$0xff] %v882_v6  ;;  %v886_v11 = vadd.f32 %v885_v10, %v10610_v26  ;;  %v887_v13 = vpop.f32.mrb[15].mxu1 }
 0x10e   : > { %996 = vst.msk [vmem:[#allocation2 + $0x2a8] sm:$0xff] %vm911_vm1, %v884_v9  ;;  %v888_v14 = vadd.f32 %v887_v13, %v10612_v27 }
 0x10f   : > { %997 = vst [vmem:[#allocation2 + $0x2b0] sm:$0xff] %v886_v11 }
 0x110   : > { %998 = vst.msk [vmem:[#allocation2 + $0x2b8] sm:$0xff] %vm911_vm1, %v888_v14 }
 0x112   : > { %v891_v15 = vpop.f32.mrb[16].mxu1 }
 0x113   : > { %v892_v16 = vadd.f32 %v891_v15, %v10610_v26  ;;  %v893_v17 = vpop.f32.mrb[17].mxu1 }
 0x114   : > { %v894_v18 = vadd.f32 %v893_v17, %v10612_v27  ;;  %v895_v19 = vpop.f32.mrb[18].mxu1 }
 0x115   : > { %999 = vst [vmem:[#allocation2 + $0x2c0] sm:$0xff] %v892_v16  ;;  %v896_v21 = vadd.f32 %v895_v19, %v10610_v26  ;;  %v897_v22 = vpop.f32.mrb[19].mxu1 }
 0x116   : > { %1000 = vst.msk [vmem:[#allocation2 + $0x2c8] sm:$0xff] %vm911_vm1, %v894_v18  ;;  %v898_v23 = vadd.f32 %v897_v22, %v10612_v27 }
 0x117   : > { %1001 = vst [vmem:[#allocation2 + $0x2d0] sm:$0xff] %v896_v21 }
 0x118   : > { %1002 = vst.msk [vmem:[#allocation2 + $0x2d8] sm:$0xff] %vm911_vm1, %v898_v23  ;;  %v9383_v23 = vld [vmem:[%s10567_s26 + $0x10] sm:$0xff]  }
 0x119   : > { %8164 = vmatmul.mubr.msk.bf16.gmra.mrb[8].mxu0 %vm564_vm0, %v9383_v23 }
 0x11a   : > { %v901_v24 = vpop.f32.mrb[20].mxu1  ;;  %699 = vmatprep.mubr.bf16.mxu0 %v12914_v2 }
 0x11b   : > { %v902_v25 = vadd.f32 %v901_v24, %v10610_v26  ;;  %v903_v28 = vpop.f32.mrb[21].mxu1 }
 0x11c   : > { %v904_v29 = vadd.f32 %v903_v28, %v10612_v27  ;;  %v905_v30 = vpop.f32.mrb[22].mxu1 }
 0x11d   : > { %1003 = vst [vmem:[#allocation2 + $0x2e0] sm:$0xff] %v902_v25  ;;  %v906_v31 = vadd.f32 %v905_v30, %v10610_v26  ;;  %v907_v32 = vpop.f32.mrb[23].mxu1 }
 0x11e   : > { %1004 = vst.msk [vmem:[#allocation2 + $0x2e8] sm:$0xff] %vm911_vm1, %v904_v29  ;;  %v908_v33 = vadd.f32 %v907_v32, %v10612_v27 }
 0x11f   : > { %1005 = vst [vmem:[#allocation2 + $0x2f0] sm:$0xff] %v906_v31 }
 0x120   : > { %1006 = vst.msk [vmem:[#allocation2 + $0x2f8] sm:$0xff] %vm911_vm1, %v908_v33 }
 0x122   : > { %v8686_v35 = vpop.f32.mrb[24].mxu1 }
 0x123   : > { %v1090_v36 = vpop.f32.mrb[25].mxu1  ;;  %v1141_v38 = vadd.f32 %v8686_v35, %v10674_v34  ;;  %v1110_v45 = vadd.f32 %v8686_v35, %v10626_v41 }
 0x124   : > { %v1140_v39 = vadd.f32 %v10674_v34, %v1090_v36  ;;  %v1109_v46 = vadd.f32 %v1090_v36, %v10620_v37 }
 0x125   : > { %1150 = vrot.lane.b32.xlu1 %v1141_v38, %s10408_s21  ;;  %v8188_v47 = vmul.f32 -1.442695, %v1110_v45 }
 0x126   : > { %1148 = vrot.lane.b32.xlu0 %v1140_v39, %s10408_s21  ;;  %v8689_v40 = vpop.f32.mrb[26].mxu1  ;;  %v8187_v49 = vmul.f32 -1.442695, %v1109_v46 }
 0x127   : > { %v1143_v42 = vadd.f32 %v8689_v40, %v10674_v34  ;;  %v1100_v43 = vpop.f32.mrb[27].mxu1  ;;  %v1112_v48 = vadd.f32 %v8689_v40, %v10644_v57  ;;  %9403 = vpow2.f32 %v8188_v47 }
 0x128   : > { %v1142_v44 = vadd.f32 %v10674_v34, %v1100_v43  ;;  %v1111_v50 = vadd.f32 %v1100_v43, %v10638_v53  ;;  %9405 = vpow2.f32 %v8187_v49 }
 0x129   : > { %v8190_v51 = vmul.f32 -1.442695, %v1112_v48 }
 0x12a   : > { %1154 = vrot.lane.b32.xlu0 %v1143_v42, %s10408_s21  ;;  %1152 = vrot.lane.b32.xlu1 %v1142_v44, %s10408_s21  ;;  %v8189_v52 = vmul.f32 -1.442695, %v1111_v50 }
 0x12b   : > { %9407 = vpow2.f32 %v8190_v51 }
 0x12c   : > { %9409 = vpow2.f32 %v8189_v52 }
 0x131   : > { %v9404_v54 = vpop.eup %9403 }
 0x132   : > { %v9406_v55 = vpop.eup %9405  ;;  %v1126_v56 = vadd.f32 1.0, %v9404_v54 }
 0x133   : > { %v1125_v59 = vadd.f32 1.0, %v9406_v55 }
 0x134   : > { %9411 = vrcp.f32 %v1126_v56 }
 0x135   : > { %v9408_v58 = vpop.eup %9407  ;;  %9413 = vrcp.f32 %v1125_v59 }
 0x136   : > { %v9410_v60 = vpop.eup %9409  ;;  %v1128_v61 = vadd.f32 1.0, %v9408_v58 }
 0x137   : > { %v1127_v62 = vadd.f32 1.0, %v9410_v60 }
 0x138   : > { %9415 = vrcp.f32 %v1128_v61 }
 0x139   : > { %9417 = vrcp.f32 %v1127_v62 }
 0x13e   : > { %v9412_v63 = vpop.eup %9411 }
 0x13f   : > { %v9414_v1 = vpop.eup %9413  ;;  %v1213_v30 = vmul.f32 0.0, %v9412_v63 }
 0x140   : > { %v1188_v29 = vsub.f32 1.0, %v9414_v1  ;;  %v1212_v33 = vmul.f32 0.0, %v9414_v1 }
 0x142   : > { %v9416_v6 = vpop.eup %9415 }
 0x143   : > { %v9418_v8 = vpop.eup %9417  ;;  %v1191_v39 = vsub.f32 1.0, %v9416_v6  ;;  %v1215_v43 = vmul.f32 0.0, %v9416_v6 }
 0x144   : > { %v1190_v42 = vsub.f32 1.0, %v9418_v8  ;;  %v1214_v46 = vmul.f32 0.0, %v9418_v8 }
 0x197   : > { %v1151_v0 = vpop.permute.xlu1 %1150 }
 0x198   : > { %v1161_v3 = vmul.f32 %v9412_v63, %v1151_v0  ;;  %v1149_v4 = vpop.permute.xlu0 %1148 }
 0x199   : > { %v1160_v5 = vmul.f32 %v9414_v1, %v1149_v4 }
 0x19a   : > { %1170 = vrot.lane.b32.xlu0 %v1161_v3, %s10408_s21 }
 0x19b   : > { %1168 = vrot.lane.b32.xlu1 %v1160_v5, %s10408_s21 }
 0x19c   : > { %v1155_v9 = vpop.permute.xlu0 %1154  ;;  %v1153_v10 = vpop.permute.xlu1 %1152 }
 0x19d   : > { %v1163_v11 = vmul.f32 %v9416_v6, %v1155_v9  ;;  %v1162_v13 = vmul.f32 %v9418_v8, %v1153_v10 }
 0x19f   : > { %1174 = vrot.lane.b32.xlu0 %v1163_v11, %s10408_s21  ;;  %1172 = vrot.lane.b32.xlu1 %v1162_v13, %s10408_s21 }
 0x1ec   : > { %v691_v50 = vpop.f32.mrb[8].mxu0 }
 0x1ed   : > { %v10723_v51 = vadd.f32 %v691_v50, %v10610_v26  ;;  %v693_v52 = vpop.f32.mrb[9].mxu0 }
 0x1ee   : > { %v694_v54 = vadd.f32 %v693_v52, %v10612_v27  ;;  %v695_v55 = vpop.f32.mrb[10].mxu0 }
 0x1ef   : > { %919 = vst [vmem:[#allocation2 + $0x40] sm:$0xff] %v10723_v51  ;;  %v10728_v56 = vadd.f32 %v695_v55, %v10610_v26  ;;  %v697_v58 = vpop.f32.mrb[11].mxu0 }
 0x1f0   : > { %920 = vst.msk [vmem:[#allocation2 + $0x48] sm:$0xff] %vm911_vm1, %v694_v54  ;;  %v698_v59 = vadd.f32 %v697_v58, %v10612_v27 }
 0x1f1   : > { %921 = vst [vmem:[#allocation2 + $0x50] sm:$0xff] %v10728_v56 }
 0x1f2   : > { %922 = vst.msk [vmem:[#allocation2 + $0x58] sm:$0xff] %vm911_vm1, %v698_v59 }
 0x20c   : > { %v1171_v14 = vpop.permute.xlu0 %1170 }
 0x20d   : > { %v1181_v15 = vadd.f32 %v1171_v14, %v10626_v41  ;;  %v1169_v16 = vpop.permute.xlu1 %1168 }
 0x20e   : > { %v1180_v17 = vadd.f32 %v1169_v16, %v10620_v37  ;;  %v9384_v37 = vld [vmem:[%s10567_s26 + $0x18] sm:$0xff]  }
 0x20f   : > { %9419 = vtanh.f32 %v1181_v15  ;;  %8165 = vmatmul.mubr.msk.bf16.gmra.mrb[12].mxu0 %vm564_vm0, %v9384_v37 }
 0x210   : > { %9421 = vtanh.f32 %v1180_v17  ;;  %709 = vmatprep.mubr.bf16.mxu0 %v12914_v2 }
 0x211   : > { %v1175_v18 = vpop.permute.xlu0 %1174  ;;  %v1173_v19 = vpop.permute.xlu1 %1172 }
 0x212   : > { %v1183_v21 = vadd.f32 %v1175_v18, %v10644_v57  ;;  %v1182_v22 = vadd.f32 %v1173_v19, %v10638_v53  ;;  %v1189_v53 = vsub.f32 1.0, %v9412_v63 }
 0x214   : > { %9423 = vtanh.f32 %v1183_v21 }
 0x215   : > { %9425 = vtanh.f32 %v1182_v22 }
 0x219   : > { %v9420_v24 = vpop.eup %9419 }
 0x21a   : > { %v9422_v25 = vpop.eup %9421  ;;  %1198 = vrot.lane.b32.xlu0 %v9420_v24, %s10410_s29 }
 0x21b   : > { %1196 = vrot.lane.b32.xlu1 %v9422_v25, %s10410_s29 }
 0x21e   : > { %v9424_v41 = vpop.eup %9423 }
 0x21f   : > { %v9426_v28 = vpop.eup %9425  ;;  %1202 = vrot.lane.b32.xlu0 %v9424_v41, %s10410_s29 }
 0x220   : > { %1200 = vrot.lane.b32.xlu1 %v9426_v28, %s10410_s29 }
 0x28c   : > { %v1199_v57 = vpop.permute.xlu0 %1198 }
 0x28d   : > { %v1209_v31 = vmul.f32 %v1199_v57, %v1189_v53  ;;  %v1197_v32 = vpop.permute.xlu1 %1196 }
 0x28e   : > { %v1208_v35 = vmul.f32 %v1197_v32, %v1188_v29 }
 0x28f   : > { %v10706_v36 = vadd.f32 %v1213_v30, %v1209_v31 }
 0x290   : > { %v10708_v38 = vadd.f32 %v1212_v33, %v1208_v35 }
 0x291   : > { %1226 = vrot.lane.b32.xlu0 %v10706_v36, %s10410_s29  ;;  %v1203_v40 = vpop.permute.xlu0 %1202 }
 0x292   : > { %v1211_v44 = vmul.f32 %v1203_v40, %v1191_v39  ;;  %v1201_v45 = vpop.permute.xlu1 %1200  ;;  %1224 = vrot.lane.b32.xlu1 %v10708_v38, %s10410_s29 }
 0x293   : > { %v1210_v47 = vmul.f32 %v1201_v45, %v1190_v42 }
 0x294   : > { %v10714_v48 = vadd.f32 %v1215_v43, %v1211_v44 }
 0x295   : > { %v10716_v49 = vadd.f32 %v1214_v46, %v1210_v47 }
 0x296   : > { %1230 = vrot.lane.b32.xlu0 %v10714_v48, %s10410_s29 }
 0x297   : > { %1228 = vrot.lane.b32.xlu1 %v10716_v49, %s10410_s29 }
 0x2e2   : > { %v701_v60 = vpop.f32.mrb[12].mxu0 }
 0x2e3   : > { %v10735_v61 = vadd.f32 %v701_v60, %v10610_v26  ;;  %v703_v62 = vpop.f32.mrb[13].mxu0 }
 0x2e4   : > { %v704_v63 = vadd.f32 %v703_v62, %v10612_v27  ;;  %v705_v0 = vpop.f32.mrb[14].mxu0 }
 0x2e5   : > { %923 = vst [vmem:[#allocation2 + $0x60] sm:$0xff] %v10735_v61  ;;  %v10740_v1 = vadd.f32 %v705_v0, %v10610_v26  ;;  %v707_v8 = vpop.f32.mrb[15].mxu0 }
 0x2e6   : > { %924 = vst.msk [vmem:[#allocation2 + $0x68] sm:$0xff] %vm911_vm1, %v704_v63  ;;  %v708_v9 = vadd.f32 %v707_v8, %v10612_v27 }
 0x2e7   : > { %925 = vst [vmem:[#allocation2 + $0x70] sm:$0xff] %v10740_v1 }
 0x2e8   : > { %926 = vst.msk [vmem:[#allocation2 + $0x78] sm:$0xff] %vm911_vm1, %v708_v9 }
 0x303   : > { %v1227_v3 = vpop.permute.xlu0 %1226 }
 0x304   : > { %1237 = vst.msk [vmem:[#allocation3 + $0x8] sm:$0xff] %vm564_vm0, %v1227_v3  ;;  %v1225_v4 = vpop.permute.xlu1 %1224 }
 0x305   : > { %1236 = vst.msk [vmem:[#allocation3] sm:$0xff] %vm564_vm0, %v1225_v4  ;;  %8698 = vmatprep.mubr.msk.f32.mxu1 %vm564_vm0, %v1225_v4  ;;  %v9385_v4 = vld [vmem:[%s10567_s26 + $0x20] sm:$0xff]  }
 0x306   : > { %8699 = vmatmul.mubr.msk.f32.vlgmr.msra.gmra.mrb[28].mxu1 %vm564_vm0, %v1227_v3  ;;  %8166 = vmatmul.mubr.msk.bf16.gmra.mrb[16].mxu0 %vm564_vm0, %v9385_v4 }
 0x307   : > { %9087 = vmatpush3.bf16.msra.mxu1 %v10551_v7  ;;  %719 = vmatprep.mubr.bf16.mxu0 %v12914_v2 }
 0x308   : > { %v1231_v5 = vpop.permute.xlu0 %1230  ;;  %9089 = vmatprep.subr.bf16.mxu1 %v10571_v12 }
 0x309   : > { %1239 = vst.msk [vmem:[#allocation3 + $0x18] sm:$0xff] %vm564_vm0, %v1231_v5  ;;  %v1229_v6 = vpop.permute.xlu1 %1228 }
 0x30a   : > { %1238 = vst.msk [vmem:[#allocation3 + $0x10] sm:$0xff] %vm564_vm0, %v1229_v6  ;;  %8701 = vmatprep.mubr.msk.f32.mxu1 %vm564_vm0, %v1229_v6 }
 0x30b   : > { %8702 = vmatmul.mubr.msk.f32.gmra.mrb[30].mxu1 %vm564_vm0, %v1231_v5 }
 0x30c   : > { %9091 = vmatpush3.bf16.msra.mxu1 %v10571_v12 }
 0x30d   : > { %9093 = vmatprep.subr.bf16.mxu1 %v10551_v7 }
 0x3d9   : > { %v8700_v10 = vpop.f32.mrb[28].mxu1 }
 0x3da   : > { %v1366_v11 = vadd.f32 %v8700_v10, %v10674_v34  ;;  %v1318_v13 = vpop.f32.mrb[29].mxu1  ;;  %v1338_v19 = vadd.f32 %v8700_v10, %v10728_v56 }
 0x3db   : > { %v1365_v14 = vadd.f32 %v1318_v13, %v10674_v34  ;;  %v1337_v21 = vadd.f32 %v1318_v13, %v10723_v51 }
 0x3dc   : > { %1375 = vrot.lane.b32.xlu0 %v1366_v11, %s10408_s21  ;;  %v8196_v22 = vmul.f32 -1.442695, %v1338_v19 }
 0x3dd   : > { %1373 = vrot.lane.b32.xlu1 %v1365_v14, %s10408_s21  ;;  %v8195_v23 = vmul.f32 -1.442695, %v1337_v21 }
 0x3de   : > { %v8703_v15 = vpop.f32.mrb[30].mxu1  ;;  %9427 = vpow2.f32 %v8196_v22 }
 0x3df   : > { %v1368_v16 = vadd.f32 %v8703_v15, %v10674_v34  ;;  %v1328_v17 = vpop.f32.mrb[31].mxu1  ;;  %v1340_v24 = vadd.f32 %v8703_v15, %v10740_v1  ;;  %9429 = vpow2.f32 %v8195_v23 }
 0x3e0   : > { %v1367_v18 = vadd.f32 %v1328_v17, %v10674_v34  ;;  %v1339_v25 = vadd.f32 %v1328_v17, %v10735_v61 }
 0x3e1   : > { %1379 = vrot.lane.b32.xlu0 %v1368_v16, %s10408_s21  ;;  %v8198_v37 = vmul.f32 -1.442695, %v1340_v24 }
 0x3e2   : > { %1377 = vrot.lane.b32.xlu1 %v1367_v18, %s10408_s21  ;;  %v8197_v41 = vmul.f32 -1.442695, %v1339_v25 }
 0x3e3   : > { %9431 = vpow2.f32 %v8198_v37 }
 0x3e4   : > { %9433 = vpow2.f32 %v8197_v41  ;;  %v711_v41 = vpop.f32.mrb[16].mxu0 }
 0x3e8   : > { %v9428_v28 = vpop.eup %9427 }
 0x3e9   : > { %v9430_v53 = vpop.eup %9429  ;;  %v1354_v57 = vadd.f32 1.0, %v9428_v28  ;;  %v713_v28 = vpop.f32.mrb[17].mxu0 }
 0x3ea   : > { %v1353_v29 = vadd.f32 1.0, %v9430_v53  ;;  %v714_v53 = vadd.f32 %v713_v28, %v10612_v27 }
 0x3eb   : > { %9435 = vrcp.f32 %v1354_v57  ;;  %v715_v57 = vpop.f32.mrb[18].mxu0 }
 0x3ec   : > { %9437 = vrcp.f32 %v1353_v29  ;;  %v717_v29 = vpop.f32.mrb[19].mxu0  ;;  %928 = vst.msk [vmem:[#allocation2 + $0x88] sm:$0xff] %vm911_vm1, %v714_v53 }
 0x3ed   : > { %v9432_v30 = vpop.eup %9431 }
 0x3ee   : > { %v9434_v31 = vpop.eup %9433  ;;  %v1356_v32 = vadd.f32 1.0, %v9432_v30  ;;  %v718_v30 = vadd.f32 %v717_v29, %v10612_v27 }
 0x3ef   : > { %v1355_v33 = vadd.f32 1.0, %v9434_v31 }
 0x3f0   : > { %9439 = vrcp.f32 %v1356_v32  ;;  %930 = vst.msk [vmem:[#allocation2 + $0x98] sm:$0xff] %vm911_vm1, %v718_v30 }
 0x3f1   : > { %9441 = vrcp.f32 %v1355_v33 }
 0x3f5   : > { %v9436_v35 = vpop.eup %9435 }
 0x3f6   : > { %v9438_v40 = vpop.eup %9437  ;;  %v1438_v10 = vmul.f32 %v9436_v35, %v10706_v36 }
 0x3f7   : > { %v1413_v9 = vsub.f32 1.0, %v9438_v40  ;;  %v1437_v14 = vmul.f32 %v9438_v40, %v10708_v38 }
 0x3fa   : > { %v9440_v45 = vpop.eup %9439 }
 0x3fb   : > { %v9442_v47 = vpop.eup %9441  ;;  %v1416_v18 = vsub.f32 1.0, %v9440_v45  ;;  %v1440_v22 = vmul.f32 %v9440_v45, %v10714_v48  ;;  %v10809_v48 = vadd.f32 %v711_v41, %v10610_v26 }
 0x3fc   : > { %v1415_v21 = vsub.f32 1.0, %v9442_v47  ;;  %v1439_v36 = vmul.f32 %v9442_v47, %v10716_v49  ;;  %v10814_v49 = vadd.f32 %v715_v57, %v10610_v26 }
 0x3fd   : > { %927 = vst [vmem:[#allocation2 + $0x80] sm:$0xff] %v10809_v48 }
 0x3fe   : > { %929 = vst [vmem:[#allocation2 + $0x90] sm:$0xff] %v10814_v49 }
 0x44e   : > { %v1376_v39 = vpop.permute.xlu0 %1375 }
 0x44f   : > { %v1386_v42 = vmul.f32 %v9436_v35, %v1376_v39  ;;  %v1374_v43 = vpop.permute.xlu1 %1373 }
 0x450   : > { %v1385_v44 = vmul.f32 %v9438_v40, %v1374_v43 }
 0x451   : > { %1395 = vrot.lane.b32.xlu0 %v1386_v42, %s10408_s21 }
 0x452   : > { %1393 = vrot.lane.b32.xlu1 %v1385_v44, %s10408_s21 }
 0x453   : > { %v1380_v46 = vpop.permute.xlu0 %1379 }
 0x454   : > { %v1388_v50 = vmul.f32 %v9440_v45, %v1380_v46  ;;  %v1378_v52 = vpop.permute.xlu1 %1377 }
 0x455   : > { %v1387_v54 = vmul.f32 %v9442_v47, %v1378_v52 }
 0x456   : > { %1399 = vrot.lane.b32.xlu0 %v1388_v50, %s10408_s21 }
 0x457   : > { %1397 = vrot.lane.b32.xlu1 %v1387_v54, %s10408_s21 }
 0x4c3   : > { %v1396_v55 = vpop.permute.xlu0 %1395 }
 0x4c4   : > { %v1406_v58 = vadd.f32 %v1396_v55, %v10728_v56  ;;  %v1394_v59 = vpop.permute.xlu1 %1393 }
 0x4c5   : > { %v1405_v60 = vadd.f32 %v1394_v59, %v10723_v51  ;;  %v9386_v51 = vld [vmem:[%s10567_s26 + $0x28] sm:$0xff]  }
 0x4c6   : > { %9443 = vtanh.f32 %v1406_v58  ;;  %8167 = vmatmul.mubr.msk.bf16.gmra.mrb[20].mxu0 %vm564_vm0, %v9386_v51 }
 0x4c7   : > { %9445 = vtanh.f32 %v1405_v60  ;;  %729 = vmatprep.mubr.bf16.mxu0 %v12914_v2 }
 0x4c8   : > { %v1400_v62 = vpop.permute.xlu0 %1399 }
 0x4c9   : > { %v1408_v63 = vadd.f32 %v1400_v62, %v10740_v1  ;;  %v1398_v0 = vpop.permute.xlu1 %1397 }
 0x4ca   : > { %v1407_v3 = vadd.f32 %v1398_v0, %v10735_v61  ;;  %v1414_v61 = vsub.f32 1.0, %v9436_v35 }
 0x4cb   : > { %9447 = vtanh.f32 %v1408_v63 }
 0x4cc   : > { %9449 = vtanh.f32 %v1407_v3 }
 0x4d0   : > { %v9444_v5 = vpop.eup %9443 }
 0x4d1   : > { %v9446_v6 = vpop.eup %9445  ;;  %1423 = vrot.lane.b32.xlu0 %v9444_v5, %s10410_s29 }
 0x4d2   : > { %1421 = vrot.lane.b32.xlu1 %v9446_v6, %s10410_s29 }
 0x4d5   : > { %v9448_v56 = vpop.eup %9447 }
 0x4d6   : > { %v9450_v8 = vpop.eup %9449  ;;  %1427 = vrot.lane.b32.xlu0 %v9448_v56, %s10410_s29 }
 0x4d7   : > { %1425 = vrot.lane.b32.xlu1 %v9450_v8, %s10410_s29 }
 0x543   : > { %v1424_v1 = vpop.permute.xlu0 %1423 }
 0x544   : > { %v1434_v11 = vmul.f32 %v1424_v1, %v1414_v61  ;;  %v1422_v13 = vpop.permute.xlu1 %1421 }
 0x545   : > { %v1433_v15 = vmul.f32 %v1422_v13, %v1413_v9 }
 0x546   : > { %v10790_v16 = vadd.f32 %v1438_v10, %v1434_v11 }
 0x547   : > { %v10792_v17 = vadd.f32 %v1437_v14, %v1433_v15 }
 0x548   : > { %v1428_v19 = vpop.permute.xlu0 %1427  ;;  %1451 = vrot.lane.b32.xlu0 %v10790_v16, %s10410_s29 }
 0x549   : > { %v1436_v23 = vmul.f32 %v1428_v19, %v1416_v18  ;;  %v1426_v24 = vpop.permute.xlu1 %1425  ;;  %1449 = vrot.lane.b32.xlu1 %v10792_v17, %s10410_s29 }
 0x54a   : > { %v1435_v38 = vmul.f32 %v1426_v24, %v1415_v21 }
 0x54b   : > { %v10800_v25 = vadd.f32 %v1440_v22, %v1436_v23 }
 0x54c   : > { %v10802_v37 = vadd.f32 %v1439_v36, %v1435_v38 }
 0x54d   : > { %1455 = vrot.lane.b32.xlu0 %v10800_v25, %s10410_s29 }
 0x54e   : > { %1453 = vrot.lane.b32.xlu1 %v10802_v37, %s10410_s29 }
 0x599   : > { %v721_v31 = vpop.f32.mrb[20].mxu0 }
 0x59a   : > { %v10821_v32 = vadd.f32 %v721_v31, %v10610_v26  ;;  %v723_v33 = vpop.f32.mrb[21].mxu0 }
 0x59b   : > { %v724_v35 = vadd.f32 %v723_v33, %v10612_v27  ;;  %v725_v39 = vpop.f32.mrb[22].mxu0 }
 0x59c   : > { %931 = vst [vmem:[#allocation2 + $0xa0] sm:$0xff] %v10821_v32  ;;  %v10826_v40 = vadd.f32 %v725_v39, %v10610_v26  ;;  %v727_v46 = vpop.f32.mrb[23].mxu0 }
 0x59d   : > { %932 = vst.msk [vmem:[#allocation2 + $0xa8] sm:$0xff] %vm911_vm1, %v724_v35  ;;  %v728_v47 = vadd.f32 %v727_v46, %v10612_v27 }
 0x59e   : > { %933 = vst [vmem:[#allocation2 + $0xb0] sm:$0xff] %v10826_v40 }
 0x59f   : > { %934 = vst.msk [vmem:[#allocation2 + $0xb8] sm:$0xff] %vm911_vm1, %v728_v47 }
 0x5ba   : > { %v1452_v42 = vpop.permute.xlu0 %1451 }
 0x5bb   : > { %1462 = vst.msk [vmem:[#allocation3 + $0x28] sm:$0xff] %vm564_vm0, %v1452_v42  ;;  %v1450_v43 = vpop.permute.xlu1 %1449 }
 0x5bc   : > { %1461 = vst.msk [vmem:[#allocation3 + $0x20] sm:$0xff] %vm564_vm0, %v1450_v43  ;;  %8712 = vmatprep.mubr.msk.f32.mxu1 %vm564_vm0, %v1450_v43  ;;  %v9387_v43 = vld [vmem:[%s10567_s26 + $0x30] sm:$0xff]  }
 0x5bd   : > { %8713 = vmatmul.mubr.msk.f32.vlgmr.msra.gmra.mrb[32].mxu1 %vm564_vm0, %v1452_v42  ;;  %8168 = vmatmul.mubr.msk.bf16.gmra.mrb[24].mxu0 %vm564_vm0, %v9387_v43 }
 0x5be   : > { %9095 = vmatpush3.bf16.msra.mxu1 %v10551_v7  ;;  %739 = vmatprep.mubr.bf16.mxu0 %v12914_v2 }
 0x5bf   : > { %v1456_v44 = vpop.permute.xlu0 %1455  ;;  %9097 = vmatprep.subr.bf16.mxu1 %v10571_v12 }
 0x5c0   : > { %1464 = vst.msk [vmem:[#allocation3 + $0x38] sm:$0xff] %vm564_vm0, %v1456_v44  ;;  %v1454_v45 = vpop.permute.xlu1 %1453 }
 0x5c1   : > { %1463 = vst.msk [vmem:[#allocation3 + $0x30] sm:$0xff] %vm564_vm0, %v1454_v45  ;;  %8715 = vmatprep.mubr.msk.f32.mxu1 %vm564_vm0, %v1454_v45 }
 0x5c2   : > { %8716 = vmatmul.mubr.msk.f32.gmra.mrb[34].mxu1 %vm564_vm0, %v1456_v44 }
 0x5c3   : > { %9099 = vmatpush3.bf16.msra.mxu1 %v10571_v12 }
 0x5c4   : > { %9101 = vmatprep.subr.bf16.mxu1 %v10551_v7 }
 0x690   : > { %v8714_v50 = vpop.f32.mrb[32].mxu1 }
 0x691   : > { %v1591_v52 = vadd.f32 %v8714_v50, %v10674_v34  ;;  %v1543_v54 = vpop.f32.mrb[33].mxu1  ;;  %v1563_v63 = vadd.f32 %v8714_v50, %v10814_v49 }
 0x692   : > { %v1590_v55 = vadd.f32 %v1543_v54, %v10674_v34  ;;  %v1562_v0 = vadd.f32 %v1543_v54, %v10809_v48 }
 0x693   : > { %1600 = vrot.lane.b32.xlu0 %v1591_v52, %s10408_s21  ;;  %v8204_v3 = vmul.f32 -1.442695, %v1563_v63 }
 0x694   : > { %1598 = vrot.lane.b32.xlu1 %v1590_v55, %s10408_s21  ;;  %v8203_v4 = vmul.f32 -1.442695, %v1562_v0 }
 0x695   : > { %v8717_v58 = vpop.f32.mrb[34].mxu1  ;;  %9451 = vpow2.f32 %v8204_v3 }
 0x696   : > { %v1593_v59 = vadd.f32 %v8717_v58, %v10674_v34  ;;  %v1553_v60 = vpop.f32.mrb[35].mxu1  ;;  %v1565_v5 = vadd.f32 %v8717_v58, %v10826_v40  ;;  %9453 = vpow2.f32 %v8203_v4 }
 0x697   : > { %v1592_v62 = vadd.f32 %v1553_v60, %v10674_v34  ;;  %v1564_v6 = vadd.f32 %v1553_v60, %v10821_v32 }
 0x698   : > { %1604 = vrot.lane.b32.xlu0 %v1593_v59, %s10408_s21  ;;  %v8206_v51 = vmul.f32 -1.442695, %v1565_v5 }
 0x699   : > { %1602 = vrot.lane.b32.xlu1 %v1592_v62, %s10408_s21  ;;  %v8205_v56 = vmul.f32 -1.442695, %v1564_v6 }
 0x69a   : > { %9455 = vpow2.f32 %v8206_v51 }
 0x69b   : > { %9457 = vpow2.f32 %v8205_v56  ;;  %v731_v56 = vpop.f32.mrb[24].mxu0 }
 0x69f   : > { %v9452_v8 = vpop.eup %9451 }
 0x6a0   : > { %v9454_v61 = vpop.eup %9453  ;;  %v1579_v1 = vadd.f32 1.0, %v9452_v8  ;;  %v733_v8 = vpop.f32.mrb[25].mxu0 }
 0x6a1   : > { %v1578_v9 = vadd.f32 1.0, %v9454_v61  ;;  %v734_v61 = vadd.f32 %v733_v8, %v10612_v27 }
 0x6a2   : > { %9459 = vrcp.f32 %v1579_v1  ;;  %v735_v1 = vpop.f32.mrb[26].mxu0 }
 0x6a3   : > { %9461 = vrcp.f32 %v1578_v9  ;;  %v737_v9 = vpop.f32.mrb[27].mxu0  ;;  %936 = vst.msk [vmem:[#allocation2 + $0xc8] sm:$0xff] %vm911_vm1, %v734_v61 }
 0x6a4   : > { %v9456_v10 = vpop.eup %9455 }
 0x6a5   : > { %v9458_v11 = vpop.eup %9457  ;;  %v1581_v13 = vadd.f32 1.0, %v9456_v10  ;;  %v738_v10 = vadd.f32 %v737_v9, %v10612_v27 }
 0x6a6   : > { %v1580_v14 = vadd.f32 1.0, %v9458_v11 }
 0x6a7   : > { %9463 = vrcp.f32 %v1581_v13  ;;  %938 = vst.msk [vmem:[#allocation2 + $0xd8] sm:$0xff] %vm911_vm1, %v738_v10 }
 0x6a8   : > { %9465 = vrcp.f32 %v1580_v14 }
 0x6ac   : > { %v9460_v15 = vpop.eup %9459 }
 0x6ad   : > { %v9462_v19 = vpop.eup %9461  ;;  %v1663_v50 = vmul.f32 %v9460_v15, %v10790_v16 }
 0x6ae   : > { %v1638_v47 = vsub.f32 1.0, %v9462_v19  ;;  %v1662_v55 = vmul.f32 %v9462_v19, %v10792_v17 }
 0x6b1   : > { %v9464_v24 = vpop.eup %9463 }
 0x6b2   : > { %v9466_v38 = vpop.eup %9465  ;;  %v1641_v62 = vsub.f32 1.0, %v9464_v24  ;;  %v1665_v3 = vmul.f32 %v9464_v24, %v10800_v25  ;;  %v10895_v25 = vadd.f32 %v731_v56, %v10610_v26 }
 0x6b3   : > { %v1640_v0 = vsub.f32 1.0, %v9466_v38  ;;  %v1664_v16 = vmul.f32 %v9466_v38, %v10802_v37  ;;  %v10900_v37 = vadd.f32 %v735_v1, %v10610_v26 }
 0x6b4   : > { %935 = vst [vmem:[#allocation2 + $0xc0] sm:$0xff] %v10895_v25 }
 0x6b5   : > { %937 = vst [vmem:[#allocation2 + $0xd0] sm:$0xff] %v10900_v37 }
 0x705   : > { %v1601_v18 = vpop.permute.xlu0 %1600 }
 0x706   : > { %v1611_v21 = vmul.f32 %v9460_v15, %v1601_v18  ;;  %v1599_v22 = vpop.permute.xlu1 %1598 }
 0x707   : > { %v1610_v23 = vmul.f32 %v9462_v19, %v1599_v22 }
 0x708   : > { %1620 = vrot.lane.b32.xlu0 %v1611_v21, %s10408_s21 }
 0x709   : > { %1618 = vrot.lane.b32.xlu1 %v1610_v23, %s10408_s21 }
 0x70a   : > { %v1605_v36 = vpop.permute.xlu0 %1604 }
 0x70b   : > { %v1613_v41 = vmul.f32 %v9464_v24, %v1605_v36  ;;  %v1603_v28 = vpop.permute.xlu1 %1602 }
 0x70c   : > { %v1612_v53 = vmul.f32 %v9466_v38, %v1603_v28 }
 0x70d   : > { %1624 = vrot.lane.b32.xlu0 %v1613_v41, %s10408_s21 }
 0x70e   : > { %1622 = vrot.lane.b32.xlu1 %v1612_v53, %s10408_s21 }
 0x77a   : > { %v1621_v57 = vpop.permute.xlu0 %1620 }
 0x77b   : > { %v1631_v29 = vadd.f32 %v1621_v57, %v10814_v49  ;;  %v1619_v30 = vpop.permute.xlu1 %1618 }
 0x77c   : > { %v1630_v31 = vadd.f32 %v1619_v30, %v10809_v48  ;;  %v9388_v48 = vld [vmem:[%s10567_s26 + $0x38] sm:$0xff]  }
 0x77d   : > { %9467 = vtanh.f32 %v1631_v29  ;;  %8169 = vmatmul.mubr.msk.bf16.gmra.mrb[28].mxu0 %vm564_vm0, %v9388_v48 }
 0x77e   : > { %9469 = vtanh.f32 %v1630_v31  ;;  %749 = vmatprep.mubr.bf16.mxu0 %v12914_v2 }
 0x77f   : > { %v1625_v33 = vpop.permute.xlu0 %1624 }
 0x780   : > { %v1633_v35 = vadd.f32 %v1625_v33, %v10826_v40  ;;  %v1623_v39 = vpop.permute.xlu1 %1622 }
 0x781   : > { %v1632_v42 = vadd.f32 %v1623_v39, %v10821_v32  ;;  %v1639_v32 = vsub.f32 1.0, %v9460_v15 }
 0x782   : > { %9471 = vtanh.f32 %v1633_v35 }
 0x783   : > { %9473 = vtanh.f32 %v1632_v42 }
 0x787   : > { %v9468_v44 = vpop.eup %9467 }
 0x788   : > { %v9470_v45 = vpop.eup %9469  ;;  %1648 = vrot.lane.b32.xlu0 %v9468_v44, %s10410_s29 }
 0x789   : > { %1646 = vrot.lane.b32.xlu1 %v9470_v45, %s10410_s29 }
 0x78c   : > { %v9472_v49 = vpop.eup %9471 }
 0x78d   : > { %v9474_v46 = vpop.eup %9473  ;;  %1652 = vrot.lane.b32.xlu0 %v9472_v49, %s10410_s29 }
 0x78e   : > { %1650 = vrot.lane.b32.xlu1 %v9474_v46, %s10410_s29 }
 0x7fa   : > { %v1649_v40 = vpop.permute.xlu0 %1648 }
 0x7fb   : > { %v1659_v52 = vmul.f32 %v1649_v40, %v1639_v32  ;;  %v1647_v54 = vpop.permute.xlu1 %1646 }
 0x7fc   : > { %v1658_v58 = vmul.f32 %v1647_v54, %v1638_v47 }
 0x7fd   : > { %v10876_v59 = vadd.f32 %v1663_v50, %v1659_v52 }
 0x7fe   : > { %v10878_v60 = vadd.f32 %v1662_v55, %v1658_v58 }
 0x7ff   : > { %v1653_v63 = vpop.permute.xlu0 %1652  ;;  %1676 = vrot.lane.b32.xlu0 %v10876_v59, %s10410_s29 }
 0x800   : > { %v1661_v4 = vmul.f32 %v1653_v63, %v1641_v62  ;;  %v1651_v5 = vpop.permute.xlu1 %1650  ;;  %1674 = vrot.lane.b32.xlu1 %v10878_v60, %s10410_s29 }
 0x801   : > { %v1660_v17 = vmul.f32 %v1651_v5, %v1640_v0 }
 0x802   : > { %v10886_v6 = vadd.f32 %v1665_v3, %v1661_v4 }
 0x803   : > { %v10888_v51 = vadd.f32 %v1664_v16, %v1660_v17 }
 0x804   : > { %1680 = vrot.lane.b32.xlu0 %v10886_v6, %s10410_s29 }
 0x805   : > { %1678 = vrot.lane.b32.xlu1 %v10888_v51, %s10410_s29 }
 0x850   : > { %v741_v11 = vpop.f32.mrb[28].mxu0 }
 0x851   : > { %v10907_v13 = vadd.f32 %v741_v11, %v10610_v26  ;;  %v743_v14 = vpop.f32.mrb[29].mxu0 }
 0x852   : > { %v744_v15 = vadd.f32 %v743_v14, %v10612_v27  ;;  %v745_v18 = vpop.f32.mrb[30].mxu0 }
 0x853   : > { %939 = vst [vmem:[#allocation2 + $0xe0] sm:$0xff] %v10907_v13  ;;  %v10912_v19 = vadd.f32 %v745_v18, %v10610_v26  ;;  %v747_v36 = vpop.f32.mrb[31].mxu0 }
 0x854   : > { %940 = vst.msk [vmem:[#allocation2 + $0xe8] sm:$0xff] %vm911_vm1, %v744_v15  ;;  %v748_v38 = vadd.f32 %v747_v36, %v10612_v27 }
 0x855   : > { %941 = vst [vmem:[#allocation2 + $0xf0] sm:$0xff] %v10912_v19 }
 0x856   : > { %942 = vst.msk [vmem:[#allocation2 + $0xf8] sm:$0xff] %vm911_vm1, %v748_v38 }
 0x871   : > { %v1677_v21 = vpop.permute.xlu0 %1676 }
 0x872   : > { %1687 = vst.msk [vmem:[#allocation3 + $0x48] sm:$0xff] %vm564_vm0, %v1677_v21  ;;  %v1675_v22 = vpop.permute.xlu1 %1674 }
 0x873   : > { %1686 = vst.msk [vmem:[#allocation3 + $0x40] sm:$0xff] %vm564_vm0, %v1675_v22  ;;  %8726 = vmatprep.mubr.msk.f32.mxu1 %vm564_vm0, %v1675_v22  ;;  %v9389_v22 = vld [vmem:[%s10567_s26 + $0x40] sm:$0xff]  }
 0x874   : > { %8727 = vmatmul.mubr.msk.f32.vlgmr.msra.gmra.mrb[36].mxu1 %vm564_vm0, %v1677_v21  ;;  %8170 = vmatmul.mubr.msk.bf16.gmra.mrb[32].mxu0 %vm564_vm0, %v9389_v22 }
 0x875   : > { %9103 = vmatpush3.bf16.msra.mxu1 %v10551_v7  ;;  %759 = vmatprep.mubr.bf16.mxu0 %v12914_v2 }
 0x876   : > { %v1681_v23 = vpop.permute.xlu0 %1680  ;;  %9105 = vmatprep.subr.bf16.mxu1 %v10571_v12 }
 0x877   : > { %1689 = vst.msk [vmem:[#allocation3 + $0x58] sm:$0xff] %vm564_vm0, %v1681_v23  ;;  %v1679_v24 = vpop.permute.xlu1 %1678 }
 0x878   : > { %1688 = vst.msk [vmem:[#allocation3 + $0x50] sm:$0xff] %vm564_vm0, %v1679_v24  ;;  %8729 = vmatprep.mubr.msk.f32.mxu1 %vm564_vm0, %v1679_v24 }
 0x879   : > { %8730 = vmatmul.mubr.msk.f32.gmra.mrb[38].mxu1 %vm564_vm0, %v1681_v23 }
 0x87a   : > { %9107 = vmatpush3.bf16.msra.mxu1 %v10571_v12 }
 0x87b   : > { %9109 = vmatprep.subr.bf16.mxu1 %v10551_v7 }
 0x947   : > { %v8728_v41 = vpop.f32.mrb[36].mxu1 }
 0x948   : > { %v1816_v28 = vadd.f32 %v8728_v41, %v10674_v34  ;;  %v1768_v53 = vpop.f32.mrb[37].mxu1  ;;  %v1788_v35 = vadd.f32 %v8728_v41, %v10900_v37 }
 0x949   : > { %v1815_v57 = vadd.f32 %v1768_v53, %v10674_v34  ;;  %v1787_v39 = vadd.f32 %v1768_v53, %v10895_v25 }
 0x94a   : > { %1825 = vrot.lane.b32.xlu0 %v1816_v28, %s10408_s21  ;;  %v8212_v42 = vmul.f32 -1.442695, %v1788_v35 }
 0x94b   : > { %1823 = vrot.lane.b32.xlu1 %v1815_v57, %s10408_s21  ;;  %v8211_v43 = vmul.f32 -1.442695, %v1787_v39 }
 0x94c   : > { %v8731_v29 = vpop.f32.mrb[38].mxu1  ;;  %9475 = vpow2.f32 %v8212_v42 }
 0x94d   : > { %v1818_v30 = vadd.f32 %v8731_v29, %v10674_v34  ;;  %v1778_v31 = vpop.f32.mrb[39].mxu1  ;;  %v1790_v44 = vadd.f32 %v8731_v29, %v10912_v19  ;;  %9477 = vpow2.f32 %v8211_v43 }
 0x94e   : > { %v1817_v33 = vadd.f32 %v1778_v31, %v10674_v34  ;;  %v1789_v45 = vadd.f32 %v1778_v31, %v10907_v13 }
 0x94f   : > { %1829 = vrot.lane.b32.xlu0 %v1818_v30, %s10408_s21  ;;  %v8214_v48 = vmul.f32 -1.442695, %v1790_v44 }
 0x950   : > { %1827 = vrot.lane.b32.xlu1 %v1817_v33, %s10408_s21  ;;  %v8213_v49 = vmul.f32 -1.442695, %v1789_v45 }
 0x951   : > { %9479 = vpow2.f32 %v8214_v48 }
 0x952   : > { %9481 = vpow2.f32 %v8213_v49  ;;  %v751_v49 = vpop.f32.mrb[32].mxu0 }
 0x956   : > { %v9476_v46 = vpop.eup %9475 }
 0x957   : > { %v9478_v32 = vpop.eup %9477  ;;  %v1804_v40 = vadd.f32 1.0, %v9476_v46  ;;  %v753_v46 = vpop.f32.mrb[33].mxu0 }
 0x958   : > { %v1803_v47 = vadd.f32 1.0, %v9478_v32  ;;  %v754_v32 = vadd.f32 %v753_v46, %v10612_v27 }
 0x959   : > { %9483 = vrcp.f32 %v1804_v40  ;;  %v755_v40 = vpop.f32.mrb[34].mxu0 }
 0x95a   : > { %9485 = vrcp.f32 %v1803_v47  ;;  %v757_v47 = vpop.f32.mrb[35].mxu0  ;;  %944 = vst.msk [vmem:[#allocation2 + $0x108] sm:$0xff] %vm911_vm1, %v754_v32 }
 0x95b   : > { %v9480_v50 = vpop.eup %9479 }
 0x95c   : > { %v9482_v52 = vpop.eup %9481  ;;  %v1806_v54 = vadd.f32 1.0, %v9480_v50  ;;  %v758_v50 = vadd.f32 %v757_v47, %v10612_v27 }
 0x95d   : > { %v1805_v55 = vadd.f32 1.0, %v9482_v52 }
 0x95e   : > { %9487 = vrcp.f32 %v1806_v54  ;;  %946 = vst.msk [vmem:[#allocation2 + $0x118] sm:$0xff] %vm911_vm1, %v758_v50 }
 0x95f   : > { %9489 = vrcp.f32 %v1805_v55 }
 0x963   : > { %v9484_v58 = vpop.eup %9483 }
 0x964   : > { %v9486_v63 = vpop.eup %9485  ;;  %v1888_v41 = vmul.f32 %v9484_v58, %v10876_v59 }
 0x965   : > { %v1863_v38 = vsub.f32 1.0, %v9486_v63  ;;  %v1887_v57 = vmul.f32 %v9486_v63, %v10878_v60 }
 0x968   : > { %v9488_v5 = vpop.eup %9487 }
 0x969   : > { %v9490_v17 = vpop.eup %9489  ;;  %v1866_v33 = vsub.f32 1.0, %v9488_v5  ;;  %v1890_v42 = vmul.f32 %v9488_v5, %v10886_v6  ;;  %v10981_v6 = vadd.f32 %v751_v49, %v10610_v26 }
 0x96a   : > { %v1865_v39 = vsub.f32 1.0, %v9490_v17  ;;  %v1889_v59 = vmul.f32 %v9490_v17, %v10888_v51  ;;  %v10986_v51 = vadd.f32 %v755_v40, %v10610_v26 }
 0x96b   : > { %943 = vst [vmem:[#allocation2 + $0x100] sm:$0xff] %v10981_v6 }
 0x96c   : > { %945 = vst [vmem:[#allocation2 + $0x110] sm:$0xff] %v10986_v51 }
 0x9bc   : > { %v1826_v62 = vpop.permute.xlu0 %1825 }
 0x9bd   : > { %v1836_v0 = vmul.f32 %v9484_v58, %v1826_v62  ;;  %v1824_v3 = vpop.permute.xlu1 %1823 }
 0x9be   : > { %v1835_v4 = vmul.f32 %v9486_v63, %v1824_v3 }
 0x9bf   : > { %1845 = vrot.lane.b32.xlu0 %v1836_v0, %s10408_s21 }
 0x9c0   : > { %1843 = vrot.lane.b32.xlu1 %v1835_v4, %s10408_s21 }
 0x9c1   : > { %v1830_v16 = vpop.permute.xlu0 %1829 }
 0x9c2   : > { %v1838_v56 = vmul.f32 %v9488_v5, %v1830_v16  ;;  %v1828_v8 = vpop.permute.xlu1 %1827 }
 0x9c3   : > { %v1837_v61 = vmul.f32 %v9490_v17, %v1828_v8 }
 0x9c4   : > { %1849 = vrot.lane.b32.xlu0 %v1838_v56, %s10408_s21 }
 0x9c5   : > { %1847 = vrot.lane.b32.xlu1 %v1837_v61, %s10408_s21 }
 0xa31   : > { %v1846_v1 = vpop.permute.xlu0 %1845 }
 0xa32   : > { %v1856_v9 = vadd.f32 %v1846_v1, %v10900_v37  ;;  %v1844_v10 = vpop.permute.xlu1 %1843 }
 0xa33   : > { %v1855_v11 = vadd.f32 %v1844_v10, %v10895_v25  ;;  %v9390_v25 = vld [vmem:[%s10567_s26 + $0x48] sm:$0xff]  }
 0xa34   : > { %9491 = vtanh.f32 %v1856_v9  ;;  %8171 = vmatmul.mubr.msk.bf16.gmra.mrb[36].mxu0 %vm564_vm0, %v9390_v25 }
 0xa35   : > { %9493 = vtanh.f32 %v1855_v11  ;;  %769 = vmatprep.mubr.bf16.mxu0 %v12914_v2 }
 0xa36   : > { %v1850_v14 = vpop.permute.xlu0 %1849 }
 0xa37   : > { %v1858_v15 = vadd.f32 %v1850_v14, %v10912_v19  ;;  %v1848_v18 = vpop.permute.xlu1 %1847 }
 0xa38   : > { %v1857_v21 = vadd.f32 %v1848_v18, %v10907_v13  ;;  %v1864_v13 = vsub.f32 1.0, %v9484_v58 }
 0xa39   : > { %9495 = vtanh.f32 %v1858_v15 }
 0xa3a   : > { %9497 = vtanh.f32 %v1857_v21 }
 0xa3e   : > { %v9492_v23 = vpop.eup %9491 }
 0xa3f   : > { %v9494_v24 = vpop.eup %9493  ;;  %1873 = vrot.lane.b32.xlu0 %v9492_v23, %s10410_s29 }
 0xa40   : > { %1871 = vrot.lane.b32.xlu1 %v9494_v24, %s10410_s29 }
 0xa43   : > { %v9496_v37 = vpop.eup %9495 }
 0xa44   : > { %v9498_v36 = vpop.eup %9497  ;;  %1877 = vrot.lane.b32.xlu0 %v9496_v37, %s10410_s29 }
 0xa45   : > { %1875 = vrot.lane.b32.xlu1 %v9498_v36, %s10410_s29 }
 0xab1   : > { %v1874_v19 = vpop.permute.xlu0 %1873 }
 0xab2   : > { %v1884_v28 = vmul.f32 %v1874_v19, %v1864_v13  ;;  %v1872_v53 = vpop.permute.xlu1 %1871 }
 0xab3   : > { %v1883_v29 = vmul.f32 %v1872_v53, %v1863_v38 }
 0xab4   : > { %v10962_v30 = vadd.f32 %v1888_v41, %v1884_v28 }
 0xab5   : > { %v10964_v31 = vadd.f32 %v1887_v57, %v1883_v29 }
 0xab6   : > { %v1878_v35 = vpop.permute.xlu0 %1877  ;;  %1901 = vrot.lane.b32.xlu0 %v10962_v30, %s10410_s29 }
 0xab7   : > { %v1886_v43 = vmul.f32 %v1878_v35, %v1866_v33  ;;  %v1876_v44 = vpop.permute.xlu1 %1875  ;;  %1899 = vrot.lane.b32.xlu1 %v10964_v31, %s10410_s29 }
 0xab8   : > { %v1885_v60 = vmul.f32 %v1876_v44, %v1865_v39 }
 0xab9   : > { %v10972_v45 = vadd.f32 %v1890_v42, %v1886_v43 }
 0xaba   : > { %v10974_v48 = vadd.f32 %v1889_v59, %v1885_v60 }
 0xabb   : > { %1905 = vrot.lane.b32.xlu0 %v10972_v45, %s10410_s29 }
 0xabc   : > { %1903 = vrot.lane.b32.xlu1 %v10974_v48, %s10410_s29 }
 0xb07   : > { %v761_v52 = vpop.f32.mrb[36].mxu0 }
 0xb08   : > { %v10993_v54 = vadd.f32 %v761_v52, %v10610_v26  ;;  %v763_v55 = vpop.f32.mrb[37].mxu0 }
 0xb09   : > { %v764_v58 = vadd.f32 %v763_v55, %v10612_v27  ;;  %v765_v62 = vpop.f32.mrb[38].mxu0 }
 0xb0a   : > { %947 = vst [vmem:[#allocation2 + $0x120] sm:$0xff] %v10993_v54  ;;  %v10998_v63 = vadd.f32 %v765_v62, %v10610_v26  ;;  %v767_v16 = vpop.f32.mrb[39].mxu0 }
 0xb0b   : > { %948 = vst.msk [vmem:[#allocation2 + $0x128] sm:$0xff] %vm911_vm1, %v764_v58  ;;  %v768_v17 = vadd.f32 %v767_v16, %v10612_v27 }
 0xb0c   : > { %949 = vst [vmem:[#allocation2 + $0x130] sm:$0xff] %v10998_v63 }
 0xb0d   : > { %950 = vst.msk [vmem:[#allocation2 + $0x138] sm:$0xff] %vm911_vm1, %v768_v17 }
 0xb28   : > { %v1902_v0 = vpop.permute.xlu0 %1901 }
 0xb29   : > { %1912 = vst.msk [vmem:[#allocation3 + $0x68] sm:$0xff] %vm564_vm0, %v1902_v0  ;;  %v1900_v3 = vpop.permute.xlu1 %1899 }
 0xb2a   : > { %1911 = vst.msk [vmem:[#allocation3 + $0x60] sm:$0xff] %vm564_vm0, %v1900_v3  ;;  %8740 = vmatprep.mubr.msk.f32.mxu1 %vm564_vm0, %v1900_v3  ;;  %v9391_v3 = vld [vmem:[%s10567_s26 + $0x50] sm:$0xff]  }
 0xb2b   : > { %8741 = vmatmul.mubr.msk.f32.vlgmr.msra.gmra.mrb[40].mxu1 %vm564_vm0, %v1902_v0  ;;  %8172 = vmatmul.mubr.msk.bf16.gmra.mrb[40].mxu0 %vm564_vm0, %v9391_v3 }
 0xb2c   : > { %9111 = vmatpush3.bf16.msra.mxu1 %v10551_v7  ;;  %779 = vmatprep.mubr.bf16.mxu0 %v12914_v2 }
 0xb2d   : > { %v1906_v4 = vpop.permute.xlu0 %1905  ;;  %9113 = vmatprep.subr.bf16.mxu1 %v10571_v12 }
 0xb2e   : > { %1914 = vst.msk [vmem:[#allocation3 + $0x78] sm:$0xff] %vm564_vm0, %v1906_v4  ;;  %v1904_v5 = vpop.permute.xlu1 %1903 }
 0xb2f   : > { %1913 = vst.msk [vmem:[#allocation3 + $0x70] sm:$0xff] %vm564_vm0, %v1904_v5  ;;  %8743 = vmatprep.mubr.msk.f32.mxu1 %vm564_vm0, %v1904_v5 }
 0xb30   : > { %8744 = vmatmul.mubr.msk.f32.gmra.mrb[42].mxu1 %vm564_vm0, %v1906_v4 }
 0xb31   : > { %9115 = vmatpush3.bf16.msra.mxu1 %v10571_v12 }
 0xb32   : > { %9117 = vmatprep.subr.bf16.mxu1 %v10551_v7 }
 0xbfe   : > { %v8742_v56 = vpop.f32.mrb[40].mxu1 }
 0xbff   : > { %v2041_v8 = vadd.f32 %v8742_v56, %v10674_v34  ;;  %v1993_v61 = vpop.f32.mrb[41].mxu1  ;;  %v2013_v15 = vadd.f32 %v8742_v56, %v10986_v51 }
 0xc00   : > { %v2040_v1 = vadd.f32 %v1993_v61, %v10674_v34  ;;  %v2012_v18 = vadd.f32 %v1993_v61, %v10981_v6 }
 0xc01   : > { %2050 = vrot.lane.b32.xlu0 %v2041_v8, %s10408_s21  ;;  %v8220_v21 = vmul.f32 -1.442695, %v2013_v15 }
 0xc02   : > { %2048 = vrot.lane.b32.xlu1 %v2040_v1, %s10408_s21  ;;  %v8219_v22 = vmul.f32 -1.442695, %v2012_v18 }
 0xc03   : > { %v8745_v9 = vpop.f32.mrb[42].mxu1  ;;  %9499 = vpow2.f32 %v8220_v21 }
 0xc04   : > { %v2043_v10 = vadd.f32 %v8745_v9, %v10674_v34  ;;  %v2003_v11 = vpop.f32.mrb[43].mxu1  ;;  %v2015_v23 = vadd.f32 %v8745_v9, %v10998_v63  ;;  %9501 = vpow2.f32 %v8219_v22 }
 0xc05   : > { %v2042_v14 = vadd.f32 %v2003_v11, %v10674_v34  ;;  %v2014_v24 = vadd.f32 %v2003_v11, %v10993_v54 }
 0xc06   : > { %2054 = vrot.lane.b32.xlu0 %v2043_v10, %s10408_s21  ;;  %v8222_v25 = vmul.f32 -1.442695, %v2015_v23 }
 0xc07   : > { %2052 = vrot.lane.b32.xlu1 %v2042_v14, %s10408_s21  ;;  %v8221_v37 = vmul.f32 -1.442695, %v2014_v24 }
 0xc08   : > { %9503 = vpow2.f32 %v8222_v25 }
 0xc09   : > { %9505 = vpow2.f32 %v8221_v37  ;;  %v771_v37 = vpop.f32.mrb[40].mxu0 }
 0xc0d   : > { %v9500_v36 = vpop.eup %9499 }
 0xc0e   : > { %v9502_v13 = vpop.eup %9501  ;;  %v2029_v19 = vadd.f32 1.0, %v9500_v36  ;;  %v773_v36 = vpop.f32.mrb[41].mxu0 }
 0xc0f   : > { %v2028_v38 = vadd.f32 1.0, %v9502_v13  ;;  %v774_v13 = vadd.f32 %v773_v36, %v10612_v27 }
 0xc10   : > { %9507 = vrcp.f32 %v2029_v19  ;;  %v775_v19 = vpop.f32.mrb[42].mxu0 }
 0xc11   : > { %9509 = vrcp.f32 %v2028_v38  ;;  %v777_v38 = vpop.f32.mrb[43].mxu0  ;;  %952 = vst.msk [vmem:[#allocation2 + $0x148] sm:$0xff] %vm911_vm1, %v774_v13 }
 0xc12   : > { %v9504_v41 = vpop.eup %9503 }
 0xc13   : > { %v9506_v28 = vpop.eup %9505  ;;  %v2031_v53 = vadd.f32 1.0, %v9504_v41  ;;  %v778_v41 = vadd.f32 %v777_v38, %v10612_v27 }
 0xc14   : > { %v2030_v57 = vadd.f32 1.0, %v9506_v28 }
 0xc15   : > { %9511 = vrcp.f32 %v2031_v53  ;;  %954 = vst.msk [vmem:[#allocation2 + $0x158] sm:$0xff] %vm911_vm1, %v778_v41 }
 0xc16   : > { %9513 = vrcp.f32 %v2030_v57 }
 0xc1a   : > { %v9508_v29 = vpop.eup %9507 }
 0xc1b   : > { %v9510_v35 = vpop.eup %9509  ;;  %v2113_v56 = vmul.f32 %v9508_v29, %v10962_v30 }
 0xc1c   : > { %v2088_v17 = vsub.f32 1.0, %v9510_v35  ;;  %v2112_v1 = vmul.f32 %v9510_v35, %v10964_v31 }
 0xc1f   : > { %v9512_v44 = vpop.eup %9511 }
 0xc20   : > { %v9514_v60 = vpop.eup %9513  ;;  %v2091_v14 = vsub.f32 1.0, %v9512_v44  ;;  %v2115_v21 = vmul.f32 %v9512_v44, %v10972_v45  ;;  %v11067_v45 = vadd.f32 %v771_v37, %v10610_v26 }
 0xc21   : > { %v2090_v18 = vsub.f32 1.0, %v9514_v60  ;;  %v2114_v30 = vmul.f32 %v9514_v60, %v10974_v48  ;;  %v11072_v48 = vadd.f32 %v775_v19, %v10610_v26 }
 0xc22   : > { %951 = vst [vmem:[#allocation2 + $0x140] sm:$0xff] %v11067_v45 }
 0xc23   : > { %953 = vst [vmem:[#allocation2 + $0x150] sm:$0xff] %v11072_v48 }
 0xc73   : > { %v2051_v33 = vpop.permute.xlu0 %2050 }
 0xc74   : > { %v2061_v39 = vmul.f32 %v9508_v29, %v2051_v33  ;;  %v2049_v42 = vpop.permute.xlu1 %2048 }
 0xc75   : > { %v2060_v43 = vmul.f32 %v9510_v35, %v2049_v42 }
 0xc76   : > { %2070 = vrot.lane.b32.xlu0 %v2061_v39, %s10408_s21 }
 0xc77   : > { %2068 = vrot.lane.b32.xlu1 %v2060_v43, %s10408_s21 }
 0xc78   : > { %v2055_v59 = vpop.permute.xlu0 %2054 }
 0xc79   : > { %v2063_v49 = vmul.f32 %v9512_v44, %v2055_v59  ;;  %v2053_v46 = vpop.permute.xlu1 %2052 }
 0xc7a   : > { %v2062_v32 = vmul.f32 %v9514_v60, %v2053_v46 }
 0xc7b   : > { %2074 = vrot.lane.b32.xlu0 %v2063_v49, %s10408_s21 }
 0xc7c   : > { %2072 = vrot.lane.b32.xlu1 %v2062_v32, %s10408_s21 }
 0xce8   : > { %v2071_v40 = vpop.permute.xlu0 %2070 }
 0xce9   : > { %v2081_v47 = vadd.f32 %v2071_v40, %v10986_v51  ;;  %v2069_v50 = vpop.permute.xlu1 %2068 }
 0xcea   : > { %v2080_v52 = vadd.f32 %v2069_v50, %v10981_v6  ;;  %v9392_v6 = vld [vmem:[%s10567_s26 + $0x58] sm:$0xff]  }
 0xceb   : > { %9515 = vtanh.f32 %v2081_v47  ;;  %8173 = vmatmul.mubr.msk.bf16.gmra.mrb[44].mxu0 %vm564_vm0, %v9392_v6 }
 0xcec   : > { %9517 = vtanh.f32 %v2080_v52  ;;  %789 = vmatprep.mubr.bf16.mxu0 %v12914_v2 }
 0xced   : > { %v2075_v55 = vpop.permute.xlu0 %2074 }
 0xcee   : > { %v2083_v58 = vadd.f32 %v2075_v55, %v10998_v63  ;;  %v2073_v62 = vpop.permute.xlu1 %2072 }
 0xcef   : > { %v2082_v0 = vadd.f32 %v2073_v62, %v10993_v54  ;;  %v2089_v54 = vsub.f32 1.0, %v9508_v29 }
 0xcf0   : > { %9519 = vtanh.f32 %v2083_v58 }
 0xcf1   : > { %9521 = vtanh.f32 %v2082_v0 }
 0xcf5   : > { %v9516_v4 = vpop.eup %9515 }
 0xcf6   : > { %v9518_v5 = vpop.eup %9517  ;;  %2098 = vrot.lane.b32.xlu0 %v9516_v4, %s10410_s29 }
 0xcf7   : > { %2096 = vrot.lane.b32.xlu1 %v9518_v5, %s10410_s29 }
 0xcfa   : > { %v9520_v51 = vpop.eup %9519 }
 0xcfb   : > { %v9522_v16 = vpop.eup %9521  ;;  %2102 = vrot.lane.b32.xlu0 %v9520_v51, %s10410_s29 }
 0xcfc   : > { %2100 = vrot.lane.b32.xlu1 %v9522_v16, %s10410_s29 }
 0xd68   : > { %v2099_v63 = vpop.permute.xlu0 %2098 }
 0xd69   : > { %v2109_v8 = vmul.f32 %v2099_v63, %v2089_v54  ;;  %v2097_v61 = vpop.permute.xlu1 %2096 }
 0xd6a   : > { %v2108_v9 = vmul.f32 %v2097_v61, %v2088_v17 }
 0xd6b   : > { %v11048_v10 = vadd.f32 %v2113_v56, %v2109_v8 }
 0xd6c   : > { %v11050_v11 = vadd.f32 %v2112_v1, %v2108_v9 }
 0xd6d   : > { %v2103_v15 = vpop.permute.xlu0 %2102  ;;  %2126 = vrot.lane.b32.xlu0 %v11048_v10, %s10410_s29 }
 0xd6e   : > { %v2111_v22 = vmul.f32 %v2103_v15, %v2091_v14  ;;  %v2101_v23 = vpop.permute.xlu1 %2100  ;;  %2124 = vrot.lane.b32.xlu1 %v11050_v11, %s10410_s29 }
 0xd6f   : > { %v2110_v31 = vmul.f32 %v2101_v23, %v2090_v18 }
 0xd70   : > { %v11058_v24 = vadd.f32 %v2115_v21, %v2111_v22 }
 0xd71   : > { %v11060_v25 = vadd.f32 %v2114_v30, %v2110_v31 }
 0xd72   : > { %2130 = vrot.lane.b32.xlu0 %v11058_v24, %s10410_s29 }
 0xd73   : > { %2128 = vrot.lane.b32.xlu1 %v11060_v25, %s10410_s29 }
 0xdbe   : > { %v781_v28 = vpop.f32.mrb[44].mxu0 }
 0xdbf   : > { %v11079_v53 = vadd.f32 %v781_v28, %v10610_v26  ;;  %v783_v57 = vpop.f32.mrb[45].mxu0 }
 0xdc0   : > { %v784_v29 = vadd.f32 %v783_v57, %v10612_v27  ;;  %v785_v33 = vpop.f32.mrb[46].mxu0 }
 0xdc1   : > { %955 = vst [vmem:[#allocation2 + $0x160] sm:$0xff] %v11079_v53  ;;  %v11084_v35 = vadd.f32 %v785_v33, %v10610_v26  ;;  %v787_v59 = vpop.f32.mrb[47].mxu0 }
 0xdc2   : > { %956 = vst.msk [vmem:[#allocation2 + $0x168] sm:$0xff] %vm911_vm1, %v784_v29  ;;  %v788_v60 = vadd.f32 %v787_v59, %v10612_v27 }
 0xdc3   : > { %957 = vst [vmem:[#allocation2 + $0x170] sm:$0xff] %v11084_v35 }
 0xdc4   : > { %958 = vst.msk [vmem:[#allocation2 + $0x178] sm:$0xff] %vm911_vm1, %v788_v60 }
 0xddf   : > { %v2127_v39 = vpop.permute.xlu0 %2126 }
 0xde0   : > { %2137 = vst.msk [vmem:[#allocation3 + $0x88] sm:$0xff] %vm564_vm0, %v2127_v39  ;;  %v2125_v42 = vpop.permute.xlu1 %2124 }
 0xde1   : > { %2136 = vst.msk [vmem:[#allocation3 + $0x80] sm:$0xff] %vm564_vm0, %v2125_v42  ;;  %8754 = vmatprep.mubr.msk.f32.mxu1 %vm564_vm0, %v2125_v42  ;;  %v9393_v42 = vld [vmem:[%s10567_s26 + $0x60] sm:$0xff]  }
 0xde2   : > { %8755 = vmatmul.mubr.msk.f32.vlgmr.msra.gmra.mrb[44].mxu1 %vm564_vm0, %v2127_v39  ;;  %8174 = vmatmul.mubr.msk.bf16.gmra.mrb[48].mxu0 %vm564_vm0, %v9393_v42 }
 0xde3   : > { %9119 = vmatpush3.bf16.msra.mxu1 %v10551_v7  ;;  %799 = vmatprep.mubr.bf16.mxu0 %v12914_v2 }
 0xde4   : > { %v2131_v43 = vpop.permute.xlu0 %2130  ;;  %9121 = vmatprep.subr.bf16.mxu1 %v10571_v12 }
 0xde5   : > { %2139 = vst.msk [vmem:[#allocation3 + $0x98] sm:$0xff] %vm564_vm0, %v2131_v43  ;;  %v2129_v44 = vpop.permute.xlu1 %2128 }
 0xde6   : > { %2138 = vst.msk [vmem:[#allocation3 + $0x90] sm:$0xff] %vm564_vm0, %v2129_v44  ;;  %8757 = vmatprep.mubr.msk.f32.mxu1 %vm564_vm0, %v2129_v44 }
 0xde7   : > { %8758 = vmatmul.mubr.msk.f32.gmra.mrb[46].mxu1 %vm564_vm0, %v2131_v43 }
 0xde8   : > { %9123 = vmatpush3.bf16.msra.mxu1 %v10571_v12 }
 0xde9   : > { %9125 = vmatprep.subr.bf16.mxu1 %v10551_v7 }
 0xeb5   : > { %v8756_v49 = vpop.f32.mrb[44].mxu1 }
 0xeb6   : > { %v2266_v46 = vadd.f32 %v8756_v49, %v10674_v34  ;;  %v2218_v32 = vpop.f32.mrb[45].mxu1  ;;  %v2238_v58 = vadd.f32 %v8756_v49, %v11072_v48 }
 0xeb7   : > { %v2265_v40 = vadd.f32 %v2218_v32, %v10674_v34  ;;  %v2237_v62 = vadd.f32 %v2218_v32, %v11067_v45 }
 0xeb8   : > { %2275 = vrot.lane.b32.xlu0 %v2266_v46, %s10408_s21  ;;  %v8228_v0 = vmul.f32 -1.442695, %v2238_v58 }
 0xeb9   : > { %2273 = vrot.lane.b32.xlu1 %v2265_v40, %s10408_s21  ;;  %v8227_v3 = vmul.f32 -1.442695, %v2237_v62 }
 0xeba   : > { %v8759_v47 = vpop.f32.mrb[46].mxu1  ;;  %9523 = vpow2.f32 %v8228_v0 }
 0xebb   : > { %v2268_v50 = vadd.f32 %v8759_v47, %v10674_v34  ;;  %v2228_v52 = vpop.f32.mrb[47].mxu1  ;;  %v2240_v4 = vadd.f32 %v8759_v47, %v11084_v35  ;;  %9525 = vpow2.f32 %v8227_v3 }
 0xebc   : > { %v2267_v55 = vadd.f32 %v2228_v52, %v10674_v34  ;;  %v2239_v5 = vadd.f32 %v2228_v52, %v11079_v53 }
 0xebd   : > { %2279 = vrot.lane.b32.xlu0 %v2268_v50, %s10408_s21  ;;  %v8230_v6 = vmul.f32 -1.442695, %v2240_v4 }
 0xebe   : > { %2277 = vrot.lane.b32.xlu1 %v2267_v55, %s10408_s21  ;;  %v8229_v51 = vmul.f32 -1.442695, %v2239_v5 }
 0xebf   : > { %9527 = vpow2.f32 %v8230_v6 }
 0xec0   : > { %9529 = vpow2.f32 %v8229_v51  ;;  %v791_v51 = vpop.f32.mrb[48].mxu0 }
 0xec4   : > { %v9524_v16 = vpop.eup %9523 }
 0xec5   : > { %v9526_v54 = vpop.eup %9525  ;;  %v2254_v63 = vadd.f32 1.0, %v9524_v16  ;;  %v793_v16 = vpop.f32.mrb[49].mxu0 }
 0xec6   : > { %v2253_v17 = vadd.f32 1.0, %v9526_v54  ;;  %v794_v54 = vadd.f32 %v793_v16, %v10612_v27 }
 0xec7   : > { %9531 = vrcp.f32 %v2254_v63  ;;  %v795_v63 = vpop.f32.mrb[50].mxu0 }
 0xec8   : > { %9533 = vrcp.f32 %v2253_v17  ;;  %v797_v17 = vpop.f32.mrb[51].mxu0  ;;  %960 = vst.msk [vmem:[#allocation2 + $0x188] sm:$0xff] %vm911_vm1, %v794_v54 }
 0xec9   : > { %v9528_v56 = vpop.eup %9527 }
 0xeca   : > { %v9530_v8 = vpop.eup %9529  ;;  %v2256_v61 = vadd.f32 1.0, %v9528_v56  ;;  %v798_v56 = vadd.f32 %v797_v17, %v10612_v27 }
 0xecb   : > { %v2255_v1 = vadd.f32 1.0, %v9530_v8 }
 0xecc   : > { %9535 = vrcp.f32 %v2256_v61  ;;  %962 = vst.msk [vmem:[#allocation2 + $0x198] sm:$0xff] %vm911_vm1, %v798_v56 }
 0xecd   : > { %9537 = vrcp.f32 %v2255_v1 }
 0xed1   : > { %v9532_v9 = vpop.eup %9531 }
 0xed2   : > { %v9534_v15 = vpop.eup %9533  ;;  %v2338_v49 = vmul.f32 %v9532_v9, %v11048_v10 }
 0xed3   : > { %v2313_v60 = vsub.f32 1.0, %v9534_v15  ;;  %v2337_v40 = vmul.f32 %v9534_v15, %v11050_v11 }
 0xed6   : > { %v9536_v23 = vpop.eup %9535 }
 0xed7   : > { %v9538_v31 = vpop.eup %9537  ;;  %v2316_v55 = vsub.f32 1.0, %v9536_v23  ;;  %v2340_v0 = vmul.f32 %v9536_v23, %v11058_v24  ;;  %v11153_v24 = vadd.f32 %v791_v51, %v10610_v26 }
 0xed8   : > { %v2315_v62 = vsub.f32 1.0, %v9538_v31  ;;  %v2339_v10 = vmul.f32 %v9538_v31, %v11060_v25  ;;  %v11158_v25 = vadd.f32 %v795_v63, %v10610_v26 }
 0xed9   : > { %959 = vst [vmem:[#allocation2 + $0x180] sm:$0xff] %v11153_v24 }
 0xeda   : > { %961 = vst [vmem:[#allocation2 + $0x190] sm:$0xff] %v11158_v25 }
 0xf2a   : > { %v2276_v14 = vpop.permute.xlu0 %2275 }
 0xf2b   : > { %v2286_v18 = vmul.f32 %v9532_v9, %v2276_v14  ;;  %v2274_v21 = vpop.permute.xlu1 %2273 }
 0xf2c   : > { %v2285_v22 = vmul.f32 %v9534_v15, %v2274_v21 }
 0xf2d   : > { %2295 = vrot.lane.b32.xlu0 %v2286_v18, %s10408_s21 }
 0xf2e   : > { %2293 = vrot.lane.b32.xlu1 %v2285_v22, %s10408_s21 }
 0xf2f   : > { %v2280_v30 = vpop.permute.xlu0 %2279 }
 0xf30   : > { %v2288_v37 = vmul.f32 %v9536_v23, %v2280_v30  ;;  %v2278_v36 = vpop.permute.xlu1 %2277 }
 0xf31   : > { %v2287_v13 = vmul.f32 %v9538_v31, %v2278_v36 }
 0xf32   : > { %2299 = vrot.lane.b32.xlu0 %v2288_v37, %s10408_s21 }
 0xf33   : > { %2297 = vrot.lane.b32.xlu1 %v2287_v13, %s10408_s21 }
 0xf9f   : > { %v2296_v19 = vpop.permute.xlu0 %2295 }
 0xfa0   : > { %v2306_v38 = vadd.f32 %v2296_v19, %v11072_v48  ;;  %v2294_v41 = vpop.permute.xlu1 %2293 }
 0xfa1   : > { %v2305_v28 = vadd.f32 %v2294_v41, %v11067_v45  ;;  %v9394_v45 = vld [vmem:[%s10567_s26 + $0x68] sm:$0xff]  }
 0xfa2   : > { %9539 = vtanh.f32 %v2306_v38  ;;  %8175 = vmatmul.mubr.msk.bf16.gmra.mrb[52].mxu0 %vm564_vm0, %v9394_v45 }
 0xfa3   : > { %9541 = vtanh.f32 %v2305_v28  ;;  %809 = vmatprep.mubr.bf16.mxu0 %v12914_v2 }
 0xfa4   : > { %v2300_v57 = vpop.permute.xlu0 %2299 }
 0xfa5   : > { %v2308_v29 = vadd.f32 %v2300_v57, %v11084_v35  ;;  %v2298_v33 = vpop.permute.xlu1 %2297 }
 0xfa6   : > { %v2307_v39 = vadd.f32 %v2298_v33, %v11079_v53  ;;  %v2314_v53 = vsub.f32 1.0, %v9532_v9 }
 0xfa7   : > { %9543 = vtanh.f32 %v2308_v29 }
 0xfa8   : > { %9545 = vtanh.f32 %v2307_v39 }
 0xfac   : > { %v9540_v43 = vpop.eup %9539 }
 0xfad   : > { %v9542_v44 = vpop.eup %9541  ;;  %2323 = vrot.lane.b32.xlu0 %v9540_v43, %s10410_s29 }
 0xfae   : > { %2321 = vrot.lane.b32.xlu1 %v9542_v44, %s10410_s29 }
 0xfb1   : > { %v9544_v48 = vpop.eup %9543 }
 0xfb2   : > { %v9546_v59 = vpop.eup %9545  ;;  %2327 = vrot.lane.b32.xlu0 %v9544_v48, %s10410_s29 }
 0xfb3   : > { %2325 = vrot.lane.b32.xlu1 %v9546_v59, %s10410_s29 }
0x101f   : > { %v2324_v35 = vpop.permute.xlu0 %2323 }
0x1020   : > { %v2334_v46 = vmul.f32 %v2324_v35, %v2314_v53  ;;  %v2322_v32 = vpop.permute.xlu1 %2321 }
0x1021   : > { %v2333_v47 = vmul.f32 %v2322_v32, %v2313_v60 }
0x1022   : > { %v11134_v50 = vadd.f32 %v2338_v49, %v2334_v46 }
0x1023   : > { %v11136_v52 = vadd.f32 %v2337_v40, %v2333_v47 }
0x1024   : > { %v2328_v58 = vpop.permute.xlu0 %2327  ;;  %2351 = vrot.lane.b32.xlu0 %v11134_v50, %s10410_s29 }
0x1025   : > { %v2336_v3 = vmul.f32 %v2328_v58, %v2316_v55  ;;  %v2326_v4 = vpop.permute.xlu1 %2325  ;;  %2349 = vrot.lane.b32.xlu1 %v11136_v52, %s10410_s29 }
0x1026   : > { %v2335_v11 = vmul.f32 %v2326_v4, %v2315_v62 }
0x1027   : > { %v11144_v5 = vadd.f32 %v2340_v0, %v2336_v3 }
0x1028   : > { %v11146_v6 = vadd.f32 %v2339_v10, %v2335_v11 }
0x1029   : > { %2355 = vrot.lane.b32.xlu0 %v11144_v5, %s10410_s29 }
0x102a   : > { %2353 = vrot.lane.b32.xlu1 %v11146_v6, %s10410_s29 }
0x1075   : > { %v801_v8 = vpop.f32.mrb[52].mxu0 }
0x1076   : > { %v11165_v61 = vadd.f32 %v801_v8, %v10610_v26  ;;  %v803_v1 = vpop.f32.mrb[53].mxu0 }
0x1077   : > { %v804_v9 = vadd.f32 %v803_v1, %v10612_v27  ;;  %v805_v14 = vpop.f32.mrb[54].mxu0 }
0x1078   : > { %963 = vst [vmem:[#allocation2 + $0x1a0] sm:$0xff] %v11165_v61  ;;  %v11170_v15 = vadd.f32 %v805_v14, %v10610_v26  ;;  %v807_v30 = vpop.f32.mrb[55].mxu0 }
0x1079   : > { %964 = vst.msk [vmem:[#allocation2 + $0x1a8] sm:$0xff] %vm911_vm1, %v804_v9  ;;  %v808_v31 = vadd.f32 %v807_v30, %v10612_v27 }
0x107a   : > { %965 = vst [vmem:[#allocation2 + $0x1b0] sm:$0xff] %v11170_v15 }
0x107b   : > { %966 = vst.msk [vmem:[#allocation2 + $0x1b8] sm:$0xff] %vm911_vm1, %v808_v31 }
0x1096   : > { %v2352_v18 = vpop.permute.xlu0 %2351 }
0x1097   : > { %2362 = vst.msk [vmem:[#allocation3 + $0xa8] sm:$0xff] %vm564_vm0, %v2352_v18  ;;  %v2350_v21 = vpop.permute.xlu1 %2349 }
0x1098   : > { %2361 = vst.msk [vmem:[#allocation3 + $0xa0] sm:$0xff] %vm564_vm0, %v2350_v21  ;;  %8768 = vmatprep.mubr.msk.f32.mxu1 %vm564_vm0, %v2350_v21  ;;  %v9395_v21 = vld [vmem:[%s10567_s26 + $0x70] sm:$0xff]  }
0x1099   : > { %8769 = vmatmul.mubr.msk.f32.vlgmr.msra.gmra.mrb[48].mxu1 %vm564_vm0, %v2352_v18  ;;  %8176 = vmatmul.mubr.msk.bf16.gmra.mrb[56].mxu0 %vm564_vm0, %v9395_v21 }
0x109a   : > { %9127 = vmatpush3.bf16.msra.mxu1 %v10551_v7  ;;  %819 = vmatprep.mubr.bf16.mxu0 %v12914_v2 }
0x109b   : > { %v2356_v22 = vpop.permute.xlu0 %2355  ;;  %9129 = vmatprep.subr.bf16.mxu1 %v10571_v12 }
0x109c   : > { %2364 = vst.msk [vmem:[#allocation3 + $0xb8] sm:$0xff] %vm564_vm0, %v2356_v22  ;;  %v2354_v23 = vpop.permute.xlu1 %2353 }
0x109d   : > { %2363 = vst.msk [vmem:[#allocation3 + $0xb0] sm:$0xff] %vm564_vm0, %v2354_v23  ;;  %8771 = vmatprep.mubr.msk.f32.mxu1 %vm564_vm0, %v2354_v23 }
0x109e   : > { %8772 = vmatmul.mubr.msk.f32.gmra.mrb[50].mxu1 %vm564_vm0, %v2356_v22 }
0x109f   : > { %9131 = vmatpush3.bf16.msra.mxu1 %v10571_v12 }
0x10a0   : > { %9133 = vmatprep.subr.bf16.mxu1 %v10551_v7 }
0x116c   : > { %v8770_v37 = vpop.f32.mrb[48].mxu1 }
0x116d   : > { %v2491_v36 = vadd.f32 %v8770_v37, %v10674_v34  ;;  %v2443_v13 = vpop.f32.mrb[49].mxu1  ;;  %v2463_v29 = vadd.f32 %v8770_v37, %v11158_v25 }
0x116e   : > { %v2490_v19 = vadd.f32 %v2443_v13, %v10674_v34  ;;  %v2462_v33 = vadd.f32 %v2443_v13, %v11153_v24 }
0x116f   : > { %2500 = vrot.lane.b32.xlu0 %v2491_v36, %s10408_s21  ;;  %v8236_v39 = vmul.f32 -1.442695, %v2463_v29 }
0x1170   : > { %2498 = vrot.lane.b32.xlu1 %v2490_v19, %s10408_s21  ;;  %v8235_v42 = vmul.f32 -1.442695, %v2462_v33 }
0x1171   : > { %v8773_v38 = vpop.f32.mrb[50].mxu1  ;;  %9547 = vpow2.f32 %v8236_v39 }
0x1172   : > { %v2493_v41 = vadd.f32 %v8773_v38, %v10674_v34  ;;  %v2453_v28 = vpop.f32.mrb[51].mxu1  ;;  %v2465_v43 = vadd.f32 %v8773_v38, %v11170_v15  ;;  %9549 = vpow2.f32 %v8235_v42 }
0x1173   : > { %v2492_v57 = vadd.f32 %v2453_v28, %v10674_v34  ;;  %v2464_v44 = vadd.f32 %v2453_v28, %v11165_v61 }
0x1174   : > { %2504 = vrot.lane.b32.xlu0 %v2493_v41, %s10408_s21  ;;  %v8238_v45 = vmul.f32 -1.442695, %v2465_v43 }
0x1175   : > { %2502 = vrot.lane.b32.xlu1 %v2492_v57, %s10408_s21  ;;  %v8237_v48 = vmul.f32 -1.442695, %v2464_v44 }
0x1176   : > { %9551 = vpow2.f32 %v8238_v45 }
0x1177   : > { %9553 = vpow2.f32 %v8237_v48  ;;  %v811_v48 = vpop.f32.mrb[56].mxu0 }
0x117b   : > { %v9548_v59 = vpop.eup %9547 }
0x117c   : > { %v9550_v53 = vpop.eup %9549  ;;  %v2479_v35 = vadd.f32 1.0, %v9548_v59  ;;  %v813_v59 = vpop.f32.mrb[57].mxu0 }
0x117d   : > { %v2478_v60 = vadd.f32 1.0, %v9550_v53  ;;  %v814_v53 = vadd.f32 %v813_v59, %v10612_v27 }
0x117e   : > { %9555 = vrcp.f32 %v2479_v35  ;;  %v815_v35 = vpop.f32.mrb[58].mxu0 }
0x117f   : > { %9557 = vrcp.f32 %v2478_v60  ;;  %v817_v60 = vpop.f32.mrb[59].mxu0  ;;  %968 = vst.msk [vmem:[#allocation2 + $0x1c8] sm:$0xff] %vm911_vm1, %v814_v53 }
0x1180   : > { %v9552_v49 = vpop.eup %9551 }
0x1181   : > { %v9554_v46 = vpop.eup %9553  ;;  %v2481_v32 = vadd.f32 1.0, %v9552_v49  ;;  %v818_v49 = vadd.f32 %v817_v60, %v10612_v27 }
0x1182   : > { %v2480_v40 = vadd.f32 1.0, %v9554_v46 }
0x1183   : > { %9559 = vrcp.f32 %v2481_v32  ;;  %970 = vst.msk [vmem:[#allocation2 + $0x1d8] sm:$0xff] %vm911_vm1, %v818_v49 }
0x1184   : > { %9561 = vrcp.f32 %v2480_v40 }
0x1188   : > { %v9556_v47 = vpop.eup %9555 }
0x1189   : > { %v9558_v58 = vpop.eup %9557  ;;  %v2563_v37 = vmul.f32 %v9556_v47, %v11134_v50 }
0x118a   : > { %v2538_v31 = vsub.f32 1.0, %v9558_v58  ;;  %v2562_v19 = vmul.f32 %v9558_v58, %v11136_v52 }
0x118d   : > { %v9560_v4 = vpop.eup %9559 }
0x118e   : > { %v9562_v11 = vpop.eup %9561  ;;  %v2541_v57 = vsub.f32 1.0, %v9560_v4  ;;  %v2565_v39 = vmul.f32 %v9560_v4, %v11144_v5  ;;  %v11239_v5 = vadd.f32 %v811_v48, %v10610_v26 }
0x118f   : > { %v2540_v33 = vsub.f32 1.0, %v9562_v11  ;;  %v2564_v50 = vmul.f32 %v9562_v11, %v11146_v6  ;;  %v11244_v6 = vadd.f32 %v815_v35, %v10610_v26 }
0x1190   : > { %967 = vst [vmem:[#allocation2 + $0x1c0] sm:$0xff] %v11239_v5 }
0x1191   : > { %969 = vst [vmem:[#allocation2 + $0x1d0] sm:$0xff] %v11244_v6 }
0x11e1   : > { %v2501_v55 = vpop.permute.xlu0 %2500 }
0x11e2   : > { %v2511_v62 = vmul.f32 %v9556_v47, %v2501_v55  ;;  %v2499_v0 = vpop.permute.xlu1 %2498 }
0x11e3   : > { %v2510_v3 = vmul.f32 %v9558_v58, %v2499_v0 }
0x11e4   : > { %2520 = vrot.lane.b32.xlu0 %v2511_v62, %s10408_s21 }
0x11e5   : > { %2518 = vrot.lane.b32.xlu1 %v2510_v3, %s10408_s21 }
0x11e6   : > { %v2505_v10 = vpop.permute.xlu0 %2504 }
0x11e7   : > { %v2513_v51 = vmul.f32 %v9560_v4, %v2505_v10  ;;  %v2503_v16 = vpop.permute.xlu1 %2502 }
0x11e8   : > { %v2512_v54 = vmul.f32 %v9562_v11, %v2503_v16 }
0x11e9   : > { %2524 = vrot.lane.b32.xlu0 %v2513_v51, %s10408_s21 }
0x11ea   : > { %2522 = vrot.lane.b32.xlu1 %v2512_v54, %s10408_s21 }
0x1256   : > { %v2521_v63 = vpop.permute.xlu0 %2520 }
0x1257   : > { %v2531_v17 = vadd.f32 %v2521_v63, %v11158_v25  ;;  %v2519_v56 = vpop.permute.xlu1 %2518 }
0x1258   : > { %v2530_v8 = vadd.f32 %v2519_v56, %v11153_v24  ;;  %v9396_v24 = vld [vmem:[%s10567_s26 + $0x78] sm:$0xff]  }
0x1259   : > { %9563 = vtanh.f32 %v2531_v17  ;;  %8177 = vmatmul.mubr.msk.bf16.gmra.mrb[60].mxu0 %vm564_vm0, %v9396_v24 }
0x125a   : > { %9565 = vtanh.f32 %v2530_v8  ;;  %829 = vmatprep.mubr.bf16.mxu0 %v12914_v2 }
0x125b   : > { %v2525_v1 = vpop.permute.xlu0 %2524 }
0x125c   : > { %v2533_v9 = vadd.f32 %v2525_v1, %v11170_v15  ;;  %v2523_v14 = vpop.permute.xlu1 %2522 }
0x125d   : > { %v2532_v18 = vadd.f32 %v2523_v14, %v11165_v61  ;;  %v2539_v61 = vsub.f32 1.0, %v9556_v47 }
0x125e   : > { %9567 = vtanh.f32 %v2533_v9 }
0x125f   : > { %9569 = vtanh.f32 %v2532_v18 }
0x1263   : > { %v9564_v22 = vpop.eup %9563 }
0x1264   : > { %v9566_v23 = vpop.eup %9565  ;;  %2548 = vrot.lane.b32.xlu0 %v9564_v22, %s10410_s29 }
0x1265   : > { %2546 = vrot.lane.b32.xlu1 %v9566_v23, %s10410_s29 }
0x1268   : > { %v9568_v25 = vpop.eup %9567 }
0x1269   : > { %v9570_v30 = vpop.eup %9569  ;;  %2552 = vrot.lane.b32.xlu0 %v9568_v25, %s10410_s29 }
0x126a   : > { %2550 = vrot.lane.b32.xlu1 %v9570_v30, %s10410_s29 }
0x12d6   : > { %v2549_v15 = vpop.permute.xlu0 %2548 }
0x12d7   : > { %v2559_v36 = vmul.f32 %v2549_v15, %v2539_v61  ;;  %v2547_v13 = vpop.permute.xlu1 %2546 }
0x12d8   : > { %v2558_v38 = vmul.f32 %v2547_v13, %v2538_v31 }
0x12d9   : > { %v11220_v41 = vadd.f32 %v2563_v37, %v2559_v36 }
0x12da   : > { %v11222_v28 = vadd.f32 %v2562_v19, %v2558_v38 }
0x12db   : > { %v2553_v29 = vpop.permute.xlu0 %2552  ;;  %2576 = vrot.lane.b32.xlu0 %v11220_v41, %s10410_s29 }
0x12dc   : > { %v2561_v42 = vmul.f32 %v2553_v29, %v2541_v57  ;;  %v2551_v43 = vpop.permute.xlu1 %2550  ;;  %2574 = vrot.lane.b32.xlu1 %v11222_v28, %s10410_s29 }
0x12dd   : > { %v2560_v52 = vmul.f32 %v2551_v43, %v2540_v33 }
0x12de   : > { %v11230_v44 = vadd.f32 %v2565_v39, %v2561_v42 }
0x12df   : > { %v11232_v45 = vadd.f32 %v2564_v50, %v2560_v52 }
0x12e0   : > { %2580 = vrot.lane.b32.xlu0 %v11230_v44, %s10410_s29 }
0x12e1   : > { %2578 = vrot.lane.b32.xlu1 %v11232_v45, %s10410_s29 }
0x132c   : > { %v821_v46 = vpop.f32.mrb[60].mxu0 }
0x132d   : > { %v11251_v32 = vadd.f32 %v821_v46, %v10610_v26  ;;  %v823_v40 = vpop.f32.mrb[61].mxu0 }
0x132e   : > { %v824_v47 = vadd.f32 %v823_v40, %v10612_v27  ;;  %v825_v55 = vpop.f32.mrb[62].mxu0 }
0x132f   : > { %971 = vst [vmem:[#allocation2 + $0x1e0] sm:$0xff] %v11251_v32  ;;  %v11256_v58 = vadd.f32 %v825_v55, %v10610_v26  ;;  %v827_v10 = vpop.f32.mrb[63].mxu0 }
0x1330   : > { %972 = vst.msk [vmem:[#allocation2 + $0x1e8] sm:$0xff] %vm911_vm1, %v824_v47  ;;  %v828_v11 = vadd.f32 %v827_v10, %v10612_v27 }
0x1331   : > { %973 = vst [vmem:[#allocation2 + $0x1f0] sm:$0xff] %v11256_v58 }
0x1332   : > { %974 = vst.msk [vmem:[#allocation2 + $0x1f8] sm:$0xff] %vm911_vm1, %v828_v11 }
0x134d   : > { %v2577_v62 = vpop.permute.xlu0 %2576 }
0x134e   : > { %2587 = vst.msk [vmem:[#allocation3 + $0xc8] sm:$0xff] %vm564_vm0, %v2577_v62  ;;  %v2575_v0 = vpop.permute.xlu1 %2574 }
0x134f   : > { %2586 = vst.msk [vmem:[#allocation3 + $0xc0] sm:$0xff] %vm564_vm0, %v2575_v0  ;;  %8782 = vmatprep.mubr.msk.f32.mxu1 %vm564_vm0, %v2575_v0  ;;  %v9397_v0 = vld [vmem:[%s10567_s26 + $0x80] sm:$0xff]  }
0x1350   : > { %8783 = vmatmul.mubr.msk.f32.vlgmr.msra.gmra.mrb[52].mxu1 %vm564_vm0, %v2577_v62  ;;  %8178 = vmatmul.mubr.msk.bf16.gmra.mrb[64].mxu0 %vm564_vm0, %v9397_v0 }
0x1351   : > { %9135 = vmatpush3.bf16.msra.mxu1 %v10551_v7  ;;  %839 = vmatprep.mubr.bf16.mxu0 %v12914_v2 }
0x1352   : > { %v2581_v3 = vpop.permute.xlu0 %2580  ;;  %9137 = vmatprep.subr.bf16.mxu1 %v10571_v12 }
0x1353   : > { %2589 = vst.msk [vmem:[#allocation3 + $0xd8] sm:$0xff] %vm564_vm0, %v2581_v3  ;;  %v2579_v4 = vpop.permute.xlu1 %2578 }
0x1354   : > { %2588 = vst.msk [vmem:[#allocation3 + $0xd0] sm:$0xff] %vm564_vm0, %v2579_v4  ;;  %8785 = vmatprep.mubr.msk.f32.mxu1 %vm564_vm0, %v2579_v4 }
0x1355   : > { %8786 = vmatmul.mubr.msk.f32.gmra.mrb[54].mxu1 %vm564_vm0, %v2581_v3 }
0x1356   : > { %9139 = vmatpush3.bf16.msra.mxu1 %v10571_v12 }
0x1357   : > { %9141 = vmatprep.subr.bf16.mxu1 %v10551_v7 }
0x1423   : > { %v8784_v51 = vpop.f32.mrb[52].mxu1 }
0x1424   : > { %v2716_v16 = vadd.f32 %v8784_v51, %v10674_v34  ;;  %v2668_v54 = vpop.f32.mrb[53].mxu1  ;;  %v2688_v9 = vadd.f32 %v8784_v51, %v11244_v6 }
0x1425   : > { %v2715_v63 = vadd.f32 %v2668_v54, %v10674_v34  ;;  %v2687_v14 = vadd.f32 %v2668_v54, %v11239_v5 }
0x1426   : > { %2725 = vrot.lane.b32.xlu0 %v2716_v16, %s10408_s21  ;;  %v8244_v18 = vmul.f32 -1.442695, %v2688_v9 }
0x1427   : > { %2723 = vrot.lane.b32.xlu1 %v2715_v63, %s10408_s21  ;;  %v8243_v21 = vmul.f32 -1.442695, %v2687_v14 }
0x1428   : > { %v8787_v17 = vpop.f32.mrb[54].mxu1  ;;  %9571 = vpow2.f32 %v8244_v18 }
0x1429   : > { %v2718_v56 = vadd.f32 %v8787_v17, %v10674_v34  ;;  %v2678_v8 = vpop.f32.mrb[55].mxu1  ;;  %v2690_v22 = vadd.f32 %v8787_v17, %v11256_v58  ;;  %9573 = vpow2.f32 %v8243_v21 }
0x142a   : > { %v2717_v1 = vadd.f32 %v2678_v8, %v10674_v34  ;;  %v2689_v23 = vadd.f32 %v2678_v8, %v11251_v32 }
0x142b   : > { %2729 = vrot.lane.b32.xlu0 %v2718_v56, %s10408_s21  ;;  %v8246_v24 = vmul.f32 -1.442695, %v2690_v22 }
0x142c   : > { %2727 = vrot.lane.b32.xlu1 %v2717_v1, %s10408_s21  ;;  %v8245_v25 = vmul.f32 -1.442695, %v2689_v23 }
0x142d   : > { %9575 = vpow2.f32 %v8246_v24 }
0x142e   : > { %9577 = vpow2.f32 %v8245_v25  ;;  %v831_v25 = vpop.f32.mrb[64].mxu0 }
0x1432   : > { %v9572_v30 = vpop.eup %9571 }
0x1433   : > { %v9574_v61 = vpop.eup %9573  ;;  %v2704_v15 = vadd.f32 1.0, %v9572_v30  ;;  %v833_v30 = vpop.f32.mrb[65].mxu0 }
0x1434   : > { %v2703_v31 = vadd.f32 1.0, %v9574_v61  ;;  %v834_v61 = vadd.f32 %v833_v30, %v10612_v27 }
0x1435   : > { %9579 = vrcp.f32 %v2704_v15  ;;  %v835_v15 = vpop.f32.mrb[66].mxu0 }
0x1436   : > { %9581 = vrcp.f32 %v2703_v31  ;;  %v837_v31 = vpop.f32.mrb[67].mxu0  ;;  %976 = vst.msk [vmem:[#allocation2 + $0x208] sm:$0xff] %vm911_vm1, %v834_v61 }
0x1437   : > { %v9576_v37 = vpop.eup %9575 }
0x1438   : > { %v9578_v36 = vpop.eup %9577  ;;  %v2706_v13 = vadd.f32 1.0, %v9576_v37  ;;  %v838_v37 = vadd.f32 %v837_v31, %v10612_v27 }
0x1439   : > { %v2705_v19 = vadd.f32 1.0, %v9578_v36 }
0x143a   : > { %9583 = vrcp.f32 %v2706_v13  ;;  %978 = vst.msk [vmem:[#allocation2 + $0x218] sm:$0xff] %vm911_vm1, %v838_v37 }
0x143b   : > { %9585 = vrcp.f32 %v2705_v19 }
0x143f   : > { %v9580_v38 = vpop.eup %9579 }
0x1440   : > { %v9582_v29 = vpop.eup %9581  ;;  %v2788_v51 = vmul.f32 %v9580_v38, %v11220_v41 }
0x1441   : > { %v2763_v11 = vsub.f32 1.0, %v9582_v29  ;;  %v2787_v63 = vmul.f32 %v9582_v29, %v11222_v28 }
0x1444   : > { %v9584_v43 = vpop.eup %9583 }
0x1445   : > { %v9586_v52 = vpop.eup %9585  ;;  %v2766_v1 = vsub.f32 1.0, %v9584_v43  ;;  %v2790_v18 = vmul.f32 %v9584_v43, %v11230_v44  ;;  %v11324_v44 = vadd.f32 %v831_v25, %v10610_v26 }
0x1446   : > { %v2765_v14 = vsub.f32 1.0, %v9586_v52  ;;  %v2789_v41 = vmul.f32 %v9586_v52, %v11232_v45  ;;  %v11329_v45 = vadd.f32 %v835_v15, %v10610_v26 }
0x1447   : > { %975 = vst [vmem:[#allocation2 + $0x200] sm:$0xff] %v11324_v44 }
0x1448   : > { %977 = vst [vmem:[#allocation2 + $0x210] sm:$0xff] %v11329_v45 }
0x1498   : > { %v2726_v57 = vpop.permute.xlu0 %2725 }
0x1499   : > { %v2736_v33 = vmul.f32 %v9580_v38, %v2726_v57  ;;  %v2724_v39 = vpop.permute.xlu1 %2723 }
0x149a   : > { %v2735_v42 = vmul.f32 %v9582_v29, %v2724_v39 }
0x149b   : > { %2745 = vrot.lane.b32.xlu0 %v2736_v33, %s10408_s21 }
0x149c   : > { %2743 = vrot.lane.b32.xlu1 %v2735_v42, %s10408_s21 }
0x149d   : > { %v2730_v50 = vpop.permute.xlu0 %2729 }
0x149e   : > { %v2738_v48 = vmul.f32 %v9584_v43, %v2730_v50  ;;  %v2728_v59 = vpop.permute.xlu1 %2727 }
0x149f   : > { %v2737_v53 = vmul.f32 %v9586_v52, %v2728_v59 }
0x14a0   : > { %2749 = vrot.lane.b32.xlu0 %v2738_v48, %s10408_s21 }
0x14a1   : > { %2747 = vrot.lane.b32.xlu1 %v2737_v53, %s10408_s21 }
0x150d   : > { %v2746_v35 = vpop.permute.xlu0 %2745 }
0x150e   : > { %v2756_v60 = vadd.f32 %v2746_v35, %v11244_v6  ;;  %v2744_v49 = vpop.permute.xlu1 %2743 }
0x150f   : > { %v2755_v46 = vadd.f32 %v2744_v49, %v11239_v5  ;;  %v9398_v5 = vld [vmem:[%s10567_s26 + $0x88] sm:$0xff]   ;;  %s8455_s26 = sshll.u32 %s10502_s17, 9  ;;  %s12862_s17 = scalar_lea.sflag [#allocation5], %s350_s18 }
0x1510   : > { %9587 = vtanh.f32 %v2756_v60  ;;  %8179 = vmatmul.mubr.msk.bf16.gmra.mrb[68].mxu0 %vm564_vm0, %v9398_v5 }
0x1511   : > { %9589 = vtanh.f32 %v2755_v46 }
0x1512   : > { %v2750_v40 = vpop.permute.xlu0 %2749 }
0x1513   : > { %v2758_v47 = vadd.f32 %v2750_v40, %v11256_v58  ;;  %v2748_v55 = vpop.permute.xlu1 %2747 }
0x1514   : > { %v2757_v62 = vadd.f32 %v2748_v55, %v11251_v32  ;;  %v2764_v32 = vsub.f32 1.0, %v9580_v38 }
0x1515   : > { %9591 = vtanh.f32 %v2758_v47 }
0x1516   : > { %9593 = vtanh.f32 %v2757_v62 }
0x151a   : > { %v9588_v3 = vpop.eup %9587 }
0x151b   : > { %v9590_v4 = vpop.eup %9589  ;;  %2773 = vrot.lane.b32.xlu0 %v9588_v3, %s10410_s29 }
0x151c   : > { %2771 = vrot.lane.b32.xlu1 %v9590_v4, %s10410_s29 }
0x151f   : > { %v9592_v6 = vpop.eup %9591 }
0x1520   : > { %v9594_v10 = vpop.eup %9593  ;;  %2777 = vrot.lane.b32.xlu0 %v9592_v6, %s10410_s29 }
0x1521   : > { %2775 = vrot.lane.b32.xlu1 %v9594_v10, %s10410_s29 }
0x158d   : > { %v2774_v58 = vpop.permute.xlu0 %2773 }
0x158e   : > { %v2784_v16 = vmul.f32 %v2774_v58, %v2764_v32  ;;  %v2772_v54 = vpop.permute.xlu1 %2771 }
0x158f   : > { %v2783_v17 = vmul.f32 %v2772_v54, %v2763_v11 }
0x1590   : > { %v11305_v56 = vadd.f32 %v2788_v51, %v2784_v16 }
0x1591   : > { %v11307_v8 = vadd.f32 %v2787_v63, %v2783_v17 }
0x1592   : > { %v2778_v9 = vpop.permute.xlu0 %2777  ;;  %2801 = vrot.lane.b32.xlu0 %v11305_v56, %s10410_s29 }
0x1593   : > { %v2786_v21 = vmul.f32 %v2778_v9, %v2766_v1  ;;  %v2776_v22 = vpop.permute.xlu1 %2775  ;;  %2799 = vrot.lane.b32.xlu1 %v11307_v8, %s10410_s29 }
0x1594   : > { %v2785_v28 = vmul.f32 %v2776_v22, %v2765_v14 }
0x1595   : > { %v11315_v23 = vadd.f32 %v2790_v18, %v2786_v21 }
0x1596   : > { %v11317_v24 = vadd.f32 %v2789_v41, %v2785_v28 }
0x1597   : > { %2805 = vrot.lane.b32.xlu0 %v11315_v23, %s10410_s29 }
0x1598   : > { %2803 = vrot.lane.b32.xlu1 %v11317_v24, %s10410_s29 }
0x15e3   : > { %v841_v36 = vpop.f32.mrb[68].mxu0 }
0x15e4   : > { %v11336_v13 = vadd.f32 %v841_v36, %v10610_v26  ;;  %v843_v19 = vpop.f32.mrb[69].mxu0 }
0x15e5   : > { %v844_v38 = vadd.f32 %v843_v19, %v10612_v27  ;;  %v845_v57 = vpop.f32.mrb[70].mxu0 }
0x15e6   : > { %979 = vst [vmem:[#allocation2 + $0x220] sm:$0xff] %v11336_v13  ;;  %v11341_v29 = vadd.f32 %v845_v57, %v10610_v26  ;;  %v847_v43 = vpop.f32.mrb[71].mxu0 }
0x15e7   : > { %980 = vst.msk [vmem:[#allocation2 + $0x228] sm:$0xff] %vm911_vm1, %v844_v38  ;;  %v848_v50 = vadd.f32 %v847_v43, %v10612_v27 }
0x15e8   : > { %981 = vst [vmem:[#allocation2 + $0x230] sm:$0xff] %v11341_v29 }
0x15e9   : > { %982 = vst.msk [vmem:[#allocation2 + $0x238] sm:$0xff] %vm911_vm1, %v848_v50 }
0x1604   : > { %v2802_v33 = vpop.permute.xlu0 %2801 }
0x1605   : > { %2812 = vst.msk [vmem:[#allocation3 + $0xe8] sm:$0xff] %vm564_vm0, %v2802_v33  ;;  %v2800_v39 = vpop.permute.xlu1 %2799 }
0x1606   : > { %2811 = vst.msk [vmem:[#allocation3 + $0xe0] sm:$0xff] %vm564_vm0, %v2800_v39  ;;  %8796 = vmatprep.mubr.msk.f32.mxu1 %vm564_vm0, %v2800_v39 }
0x1607   : > { %8797 = vmatmul.mubr.msk.f32.vlgmr.msra.gmra.mrb[56].mxu1 %vm564_vm0, %v2802_v33 }
0x1608   : > { %9143 = vmatpush3.bf16.msra.mxu1 %v10551_v7 }
0x1609   : > { %v2806_v42 = vpop.permute.xlu0 %2805  ;;  %9145 = vmatprep.subr.bf16.mxu1 %v10571_v12 }
0x160a   : > { %2814 = vst.msk [vmem:[#allocation3 + $0xf8] sm:$0xff] %vm564_vm0, %v2806_v42  ;;  %v2804_v26 = vpop.permute.xlu1 %2803 }
0x160b   : > { %2813 = vst.msk [vmem:[#allocation3 + $0xf0] sm:$0xff] %vm564_vm0, %v2804_v26  ;;  %8799 = vmatprep.mubr.msk.f32.mxu1 %vm564_vm0, %v2804_v26 }
0x160c   : > { %8800 = vmatmul.mubr.msk.f32.gmra.mrb[58].mxu1 %vm564_vm0, %v2806_v42 }
0x160d   : > { %9147 = vmatpush3.bf16.msra.mxu1 %v10571_v12 }
0x160e   : > { %9149 = vmatprep.subr.bf16.mxu1 %v10551_v7 }
0x16da   : > { %v8798_v52 = vpop.f32.mrb[56].mxu1 }
0x16db   : > { %v2941_v48 = vadd.f32 %v8798_v52, %v10674_v34  ;;  %v2893_v59 = vpop.f32.mrb[57].mxu1  ;;  %v2913_v27 = vadd.f32 %v8798_v52, %v11329_v45 }
0x16dc   : > { %v2940_v53 = vadd.f32 %v2893_v59, %v10674_v34  ;;  %v2912_v40 = vadd.f32 %v2893_v59, %v11324_v44 }
0x16dd   : > { %2950 = vrot.lane.b32.xlu0 %v2941_v48, %s10408_s21  ;;  %v8252_v47 = vmul.f32 -1.442695, %v2913_v27 }
0x16de   : > { %2948 = vrot.lane.b32.xlu1 %v2940_v53, %s10408_s21  ;;  %v8251_v55 = vmul.f32 -1.442695, %v2912_v40 }
0x16df   : > { %v8801_v35 = vpop.f32.mrb[58].mxu1  ;;  %9595 = vpow2.f32 %v8252_v47 }
0x16e0   : > { %v2943_v60 = vadd.f32 %v8801_v35, %v10674_v34  ;;  %v2903_v49 = vpop.f32.mrb[59].mxu1  ;;  %v2915_v62 = vadd.f32 %v8801_v35, %v11341_v29  ;;  %9597 = vpow2.f32 %v8251_v55 }
0x16e1   : > { %v2942_v46 = vadd.f32 %v2903_v49, %v10674_v34  ;;  %v2914_v0 = vadd.f32 %v2903_v49, %v11336_v13 }
0x16e2   : > { %2954 = vrot.lane.b32.xlu0 %v2943_v60, %s10408_s21  ;;  %v8254_v3 = vmul.f32 -1.442695, %v2915_v62 }
0x16e3   : > { %2952 = vrot.lane.b32.xlu1 %v2942_v46, %s10408_s21  ;;  %v8253_v4 = vmul.f32 -1.442695, %v2914_v0 }
0x16e4   : > { %9599 = vpow2.f32 %v8254_v3 }
0x16e5   : > { %9601 = vpow2.f32 %v8253_v4 }
0x16e9   : > { %v9596_v5 = vpop.eup %9595 }
0x16ea   : > { %v9598_v6 = vpop.eup %9597  ;;  %v2929_v10 = vadd.f32 1.0, %v9596_v5 }
0x16eb   : > { %v2928_v32 = vadd.f32 1.0, %v9598_v6 }
0x16ec   : > { %9603 = vrcp.f32 %v2929_v10 }
0x16ed   : > { %9605 = vrcp.f32 %v2928_v32 }
0x16ee   : > { %v9600_v58 = vpop.eup %9599 }
0x16ef   : > { %v9602_v11 = vpop.eup %9601  ;;  %v2931_v51 = vadd.f32 1.0, %v9600_v58 }
0x16f0   : > { %v2930_v16 = vadd.f32 1.0, %v9602_v11  ;;  %v3041_v11 = vld [vmem:[#allocation2 + $0x250] sm:$0xff] }
0x16f1   : > { %9607 = vrcp.f32 %v2931_v51 }
0x16f2   : > { %9609 = vrcp.f32 %v2930_v16  ;;  %v3040_v16 = vld [vmem:[#allocation2 + $0x240] sm:$0xff] }
0x16f6   : > { %v9604_v54 = vpop.eup %9603 }
0x16f7   : > { %v9606_v17 = vpop.eup %9605  ;;  %v3013_v26 = vmul.f32 %v9604_v54, %v11305_v56 }
0x16f8   : > { %v3012_v50 = vmul.f32 %v9606_v17, %v11307_v8 }
0x16fb   : > { %v9608_v18 = vpop.eup %9607 }
0x16fc   : > { %v9610_v22 = vpop.eup %9609  ;;  %v2991_v53 = vsub.f32 1.0, %v9608_v18  ;;  %v3015_v49 = vmul.f32 %v9608_v18, %v11315_v23 }
0x16fd   : > { %v2990_v60 = vsub.f32 1.0, %v9610_v22  ;;  %v3014_v56 = vmul.f32 %v9610_v22, %v11317_v24 }
0x174f   : > { %v2951_v63 = vpop.permute.xlu0 %2950 }
0x1750   : > { %v2961_v1 = vmul.f32 %v9604_v54, %v2951_v63  ;;  %v2949_v9 = vpop.permute.xlu1 %2948 }
0x1751   : > { %v2960_v14 = vmul.f32 %v9606_v17, %v2949_v9 }
0x1752   : > { %2970 = vrot.lane.b32.xlu0 %v2961_v1, %s10408_s21 }
0x1753   : > { %2968 = vrot.lane.b32.xlu1 %v2960_v14, %s10408_s21  ;;  %v3042_v14 = vld [vmem:[#allocation2 + $0x260] sm:$0xff] }
0x1754   : > { %v2955_v21 = vpop.permute.xlu0 %2954 }
0x1755   : > { %v2963_v41 = vmul.f32 %v9608_v18, %v2955_v21  ;;  %v2953_v28 = vpop.permute.xlu1 %2952 }
0x1756   : > { %v2962_v25 = vmul.f32 %v9610_v22, %v2953_v28 }
0x1757   : > { %2974 = vrot.lane.b32.xlu0 %v2963_v41, %s10408_s21 }
0x1758   : > { %2972 = vrot.lane.b32.xlu1 %v2962_v25, %s10408_s21 }
0x17c4   : > { %v2971_v30 = vpop.permute.xlu0 %2970 }
0x17c5   : > { %v2981_v61 = vadd.f32 %v2971_v30, %v11329_v45  ;;  %v2969_v15 = vpop.permute.xlu1 %2968 }
0x17c6   : > { %v2980_v31 = vadd.f32 %v2969_v15, %v11324_v44  ;;  %v2989_v44 = vsub.f32 1.0, %v9604_v54 }
0x17c7   : > { %9611 = vtanh.f32 %v2981_v61 }
0x17c8   : > { %9613 = vtanh.f32 %v2980_v31 }
0x17c9   : > { %v2975_v37 = vpop.permute.xlu0 %2974 }
0x17ca   : > { %v2983_v36 = vadd.f32 %v2975_v37, %v11341_v29  ;;  %v2973_v19 = vpop.permute.xlu1 %2972  ;;  %v2988_v29 = vsub.f32 1.0, %v9606_v17  ;;  %v3043_v17 = vld [vmem:[#allocation2 + $0x270] sm:$0xff] }
0x17cb   : > { %v2982_v38 = vadd.f32 %v2973_v19, %v11336_v13 }
0x17cc   : > { %9615 = vtanh.f32 %v2983_v36 }
0x17cd   : > { %9617 = vtanh.f32 %v2982_v38 }
0x17d1   : > { %v9612_v57 = vpop.eup %9611 }
0x17d2   : > { %v9614_v33 = vpop.eup %9613  ;;  %2998 = vrot.lane.b32.xlu0 %v9612_v57, %s10410_s29 }
0x17d3   : > { %2996 = vrot.lane.b32.xlu1 %v9614_v33, %s10410_s29 }
0x17d6   : > { %v9616_v45 = vpop.eup %9615 }
0x17d7   : > { %v9618_v39 = vpop.eup %9617  ;;  %3002 = vrot.lane.b32.xlu0 %v9616_v45, %s10410_s29 }
0x17d8   : > { %3000 = vrot.lane.b32.xlu1 %v9618_v39, %s10410_s29 }
0x1844   : > { %v2999_v42 = vpop.permute.xlu0 %2998 }
0x1845   : > { %v3009_v13 = vmul.f32 %v2999_v42, %v2989_v44  ;;  %v2997_v43 = vpop.permute.xlu1 %2996 }
0x1846   : > { %v3008_v52 = vmul.f32 %v2997_v43, %v2988_v29 }
0x1847   : > { %v11385_v48 = vadd.f32 %v3013_v26, %v3009_v13 }
0x1848   : > { %v11387_v59 = vadd.f32 %v3012_v50, %v3008_v52 }
0x1849   : > { %v3003_v35 = vpop.permute.xlu0 %3002  ;;  %3026 = vrot.lane.b32.xlu0 %v11385_v48, %s10410_s29 }
0x184a   : > { %v3011_v46 = vmul.f32 %v3003_v35, %v2991_v53  ;;  %v3001_v27 = vpop.permute.xlu1 %3000  ;;  %3024 = vrot.lane.b32.xlu1 %v11387_v59, %s10410_s29 }
0x184b   : > { %v3010_v8 = vmul.f32 %v3001_v27, %v2990_v60 }
0x184c   : > { %v11395_v40 = vadd.f32 %v3015_v49, %v3011_v46 }
0x184d   : > { %v11397_v47 = vadd.f32 %v3014_v56, %v3010_v8 }
0x184e   : > { %3030 = vrot.lane.b32.xlu0 %v11395_v40, %s10410_s29 }
0x184f   : > { %3028 = vrot.lane.b32.xlu1 %v11397_v47, %s10410_s29 }
0x18bb   : > { %v3027_v55 = vpop.permute.xlu0 %3026 }
0x18bc   : > { %3037 = vst.msk [vmem:[#allocation3 + $0x108] sm:$0xff] %vm564_vm0, %v3027_v55  ;;  %v3025_v23 = vpop.permute.xlu1 %3024 }
0x18bd   : > { %3036 = vst.msk [vmem:[#allocation3 + $0x100] sm:$0xff] %vm564_vm0, %v3025_v23  ;;  %8810 = vmatprep.mubr.msk.f32.mxu1 %vm564_vm0, %v3025_v23 }
0x18be   : > { %8811 = vmatmul.mubr.msk.f32.vlgmr.msra.gmra.mrb[60].mxu1 %vm564_vm0, %v3027_v55 }
0x18bf   : > { %9151 = vmatpush3.bf16.msra.mxu1 %v10551_v7 }
0x18c0   : > { %v3031_v24 = vpop.permute.xlu0 %3030  ;;  %9153 = vmatprep.subr.bf16.mxu1 %v10571_v12 }
0x18c1   : > { %3039 = vst.msk [vmem:[#allocation3 + $0x118] sm:$0xff] %vm564_vm0, %v3031_v24  ;;  %v3029_v62 = vpop.permute.xlu1 %3028 }
0x18c2   : > { %3038 = vst.msk [vmem:[#allocation3 + $0x110] sm:$0xff] %vm564_vm0, %v3029_v62  ;;  %8813 = vmatprep.mubr.msk.f32.mxu1 %vm564_vm0, %v3029_v62 }
0x18c3   : > { %8814 = vmatmul.mubr.msk.f32.gmra.mrb[62].mxu1 %vm564_vm0, %v3031_v24 }
0x18c4   : > { %9155 = vmatpush3.bf16.msra.mxu1 %v10571_v12 }
0x18c5   : > { %9157 = vmatprep.subr.bf16.mxu1 %v10551_v7 }
0x1991   : > { %v8812_v0 = vpop.f32.mrb[60].mxu1 }
0x1992   : > { %v3166_v3 = vadd.f32 %v8812_v0, %v10674_v34  ;;  %v3118_v4 = vpop.f32.mrb[61].mxu1  ;;  %v3138_v51 = vadd.f32 %v8812_v0, %v3041_v11 }
0x1993   : > { %v3165_v5 = vadd.f32 %v3118_v4, %v10674_v34  ;;  %v3137_v54 = vadd.f32 %v3118_v4, %v3040_v16 }
0x1994   : > { %3175 = vrot.lane.b32.xlu0 %v3166_v3, %s10408_s21  ;;  %v8260_v63 = vmul.f32 -1.442695, %v3138_v51 }
0x1995   : > { %3173 = vrot.lane.b32.xlu1 %v3165_v5, %s10408_s21  ;;  %v8259_v1 = vmul.f32 -1.442695, %v3137_v54 }
0x1996   : > { %v8815_v6 = vpop.f32.mrb[62].mxu1  ;;  %9619 = vpow2.f32 %v8260_v63 }
0x1997   : > { %v3168_v10 = vadd.f32 %v8815_v6, %v10674_v34  ;;  %v3128_v32 = vpop.f32.mrb[63].mxu1  ;;  %v3140_v9 = vadd.f32 %v8815_v6, %v3043_v17  ;;  %9621 = vpow2.f32 %v8259_v1 }
0x1998   : > { %v3167_v58 = vadd.f32 %v3128_v32, %v10674_v34  ;;  %v3139_v18 = vadd.f32 %v3128_v32, %v3042_v14 }
0x1999   : > { %3179 = vrot.lane.b32.xlu0 %v3168_v10, %s10408_s21  ;;  %v8262_v21 = vmul.f32 -1.442695, %v3140_v9 }
0x199a   : > { %3177 = vrot.lane.b32.xlu1 %v3167_v58, %s10408_s21  ;;  %v8261_v22 = vmul.f32 -1.442695, %v3139_v18 }
0x199b   : > { %9623 = vpow2.f32 %v8262_v21 }
0x199c   : > { %9625 = vpow2.f32 %v8261_v22 }
0x19a0   : > { %v9620_v41 = vpop.eup %9619 }
0x19a1   : > { %v9622_v28 = vpop.eup %9621  ;;  %v3154_v25 = vadd.f32 1.0, %v9620_v41 }
0x19a2   : > { %v3153_v30 = vadd.f32 1.0, %v9622_v28 }
0x19a3   : > { %9627 = vrcp.f32 %v3154_v25 }
0x19a4   : > { %9629 = vrcp.f32 %v3153_v30 }
0x19a5   : > { %v9624_v61 = vpop.eup %9623 }
0x19a6   : > { %v9626_v15 = vpop.eup %9625  ;;  %v3156_v31 = vadd.f32 1.0, %v9624_v61 }
0x19a7   : > { %v3155_v37 = vadd.f32 1.0, %v9626_v15  ;;  %v11473_v15 = vld [vmem:[#allocation2 + $0x280] sm:$0xff] }
0x19a8   : > { %9631 = vrcp.f32 %v3156_v31 }
0x19a9   : > { %9633 = vrcp.f32 %v3155_v37 }
0x19ad   : > { %v9628_v36 = vpop.eup %9627 }
0x19ae   : > { %v9630_v38 = vpop.eup %9629  ;;  %v3214_v23 = vsub.f32 1.0, %v9628_v36  ;;  %v3238_v0 = vmul.f32 %v9628_v36, %v11385_v48 }
0x19af   : > { %v3213_v62 = vsub.f32 1.0, %v9630_v38  ;;  %v3237_v5 = vmul.f32 %v9630_v38, %v11387_v59 }
0x19b2   : > { %v9632_v39 = vpop.eup %9631 }
0x19b3   : > { %v9634_v42 = vpop.eup %9633  ;;  %v3216_v58 = vsub.f32 1.0, %v9632_v39 }
0x19b4   : > { %v3215_v51 = vsub.f32 1.0, %v9634_v42  ;;  %v3239_v48 = vmul.f32 %v9634_v42, %v11397_v47 }
0x1a06   : > { %v3176_v19 = vpop.permute.xlu0 %3175 }
0x1a07   : > { %v3186_v57 = vmul.f32 %v9628_v36, %v3176_v19  ;;  %v3174_v33 = vpop.permute.xlu1 %3173  ;;  %v11476_v36 = vld [vmem:[#allocation2 + $0x2b0] sm:$0xff] }
0x1a08   : > { %v3185_v45 = vmul.f32 %v9630_v38, %v3174_v33 }
0x1a09   : > { %3195 = vrot.lane.b32.xlu0 %v3186_v57, %s10408_s21  ;;  %v11479_v57 = vld [vmem:[#allocation2 + $0x2a0] sm:$0xff] }
0x1a0a   : > { %3193 = vrot.lane.b32.xlu1 %v3185_v45, %s10408_s21 }
0x1a0b   : > { %v3180_v44 = vpop.permute.xlu0 %3179 }
0x1a0c   : > { %v3188_v29 = vmul.f32 %v9632_v39, %v3180_v44  ;;  %v3178_v26 = vpop.permute.xlu1 %3177 }
0x1a0d   : > { %v3187_v13 = vmul.f32 %v9634_v42, %v3178_v26 }
0x1a0e   : > { %3199 = vrot.lane.b32.xlu0 %v3188_v29, %s10408_s21 }
0x1a0f   : > { %3197 = vrot.lane.b32.xlu1 %v3187_v13, %s10408_s21 }
0x1a7b   : > { %v3196_v43 = vpop.permute.xlu0 %3195 }
0x1a7c   : > { %v3206_v50 = vadd.f32 %v3196_v43, %v3041_v11  ;;  %v3194_v52 = vpop.permute.xlu1 %3193 }
0x1a7d   : > { %v3205_v53 = vadd.f32 %v3194_v52, %v3040_v16  ;;  %v3240_v16 = vmul.f32 %v9632_v39, %v11395_v40 }
0x1a7e   : > { %9635 = vtanh.f32 %v3206_v50 }
0x1a7f   : > { %9637 = vtanh.f32 %v3205_v53 }
0x1a80   : > { %v3200_v35 = vpop.permute.xlu0 %3199 }
0x1a81   : > { %v3208_v60 = vadd.f32 %v3200_v35, %v3043_v17  ;;  %v3198_v49 = vpop.permute.xlu1 %3197 }
0x1a82   : > { %v3207_v46 = vadd.f32 %v3198_v49, %v3042_v14 }
0x1a83   : > { %9639 = vtanh.f32 %v3208_v60 }
0x1a84   : > { %9641 = vtanh.f32 %v3207_v46 }
0x1a88   : > { %v9636_v27 = vpop.eup %9635 }
0x1a89   : > { %v9638_v56 = vpop.eup %9637  ;;  %3223 = vrot.lane.b32.xlu0 %v9636_v27, %s10410_s29 }
0x1a8a   : > { %3221 = vrot.lane.b32.xlu1 %v9638_v56, %s10410_s29 }
0x1a8d   : > { %v9640_v8 = vpop.eup %9639 }
0x1a8e   : > { %v9642_v55 = vpop.eup %9641  ;;  %3227 = vrot.lane.b32.xlu0 %v9640_v8, %s10410_s29 }
0x1a8f   : > { %3225 = vrot.lane.b32.xlu1 %v9642_v55, %s10410_s29 }
0x1afb   : > { %v3224_v24 = vpop.permute.xlu0 %3223 }
0x1afc   : > { %v3234_v3 = vmul.f32 %v3224_v24, %v3214_v23  ;;  %v3222_v4 = vpop.permute.xlu1 %3221 }
0x1afd   : > { %v3233_v6 = vmul.f32 %v3222_v4, %v3213_v62 }
0x1afe   : > { %v11433_v10 = vadd.f32 %v3238_v0, %v3234_v3 }
0x1aff   : > { %v11435_v32 = vadd.f32 %v3237_v5, %v3233_v6 }
0x1b00   : > { %v3228_v11 = vpop.permute.xlu0 %3227  ;;  %3251 = vrot.lane.b32.xlu0 %v11433_v10, %s10410_s29 }
0x1b01   : > { %v3236_v54 = vmul.f32 %v3228_v11, %v3216_v58  ;;  %v3226_v63 = vpop.permute.xlu1 %3225  ;;  %3249 = vrot.lane.b32.xlu1 %v11435_v32, %s10410_s29 }
0x1b02   : > { %v3235_v59 = vmul.f32 %v3226_v63, %v3215_v51 }
0x1b03   : > { %v11443_v17 = vadd.f32 %v3240_v16, %v3236_v54 }
0x1b04   : > { %v11445_v1 = vadd.f32 %v3239_v48, %v3235_v59  ;;  %v3715_v59 = vld [vmem:[%s12907_s4] sm:$0xff] }
0x1b05   : > { %3255 = vrot.lane.b32.xlu0 %v11443_v17, %s10410_s29 }
0x1b06   : > { %3253 = vrot.lane.b32.xlu1 %v11445_v1, %s10410_s29 }
0x1b72   : > { %v3252_v9 = vpop.permute.xlu0 %3251 }
0x1b73   : > { %3262 = vst.msk [vmem:[#allocation3 + $0x128] sm:$0xff] %vm564_vm0, %v3252_v9  ;;  %v3250_v40 = vpop.permute.xlu1 %3249 }
0x1b74   : > { %3261 = vst.msk [vmem:[#allocation3 + $0x120] sm:$0xff] %vm564_vm0, %v3250_v40  ;;  %8824 = vmatprep.mubr.msk.f32.mxu1 %vm564_vm0, %v3250_v40 }
0x1b75   : > { %8825 = vmatmul.mubr.msk.f32.vlgmr.msra.gmra.mrb[64].mxu1 %vm564_vm0, %v3252_v9  ;;  %v3716_v9 = vld [vmem:[%s12907_s4 + $0x8] sm:$0xff] }
0x1b76   : > { %9159 = vmatpush3.bf16.msra.mxu1 %v10551_v7  ;;  %v11500_v40 = vpack.c.bf16 %v3716_v9, %v3715_v59 }
0x1b77   : > { %v3256_v47 = vpop.permute.xlu0 %3255  ;;  %9161 = vmatprep.subr.bf16.mxu1 %v10571_v12 }
0x1b78   : > { %3264 = vst.msk [vmem:[#allocation3 + $0x138] sm:$0xff] %vm564_vm0, %v3256_v47  ;;  %v3254_v14 = vpop.permute.xlu1 %3253 }
0x1b79   : > { %3263 = vst.msk [vmem:[#allocation3 + $0x130] sm:$0xff] %vm564_vm0, %v3254_v14  ;;  %8827 = vmatprep.mubr.msk.f32.mxu1 %vm564_vm0, %v3254_v14 }
0x1b7a   : > { %8828 = vmatmul.mubr.msk.f32.gmra.mrb[66].mxu1 %vm564_vm0, %v3256_v47 }
0x1b7b   : > { %9163 = vmatpush3.bf16.msra.mxu1 %v10571_v12  ;;  %v11470_v12 = vld [vmem:[#allocation2 + $0x290] sm:$0xff] }
0x1b7c   : > { %9165 = vmatprep.subr.bf16.mxu1 %v11500_v40 }
0x1c48   : > { %v8826_v18 = vpop.f32.mrb[64].mxu1 }
0x1c49   : > { %v3391_v21 = vadd.f32 %v8826_v18, %v10674_v34  ;;  %v3343_v22 = vpop.f32.mrb[65].mxu1  ;;  %v3363_v61 = vadd.f32 %v8826_v18, %v11470_v12 }
0x1c4a   : > { %v3390_v7 = vadd.f32 %v3343_v22, %v10674_v34  ;;  %v3362_v31 = vadd.f32 %v3343_v22, %v11473_v15 }
0x1c4b   : > { %3400 = vrot.lane.b32.xlu0 %v3391_v21, %s10408_s21  ;;  %v8268_v37 = vmul.f32 -1.442695, %v3363_v61 }
0x1c4c   : > { %3398 = vrot.lane.b32.xlu1 %v3390_v7, %s10408_s21  ;;  %v8267_v19 = vmul.f32 -1.442695, %v3362_v31 }
0x1c4d   : > { %v8829_v41 = vpop.f32.mrb[66].mxu1  ;;  %9643 = vpow2.f32 %v8268_v37 }
0x1c4e   : > { %v3393_v28 = vadd.f32 %v8829_v41, %v10674_v34  ;;  %v3353_v25 = vpop.f32.mrb[67].mxu1  ;;  %v3365_v38 = vadd.f32 %v8829_v41, %v11476_v36  ;;  %9645 = vpow2.f32 %v8267_v19 }
0x1c4f   : > { %v3392_v30 = vadd.f32 %v3353_v25, %v10674_v34  ;;  %v3364_v33 = vadd.f32 %v3353_v25, %v11479_v57 }
0x1c50   : > { %3404 = vrot.lane.b32.xlu0 %v3393_v28, %s10408_s21  ;;  %v8270_v45 = vmul.f32 -1.442695, %v3365_v38 }
0x1c51   : > { %3402 = vrot.lane.b32.xlu1 %v3392_v30, %s10408_s21  ;;  %v8269_v39 = vmul.f32 -1.442695, %v3364_v33 }
0x1c52   : > { %9647 = vpow2.f32 %v8270_v45 }
0x1c53   : > { %9649 = vpow2.f32 %v8269_v39 }
0x1c57   : > { %v9644_v44 = vpop.eup %9643 }
0x1c58   : > { %v9646_v42 = vpop.eup %9645  ;;  %v3379_v29 = vadd.f32 1.0, %v9644_v44  ;;  %v3718_v44 = vld [vmem:[%s12907_s4 + $0x18] sm:$0xff] }
0x1c59   : > { %v3378_v26 = vadd.f32 1.0, %v9646_v42 }
0x1c5a   : > { %9651 = vrcp.f32 %v3379_v29 }
0x1c5b   : > { %9653 = vrcp.f32 %v3378_v26 }
0x1c5c   : > { %v9648_v13 = vpop.eup %9647 }
0x1c5d   : > { %v9650_v43 = vpop.eup %9649  ;;  %v3381_v50 = vadd.f32 1.0, %v9648_v13 }
0x1c5e   : > { %v3380_v52 = vadd.f32 1.0, %v9650_v43 }
0x1c5f   : > { %9655 = vrcp.f32 %v3381_v50 }
0x1c60   : > { %9657 = vrcp.f32 %v3380_v52 }
0x1c64   : > { %v9652_v53 = vpop.eup %9651 }
0x1c65   : > { %v9654_v60 = vpop.eup %9653  ;;  %v3439_v47 = vsub.f32 1.0, %v9652_v53  ;;  %v3463_v21 = vmul.f32 %v9652_v53, %v11433_v10 }
0x1c66   : > { %v3438_v18 = vsub.f32 1.0, %v9654_v60  ;;  %v3462_v41 = vmul.f32 %v9654_v60, %v11435_v32 }
0x1c69   : > { %v9656_v56 = vpop.eup %9655 }
0x1c6a   : > { %v9658_v55 = vpop.eup %9657  ;;  %v3441_v61 = vsub.f32 1.0, %v9656_v56  ;;  %v3465_v19 = vmul.f32 %v9656_v56, %v11443_v17  ;;  %v8279_v17 = vld [vmem:[%s12909_s6] ss:$0 sm:$0xff] }
0x1c6b   : > { %v3440_v37 = vsub.f32 1.0, %v9658_v55  ;;  %v3464_v10 = vmul.f32 %v9658_v55, %v11445_v1  ;;  %v3717_v1 = vld [vmem:[%s12907_s4 + $0x10] sm:$0xff] }
0x1c6c   : > { %v11534_v26 = vpack.c.bf16 %v3718_v44, %v3717_v1 }
0x1cbd   : > { %v3401_v35 = vpop.permute.xlu0 %3400 }
0x1cbe   : > { %v3411_v49 = vmul.f32 %v9652_v53, %v3401_v35  ;;  %v3399_v46 = vpop.permute.xlu1 %3398 }
0x1cbf   : > { %v3410_v27 = vmul.f32 %v9654_v60, %v3399_v46 }
0x1cc0   : > { %3420 = vrot.lane.b32.xlu0 %v3411_v49, %s10408_s21 }
0x1cc1   : > { %3418 = vrot.lane.b32.xlu1 %v3410_v27, %s10408_s21 }
0x1cc2   : > { %v3405_v8 = vpop.permute.xlu0 %3404 }
0x1cc3   : > { %v3413_v23 = vmul.f32 %v9656_v56, %v3405_v8  ;;  %v3403_v24 = vpop.permute.xlu1 %3402 }
0x1cc4   : > { %v3412_v62 = vmul.f32 %v9658_v55, %v3403_v24  ;;  %v3491_v24 = vld [vmem:[#allocation2 + $0x2d0] sm:$0xff] }
0x1cc5   : > { %3424 = vrot.lane.b32.xlu0 %v3413_v23, %s10408_s21 }
0x1cc6   : > { %3422 = vrot.lane.b32.xlu1 %v3412_v62, %s10408_s21 }
0x1d32   : > { %v3421_v0 = vpop.permute.xlu0 %3420 }
0x1d33   : > { %v3431_v3 = vadd.f32 %v3421_v0, %v11470_v12  ;;  %v3419_v4 = vpop.permute.xlu1 %3418  ;;  %v3490_v0 = vld [vmem:[#allocation2 + $0x2c0] sm:$0xff] }
0x1d34   : > { %v3430_v5 = vadd.f32 %v3419_v4, %v11473_v15 }
0x1d35   : > { %9659 = vtanh.f32 %v3431_v3 }
0x1d36   : > { %9661 = vtanh.f32 %v3430_v5 }
0x1d37   : > { %v3425_v6 = vpop.permute.xlu0 %3424 }
0x1d38   : > { %v3433_v58 = vadd.f32 %v3425_v6, %v11476_v36  ;;  %v3423_v11 = vpop.permute.xlu1 %3422 }
0x1d39   : > { %v3432_v51 = vadd.f32 %v3423_v11, %v11479_v57 }
0x1d3a   : > { %9663 = vtanh.f32 %v3433_v58  ;;  %v3493_v58 = vld [vmem:[#allocation2 + $0x2f0] sm:$0xff] }
0x1d3b   : > { %9665 = vtanh.f32 %v3432_v51 }
0x1d3f   : > { %v9660_v16 = vpop.eup %9659 }
0x1d40   : > { %v9662_v54 = vpop.eup %9661  ;;  %3448 = vrot.lane.b32.xlu0 %v9660_v16, %s10410_s29  ;;  %v3492_v16 = vld [vmem:[#allocation2 + $0x2e0] sm:$0xff] }
0x1d41   : > { %3446 = vrot.lane.b32.xlu1 %v9662_v54, %s10410_s29 }
0x1d44   : > { %v9664_v63 = vpop.eup %9663 }
0x1d45   : > { %v9666_v48 = vpop.eup %9665  ;;  %3452 = vrot.lane.b32.xlu0 %v9664_v63, %s10410_s29 }
0x1d46   : > { %3450 = vrot.lane.b32.xlu1 %v9666_v48, %s10410_s29 }
0x1db2   : > { %v3449_v14 = vpop.permute.xlu0 %3448 }
0x1db3   : > { %v3459_v22 = vmul.f32 %v3449_v14, %v3439_v47  ;;  %v3447_v7 = vpop.permute.xlu1 %3446 }
0x1db4   : > { %v3458_v28 = vmul.f32 %v3447_v7, %v3438_v18 }
0x1db5   : > { %v11505_v25 = vadd.f32 %v3463_v21, %v3459_v22 }
0x1db6   : > { %v11507_v30 = vadd.f32 %v3462_v41, %v3458_v28 }
0x1db7   : > { %12929 = vst [vmem:[#allocation7_spill] sm:$0xff] %v11505_v25  ;;  %v3453_v31 = vpop.permute.xlu0 %3452  ;;  %3476 = vrot.lane.b32.xlu0 %v11505_v25, %s10410_s29 }
0x1db8   : > { %12930 = vst [vmem:[#allocation8_spill] sm:$0xff] %v11507_v30  ;;  %v3461_v38 = vmul.f32 %v3453_v31, %v3441_v61  ;;  %v3451_v33 = vpop.permute.xlu1 %3450  ;;  %3474 = vrot.lane.b32.xlu1 %v11507_v30, %s10410_s29 }
0x1db9   : > { %v3460_v32 = vmul.f32 %v3451_v33, %v3440_v37 }
0x1dba   : > { %v11515_v45 = vadd.f32 %v3465_v19, %v3461_v38 }
0x1dbb   : > { %v11517_v39 = vadd.f32 %v3464_v10, %v3460_v32 }
0x1dbc   : > { %12931 = vst [vmem:[#allocation9_spill] sm:$0xff] %v11515_v45  ;;  %3480 = vrot.lane.b32.xlu0 %v11515_v45, %s10410_s29 }
0x1dbd   : > { %12932 = vst [vmem:[#allocation10_spill] sm:$0xff] %v11517_v39  ;;  %3478 = vrot.lane.b32.xlu1 %v11517_v39, %s10410_s29 }
0x1dc1   : > { %3890 = vrot.lane.b32.xlu1 %v8279_v17, %s10408_s21 }
0x1e29   : > { %v3477_v42 = vpop.permute.xlu0 %3476 }
0x1e2a   : > { %3487 = vst.msk [vmem:[#allocation3 + $0x148] sm:$0xff] %vm564_vm0, %v3477_v42  ;;  %v3475_v29 = vpop.permute.xlu1 %3474 }
0x1e2b   : > { %3486 = vst.msk [vmem:[#allocation3 + $0x140] sm:$0xff] %vm564_vm0, %v3475_v29  ;;  %8838 = vmatprep.mubr.msk.f32.mxu1 %vm564_vm0, %v3475_v29  ;;  %v3728_v29 = vld [vmem:[#allocation2 + $0x2d8] sm:$0xff] }
0x1e2c   : > { %8839 = vmatmul.mubr.msk.f32.vlgmr.msra.gmra.mrb[68].mxu1 %vm564_vm0, %v3477_v42 }
0x1e2d   : > { %9167 = vmatpush3.bf16.msra.mxu1 %v11500_v40 }
0x1e2e   : > { %v3481_v13 = vpop.permute.xlu0 %3480  ;;  %9169 = vmatprep.subr.bf16.mxu1 %v11534_v26 }
0x1e2f   : > { %3489 = vst.msk [vmem:[#allocation3 + $0x158] sm:$0xff] %vm564_vm0, %v3481_v13  ;;  %v3479_v43 = vpop.permute.xlu1 %3478 }
0x1e30   : > { %3488 = vst.msk [vmem:[#allocation3 + $0x150] sm:$0xff] %vm564_vm0, %v3479_v43  ;;  %8841 = vmatprep.mubr.msk.f32.mxu1 %vm564_vm0, %v3479_v43 }
0x1e31   : > { %8842 = vmatmul.mubr.msk.f32.gmra.mrb[70].mxu1 %vm564_vm0, %v3481_v13 }
0x1e32   : > { %9171 = vmatpush3.bf16.msra.mxu1 %v11534_v26  ;;  %8852 = vmatprep.mubr.f32.mxu1 %v10409_v20 }
0x1e33   : > { %9173 = vmatprep.subr.bf16.mxu1 %v11500_v40  ;;  %v11565_v46 = vpop.permute.xlu1 %3890 }
0x1e35   : > { %8853 = vmatmul.mubr.f32.vlgmr.msra.gmra.mrb[72].mxu1 %v10409_v20 }
0x1e36   : > { %8855 = vmatprep.mubr.f32.mxu1 %v10409_v20  ;;  %9175 = vmatpush3.bf16.msra.mxu1 %v11500_v40 }
0x1e37   : > { %9177 = vmatprep.subr.bf16.mxu1 %v11534_v26 }
0x1e39   : > { %8856 = vmatmul.mubr.f32.gmra.mrb[74].mxu1 %v10409_v20 }
0x1e3a   : > { %9179 = vmatpush3.bf16.msra.mxu1 %v11534_v26 }
0x1e3b   : > { %9181 = vmatprep.subr.bf16.mxu1 %v11500_v40 }
0x1eff   : > { %v11555_v50 = vpop.f32.mrb[68].mxu1 }
0x1f00   : > { %v11557_v52 = vpop.f32.mrb[69].mxu1 }
0x1f04   : > { %v11559_v53 = vpop.f32.mrb[70].mxu1 }
0x1f05   : > { %v11561_v35 = vpop.f32.mrb[71].mxu1 }
0x1f08   : > { %v8854_v60 = vpop.f32.mrb[72].mxu1 }
0x1f09   : > { %3824 = vrot.lane.b32.xlu1 %v8854_v60, %s10410_s29  ;;  %v3799_v49 = vpop.f32.mrb[73].mxu1  ;;  %v3894_v56 = vadd.f32 %v8854_v60, %v11565_v46  ;;  %v3726_v60 = vld [vmem:[#allocation2 + $0x2c8] sm:$0xff] }
0x1f0a   : > { %3822 = vrot.lane.b32.xlu0 %v3799_v49, %s10410_s29  ;;  %v3893_v8 = vadd.f32 %v11565_v46, %v3799_v49 }
0x1f0c   : > { %v8857_v20 = vpop.f32.mrb[74].mxu1 }
0x1f0d   : > { %3828 = vrot.lane.b32.xlu1 %v8857_v20, %s10410_s29  ;;  %v3809_v27 = vpop.f32.mrb[75].mxu1  ;;  %v3896_v55 = vadd.f32 %v8857_v20, %v11565_v46 }
0x1f0e   : > { %3826 = vrot.lane.b32.xlu0 %v3809_v27, %s10410_s29  ;;  %v3895_v23 = vadd.f32 %v11565_v46, %v3809_v27  ;;  %v3732_v27 = vld [vmem:[#allocation2 + $0x2f8] sm:$0xff] }
0x1f11   : > { %3903 = vrot.lane.b32.xlu1 %v3894_v56, %s10411_s12 }
0x1f12   : > { %3901 = vrot.lane.b32.xlu0 %v3893_v8, %s10411_s12 }
0x1f15   : > { %3907 = vrot.lane.b32.xlu1 %v3896_v55, %s10411_s12  ;;  %v3730_v55 = vld [vmem:[#allocation2 + $0x2e8] sm:$0xff] }
0x1f16   : > { %3905 = vrot.lane.b32.xlu0 %v3895_v23, %s10411_s12 }
0x1f7b   : > { %v11577_v62 = vpop.permute.xlu1 %3824 }
0x1f7c   : > { %v3836_v3 = vadd.f32 %v11577_v62, %v3491_v24  ;;  %v11580_v4 = vpop.permute.xlu0 %3822 }
0x1f7d   : > { %v3834_v5 = vadd.f32 %v11580_v4, %v3490_v0 }
0x1f7e   : > { %v8282_v6 = vmul.f32 -1.442695, %v3836_v3 }
0x1f7f   : > { %v8280_v11 = vmul.f32 -1.442695, %v3834_v5  ;;  %v11583_v51 = vpop.permute.xlu1 %3828 }
0x1f80   : > { %9667 = vpow2.f32 %v8282_v6  ;;  %v3840_v54 = vadd.f32 %v11583_v51, %v3493_v58  ;;  %v11586_v63 = vpop.permute.xlu0 %3826  ;;  %v3837_v58 = vadd.f32 %v11577_v62, %v3728_v29 }
0x1f81   : > { %9669 = vpow2.f32 %v8280_v11  ;;  %v3838_v48 = vadd.f32 %v11586_v63, %v3492_v16  ;;  %v3835_v11 = vadd.f32 %v11580_v4, %v3726_v60 }
0x1f82   : > { %v8286_v59 = vmul.f32 -1.442695, %v3840_v54  ;;  %v8283_v16 = vmul.f32 -1.442695, %v3837_v58  ;;  %v3841_v54 = vadd.f32 %v11583_v51, %v3732_v27 }
0x1f83   : > { %v8284_v9 = vmul.f32 -1.442695, %v3838_v48  ;;  %v3904_v61 = vpop.permute.xlu1 %3903  ;;  %v8281_v48 = vmul.f32 -1.442695, %v3835_v11 }
0x1f84   : > { %9671 = vpow2.f32 %v8286_v59  ;;  %v3902_v31 = vpop.permute.xlu0 %3901  ;;  %v3839_v59 = vadd.f32 %v11586_v63, %v3730_v55 }
0x1f85   : > { %9673 = vpow2.f32 %v8284_v9  ;;  %v8287_v9 = vmul.f32 -1.442695, %v3841_v54 }
0x1f87   : > { %v3908_v32 = vpop.permute.xlu1 %3907 }
0x1f88   : > { %v3906_v44 = vpop.permute.xlu0 %3905 }
0x1f8a   : > { %v9668_v47 = vpop.eup %9667 }
0x1f8b   : > { %v9670_v14 = vpop.eup %9669  ;;  %v3868_v18 = vadd.f32 1.0, %v9668_v47  ;;  %v8285_v47 = vmul.f32 -1.442695, %v3839_v59 }
0x1f8c   : > { %v3866_v21 = vadd.f32 1.0, %v9670_v14 }
0x1f8d   : > { %9675 = vrcp.f32 %v3868_v18 }
0x1f8e   : > { %v9672_v22 = vpop.eup %9671  ;;  %9677 = vrcp.f32 %v3866_v21 }
0x1f8f   : > { %v9674_v7 = vpop.eup %9673  ;;  %v3872_v41 = vadd.f32 1.0, %v9672_v22 }
0x1f90   : > { %v3870_v28 = vadd.f32 1.0, %v9674_v7 }
0x1f91   : > { %9679 = vrcp.f32 %v3872_v41 }
0x1f92   : > { %9681 = vrcp.f32 %v3870_v28 }
0x1f97   : > { %v9676_v37 = vpop.eup %9675 }
0x1f98   : > { %v9678_v19 = vpop.eup %9677  ;;  %v3914_v38 = vmul.f32 %v9676_v37, %v3904_v61 }
0x1f99   : > { %v3913_v33 = vmul.f32 %v9678_v19, %v3902_v31 }
0x1f9a   : > { %3923 = vrot.lane.b32.xlu1 %v3914_v38, %s10408_s21 }
0x1f9b   : > { %v9680_v10 = vpop.eup %9679  ;;  %3921 = vrot.lane.b32.xlu0 %v3913_v33, %s10408_s21 }
0x1f9c   : > { %v9682_v17 = vpop.eup %9681  ;;  %v3916_v1 = vmul.f32 %v9680_v10, %v3908_v32 }
0x1f9d   : > { %v3915_v42 = vmul.f32 %v9682_v17, %v3906_v44 }
0x1f9e   : > { %3927 = vrot.lane.b32.xlu1 %v3916_v1, %s10408_s21 }
0x1f9f   : > { %3925 = vrot.lane.b32.xlu0 %v3915_v42, %s10408_s21 }
0x200c   : > { %v3924_v13 = vpop.permute.xlu1 %3923 }
0x200d   : > { %v3934_v43 = vadd.f32 %v3924_v13, %v3728_v29  ;;  %v3922_v49 = vpop.permute.xlu0 %3921 }
0x200e   : > { %v3933_v20 = vadd.f32 %v3922_v49, %v3726_v60 }
0x200f   : > { %9683 = vtanh.f32 %v3934_v43 }
0x2010   : > { %9685 = vtanh.f32 %v3933_v20  ;;  %v3928_v56 = vpop.permute.xlu1 %3927 }
0x2011   : > { %v3936_v8 = vadd.f32 %v3928_v56, %v3732_v27  ;;  %v3926_v23 = vpop.permute.xlu0 %3925 }
0x2012   : > { %v3935_v24 = vadd.f32 %v3926_v23, %v3730_v55 }
0x2013   : > { %9687 = vtanh.f32 %v3936_v8 }
0x2014   : > { %9689 = vtanh.f32 %v3935_v24 }
0x2015   : > { %9691 = vpow2.f32 %v8283_v16 }
0x2016   : > { %9693 = vpow2.f32 %v8281_v48 }
0x2017   : > { %9695 = vpow2.f32 %v8287_v9 }
0x2018   : > { %9697 = vpow2.f32 %v8285_v47 }
0x2019   : > { %v9684_v0 = vpop.eup %9683 }
0x201a   : > { %v9686_v3 = vpop.eup %9685  ;;  %3951 = vrot.lane.b32.xlu1 %v9684_v0, %s10410_s29 }
0x201b   : > { %3949 = vrot.lane.b32.xlu0 %v9686_v3, %s10410_s29 }
0x201d   : > { %v9688_v5 = vpop.eup %9687 }
0x201e   : > { %v9690_v6 = vpop.eup %9689  ;;  %3955 = vrot.lane.b32.xlu1 %v9688_v5, %s10410_s29 }
0x201f   : > { %3953 = vrot.lane.b32.xlu0 %v9690_v6, %s10410_s29  ;;  %v9692_v14 = vpop.eup %9691 }
0x2020   : > { %v9694_v18 = vpop.eup %9693  ;;  %v3869_v21 = vadd.f32 1.0, %v9692_v14 }
0x2021   : > { %v9696_v22 = vpop.eup %9695  ;;  %v3867_v7 = vadd.f32 1.0, %v9694_v18 }
0x2022   : > { %v9698_v62 = vpop.eup %9697  ;;  %9699 = vrcp.f32 %v3869_v21  ;;  %v3873_v4 = vadd.f32 1.0, %v9696_v22 }
0x2023   : > { %9701 = vrcp.f32 %v3867_v7  ;;  %v3871_v41 = vadd.f32 1.0, %v9698_v62 }
0x2024   : > { %9703 = vrcp.f32 %v3873_v4 }
0x2025   : > { %9705 = vrcp.f32 %v3871_v41 }
0x202c   : > { %v9700_v51 = vpop.eup %9699 }
0x202d   : > { %v9702_v63 = vpop.eup %9701  ;;  %v3942_v28 = vsub.f32 1.0, %v9700_v51  ;;  %v3966_v17 = vmul.f32 0.0, %v9700_v51 }
0x202e   : > { %v9704_v61 = vpop.eup %9703  ;;  %v3941_v37 = vsub.f32 1.0, %v9702_v63  ;;  %v3965_v10 = vmul.f32 0.0, %v9702_v63 }
0x202f   : > { %v9706_v19 = vpop.eup %9705  ;;  %v3944_v1 = vsub.f32 1.0, %v9704_v61  ;;  %v3968_v27 = vmul.f32 0.0, %v9704_v61 }
0x2030   : > { %v3943_v29 = vsub.f32 1.0, %v9706_v19  ;;  %v3967_v49 = vmul.f32 0.0, %v9706_v19 }
0x208c   : > { %v3952_v31 = vpop.permute.xlu1 %3951 }
0x208d   : > { %v3962_v38 = vmul.f32 %v3952_v31, %v3942_v28  ;;  %v3950_v33 = vpop.permute.xlu0 %3949 }
0x208e   : > { %v3961_v32 = vmul.f32 %v3950_v33, %v3941_v37 }
0x208f   : > { %v11603_v13 = vadd.f32 %v3966_v17, %v3962_v38 }
0x2090   : > { %v11601_v44 = vadd.f32 %v3965_v10, %v3961_v32  ;;  %v3956_v42 = vpop.permute.xlu1 %3955 }
0x2091   : > { %12934 = vst [vmem:[#allocation12_spill] sm:$0xff] %v11603_v13  ;;  %v3964_v43 = vmul.f32 %v3956_v42, %v3944_v1  ;;  %v3954_v60 = vpop.permute.xlu0 %3953  ;;  %v3997_v42 = vld [vmem:[#allocation2 + $0x298] sm:$0xff] }
0x2092   : > { %12933 = vst [vmem:[#allocation11_spill] sm:$0xff] %v11601_v44  ;;  %v3963_v20 = vmul.f32 %v3954_v60, %v3943_v29  ;;  %8866 = vmatprep.mubr.msk.f32.mxu1 %vm564_vm0, %v11601_v44  ;;  %v3995_v60 = vld [vmem:[#allocation2 + $0x288] sm:$0xff] }
0x2093   : > { %8867 = vmatmul.mubr.msk.f32.vlgmr.msra.gmra.mrb[76].mxu1 %vm564_vm0, %v11603_v13  ;;  %v11612_v8 = vadd.f32 %v3968_v27, %v3964_v43  ;;  %v4001_v27 = vld [vmem:[#allocation2 + $0x2b8] sm:$0xff] }
0x2094   : > { %v11609_v56 = vadd.f32 %v3967_v49, %v3963_v20  ;;  %9183 = vmatpush3.bf16.msra.mxu1 %v11500_v40 }
0x2095   : > { %12936 = vst [vmem:[#allocation14_spill] sm:$0xff] %v11612_v8  ;;  %9185 = vmatprep.subr.bf16.mxu1 %v11534_v26 }
0x2096   : > { %12935 = vst [vmem:[#allocation13_spill] sm:$0xff] %v11609_v56  ;;  %8869 = vmatprep.mubr.msk.f32.mxu1 %vm564_vm0, %v11609_v56 }
0x2097   : > { %8870 = vmatmul.mubr.msk.f32.gmra.mrb[78].mxu1 %vm564_vm0, %v11612_v8 }
0x2098   : > { %9187 = vmatpush3.bf16.msra.mxu1 %v11534_v26 }
0x2099   : > { %9189 = vmatprep.subr.bf16.mxu1 %v11500_v40 }
0x2166   : > { %v8868_v55 = vpop.f32.mrb[76].mxu1 }
0x2167   : > { %4101 = vrot.lane.b32.xlu1 %v8868_v55, %s10410_s29  ;;  %v4076_v23 = vpop.f32.mrb[77].mxu1  ;;  %v4168_v3 = vadd.f32 %v8868_v55, %v11565_v46 }
0x2168   : > { %4099 = vrot.lane.b32.xlu0 %v4076_v23, %s10410_s29  ;;  %v4167_v5 = vadd.f32 %v4076_v23, %v11565_v46 }
0x216a   : > { %v8871_v24 = vpop.f32.mrb[78].mxu1 }
0x216b   : > { %4105 = vrot.lane.b32.xlu1 %v8871_v24, %s10410_s29  ;;  %v4086_v0 = vpop.f32.mrb[79].mxu1  ;;  %v4170_v6 = vadd.f32 %v8871_v24, %v11565_v46  ;;  %v3999_v24 = vld [vmem:[#allocation2 + $0x2a8] sm:$0xff] }
0x216c   : > { %4103 = vrot.lane.b32.xlu0 %v4086_v0, %s10410_s29  ;;  %v4169_v58 = vadd.f32 %v4086_v0, %v11565_v46 }
0x216f   : > { %4177 = vrot.lane.b32.xlu1 %v4168_v3, %s10411_s12 }
0x2170   : > { %4175 = vrot.lane.b32.xlu0 %v4167_v5, %s10411_s12 }
0x2173   : > { %4181 = vrot.lane.b32.xlu1 %v4170_v6, %s10411_s12 }
0x2174   : > { %4179 = vrot.lane.b32.xlu0 %v4169_v58, %s10411_s12 }
0x21d9   : > { %v11633_v11 = vpop.permute.xlu1 %4101 }
0x21da   : > { %v4113_v16 = vadd.f32 %v11633_v11, %v11470_v12  ;;  %v11637_v54 = vpop.permute.xlu0 %4099 }
0x21db   : > { %v4111_v48 = vadd.f32 %v11637_v54, %v11473_v15 }
0x21dc   : > { %v8294_v59 = vmul.f32 -1.442695, %v4113_v16 }
0x21dd   : > { %v8292_v9 = vmul.f32 -1.442695, %v4111_v48  ;;  %v11641_v47 = vpop.permute.xlu1 %4105  ;;  %v4114_v48 = vadd.f32 %v11633_v11, %v3997_v42 }
0x21de   : > { %9707 = vpow2.f32 %v8294_v59  ;;  %v4117_v14 = vadd.f32 %v11641_v47, %v11476_v36  ;;  %v11645_v18 = vpop.permute.xlu0 %4103  ;;  %v4112_v59 = vadd.f32 %v11637_v54, %v3995_v60 }
0x21df   : > { %9709 = vpow2.f32 %v8292_v9  ;;  %v4115_v21 = vadd.f32 %v11645_v18, %v11479_v57  ;;  %v8295_v9 = vmul.f32 -1.442695, %v4114_v48 }
0x21e0   : > { %v8298_v12 = vmul.f32 -1.442695, %v4117_v14  ;;  %v4118_v14 = vadd.f32 %v11641_v47, %v4001_v27 }
0x21e1   : > { %v8296_v22 = vmul.f32 -1.442695, %v4115_v21  ;;  %v4178_v28 = vpop.permute.xlu1 %4177  ;;  %v8293_v21 = vmul.f32 -1.442695, %v4112_v59  ;;  %v4269_v59 = vld [vmem:[#allocation2 + $0x250] sm:$0xff] }
0x21e2   : > { %9711 = vpow2.f32 %v8298_v12  ;;  %v4176_v61 = vpop.permute.xlu0 %4175  ;;  %v4116_v12 = vadd.f32 %v11645_v18, %v3999_v24 }
0x21e3   : > { %9713 = vpow2.f32 %v8296_v22  ;;  %v8299_v22 = vmul.f32 -1.442695, %v4118_v14 }
0x21e5   : > { %v4182_v33 = vpop.permute.xlu1 %4181 }
0x21e6   : > { %v4180_v17 = vpop.permute.xlu0 %4179 }
0x21e8   : > { %v9708_v7 = vpop.eup %9707 }
0x21e9   : > { %v9710_v15 = vpop.eup %9709  ;;  %v4145_v62 = vadd.f32 1.0, %v9708_v7  ;;  %v8297_v7 = vmul.f32 -1.442695, %v4116_v12 }
0x21ea   : > { %v4143_v4 = vadd.f32 1.0, %v9710_v15 }
0x21eb   : > { %9715 = vrcp.f32 %v4145_v62 }
0x21ec   : > { %v9712_v41 = vpop.eup %9711  ;;  %9717 = vrcp.f32 %v4143_v4 }
0x21ed   : > { %v9714_v51 = vpop.eup %9713  ;;  %v4149_v63 = vadd.f32 1.0, %v9712_v41 }
0x21ee   : > { %v4147_v36 = vadd.f32 1.0, %v9714_v51 }
0x21ef   : > { %9719 = vrcp.f32 %v4149_v63 }
0x21f0   : > { %9721 = vrcp.f32 %v4147_v36 }
0x21f5   : > { %v9716_v31 = vpop.eup %9715 }
0x21f6   : > { %v9718_v57 = vpop.eup %9717  ;;  %v4188_v37 = vmul.f32 %v9716_v31, %v4178_v28 }
0x21f7   : > { %v4187_v19 = vmul.f32 %v9718_v57, %v4176_v61 }
0x21f8   : > { %4197 = vrot.lane.b32.xlu1 %v4188_v37, %s10408_s21 }
0x21f9   : > { %v9720_v38 = vpop.eup %9719  ;;  %4195 = vrot.lane.b32.xlu0 %v4187_v19, %s10408_s21 }
0x21fa   : > { %v9722_v10 = vpop.eup %9721  ;;  %v4190_v32 = vmul.f32 %v9720_v38, %v4182_v33 }
0x21fb   : > { %v4189_v1 = vmul.f32 %v9722_v10, %v4180_v17 }
0x21fc   : > { %4201 = vrot.lane.b32.xlu1 %v4190_v32, %s10408_s21 }
0x21fd   : > { %4199 = vrot.lane.b32.xlu0 %v4189_v1, %s10408_s21 }
0x226a   : > { %v4198_v29 = vpop.permute.xlu1 %4197 }
0x226b   : > { %v4208_v43 = vadd.f32 %v4198_v29, %v3997_v42  ;;  %v4196_v49 = vpop.permute.xlu0 %4195 }
0x226c   : > { %v4207_v20 = vadd.f32 %v4196_v49, %v3995_v60 }
0x226d   : > { %9723 = vtanh.f32 %v4208_v43 }
0x226e   : > { %9725 = vtanh.f32 %v4207_v20  ;;  %v4202_v55 = vpop.permute.xlu1 %4201 }
0x226f   : > { %v4210_v23 = vadd.f32 %v4202_v55, %v4001_v27  ;;  %v4200_v0 = vpop.permute.xlu0 %4199 }
0x2270   : > { %v4209_v3 = vadd.f32 %v4200_v0, %v3999_v24 }
0x2271   : > { %9727 = vtanh.f32 %v4210_v23 }
0x2272   : > { %9729 = vtanh.f32 %v4209_v3 }
0x2273   : > { %9731 = vpow2.f32 %v8295_v9 }
0x2274   : > { %9733 = vpow2.f32 %v8293_v21  ;;  %v4267_v21 = vld [vmem:[#allocation2 + $0x240] sm:$0xff] }
0x2275   : > { %9735 = vpow2.f32 %v8299_v22 }
0x2276   : > { %9737 = vpow2.f32 %v8297_v7 }
0x2277   : > { %v9724_v5 = vpop.eup %9723 }
0x2278   : > { %v9726_v6 = vpop.eup %9725  ;;  %4225 = vrot.lane.b32.xlu1 %v9724_v5, %s10410_s29 }
0x2279   : > { %4223 = vrot.lane.b32.xlu0 %v9726_v6, %s10410_s29 }
0x227b   : > { %v9728_v58 = vpop.eup %9727 }
0x227c   : > { %v9730_v16 = vpop.eup %9729  ;;  %4229 = vrot.lane.b32.xlu1 %v9728_v58, %s10410_s29 }
0x227d   : > { %4227 = vrot.lane.b32.xlu0 %v9730_v16, %s10410_s29  ;;  %v9732_v15 = vpop.eup %9731 }
0x227e   : > { %v9734_v62 = vpop.eup %9733  ;;  %v4146_v4 = vadd.f32 1.0, %v9732_v15 }
0x227f   : > { %v9736_v41 = vpop.eup %9735  ;;  %v4144_v51 = vadd.f32 1.0, %v9734_v62  ;;  %v4273_v62 = vld [vmem:[#allocation2 + $0x270] sm:$0xff] }
0x2280   : > { %v9738_v11 = vpop.eup %9737  ;;  %9739 = vrcp.f32 %v4146_v4  ;;  %v4150_v54 = vadd.f32 1.0, %v9736_v41 }
0x2281   : > { %9741 = vrcp.f32 %v4144_v51  ;;  %v4148_v63 = vadd.f32 1.0, %v9738_v11  ;;  %v4271_v51 = vld [vmem:[#allocation2 + $0x260] sm:$0xff] }
0x2282   : > { %9743 = vrcp.f32 %v4150_v54 }
0x2283   : > { %9745 = vrcp.f32 %v4148_v63 }
0x228a   : > { %v9740_v47 = vpop.eup %9739 }
0x228b   : > { %v9742_v18 = vpop.eup %9741  ;;  %v4216_v36 = vsub.f32 1.0, %v9740_v47  ;;  %v4240_v10 = vmul.f32 %v9740_v47, %v11603_v13 }
0x228c   : > { %v9744_v28 = vpop.eup %9743  ;;  %v4215_v31 = vsub.f32 1.0, %v9742_v18  ;;  %v4239_v38 = vmul.f32 %v9742_v18, %v11601_v44 }
0x228d   : > { %v9746_v57 = vpop.eup %9745  ;;  %v4218_v32 = vsub.f32 1.0, %v9744_v28  ;;  %v4242_v27 = vmul.f32 %v9744_v28, %v11612_v8 }
0x228e   : > { %v4217_v42 = vsub.f32 1.0, %v9746_v57  ;;  %v4241_v49 = vmul.f32 %v9746_v57, %v11609_v56 }
0x22ea   : > { %v4226_v61 = vpop.permute.xlu1 %4225 }
0x22eb   : > { %v4236_v37 = vmul.f32 %v4226_v61, %v4216_v36  ;;  %v4224_v19 = vpop.permute.xlu0 %4223 }
0x22ec   : > { %v4235_v33 = vmul.f32 %v4224_v19, %v4215_v31 }
0x22ed   : > { %v11665_v29 = vadd.f32 %v4240_v10, %v4236_v37 }
0x22ee   : > { %v11663_v17 = vadd.f32 %v4239_v38, %v4235_v33  ;;  %v4230_v1 = vpop.permute.xlu1 %4229 }
0x22ef   : > { %v4238_v43 = vmul.f32 %v4230_v1, %v4218_v32  ;;  %v4228_v60 = vpop.permute.xlu0 %4227 }
0x22f0   : > { %12937 = vst [vmem:[#allocation15_spill] sm:$0xff] %v11663_v17  ;;  %v4237_v20 = vmul.f32 %v4228_v60, %v4217_v42  ;;  %8880 = vmatprep.mubr.msk.f32.mxu1 %vm564_vm0, %v11663_v17 }
0x22f1   : > { %8881 = vmatmul.mubr.msk.f32.vlgmr.msra.gmra.mrb[80].mxu1 %vm564_vm0, %v11665_v29  ;;  %v11676_v23 = vadd.f32 %v4242_v27, %v4238_v43 }
0x22f2   : > { %v11673_v55 = vadd.f32 %v4241_v49, %v4237_v20  ;;  %9191 = vmatpush3.bf16.msra.mxu1 %v11500_v40 }
0x22f3   : > { %12939 = vst [vmem:[#allocation17_spill] sm:$0xff] %v11676_v23  ;;  %9193 = vmatprep.subr.bf16.mxu1 %v11534_v26 }
0x22f4   : > { %12938 = vst [vmem:[#allocation16_spill] sm:$0xff] %v11673_v55  ;;  %8883 = vmatprep.mubr.msk.f32.mxu1 %vm564_vm0, %v11673_v55 }
0x22f5   : > { %8884 = vmatmul.mubr.msk.f32.gmra.mrb[82].mxu1 %vm564_vm0, %v11676_v23 }
0x22f6   : > { %9195 = vmatpush3.bf16.msra.mxu1 %v11534_v26 }
0x22f7   : > { %9197 = vmatprep.subr.bf16.mxu1 %v11500_v40 }
0x23c4   : > { %v8882_v24 = vpop.f32.mrb[80].mxu1 }
0x23c5   : > { %4374 = vrot.lane.b32.xlu1 %v8882_v24, %s10410_s29  ;;  %v4349_v0 = vpop.f32.mrb[81].mxu1  ;;  %v4441_v6 = vadd.f32 %v8882_v24, %v11565_v46 }
0x23c6   : > { %4372 = vrot.lane.b32.xlu0 %v4349_v0, %s10410_s29  ;;  %v4440_v58 = vadd.f32 %v4349_v0, %v11565_v46  ;;  %v4270_v0 = vld [vmem:[#allocation2 + $0x258] sm:$0xff] }
0x23c8   : > { %v8885_v3 = vpop.f32.mrb[82].mxu1 }
0x23c9   : > { %4378 = vrot.lane.b32.xlu1 %v8885_v3, %s10410_s29  ;;  %v4359_v5 = vpop.f32.mrb[83].mxu1  ;;  %v4443_v16 = vadd.f32 %v8885_v3, %v11565_v46 }
0x23ca   : > { %4376 = vrot.lane.b32.xlu0 %v4359_v5, %s10410_s29  ;;  %v4442_v48 = vadd.f32 %v4359_v5, %v11565_v46 }
0x23cd   : > { %4450 = vrot.lane.b32.xlu1 %v4441_v6, %s10411_s12  ;;  %v4268_v6 = vld [vmem:[#allocation2 + $0x248] sm:$0xff] }
0x23ce   : > { %4448 = vrot.lane.b32.xlu0 %v4440_v58, %s10411_s12 }
0x23d1   : > { %4454 = vrot.lane.b32.xlu1 %v4443_v16, %s10411_s12 }
0x23d2   : > { %4452 = vrot.lane.b32.xlu0 %v4442_v48, %s10411_s12  ;;  %v4274_v48 = vld [vmem:[#allocation2 + $0x278] sm:$0xff] }
0x2437   : > { %v11697_v9 = vpop.permute.xlu1 %4374 }
0x2438   : > { %v4386_v14 = vadd.f32 %v11697_v9, %v4269_v59  ;;  %v11700_v12 = vpop.permute.xlu0 %4372 }
0x2439   : > { %v4384_v22 = vadd.f32 %v11700_v12, %v4267_v21  ;;  %v4272_v21 = vld [vmem:[#allocation2 + $0x268] sm:$0xff] }
0x243a   : > { %v8306_v7 = vmul.f32 -1.442695, %v4386_v14 }
0x243b   : > { %v8304_v15 = vmul.f32 -1.442695, %v4384_v22  ;;  %v11703_v4 = vpop.permute.xlu1 %4378 }
0x243c   : > { %9747 = vpow2.f32 %v8306_v7  ;;  %v4390_v41 = vadd.f32 %v11703_v4, %v4273_v62  ;;  %v11706_v11 = vpop.permute.xlu0 %4376 }
0x243d   : > { %9749 = vpow2.f32 %v8304_v15  ;;  %v4388_v54 = vadd.f32 %v11706_v11, %v4271_v51 }
0x243e   : > { %v8310_v63 = vmul.f32 -1.442695, %v4390_v41 }
0x243f   : > { %v8308_v47 = vmul.f32 -1.442695, %v4388_v54  ;;  %v4451_v38 = vpop.permute.xlu1 %4450  ;;  %v4387_v54 = vadd.f32 %v11697_v9, %v4270_v0 }
0x2440   : > { %9751 = vpow2.f32 %v8310_v63  ;;  %v4449_v33 = vpop.permute.xlu0 %4448  ;;  %v4385_v63 = vadd.f32 %v11700_v12, %v4268_v6 }
0x2441   : > { %9753 = vpow2.f32 %v8308_v47  ;;  %v8307_v47 = vmul.f32 -1.442695, %v4387_v54 }
0x2443   : > { %v4455_v60 = vpop.permute.xlu1 %4454 }
0x2444   : > { %v4453_v27 = vpop.permute.xlu0 %4452 }
0x2446   : > { %v9748_v18 = vpop.eup %9747 }
0x2447   : > { %v9750_v36 = vpop.eup %9749  ;;  %v4418_v28 = vadd.f32 1.0, %v9748_v18  ;;  %v4391_v18 = vadd.f32 %v11703_v4, %v4274_v48 }
0x2448   : > { %v4416_v61 = vadd.f32 1.0, %v9750_v36  ;;  %v8305_v36 = vmul.f32 -1.442695, %v4385_v63 }
0x2449   : > { %9755 = vrcp.f32 %v4418_v28  ;;  %v4389_v28 = vadd.f32 %v11706_v11, %v4272_v21 }
0x244a   : > { %v9752_v31 = vpop.eup %9751  ;;  %9757 = vrcp.f32 %v4416_v61  ;;  %v8311_v61 = vmul.f32 -1.442695, %v4391_v18 }
0x244b   : > { %v9754_v57 = vpop.eup %9753  ;;  %v4422_v37 = vadd.f32 1.0, %v9752_v31  ;;  %v8309_v31 = vmul.f32 -1.442695, %v4389_v28  ;;  %v4542_v28 = vld [vmem:[#allocation2 + $0x210] sm:$0xff] }
0x244c   : > { %v4420_v19 = vadd.f32 1.0, %v9754_v57 }
0x244d   : > { %9759 = vrcp.f32 %v4422_v37 }
0x244e   : > { %9761 = vrcp.f32 %v4420_v19 }
0x2453   : > { %v9756_v10 = vpop.eup %9755 }
0x2454   : > { %v9758_v32 = vpop.eup %9757  ;;  %v4461_v1 = vmul.f32 %v9756_v10, %v4451_v38 }
0x2455   : > { %v4460_v42 = vmul.f32 %v9758_v32, %v4449_v33 }
0x2456   : > { %4470 = vrot.lane.b32.xlu1 %v4461_v1, %s10408_s21 }
0x2457   : > { %v9760_v43 = vpop.eup %9759  ;;  %4468 = vrot.lane.b32.xlu0 %v4460_v42, %s10408_s21 }
0x2458   : > { %v9762_v49 = vpop.eup %9761  ;;  %v4463_v20 = vmul.f32 %v9760_v43, %v4455_v60 }
0x2459   : > { %v4462_v24 = vmul.f32 %v9762_v49, %v4453_v27 }
0x245a   : > { %4474 = vrot.lane.b32.xlu1 %v4463_v20, %s10408_s21 }
0x245b   : > { %4472 = vrot.lane.b32.xlu0 %v4462_v24, %s10408_s21 }
0x24c8   : > { %v4471_v3 = vpop.permute.xlu1 %4470 }
0x24c9   : > { %v4481_v5 = vadd.f32 %v4471_v3, %v4270_v0  ;;  %v4469_v58 = vpop.permute.xlu0 %4468 }
0x24ca   : > { %v4480_v16 = vadd.f32 %v4469_v58, %v4268_v6 }
0x24cb   : > { %9763 = vtanh.f32 %v4481_v5 }
0x24cc   : > { %9765 = vtanh.f32 %v4480_v16  ;;  %v4475_v59 = vpop.permute.xlu1 %4474 }
0x24cd   : > { %v4483_v14 = vadd.f32 %v4475_v59, %v4274_v48  ;;  %v4473_v22 = vpop.permute.xlu0 %4472 }
0x24ce   : > { %v4482_v7 = vadd.f32 %v4473_v22, %v4272_v21 }
0x24cf   : > { %9767 = vtanh.f32 %v4483_v14 }
0x24d0   : > { %9769 = vtanh.f32 %v4482_v7 }
0x24d1   : > { %9771 = vpow2.f32 %v8307_v47 }
0x24d2   : > { %9773 = vpow2.f32 %v8305_v36 }
0x24d3   : > { %9775 = vpow2.f32 %v8311_v61 }
0x24d4   : > { %9777 = vpow2.f32 %v8309_v31 }
0x24d5   : > { %v9764_v15 = vpop.eup %9763 }
0x24d6   : > { %v9766_v62 = vpop.eup %9765  ;;  %4498 = vrot.lane.b32.xlu1 %v9764_v15, %s10410_s29 }
0x24d7   : > { %4496 = vrot.lane.b32.xlu0 %v9766_v62, %s10410_s29 }
0x24d9   : > { %v9768_v41 = vpop.eup %9767 }
0x24da   : > { %v9770_v51 = vpop.eup %9769  ;;  %4502 = vrot.lane.b32.xlu1 %v9768_v41, %s10410_s29 }
0x24db   : > { %4500 = vrot.lane.b32.xlu0 %v9770_v51, %s10410_s29  ;;  %v9772_v57 = vpop.eup %9771 }
0x24dc   : > { %v9774_v37 = vpop.eup %9773  ;;  %v4419_v19 = vadd.f32 1.0, %v9772_v57  ;;  %v4540_v57 = vld [vmem:[#allocation2 + $0x200] sm:$0xff] }
0x24dd   : > { %v9776_v38 = vpop.eup %9775  ;;  %v4417_v33 = vadd.f32 1.0, %v9774_v37 }
0x24de   : > { %v9778_v9 = vpop.eup %9777  ;;  %9779 = vrcp.f32 %v4419_v19  ;;  %v4423_v12 = vadd.f32 1.0, %v9776_v38 }
0x24df   : > { %9781 = vrcp.f32 %v4417_v33  ;;  %v4421_v10 = vadd.f32 1.0, %v9778_v9  ;;  %v4546_v9 = vld [vmem:[#allocation2 + $0x230] sm:$0xff] }
0x24e0   : > { %9783 = vrcp.f32 %v4423_v12 }
0x24e1   : > { %9785 = vrcp.f32 %v4421_v10 }
0x24e8   : > { %v9780_v4 = vpop.eup %9779 }
0x24e9   : > { %v9782_v11 = vpop.eup %9781  ;;  %v4489_v32 = vsub.f32 1.0, %v9780_v4  ;;  %v4513_v0 = vmul.f32 %v9780_v4, %v11665_v29  ;;  %v4544_v4 = vld [vmem:[#allocation2 + $0x220] sm:$0xff] }
0x24ea   : > { %v9784_v1 = vpop.eup %9783  ;;  %v4488_v43 = vsub.f32 1.0, %v9782_v11  ;;  %v4512_v27 = vmul.f32 %v9782_v11, %v11663_v17 }
0x24eb   : > { %v9786_v60 = vpop.eup %9785  ;;  %v4491_v3 = vsub.f32 1.0, %v9784_v1  ;;  %v4515_v22 = vmul.f32 %v9784_v1, %v11676_v23 }
0x24ec   : > { %v4490_v58 = vsub.f32 1.0, %v9786_v60  ;;  %v4514_v14 = vmul.f32 %v9786_v60, %v11673_v55 }
0x2548   : > { %v4499_v42 = vpop.permute.xlu1 %4498 }
0x2549   : > { %v4509_v49 = vmul.f32 %v4499_v42, %v4489_v32  ;;  %v4497_v20 = vpop.permute.xlu0 %4496 }
0x254a   : > { %v4508_v24 = vmul.f32 %v4497_v20, %v4488_v43 }
0x254b   : > { %v11725_v16 = vadd.f32 %v4513_v0, %v4509_v49 }
0x254c   : > { %v11723_v5 = vadd.f32 %v4512_v27, %v4508_v24  ;;  %v4503_v6 = vpop.permute.xlu1 %4502 }
0x254d   : > { %v4511_v48 = vmul.f32 %v4503_v6, %v4491_v3  ;;  %v4501_v59 = vpop.permute.xlu0 %4500 }
0x254e   : > { %v4510_v21 = vmul.f32 %v4501_v59, %v4490_v58  ;;  %8894 = vmatprep.mubr.msk.f32.mxu1 %vm564_vm0, %v11723_v5 }
0x254f   : > { %8895 = vmatmul.mubr.msk.f32.vlgmr.msra.gmra.mrb[84].mxu1 %vm564_vm0, %v11725_v16  ;;  %v11736_v15 = vadd.f32 %v4515_v22, %v4511_v48 }
0x2550   : > { %v11733_v7 = vadd.f32 %v4514_v14, %v4510_v21  ;;  %9199 = vmatpush3.bf16.msra.mxu1 %v11500_v40 }
0x2551   : > { %9201 = vmatprep.subr.bf16.mxu1 %v11534_v26 }
0x2552   : > { %8897 = vmatprep.mubr.msk.f32.mxu1 %vm564_vm0, %v11733_v7 }
0x2553   : > { %8898 = vmatmul.mubr.msk.f32.gmra.mrb[86].mxu1 %vm564_vm0, %v11736_v15 }
0x2554   : > { %9203 = vmatpush3.bf16.msra.mxu1 %v11534_v26 }
0x2555   : > { %9205 = vmatprep.subr.bf16.mxu1 %v11500_v40 }
0x2622   : > { %v8896_v62 = vpop.f32.mrb[84].mxu1 }
0x2623   : > { %4647 = vrot.lane.b32.xlu1 %v8896_v62, %s10410_s29  ;;  %v4622_v41 = vpop.f32.mrb[85].mxu1  ;;  %v4714_v63 = vadd.f32 %v8896_v62, %v11565_v46 }
0x2624   : > { %4645 = vrot.lane.b32.xlu0 %v4622_v41, %s10410_s29  ;;  %v4713_v47 = vadd.f32 %v4622_v41, %v11565_v46 }
0x2626   : > { %v8899_v51 = vpop.f32.mrb[86].mxu1 }
0x2627   : > { %4651 = vrot.lane.b32.xlu1 %v8899_v51, %s10410_s29  ;;  %v4632_v54 = vpop.f32.mrb[87].mxu1  ;;  %v4716_v18 = vadd.f32 %v8899_v51, %v11565_v46 }
0x2628   : > { %4649 = vrot.lane.b32.xlu0 %v4632_v54, %s10410_s29  ;;  %v4715_v36 = vadd.f32 %v4632_v54, %v11565_v46 }
0x262b   : > { %4723 = vrot.lane.b32.xlu1 %v4714_v63, %s10411_s12 }
0x262c   : > { %4721 = vrot.lane.b32.xlu0 %v4713_v47, %s10411_s12  ;;  %v4543_v47 = vld [vmem:[#allocation2 + $0x218] sm:$0xff] }
0x262f   : > { %4727 = vrot.lane.b32.xlu1 %v4716_v18, %s10411_s12 }
0x2630   : > { %4725 = vrot.lane.b32.xlu0 %v4715_v36, %s10411_s12 }
0x2695   : > { %v11757_v61 = vpop.permute.xlu1 %4647 }
0x2696   : > { %v4659_v31 = vadd.f32 %v11757_v61, %v4542_v28  ;;  %v11760_v37 = vpop.permute.xlu0 %4645  ;;  %v4541_v28 = vld [vmem:[#allocation2 + $0x208] sm:$0xff] }
0x2697   : > { %v4657_v19 = vadd.f32 %v11760_v37, %v4540_v57 }
0x2698   : > { %v8318_v38 = vmul.f32 -1.442695, %v4659_v31 }
0x2699   : > { %v8316_v33 = vmul.f32 -1.442695, %v4657_v19  ;;  %v11763_v12 = vpop.permute.xlu1 %4651  ;;  %v4547_v19 = vld [vmem:[#allocation2 + $0x238] sm:$0xff] }
0x269a   : > { %9787 = vpow2.f32 %v8318_v38  ;;  %v4663_v10 = vadd.f32 %v11763_v12, %v4546_v9  ;;  %v11766_v11 = vpop.permute.xlu0 %4649  ;;  %v4545_v9 = vld [vmem:[#allocation2 + $0x228] sm:$0xff] }
0x269b   : > { %9789 = vpow2.f32 %v8316_v33  ;;  %v4661_v32 = vadd.f32 %v11766_v11, %v4544_v4 }
0x269c   : > { %v8322_v1 = vmul.f32 -1.442695, %v4663_v10 }
0x269d   : > { %v8320_v42 = vmul.f32 -1.442695, %v4661_v32  ;;  %v4724_v6 = vpop.permute.xlu1 %4723 }
0x269e   : > { %9791 = vpow2.f32 %v8322_v1  ;;  %v4722_v58 = vpop.permute.xlu0 %4721 }
0x269f   : > { %9793 = vpow2.f32 %v8320_v42 }
0x26a1   : > { %v4728_v62 = vpop.permute.xlu1 %4727 }
0x26a2   : > { %v4726_v54 = vpop.permute.xlu0 %4725 }
0x26a4   : > { %v9788_v43 = vpop.eup %9787 }
0x26a5   : > { %v9790_v60 = vpop.eup %9789  ;;  %v4691_v49 = vadd.f32 1.0, %v9788_v43 }
0x26a6   : > { %v4689_v20 = vadd.f32 1.0, %v9790_v60  ;;  %v4660_v60 = vadd.f32 %v11757_v61, %v4543_v47 }
0x26a7   : > { %9795 = vrcp.f32 %v4691_v49  ;;  %v4658_v49 = vadd.f32 %v11760_v37, %v4541_v28 }
0x26a8   : > { %v9792_v27 = vpop.eup %9791  ;;  %9797 = vrcp.f32 %v4689_v20  ;;  %v8319_v20 = vmul.f32 -1.442695, %v4660_v60 }
0x26a9   : > { %v9794_v24 = vpop.eup %9793  ;;  %v4695_v0 = vadd.f32 1.0, %v9792_v27  ;;  %v4664_v27 = vadd.f32 %v11763_v12, %v4547_v19 }
0x26aa   : > { %v4693_v3 = vadd.f32 1.0, %v9794_v24  ;;  %v8317_v24 = vmul.f32 -1.442695, %v4658_v49 }
0x26ab   : > { %9799 = vrcp.f32 %v4695_v0  ;;  %v4662_v0 = vadd.f32 %v11766_v11, %v4545_v9 }
0x26ac   : > { %9801 = vrcp.f32 %v4693_v3  ;;  %v8323_v3 = vmul.f32 -1.442695, %v4664_v27 }
0x26b1   : > { %v9796_v48 = vpop.eup %9795 }
0x26b2   : > { %v9798_v59 = vpop.eup %9797  ;;  %v4734_v14 = vmul.f32 %v9796_v48, %v4724_v6  ;;  %v8321_v6 = vmul.f32 -1.442695, %v4662_v0 }
0x26b3   : > { %v4733_v21 = vmul.f32 %v9798_v59, %v4722_v58 }
0x26b4   : > { %4743 = vrot.lane.b32.xlu1 %v4734_v14, %s10408_s21 }
0x26b5   : > { %v9800_v22 = vpop.eup %9799  ;;  %4741 = vrot.lane.b32.xlu0 %v4733_v21, %s10408_s21 }
0x26b6   : > { %v9802_v41 = vpop.eup %9801  ;;  %v4736_v51 = vmul.f32 %v9800_v22, %v4728_v62 }
0x26b7   : > { %v4735_v63 = vmul.f32 %v9802_v41, %v4726_v54 }
0x26b8   : > { %4747 = vrot.lane.b32.xlu1 %v4736_v51, %s10408_s21 }
0x26b9   : > { %4745 = vrot.lane.b32.xlu0 %v4735_v63, %s10408_s21 }
0x2726   : > { %v4744_v18 = vpop.permute.xlu1 %4743 }
0x2727   : > { %v4754_v36 = vadd.f32 %v4744_v18, %v4543_v47  ;;  %v4742_v31 = vpop.permute.xlu0 %4741 }
0x2728   : > { %v4753_v57 = vadd.f32 %v4742_v31, %v4541_v28 }
0x2729   : > { %9803 = vtanh.f32 %v4754_v36 }
0x272a   : > { %9805 = vtanh.f32 %v4753_v57  ;;  %v4748_v38 = vpop.permute.xlu1 %4747 }
0x272b   : > { %v4756_v33 = vadd.f32 %v4748_v38, %v4547_v19  ;;  %v4746_v10 = vpop.permute.xlu0 %4745 }
0x272c   : > { %v4755_v4 = vadd.f32 %v4746_v10, %v4545_v9 }
0x272d   : > { %9807 = vtanh.f32 %v4756_v33 }
0x272e   : > { %9809 = vtanh.f32 %v4755_v4 }
0x272f   : > { %9811 = vpow2.f32 %v8319_v20 }
0x2730   : > { %9813 = vpow2.f32 %v8317_v24 }
0x2731   : > { %9815 = vpow2.f32 %v8323_v3 }
0x2732   : > { %9817 = vpow2.f32 %v8321_v6 }
0x2733   : > { %v9804_v32 = vpop.eup %9803 }
0x2734   : > { %v9806_v1 = vpop.eup %9805  ;;  %4771 = vrot.lane.b32.xlu1 %v9804_v32, %s10410_s29 }
0x2735   : > { %4769 = vrot.lane.b32.xlu0 %v9806_v1, %s10410_s29 }
0x2737   : > { %v9808_v42 = vpop.eup %9807 }
0x2738   : > { %v9810_v43 = vpop.eup %9809  ;;  %4775 = vrot.lane.b32.xlu1 %v9808_v42, %s10410_s29 }
0x2739   : > { %4773 = vrot.lane.b32.xlu0 %v9810_v43, %s10410_s29  ;;  %v9812_v58 = vpop.eup %9811 }
0x273a   : > { %v9814_v48 = vpop.eup %9813  ;;  %v4692_v59 = vadd.f32 1.0, %v9812_v58 }
0x273b   : > { %v9816_v14 = vpop.eup %9815  ;;  %v4690_v21 = vadd.f32 1.0, %v9814_v48  ;;  %v4815_v48 = vld [vmem:[#allocation2 + $0x1d0] sm:$0xff] }
0x273c   : > { %v9818_v61 = vpop.eup %9817  ;;  %9819 = vrcp.f32 %v4692_v59  ;;  %v4696_v37 = vadd.f32 1.0, %v9816_v14 }
0x273d   : > { %9821 = vrcp.f32 %v4690_v21  ;;  %v4694_v22 = vadd.f32 1.0, %v9818_v61  ;;  %v4813_v21 = vld [vmem:[#allocation2 + $0x1c0] sm:$0xff] }
0x273e   : > { %9823 = vrcp.f32 %v4696_v37 }
0x273f   : > { %9825 = vrcp.f32 %v4694_v22 }
0x2746   : > { %v9820_v12 = vpop.eup %9819 }
0x2747   : > { %v9822_v11 = vpop.eup %9821  ;;  %v4762_v62 = vsub.f32 1.0, %v9820_v12  ;;  %v4786_v31 = vmul.f32 %v9820_v12, %v11725_v16 }
0x2748   : > { %v9824_v41 = vpop.eup %9823  ;;  %v4761_v54 = vsub.f32 1.0, %v9822_v11  ;;  %v4785_v36 = vmul.f32 %v9822_v11, %v11723_v5  ;;  %v4819_v11 = vld [vmem:[#allocation2 + $0x1f0] sm:$0xff] }
0x2749   : > { %v9826_v63 = vpop.eup %9825  ;;  %v4764_v57 = vsub.f32 1.0, %v9824_v41  ;;  %v4788_v42 = vmul.f32 %v9824_v41, %v11736_v15 }
0x274a   : > { %v4763_v33 = vsub.f32 1.0, %v9826_v63  ;;  %v4787_v32 = vmul.f32 %v9826_v63, %v11733_v7 }
0x27a6   : > { %v4772_v51 = vpop.permute.xlu1 %4771 }
0x27a7   : > { %v4782_v47 = vmul.f32 %v4772_v51, %v4762_v62  ;;  %v4770_v18 = vpop.permute.xlu0 %4769  ;;  %v4817_v51 = vld [vmem:[#allocation2 + $0x1e0] sm:$0xff] }
0x27a8   : > { %v4781_v28 = vmul.f32 %v4770_v18, %v4761_v54 }
0x27a9   : > { %v11785_v9 = vadd.f32 %v4786_v31, %v4782_v47 }
0x27aa   : > { %v11783_v19 = vadd.f32 %v4785_v36, %v4781_v28  ;;  %v4776_v38 = vpop.permute.xlu1 %4775 }
0x27ab   : > { %v4784_v10 = vmul.f32 %v4776_v38, %v4764_v57  ;;  %v4774_v4 = vpop.permute.xlu0 %4773 }
0x27ac   : > { %v4783_v1 = vmul.f32 %v4774_v4, %v4763_v33  ;;  %8908 = vmatprep.mubr.msk.f32.mxu1 %vm564_vm0, %v11783_v19 }
0x27ad   : > { %8909 = vmatmul.mubr.msk.f32.vlgmr.msra.gmra.mrb[88].mxu1 %vm564_vm0, %v11785_v9  ;;  %v11796_v60 = vadd.f32 %v4788_v42, %v4784_v10 }
0x27ae   : > { %v11793_v43 = vadd.f32 %v4787_v32, %v4783_v1  ;;  %9207 = vmatpush3.bf16.msra.mxu1 %v11500_v40 }
0x27af   : > { %9209 = vmatprep.subr.bf16.mxu1 %v11534_v26 }
0x27b0   : > { %8911 = vmatprep.mubr.msk.f32.mxu1 %vm564_vm0, %v11793_v43 }
0x27b1   : > { %8912 = vmatmul.mubr.msk.f32.gmra.mrb[90].mxu1 %vm564_vm0, %v11796_v60 }
0x27b2   : > { %9211 = vmatpush3.bf16.msra.mxu1 %v11534_v26 }
0x27b3   : > { %9213 = vmatprep.subr.bf16.mxu1 %v11500_v40 }
0x2880   : > { %v8910_v49 = vpop.f32.mrb[88].mxu1 }
0x2881   : > { %4920 = vrot.lane.b32.xlu1 %v8910_v49, %s10410_s29  ;;  %v4895_v20 = vpop.f32.mrb[89].mxu1  ;;  %v4987_v0 = vadd.f32 %v8910_v49, %v11565_v46 }
0x2882   : > { %4918 = vrot.lane.b32.xlu0 %v4895_v20, %s10410_s29  ;;  %v4986_v3 = vadd.f32 %v4895_v20, %v11565_v46 }
0x2884   : > { %v8913_v27 = vpop.f32.mrb[90].mxu1 }
0x2885   : > { %4924 = vrot.lane.b32.xlu1 %v8913_v27, %s10410_s29  ;;  %v4905_v24 = vpop.f32.mrb[91].mxu1  ;;  %v4989_v6 = vadd.f32 %v8913_v27, %v11565_v46 }
0x2886   : > { %4922 = vrot.lane.b32.xlu0 %v4905_v24, %s10410_s29  ;;  %v4988_v58 = vadd.f32 %v4905_v24, %v11565_v46 }
0x2889   : > { %4996 = vrot.lane.b32.xlu1 %v4987_v0, %s10411_s12 }
0x288a   : > { %4994 = vrot.lane.b32.xlu0 %v4986_v3, %s10411_s12 }
0x288d   : > { %5000 = vrot.lane.b32.xlu1 %v4989_v6, %s10411_s12 }
0x288e   : > { %4998 = vrot.lane.b32.xlu0 %v4988_v58, %s10411_s12 }
0x28f3   : > { %v11817_v59 = vpop.permute.xlu1 %4920 }
0x28f4   : > { %v4932_v14 = vadd.f32 %v11817_v59, %v4815_v48  ;;  %v11820_v61 = vpop.permute.xlu0 %4918 }
0x28f5   : > { %v4930_v37 = vadd.f32 %v11820_v61, %v4813_v21 }
0x28f6   : > { %v8330_v22 = vmul.f32 -1.442695, %v4932_v14  ;;  %v4816_v14 = vld [vmem:[#allocation2 + $0x1d8] sm:$0xff] }
0x28f7   : > { %v8328_v12 = vmul.f32 -1.442695, %v4930_v37  ;;  %v11823_v62 = vpop.permute.xlu1 %4924 }
0x28f8   : > { %9827 = vpow2.f32 %v8330_v22  ;;  %v4936_v41 = vadd.f32 %v11823_v62, %v4819_v11  ;;  %v11826_v54 = vpop.permute.xlu0 %4922  ;;  %v4814_v22 = vld [vmem:[#allocation2 + $0x1c8] sm:$0xff] }
0x28f9   : > { %9829 = vpow2.f32 %v8328_v12  ;;  %v4934_v63 = vadd.f32 %v11826_v54, %v4817_v51 }
0x28fa   : > { %v8334_v47 = vmul.f32 -1.442695, %v4936_v41  ;;  %v4820_v41 = vld [vmem:[#allocation2 + $0x1f8] sm:$0xff] }
0x28fb   : > { %v8332_v18 = vmul.f32 -1.442695, %v4934_v63  ;;  %v4997_v32 = vpop.permute.xlu1 %4996 }
0x28fc   : > { %9831 = vpow2.f32 %v8334_v47  ;;  %v4995_v1 = vpop.permute.xlu0 %4994  ;;  %v4818_v47 = vld [vmem:[#allocation2 + $0x1e8] sm:$0xff] }
0x28fd   : > { %9833 = vpow2.f32 %v8332_v18 }
0x28ff   : > { %v5001_v0 = vpop.permute.xlu1 %5000 }
0x2900   : > { %v4999_v58 = vpop.permute.xlu0 %4998 }
0x2902   : > { %v9828_v36 = vpop.eup %9827 }
0x2903   : > { %v9830_v28 = vpop.eup %9829  ;;  %v4964_v31 = vadd.f32 1.0, %v9828_v36 }
0x2904   : > { %v4962_v57 = vadd.f32 1.0, %v9830_v28 }
0x2905   : > { %9835 = vrcp.f32 %v4964_v31 }
0x2906   : > { %v9832_v38 = vpop.eup %9831  ;;  %9837 = vrcp.f32 %v4962_v57 }
0x2907   : > { %v9834_v33 = vpop.eup %9833  ;;  %v4968_v10 = vadd.f32 1.0, %v9832_v38 }
0x2908   : > { %v4966_v4 = vadd.f32 1.0, %v9834_v33  ;;  %v4933_v33 = vadd.f32 %v11817_v59, %v4816_v14 }
0x2909   : > { %9839 = vrcp.f32 %v4968_v10  ;;  %v4931_v10 = vadd.f32 %v11820_v61, %v4814_v22 }
0x290a   : > { %9841 = vrcp.f32 %v4966_v4  ;;  %v8331_v4 = vmul.f32 -1.442695, %v4933_v33 }
0x290f   : > { %v9836_v42 = vpop.eup %9835 }
0x2910   : > { %v9838_v49 = vpop.eup %9837  ;;  %v5007_v20 = vmul.f32 %v9836_v42, %v4997_v32  ;;  %v4937_v32 = vadd.f32 %v11823_v62, %v4820_v41  ;;  %v4935_v42 = vadd.f32 %v11826_v54, %v4818_v47 }
0x2911   : > { %v5006_v27 = vmul.f32 %v9838_v49, %v4995_v1  ;;  %v8329_v1 = vmul.f32 -1.442695, %v4931_v10 }
0x2912   : > { %5016 = vrot.lane.b32.xlu1 %v5007_v20, %s10408_s21  ;;  %v8335_v49 = vmul.f32 -1.442695, %v4937_v32  ;;  %v8333_v20 = vmul.f32 -1.442695, %v4935_v42 }
0x2913   : > { %v9840_v24 = vpop.eup %9839  ;;  %5014 = vrot.lane.b32.xlu0 %v5006_v27, %s10408_s21 }
0x2914   : > { %v9842_v3 = vpop.eup %9841  ;;  %v5009_v6 = vmul.f32 %v9840_v24, %v5001_v0 }
0x2915   : > { %v5008_v48 = vmul.f32 %v9842_v3, %v4999_v58 }
0x2916   : > { %5020 = vrot.lane.b32.xlu1 %v5009_v6, %s10408_s21 }
0x2917   : > { %5018 = vrot.lane.b32.xlu0 %v5008_v48, %s10408_s21 }
0x2984   : > { %v5017_v21 = vpop.permute.xlu1 %5016 }
0x2985   : > { %v5027_v37 = vadd.f32 %v5017_v21, %v4816_v14  ;;  %v5015_v12 = vpop.permute.xlu0 %5014 }
0x2986   : > { %v5026_v11 = vadd.f32 %v5015_v12, %v4814_v22 }
0x2987   : > { %9843 = vtanh.f32 %v5027_v37 }
0x2988   : > { %9845 = vtanh.f32 %v5026_v11  ;;  %v5021_v51 = vpop.permute.xlu1 %5020 }
0x2989   : > { %v5029_v63 = vadd.f32 %v5021_v51, %v4820_v41  ;;  %v5019_v18 = vpop.permute.xlu0 %5018 }
0x298a   : > { %v5028_v36 = vadd.f32 %v5019_v18, %v4818_v47 }
0x298b   : > { %9847 = vtanh.f32 %v5029_v63 }
0x298c   : > { %9849 = vtanh.f32 %v5028_v36 }
0x298d   : > { %9851 = vpow2.f32 %v8331_v4 }
0x298e   : > { %9853 = vpow2.f32 %v8329_v1 }
0x298f   : > { %9855 = vpow2.f32 %v8335_v49 }
0x2990   : > { %9857 = vpow2.f32 %v8333_v20 }
0x2991   : > { %v9844_v28 = vpop.eup %9843 }
0x2992   : > { %v9846_v31 = vpop.eup %9845  ;;  %5044 = vrot.lane.b32.xlu1 %v9844_v28, %s10410_s29 }
0x2993   : > { %5042 = vrot.lane.b32.xlu0 %v9846_v31, %s10410_s29 }
0x2995   : > { %v9848_v57 = vpop.eup %9847 }
0x2996   : > { %v9850_v38 = vpop.eup %9849  ;;  %5048 = vrot.lane.b32.xlu1 %v9848_v57, %s10410_s29 }
0x2997   : > { %5046 = vrot.lane.b32.xlu0 %v9850_v38, %s10410_s29  ;;  %v9852_v27 = vpop.eup %9851 }
0x2998   : > { %v9854_v24 = vpop.eup %9853  ;;  %v4965_v0 = vadd.f32 1.0, %v9852_v27 }
0x2999   : > { %v9856_v3 = vpop.eup %9855  ;;  %v4963_v6 = vadd.f32 1.0, %v9854_v24 }
0x299a   : > { %v9858_v59 = vpop.eup %9857  ;;  %9859 = vrcp.f32 %v4965_v0  ;;  %v4969_v61 = vadd.f32 1.0, %v9856_v3 }
0x299b   : > { %9861 = vrcp.f32 %v4963_v6  ;;  %v4967_v58 = vadd.f32 1.0, %v9858_v59  ;;  %v5088_v59 = vld [vmem:[#allocation2 + $0x190] sm:$0xff] }
0x299c   : > { %9863 = vrcp.f32 %v4969_v61 }
0x299d   : > { %9865 = vrcp.f32 %v4967_v58 }
0x29a4   : > { %v9860_v62 = vpop.eup %9859 }
0x29a5   : > { %v9862_v54 = vpop.eup %9861  ;;  %v5035_v48 = vsub.f32 1.0, %v9860_v62  ;;  %v5059_v63 = vmul.f32 %v9860_v62, %v11785_v9  ;;  %v5086_v62 = vld [vmem:[#allocation2 + $0x180] sm:$0xff] }
0x29a6   : > { %v9864_v14 = vpop.eup %9863  ;;  %v5034_v37 = vsub.f32 1.0, %v9862_v54  ;;  %v5058_v41 = vmul.f32 %v9862_v54, %v11783_v19 }
0x29a7   : > { %v9866_v22 = vpop.eup %9865  ;;  %v5037_v47 = vsub.f32 1.0, %v9864_v14  ;;  %v5061_v4 = vmul.f32 %v9864_v14, %v11796_v60 }
0x29a8   : > { %v5036_v28 = vsub.f32 1.0, %v9866_v22  ;;  %v5060_v33 = vmul.f32 %v9866_v22, %v11793_v43 }
0x2a04   : > { %v5045_v21 = vpop.permute.xlu1 %5044 }
0x2a05   : > { %v5055_v12 = vmul.f32 %v5045_v21, %v5035_v48  ;;  %v5043_v11 = vpop.permute.xlu0 %5042 }
0x2a06   : > { %v5054_v51 = vmul.f32 %v5043_v11, %v5034_v37  ;;  %v5092_v37 = vld [vmem:[#allocation2 + $0x1b0] sm:$0xff]  ;;  %v5090_v11 = vld [vmem:[#allocation2 + $0x1a0] sm:$0xff] }
0x2a07   : > { %v11845_v31 = vadd.f32 %v5059_v63, %v5055_v12 }
0x2a08   : > { %v11843_v18 = vadd.f32 %v5058_v41, %v5054_v51  ;;  %v5049_v36 = vpop.permute.xlu1 %5048 }
0x2a09   : > { %v5057_v57 = vmul.f32 %v5049_v36, %v5037_v47  ;;  %v5047_v38 = vpop.permute.xlu0 %5046 }
0x2a0a   : > { %v5056_v10 = vmul.f32 %v5047_v38, %v5036_v28  ;;  %8922 = vmatprep.mubr.msk.f32.mxu1 %vm564_vm0, %v11843_v18 }
0x2a0b   : > { %8923 = vmatmul.mubr.msk.f32.vlgmr.msra.gmra.mrb[92].mxu1 %vm564_vm0, %v11845_v31  ;;  %v11856_v1 = vadd.f32 %v5061_v4, %v5057_v57 }
0x2a0c   : > { %v11853_v32 = vadd.f32 %v5060_v33, %v5056_v10  ;;  %9215 = vmatpush3.bf16.msra.mxu1 %v11500_v40 }
0x2a0d   : > { %9217 = vmatprep.subr.bf16.mxu1 %v11534_v26 }
0x2a0e   : > { %8925 = vmatprep.mubr.msk.f32.mxu1 %vm564_vm0, %v11853_v32 }
0x2a0f   : > { %8926 = vmatmul.mubr.msk.f32.gmra.mrb[94].mxu1 %vm564_vm0, %v11856_v1 }
0x2a10   : > { %9219 = vmatpush3.bf16.msra.mxu1 %v11534_v26 }
0x2a11   : > { %9221 = vmatprep.subr.bf16.mxu1 %v11500_v40 }
0x2ade   : > { %v8924_v42 = vpop.f32.mrb[92].mxu1 }
0x2adf   : > { %5193 = vrot.lane.b32.xlu1 %v8924_v42, %s10410_s29  ;;  %v5168_v49 = vpop.f32.mrb[93].mxu1  ;;  %v5260_v24 = vadd.f32 %v8924_v42, %v11565_v46 }
0x2ae0   : > { %5191 = vrot.lane.b32.xlu0 %v5168_v49, %s10410_s29  ;;  %v5259_v0 = vadd.f32 %v5168_v49, %v11565_v46 }
0x2ae2   : > { %v8927_v20 = vpop.f32.mrb[94].mxu1 }
0x2ae3   : > { %5197 = vrot.lane.b32.xlu1 %v8927_v20, %s10410_s29  ;;  %v5178_v27 = vpop.f32.mrb[95].mxu1  ;;  %v5262_v3 = vadd.f32 %v8927_v20, %v11565_v46 }
0x2ae4   : > { %5195 = vrot.lane.b32.xlu0 %v5178_v27, %s10410_s29  ;;  %v5261_v6 = vadd.f32 %v5178_v27, %v11565_v46 }
0x2ae7   : > { %5269 = vrot.lane.b32.xlu1 %v5260_v24, %s10411_s12 }
0x2ae8   : > { %5267 = vrot.lane.b32.xlu0 %v5259_v0, %s10411_s12 }
0x2aeb   : > { %5273 = vrot.lane.b32.xlu1 %v5262_v3, %s10411_s12 }
0x2aec   : > { %5271 = vrot.lane.b32.xlu0 %v5261_v6, %s10411_s12 }
0x2b51   : > { %v11877_v61 = vpop.permute.xlu1 %5193 }
0x2b52   : > { %v5205_v58 = vadd.f32 %v11877_v61, %v5088_v59  ;;  %v11880_v54 = vpop.permute.xlu0 %5191 }
0x2b53   : > { %v5203_v48 = vadd.f32 %v11880_v54, %v5086_v62 }
0x2b54   : > { %v8342_v14 = vmul.f32 -1.442695, %v5205_v58 }
0x2b55   : > { %v8340_v21 = vmul.f32 -1.442695, %v5203_v48  ;;  %v11883_v22 = vpop.permute.xlu1 %5197 }
0x2b56   : > { %9867 = vpow2.f32 %v8342_v14  ;;  %v5209_v12 = vadd.f32 %v11883_v22, %v5092_v37  ;;  %v11886_v41 = vpop.permute.xlu0 %5195 }
0x2b57   : > { %9869 = vpow2.f32 %v8340_v21  ;;  %v5207_v51 = vadd.f32 %v11886_v41, %v5090_v11  ;;  %v5089_v21 = vld [vmem:[#allocation2 + $0x198] sm:$0xff]  ;;  %v5087_v11 = vld [vmem:[#allocation2 + $0x188] sm:$0xff] }
0x2b58   : > { %v8346_v63 = vmul.f32 -1.442695, %v5209_v12 }
0x2b59   : > { %v8344_v47 = vmul.f32 -1.442695, %v5207_v51  ;;  %v5270_v49 = vpop.permute.xlu1 %5269 }
0x2b5a   : > { %9871 = vpow2.f32 %v8346_v63  ;;  %v5268_v20 = vpop.permute.xlu0 %5267 }
0x2b5b   : > { %9873 = vpow2.f32 %v8344_v47  ;;  %v5093_v47 = vld [vmem:[#allocation2 + $0x1b8] sm:$0xff] }
0x2b5d   : > { %v5274_v59 = vpop.permute.xlu1 %5273 }
0x2b5e   : > { %v5272_v48 = vpop.permute.xlu0 %5271 }
0x2b60   : > { %v9868_v36 = vpop.eup %9867 }
0x2b61   : > { %v9870_v28 = vpop.eup %9869  ;;  %v5237_v57 = vadd.f32 1.0, %v9868_v36 }
0x2b62   : > { %v5235_v38 = vadd.f32 1.0, %v9870_v28 }
0x2b63   : > { %9875 = vrcp.f32 %v5237_v57  ;;  %v5091_v57 = vld [vmem:[#allocation2 + $0x1a8] sm:$0xff] }
0x2b64   : > { %v9872_v33 = vpop.eup %9871  ;;  %9877 = vrcp.f32 %v5235_v38 }
0x2b65   : > { %v9874_v10 = vpop.eup %9873  ;;  %v5241_v4 = vadd.f32 1.0, %v9872_v33 }
0x2b66   : > { %v5239_v42 = vadd.f32 1.0, %v9874_v10 }
0x2b67   : > { %9879 = vrcp.f32 %v5241_v4 }
0x2b68   : > { %9881 = vrcp.f32 %v5239_v42 }
0x2b6d   : > { %v9876_v27 = vpop.eup %9875 }
0x2b6e   : > { %v9878_v24 = vpop.eup %9877  ;;  %v5280_v0 = vmul.f32 %v9876_v27, %v5270_v49  ;;  %v5204_v27 = vadd.f32 %v11880_v54, %v5087_v11 }
0x2b6f   : > { %v5279_v3 = vmul.f32 %v9878_v24, %v5268_v20  ;;  %v5206_v20 = vadd.f32 %v11877_v61, %v5089_v21 }
0x2b70   : > { %5289 = vrot.lane.b32.xlu1 %v5280_v0, %s10408_s21  ;;  %v5210_v0 = vadd.f32 %v11883_v22, %v5093_v47 }
0x2b71   : > { %v9880_v6 = vpop.eup %9879  ;;  %5287 = vrot.lane.b32.xlu0 %v5279_v3, %s10408_s21  ;;  %v8343_v24 = vmul.f32 -1.442695, %v5206_v20  ;;  %v8341_v3 = vmul.f32 -1.442695, %v5204_v27 }
0x2b72   : > { %v9882_v58 = vpop.eup %9881  ;;  %v5282_v62 = vmul.f32 %v9880_v6, %v5274_v59  ;;  %v5208_v6 = vadd.f32 %v11886_v41, %v5091_v57  ;;  %v8347_v59 = vmul.f32 -1.442695, %v5210_v0 }
0x2b73   : > { %v5281_v14 = vmul.f32 %v9882_v58, %v5272_v48 }
0x2b74   : > { %5293 = vrot.lane.b32.xlu1 %v5282_v62, %s10408_s21  ;;  %v8345_v58 = vmul.f32 -1.442695, %v5208_v6 }
0x2b75   : > { %5291 = vrot.lane.b32.xlu0 %v5281_v14, %s10408_s21 }
0x2be2   : > { %v5290_v37 = vpop.permute.xlu1 %5289 }
0x2be3   : > { %v5300_v12 = vadd.f32 %v5290_v37, %v5089_v21  ;;  %v5288_v51 = vpop.permute.xlu0 %5287 }
0x2be4   : > { %v5299_v63 = vadd.f32 %v5288_v51, %v5087_v11 }
0x2be5   : > { %9883 = vtanh.f32 %v5300_v12 }
0x2be6   : > { %9885 = vtanh.f32 %v5299_v63  ;;  %v5294_v36 = vpop.permute.xlu1 %5293 }
0x2be7   : > { %v5302_v28 = vadd.f32 %v5294_v36, %v5093_v47  ;;  %v5292_v38 = vpop.permute.xlu0 %5291 }
0x2be8   : > { %v5301_v33 = vadd.f32 %v5292_v38, %v5091_v57 }
0x2be9   : > { %9887 = vtanh.f32 %v5302_v28 }
0x2bea   : > { %9889 = vtanh.f32 %v5301_v33 }
0x2beb   : > { %9891 = vpow2.f32 %v8343_v24 }
0x2bec   : > { %9893 = vpow2.f32 %v8341_v3 }
0x2bed   : > { %9895 = vpow2.f32 %v8347_v59 }
0x2bee   : > { %9897 = vpow2.f32 %v8345_v58 }
0x2bef   : > { %v9884_v10 = vpop.eup %9883 }
0x2bf0   : > { %v9886_v4 = vpop.eup %9885  ;;  %5317 = vrot.lane.b32.xlu1 %v9884_v10, %s10410_s29 }
0x2bf1   : > { %5315 = vrot.lane.b32.xlu0 %v9886_v4, %s10410_s29 }
0x2bf3   : > { %v9888_v42 = vpop.eup %9887 }
0x2bf4   : > { %v9890_v49 = vpop.eup %9889  ;;  %5321 = vrot.lane.b32.xlu1 %v9888_v42, %s10410_s29 }
0x2bf5   : > { %5319 = vrot.lane.b32.xlu0 %v9890_v49, %s10410_s29  ;;  %v9892_v62 = vpop.eup %9891 }
0x2bf6   : > { %v9894_v48 = vpop.eup %9893  ;;  %v5238_v14 = vadd.f32 1.0, %v9892_v62 }
0x2bf7   : > { %v9896_v37 = vpop.eup %9895  ;;  %v5236_v12 = vadd.f32 1.0, %v9894_v48 }
0x2bf8   : > { %v9898_v61 = vpop.eup %9897  ;;  %9899 = vrcp.f32 %v5238_v14  ;;  %v5242_v54 = vadd.f32 1.0, %v9896_v37 }
0x2bf9   : > { %9901 = vrcp.f32 %v5236_v12  ;;  %v5240_v21 = vadd.f32 1.0, %v9898_v61 }
0x2bfa   : > { %9903 = vrcp.f32 %v5242_v54 }
0x2bfb   : > { %9905 = vrcp.f32 %v5240_v21 }
0x2c02   : > { %v9900_v22 = vpop.eup %9899 }
0x2c03   : > { %v9902_v41 = vpop.eup %9901  ;;  %v5308_v11 = vsub.f32 1.0, %v9900_v22  ;;  %v5332_v10 = vmul.f32 %v9900_v22, %v11845_v31 }
0x2c04   : > { %v9904_v51 = vpop.eup %9903  ;;  %v5307_v47 = vsub.f32 1.0, %v9902_v41  ;;  %v5331_v38 = vmul.f32 %v9902_v41, %v11843_v18  ;;  %v5361_v41 = vld [vmem:[#allocation2 + $0x150] sm:$0xff] }
0x2c05   : > { %v9906_v36 = vpop.eup %9905  ;;  %v5310_v4 = vsub.f32 1.0, %v9904_v51  ;;  %v5334_v59 = vmul.f32 %v9904_v51, %v11856_v1 }
0x2c06   : > { %v5309_v20 = vsub.f32 1.0, %v9906_v36  ;;  %v5333_v3 = vmul.f32 %v9906_v36, %v11853_v32 }
0x2c62   : > { %v5318_v63 = vpop.permute.xlu1 %5317 }
0x2c63   : > { %v5328_v28 = vmul.f32 %v5318_v63, %v5308_v11  ;;  %v5316_v57 = vpop.permute.xlu0 %5315  ;;  %v5359_v63 = vld [vmem:[#allocation2 + $0x140] sm:$0xff] }
0x2c64   : > { %v5327_v33 = vmul.f32 %v5316_v57, %v5307_v47 }
0x2c65   : > { %v11905_v27 = vadd.f32 %v5332_v10, %v5328_v28 }
0x2c66   : > { %v11903_v42 = vadd.f32 %v5331_v38, %v5327_v33  ;;  %v5322_v49 = vpop.permute.xlu1 %5321  ;;  %v5365_v38 = vld [vmem:[#allocation2 + $0x170] sm:$0xff] }
0x2c67   : > { %v5330_v24 = vmul.f32 %v5322_v49, %v5310_v4  ;;  %v5320_v0 = vpop.permute.xlu0 %5319  ;;  %v5363_v4 = vld [vmem:[#allocation2 + $0x160] sm:$0xff] }
0x2c68   : > { %v5329_v6 = vmul.f32 %v5320_v0, %v5309_v20  ;;  %8936 = vmatprep.mubr.msk.f32.mxu1 %vm564_vm0, %v11903_v42 }
0x2c69   : > { %8937 = vmatmul.mubr.msk.f32.vlgmr.msra.gmra.mrb[96].mxu1 %vm564_vm0, %v11905_v27  ;;  %v11916_v62 = vadd.f32 %v5334_v59, %v5330_v24 }
0x2c6a   : > { %v11913_v58 = vadd.f32 %v5333_v3, %v5329_v6  ;;  %9223 = vmatpush3.bf16.msra.mxu1 %v11500_v40 }
0x2c6b   : > { %9225 = vmatprep.subr.bf16.mxu1 %v11534_v26 }
0x2c6c   : > { %8939 = vmatprep.mubr.msk.f32.mxu1 %vm564_vm0, %v11913_v58 }
0x2c6d   : > { %8940 = vmatmul.mubr.msk.f32.gmra.mrb[98].mxu1 %vm564_vm0, %v11916_v62 }
0x2c6e   : > { %9227 = vmatpush3.bf16.msra.mxu1 %v11534_v26 }
0x2c6f   : > { %9229 = vmatprep.subr.bf16.mxu1 %v11500_v40 }
0x2d3c   : > { %v8938_v48 = vpop.f32.mrb[96].mxu1 }
0x2d3d   : > { %5466 = vrot.lane.b32.xlu1 %v8938_v48, %s10410_s29  ;;  %v5441_v14 = vpop.f32.mrb[97].mxu1  ;;  %v5533_v61 = vadd.f32 %v8938_v48, %v11565_v46 }
0x2d3e   : > { %5464 = vrot.lane.b32.xlu0 %v5441_v14, %s10410_s29  ;;  %v5532_v54 = vadd.f32 %v5441_v14, %v11565_v46 }
0x2d40   : > { %v8941_v37 = vpop.f32.mrb[98].mxu1 }
0x2d41   : > { %5470 = vrot.lane.b32.xlu1 %v8941_v37, %s10410_s29  ;;  %v5451_v12 = vpop.f32.mrb[99].mxu1  ;;  %v5535_v21 = vadd.f32 %v8941_v37, %v11565_v46 }
0x2d42   : > { %5468 = vrot.lane.b32.xlu0 %v5451_v12, %s10410_s29  ;;  %v5534_v22 = vadd.f32 %v5451_v12, %v11565_v46 }
0x2d45   : > { %5542 = vrot.lane.b32.xlu1 %v5533_v61, %s10411_s12 }
0x2d46   : > { %5540 = vrot.lane.b32.xlu0 %v5532_v54, %s10411_s12 }
0x2d49   : > { %5546 = vrot.lane.b32.xlu1 %v5535_v21, %s10411_s12 }
0x2d4a   : > { %5544 = vrot.lane.b32.xlu0 %v5534_v22, %s10411_s12 }
0x2daf   : > { %v11937_v11 = vpop.permute.xlu1 %5466 }
0x2db0   : > { %v5478_v51 = vadd.f32 %v11937_v11, %v5361_v41  ;;  %v11940_v47 = vpop.permute.xlu0 %5464 }
0x2db1   : > { %v5476_v36 = vadd.f32 %v11940_v47, %v5359_v63 }
0x2db2   : > { %v8354_v28 = vmul.f32 -1.442695, %v5478_v51 }
0x2db3   : > { %v8352_v57 = vmul.f32 -1.442695, %v5476_v36  ;;  %v11943_v33 = vpop.permute.xlu1 %5470 }
0x2db4   : > { %9907 = vpow2.f32 %v8354_v28  ;;  %v5482_v10 = vadd.f32 %v11943_v33, %v5365_v38  ;;  %v11946_v49 = vpop.permute.xlu0 %5468 }
0x2db5   : > { %9909 = vpow2.f32 %v8352_v57  ;;  %v5480_v20 = vadd.f32 %v11946_v49, %v5363_v4 }
0x2db6   : > { %v8358_v24 = vmul.f32 -1.442695, %v5482_v10 }
0x2db7   : > { %v8356_v0 = vmul.f32 -1.442695, %v5480_v20  ;;  %v5543_v54 = vpop.permute.xlu1 %5542  ;;  %v5362_v20 = vld [vmem:[#allocation2 + $0x158] sm:$0xff] }
0x2db8   : > { %9911 = vpow2.f32 %v8358_v24  ;;  %v5541_v21 = vpop.permute.xlu0 %5540 }
0x2db9   : > { %9913 = vpow2.f32 %v8356_v0 }
0x2dbb   : > { %v5547_v28 = vpop.permute.xlu1 %5546 }
0x2dbc   : > { %v5545_v10 = vpop.permute.xlu0 %5544 }
0x2dbe   : > { %v9908_v3 = vpop.eup %9907 }
0x2dbf   : > { %v9910_v6 = vpop.eup %9909  ;;  %v5510_v59 = vadd.f32 1.0, %v9908_v3  ;;  %v5360_v3 = vld [vmem:[#allocation2 + $0x148] sm:$0xff] }
0x2dc0   : > { %v5508_v48 = vadd.f32 1.0, %v9910_v6 }
0x2dc1   : > { %9915 = vrcp.f32 %v5510_v59 }
0x2dc2   : > { %v9912_v14 = vpop.eup %9911  ;;  %9917 = vrcp.f32 %v5508_v48  ;;  %v5366_v48 = vld [vmem:[#allocation2 + $0x178] sm:$0xff] }
0x2dc3   : > { %v9914_v37 = vpop.eup %9913  ;;  %v5514_v12 = vadd.f32 1.0, %v9912_v14 }
0x2dc4   : > { %v5512_v61 = vadd.f32 1.0, %v9914_v37 }
0x2dc5   : > { %9919 = vrcp.f32 %v5514_v12  ;;  %v5364_v12 = vld [vmem:[#allocation2 + $0x168] sm:$0xff] }
0x2dc6   : > { %9921 = vrcp.f32 %v5512_v61 }
0x2dcb   : > { %v9916_v22 = vpop.eup %9915 }
0x2dcc   : > { %v9918_v41 = vpop.eup %9917  ;;  %v5553_v51 = vmul.f32 %v9916_v22, %v5543_v54 }
0x2dcd   : > { %v5552_v63 = vmul.f32 %v9918_v41, %v5541_v21 }
0x2dce   : > { %5562 = vrot.lane.b32.xlu1 %v5553_v51, %s10408_s21 }
0x2dcf   : > { %v9920_v36 = vpop.eup %9919  ;;  %5560 = vrot.lane.b32.xlu0 %v5552_v63, %s10408_s21  ;;  %v5479_v63 = vadd.f32 %v11937_v11, %v5362_v20 }
0x2dd0   : > { %v9922_v57 = vpop.eup %9921  ;;  %v5555_v38 = vmul.f32 %v9920_v36, %v5547_v28  ;;  %v5477_v36 = vadd.f32 %v11940_v47, %v5360_v3 }
0x2dd1   : > { %v5554_v4 = vmul.f32 %v9922_v57, %v5545_v10  ;;  %v8355_v28 = vmul.f32 -1.442695, %v5479_v63  ;;  %v5483_v57 = vadd.f32 %v11943_v33, %v5366_v48  ;;  %v5481_v10 = vadd.f32 %v11946_v49, %v5364_v12 }
0x2dd2   : > { %5566 = vrot.lane.b32.xlu1 %v5555_v38, %s10408_s21  ;;  %v8353_v38 = vmul.f32 -1.442695, %v5477_v36 }
0x2dd3   : > { %5564 = vrot.lane.b32.xlu0 %v5554_v4, %s10408_s21  ;;  %v8359_v4 = vmul.f32 -1.442695, %v5483_v57 }
0x2e40   : > { %v5563_v24 = vpop.permute.xlu1 %5562 }
0x2e41   : > { %v5573_v0 = vadd.f32 %v5563_v24, %v5362_v20  ;;  %v5561_v6 = vpop.permute.xlu0 %5560  ;;  %v8357_v24 = vmul.f32 -1.442695, %v5481_v10 }
0x2e42   : > { %v5572_v59 = vadd.f32 %v5561_v6, %v5360_v3 }
0x2e43   : > { %9923 = vtanh.f32 %v5573_v0 }
0x2e44   : > { %9925 = vtanh.f32 %v5572_v59  ;;  %v5567_v14 = vpop.permute.xlu1 %5566 }
0x2e45   : > { %v5575_v37 = vadd.f32 %v5567_v14, %v5366_v48  ;;  %v5565_v61 = vpop.permute.xlu0 %5564 }
0x2e46   : > { %v5574_v54 = vadd.f32 %v5565_v61, %v5364_v12 }
0x2e47   : > { %9927 = vtanh.f32 %v5575_v37 }
0x2e48   : > { %9929 = vtanh.f32 %v5574_v54 }
0x2e49   : > { %9931 = vpow2.f32 %v8355_v28 }
0x2e4a   : > { %9933 = vpow2.f32 %v8353_v38 }
0x2e4b   : > { %9935 = vpow2.f32 %v8359_v4 }
0x2e4c   : > { %9937 = vpow2.f32 %v8357_v24 }
0x2e4d   : > { %v9924_v21 = vpop.eup %9923 }
0x2e4e   : > { %v9926_v22 = vpop.eup %9925  ;;  %5590 = vrot.lane.b32.xlu1 %v9924_v21, %s10410_s29 }
0x2e4f   : > { %5588 = vrot.lane.b32.xlu0 %v9926_v22, %s10410_s29 }
0x2e51   : > { %v9928_v41 = vpop.eup %9927 }
0x2e52   : > { %v9930_v51 = vpop.eup %9929  ;;  %5594 = vrot.lane.b32.xlu1 %v9928_v41, %s10410_s29 }
0x2e53   : > { %5592 = vrot.lane.b32.xlu0 %v9930_v51, %s10410_s29  ;;  %v9932_v0 = vpop.eup %9931 }
0x2e54   : > { %v9934_v6 = vpop.eup %9933  ;;  %v5511_v59 = vadd.f32 1.0, %v9932_v0 }
0x2e55   : > { %v9936_v14 = vpop.eup %9935  ;;  %v5509_v37 = vadd.f32 1.0, %v9934_v6 }
0x2e56   : > { %v9938_v11 = vpop.eup %9937  ;;  %9939 = vrcp.f32 %v5511_v59  ;;  %v5515_v47 = vadd.f32 1.0, %v9936_v14 }
0x2e57   : > { %9941 = vrcp.f32 %v5509_v37  ;;  %v5513_v20 = vadd.f32 1.0, %v9938_v11 }
0x2e58   : > { %9943 = vrcp.f32 %v5515_v47 }
0x2e59   : > { %9945 = vrcp.f32 %v5513_v20 }
0x2e60   : > { %v9940_v33 = vpop.eup %9939 }
0x2e61   : > { %v9942_v49 = vpop.eup %9941  ;;  %v5581_v3 = vsub.f32 1.0, %v9940_v33  ;;  %v5605_v63 = vmul.f32 %v9940_v33, %v11905_v27 }
0x2e62   : > { %v9944_v48 = vpop.eup %9943  ;;  %v5580_v61 = vsub.f32 1.0, %v9942_v49  ;;  %v5604_v41 = vmul.f32 %v9942_v49, %v11903_v42 }
0x2e63   : > { %v9946_v54 = vpop.eup %9945  ;;  %v5583_v36 = vsub.f32 1.0, %v9944_v48  ;;  %v5607_v59 = vmul.f32 %v9944_v48, %v11916_v62 }
0x2e64   : > { %v5582_v38 = vsub.f32 1.0, %v9946_v54  ;;  %v5606_v0 = vmul.f32 %v9946_v54, %v11913_v58 }
0x2ec0   : > { %v5591_v12 = vpop.permute.xlu1 %5590 }
0x2ec1   : > { %v5601_v21 = vmul.f32 %v5591_v12, %v5581_v3  ;;  %v5589_v22 = vpop.permute.xlu0 %5588 }
0x2ec2   : > { %v5600_v51 = vmul.f32 %v5589_v22, %v5580_v61  ;;  %v5634_v61 = vld [vmem:[#allocation2 + $0x110] sm:$0xff]  ;;  %v5632_v22 = vld [vmem:[#allocation2 + $0x100] sm:$0xff] }
0x2ec3   : > { %v11965_v10 = vadd.f32 %v5605_v63, %v5601_v21 }
0x2ec4   : > { %v11963_v28 = vadd.f32 %v5604_v41, %v5600_v51  ;;  %v5595_v57 = vpop.permute.xlu1 %5594 }
0x2ec5   : > { %v5603_v4 = vmul.f32 %v5595_v57, %v5583_v36  ;;  %v5593_v24 = vpop.permute.xlu0 %5592  ;;  %v5638_v57 = vld [vmem:[#allocation2 + $0x130] sm:$0xff] }
0x2ec6   : > { %v5602_v6 = vmul.f32 %v5593_v24, %v5582_v38  ;;  %8950 = vmatprep.mubr.msk.f32.mxu1 %vm564_vm0, %v11963_v28  ;;  %v5636_v24 = vld [vmem:[#allocation2 + $0x120] sm:$0xff] }
0x2ec7   : > { %8951 = vmatmul.mubr.msk.f32.vlgmr.msra.gmra.mrb[100].mxu1 %vm564_vm0, %v11965_v10  ;;  %v11976_v37 = vadd.f32 %v5607_v59, %v5603_v4 }
0x2ec8   : > { %v11973_v14 = vadd.f32 %v5606_v0, %v5602_v6  ;;  %9231 = vmatpush3.bf16.msra.mxu1 %v11500_v40 }
0x2ec9   : > { %9233 = vmatprep.subr.bf16.mxu1 %v11534_v26 }
0x2eca   : > { %8953 = vmatprep.mubr.msk.f32.mxu1 %vm564_vm0, %v11973_v14 }
0x2ecb   : > { %8954 = vmatmul.mubr.msk.f32.gmra.mrb[102].mxu1 %vm564_vm0, %v11976_v37 }
0x2ecc   : > { %9235 = vmatpush3.bf16.msra.mxu1 %v11534_v26 }
0x2ecd   : > { %9237 = vmatprep.subr.bf16.mxu1 %v11500_v40 }
0x2f9a   : > { %v8952_v11 = vpop.f32.mrb[100].mxu1 }
0x2f9b   : > { %5739 = vrot.lane.b32.xlu1 %v8952_v11, %s10410_s29  ;;  %v5714_v47 = vpop.f32.mrb[101].mxu1  ;;  %v5806_v49 = vadd.f32 %v8952_v11, %v11565_v46 }
0x2f9c   : > { %5737 = vrot.lane.b32.xlu0 %v5714_v47, %s10410_s29  ;;  %v5805_v3 = vadd.f32 %v5714_v47, %v11565_v46 }
0x2f9e   : > { %v8955_v20 = vpop.f32.mrb[102].mxu1 }
0x2f9f   : > { %5743 = vrot.lane.b32.xlu1 %v8955_v20, %s10410_s29  ;;  %v5724_v33 = vpop.f32.mrb[103].mxu1  ;;  %v5808_v48 = vadd.f32 %v8955_v20, %v11565_v46 }
0x2fa0   : > { %5741 = vrot.lane.b32.xlu0 %v5724_v33, %s10410_s29  ;;  %v5807_v12 = vadd.f32 %v5724_v33, %v11565_v46 }
0x2fa3   : > { %5815 = vrot.lane.b32.xlu1 %v5806_v49, %s10411_s12 }
0x2fa4   : > { %5813 = vrot.lane.b32.xlu0 %v5805_v3, %s10411_s12 }
0x2fa7   : > { %5819 = vrot.lane.b32.xlu1 %v5808_v48, %s10411_s12 }
0x2fa8   : > { %5817 = vrot.lane.b32.xlu0 %v5807_v12, %s10411_s12 }
0x300d   : > { %v11997_v54 = vpop.permute.xlu1 %5739 }
0x300e   : > { %v5751_v21 = vadd.f32 %v11997_v54, %v5634_v61  ;;  %v12000_v41 = vpop.permute.xlu0 %5737 }
0x300f   : > { %v5749_v51 = vadd.f32 %v12000_v41, %v5632_v22 }
0x3010   : > { %v8366_v63 = vmul.f32 -1.442695, %v5751_v21 }
0x3011   : > { %v8364_v36 = vmul.f32 -1.442695, %v5749_v51  ;;  %v12003_v38 = vpop.permute.xlu1 %5743 }
0x3012   : > { %9947 = vpow2.f32 %v8366_v63  ;;  %v5755_v4 = vadd.f32 %v12003_v38, %v5638_v57  ;;  %v12006_v0 = vpop.permute.xlu0 %5741 }
0x3013   : > { %9949 = vpow2.f32 %v8364_v36  ;;  %v5753_v6 = vadd.f32 %v12006_v0, %v5636_v24 }
0x3014   : > { %v8370_v59 = vmul.f32 -1.442695, %v5755_v4 }
0x3015   : > { %v8368_v11 = vmul.f32 -1.442695, %v5753_v6  ;;  %v5816_v21 = vpop.permute.xlu1 %5815 }
0x3016   : > { %9951 = vpow2.f32 %v8370_v59  ;;  %v5814_v22 = vpop.permute.xlu0 %5813 }
0x3017   : > { %9953 = vpow2.f32 %v8368_v11 }
0x3019   : > { %v5820_v24 = vpop.permute.xlu1 %5819 }
0x301a   : > { %v5818_v11 = vpop.permute.xlu0 %5817 }
0x301c   : > { %v9948_v47 = vpop.eup %9947 }
0x301d   : > { %v9950_v20 = vpop.eup %9949  ;;  %v5783_v33 = vadd.f32 1.0, %v9948_v47 }
0x301e   : > { %v5781_v49 = vadd.f32 1.0, %v9950_v20  ;;  %v5635_v20 = vld [vmem:[#allocation2 + $0x118] sm:$0xff] }
0x301f   : > { %9955 = vrcp.f32 %v5783_v33 }
0x3020   : > { %v9952_v3 = vpop.eup %9951  ;;  %9957 = vrcp.f32 %v5781_v49 }
0x3021   : > { %v9954_v48 = vpop.eup %9953  ;;  %v5787_v12 = vadd.f32 1.0, %v9952_v3  ;;  %v5633_v3 = vld [vmem:[#allocation2 + $0x108] sm:$0xff] }
0x3022   : > { %v5785_v61 = vadd.f32 1.0, %v9954_v48 }
0x3023   : > { %9959 = vrcp.f32 %v5787_v12 }
0x3024   : > { %9961 = vrcp.f32 %v5785_v61  ;;  %v5639_v61 = vld [vmem:[#allocation2 + $0x138] sm:$0xff] }
0x3029   : > { %v9956_v51 = vpop.eup %9955 }
0x302a   : > { %v9958_v63 = vpop.eup %9957  ;;  %v5826_v36 = vmul.f32 %v9956_v51, %v5816_v21  ;;  %v5637_v51 = vld [vmem:[#allocation2 + $0x128] sm:$0xff] }
0x302b   : > { %v5825_v57 = vmul.f32 %v9958_v63, %v5814_v22 }
0x302c   : > { %5835 = vrot.lane.b32.xlu1 %v5826_v36, %s10408_s21 }
0x302d   : > { %v9960_v4 = vpop.eup %9959  ;;  %5833 = vrot.lane.b32.xlu0 %v5825_v57, %s10408_s21 }
0x302e   : > { %v9962_v6 = vpop.eup %9961  ;;  %v5828_v59 = vmul.f32 %v9960_v4, %v5820_v24 }
0x302f   : > { %v5827_v47 = vmul.f32 %v9962_v6, %v5818_v11  ;;  %v5750_v11 = vadd.f32 %v12000_v41, %v5633_v3 }
0x3030   : > { %5839 = vrot.lane.b32.xlu1 %v5828_v59, %s10408_s21  ;;  %v5752_v59 = vadd.f32 %v11997_v54, %v5635_v20 }
0x3031   : > { %5837 = vrot.lane.b32.xlu0 %v5827_v47, %s10408_s21 }
0x3032   : > { %v8367_v47 = vmul.f32 -1.442695, %v5752_v59 }
0x309e   : > { %v5836_v33 = vpop.permute.xlu1 %5835 }
0x309f   : > { %v5846_v49 = vadd.f32 %v5836_v33, %v5635_v20  ;;  %v5834_v48 = vpop.permute.xlu0 %5833  ;;  %v5756_v33 = vadd.f32 %v12003_v38, %v5639_v61 }
0x30a0   : > { %v5845_v12 = vadd.f32 %v5834_v48, %v5633_v3  ;;  %v5754_v48 = vadd.f32 %v12006_v0, %v5637_v51 }
0x30a1   : > { %9963 = vtanh.f32 %v5846_v49  ;;  %v8365_v49 = vmul.f32 -1.442695, %v5750_v11 }
0x30a2   : > { %9965 = vtanh.f32 %v5845_v12  ;;  %v5840_v21 = vpop.permute.xlu1 %5839  ;;  %v8371_v12 = vmul.f32 -1.442695, %v5756_v33 }
0x30a3   : > { %v5848_v22 = vadd.f32 %v5840_v21, %v5639_v61  ;;  %v5838_v63 = vpop.permute.xlu0 %5837  ;;  %v8369_v21 = vmul.f32 -1.442695, %v5754_v48 }
0x30a4   : > { %v5847_v36 = vadd.f32 %v5838_v63, %v5637_v51 }
0x30a5   : > { %9967 = vtanh.f32 %v5848_v22 }
0x30a6   : > { %9969 = vtanh.f32 %v5847_v36 }
0x30a7   : > { %9971 = vpow2.f32 %v8367_v47 }
0x30a8   : > { %9973 = vpow2.f32 %v8365_v49 }
0x30a9   : > { %9975 = vpow2.f32 %v8371_v12 }
0x30aa   : > { %9977 = vpow2.f32 %v8369_v21 }
0x30ab   : > { %v9964_v57 = vpop.eup %9963 }
0x30ac   : > { %v9966_v4 = vpop.eup %9965  ;;  %5863 = vrot.lane.b32.xlu1 %v9964_v57, %s10410_s29 }
0x30ad   : > { %5861 = vrot.lane.b32.xlu0 %v9966_v4, %s10410_s29 }
0x30af   : > { %v9968_v24 = vpop.eup %9967 }
0x30b0   : > { %v9970_v6 = vpop.eup %9969  ;;  %5867 = vrot.lane.b32.xlu1 %v9968_v24, %s10410_s29 }
0x30b1   : > { %5865 = vrot.lane.b32.xlu0 %v9970_v6, %s10410_s29  ;;  %v9972_v22 = vpop.eup %9971 }
0x30b2   : > { %v9974_v63 = vpop.eup %9973  ;;  %v5784_v36 = vadd.f32 1.0, %v9972_v22 }
0x30b3   : > { %v9976_v57 = vpop.eup %9975  ;;  %v5782_v4 = vadd.f32 1.0, %v9974_v63 }
0x30b4   : > { %v9978_v54 = vpop.eup %9977  ;;  %9979 = vrcp.f32 %v5784_v36  ;;  %v5788_v41 = vadd.f32 1.0, %v9976_v57 }
0x30b5   : > { %9981 = vrcp.f32 %v5782_v4  ;;  %v5786_v20 = vadd.f32 1.0, %v9978_v54 }
0x30b6   : > { %9983 = vrcp.f32 %v5788_v41 }
0x30b7   : > { %9985 = vrcp.f32 %v5786_v20 }
0x30be   : > { %v9980_v38 = vpop.eup %9979 }
0x30bf   : > { %v9982_v0 = vpop.eup %9981  ;;  %v5854_v3 = vsub.f32 1.0, %v9980_v38  ;;  %v5878_v49 = vmul.f32 %v9980_v38, %v11965_v10 }
0x30c0   : > { %v9984_v61 = vpop.eup %9983  ;;  %v5853_v24 = vsub.f32 1.0, %v9982_v0  ;;  %v5877_v47 = vmul.f32 %v9982_v0, %v11963_v28 }
0x30c1   : > { %v9986_v6 = vpop.eup %9985  ;;  %v5856_v48 = vsub.f32 1.0, %v9984_v61  ;;  %v5880_v41 = vmul.f32 %v9984_v61, %v11976_v37 }
0x30c2   : > { %v5855_v22 = vsub.f32 1.0, %v9986_v6  ;;  %v5879_v4 = vmul.f32 %v9986_v6, %v11973_v14 }
0x311e   : > { %v5864_v51 = vpop.permute.xlu1 %5863 }
0x311f   : > { %v5874_v59 = vmul.f32 %v5864_v51, %v5854_v3  ;;  %v5862_v11 = vpop.permute.xlu0 %5861 }
0x3120   : > { %v5873_v33 = vmul.f32 %v5862_v11, %v5853_v24 }
0x3121   : > { %v12025_v63 = vadd.f32 %v5878_v49, %v5874_v59 }
0x3122   : > { %v12023_v12 = vadd.f32 %v5877_v47, %v5873_v33  ;;  %v5868_v21 = vpop.permute.xlu1 %5867  ;;  %v5907_v47 = vld [vmem:[#allocation2 + $0xd0] sm:$0xff] }
0x3123   : > { %v5876_v36 = vmul.f32 %v5868_v21, %v5856_v48  ;;  %v5866_v57 = vpop.permute.xlu0 %5865  ;;  %v5905_v48 = vld [vmem:[#allocation2 + $0xc0] sm:$0xff] }
0x3124   : > { %v5875_v54 = vmul.f32 %v5866_v57, %v5855_v22  ;;  %8964 = vmatprep.mubr.msk.f32.mxu1 %vm564_vm0, %v12023_v12 }
0x3125   : > { %8965 = vmatmul.mubr.msk.f32.vlgmr.msra.gmra.mrb[104].mxu1 %vm564_vm0, %v12025_v63  ;;  %v12036_v38 = vadd.f32 %v5880_v41, %v5876_v36 }
0x3126   : > { %v12033_v20 = vadd.f32 %v5879_v4, %v5875_v54  ;;  %9239 = vmatpush3.bf16.msra.mxu1 %v11500_v40  ;;  %v5911_v4 = vld [vmem:[#allocation2 + $0xf0] sm:$0xff] }
0x3127   : > { %9241 = vmatprep.subr.bf16.mxu1 %v11534_v26 }
0x3128   : > { %8967 = vmatprep.mubr.msk.f32.mxu1 %vm564_vm0, %v12033_v20 }
0x3129   : > { %8968 = vmatmul.mubr.msk.f32.gmra.mrb[106].mxu1 %vm564_vm0, %v12036_v38 }
0x312a   : > { %9243 = vmatpush3.bf16.msra.mxu1 %v11534_v26 }
0x312b   : > { %9245 = vmatprep.subr.bf16.mxu1 %v11500_v40 }
0x31f8   : > { %v8966_v0 = vpop.f32.mrb[104].mxu1 }
0x31f9   : > { %6012 = vrot.lane.b32.xlu1 %v8966_v0, %s10410_s29  ;;  %v5987_v3 = vpop.f32.mrb[105].mxu1  ;;  %v6079_v24 = vadd.f32 %v8966_v0, %v11565_v46  ;;  %v5909_v0 = vld [vmem:[#allocation2 + $0xe0] sm:$0xff] }
0x31fa   : > { %6010 = vrot.lane.b32.xlu0 %v5987_v3, %s10410_s29  ;;  %v6078_v6 = vadd.f32 %v5987_v3, %v11565_v46 }
0x31fc   : > { %v8969_v61 = vpop.f32.mrb[106].mxu1 }
0x31fd   : > { %6016 = vrot.lane.b32.xlu1 %v8969_v61, %s10410_s29  ;;  %v5997_v51 = vpop.f32.mrb[107].mxu1  ;;  %v6081_v59 = vadd.f32 %v8969_v61, %v11565_v46 }
0x31fe   : > { %6014 = vrot.lane.b32.xlu0 %v5997_v51, %s10410_s29  ;;  %v6080_v11 = vadd.f32 %v5997_v51, %v11565_v46 }
0x3201   : > { %6088 = vrot.lane.b32.xlu1 %v6079_v24, %s10411_s12 }
0x3202   : > { %6086 = vrot.lane.b32.xlu0 %v6078_v6, %s10411_s12 }
0x3205   : > { %6092 = vrot.lane.b32.xlu1 %v6081_v59, %s10411_s12 }
0x3206   : > { %6090 = vrot.lane.b32.xlu0 %v6080_v11, %s10411_s12 }
0x326b   : > { %v12057_v33 = vpop.permute.xlu1 %6012 }
0x326c   : > { %v6024_v49 = vadd.f32 %v12057_v33, %v5907_v47  ;;  %v12060_v21 = vpop.permute.xlu0 %6010 }
0x326d   : > { %v6022_v22 = vadd.f32 %v12060_v21, %v5905_v48 }
0x326e   : > { %v8378_v36 = vmul.f32 -1.442695, %v6024_v49 }
0x326f   : > { %v8376_v57 = vmul.f32 -1.442695, %v6022_v22  ;;  %v12063_v54 = vpop.permute.xlu1 %6016 }
0x3270   : > { %9987 = vpow2.f32 %v8378_v36  ;;  %v6028_v41 = vadd.f32 %v12063_v54, %v5911_v4  ;;  %v12066_v3 = vpop.permute.xlu0 %6014 }
0x3271   : > { %9989 = vpow2.f32 %v8376_v57  ;;  %v6026_v61 = vadd.f32 %v12066_v3, %v5909_v0 }
0x3272   : > { %v8382_v51 = vmul.f32 -1.442695, %v6028_v41 }
0x3273   : > { %v8380_v24 = vmul.f32 -1.442695, %v6026_v61  ;;  %v6089_v4 = vpop.permute.xlu1 %6088 }
0x3274   : > { %9991 = vpow2.f32 %v8382_v51  ;;  %v6087_v57 = vpop.permute.xlu0 %6086 }
0x3275   : > { %9993 = vpow2.f32 %v8380_v24 }
0x3277   : > { %v6093_v24 = vpop.permute.xlu1 %6092 }
0x327a   : > { %v9988_v6 = vpop.eup %9987 }
0x327b   : > { %v9990_v59 = vpop.eup %9989  ;;  %v6056_v11 = vadd.f32 1.0, %v9988_v6 }
0x327c   : > { %v6054_v47 = vadd.f32 1.0, %v9990_v59 }
0x327d   : > { %9995 = vrcp.f32 %v6056_v11  ;;  %v6091_v11 = vpop.permute.xlu0 %6090 }
0x327e   : > { %v9992_v49 = vpop.eup %9991  ;;  %9997 = vrcp.f32 %v6054_v47 }
0x327f   : > { %v9994_v48 = vpop.eup %9993  ;;  %v6060_v22 = vadd.f32 1.0, %v9992_v49  ;;  %v5908_v49 = vld [vmem:[#allocation2 + $0xd8] sm:$0xff] }
0x3280   : > { %v6058_v36 = vadd.f32 1.0, %v9994_v48 }
0x3281   : > { %9999 = vrcp.f32 %v6060_v22 }
0x3282   : > { %10001 = vrcp.f32 %v6058_v36  ;;  %v5906_v36 = vld [vmem:[#allocation2 + $0xc8] sm:$0xff] }
0x3287   : > { %v9996_v2 = vpop.eup %9995 }
0x3288   : > { %v9998_v0 = vpop.eup %9997  ;;  %v6099_v41 = vmul.f32 %v9996_v2, %v6089_v4 }
0x3289   : > { %v6098_v61 = vmul.f32 %v9998_v0, %v6087_v57  ;;  %v5912_v57 = vld [vmem:[#allocation2 + $0xf8] sm:$0xff] }
0x328a   : > { %6108 = vrot.lane.b32.xlu1 %v6099_v41, %s10408_s21 }
0x328b   : > { %v10000_v51 = vpop.eup %9999  ;;  %6106 = vrot.lane.b32.xlu0 %v6098_v61, %s10408_s21  ;;  %v5910_v61 = vld [vmem:[#allocation2 + $0xe8] sm:$0xff] }
0x328c   : > { %v10002_v6 = vpop.eup %10001  ;;  %v6101_v59 = vmul.f32 %v10000_v51, %v6093_v24 }
0x328d   : > { %v6100_v47 = vmul.f32 %v10002_v6, %v6091_v11 }
0x328e   : > { %6112 = vrot.lane.b32.xlu1 %v6101_v59, %s10408_s21 }
0x328f   : > { %6110 = vrot.lane.b32.xlu0 %v6100_v47, %s10408_s21  ;;  %v6025_v47 = vadd.f32 %v12057_v33, %v5908_v49 }
0x32fc   : > { %v6109_v48 = vpop.permute.xlu1 %6108 }
0x32fd   : > { %v6119_v22 = vadd.f32 %v6109_v48, %v5908_v49  ;;  %v6107_v2 = vpop.permute.xlu0 %6106  ;;  %v6023_v48 = vadd.f32 %v12060_v21, %v5906_v36 }
0x32fe   : > { %v6118_v4 = vadd.f32 %v6107_v2, %v5906_v36 }
0x32ff   : > { %10003 = vtanh.f32 %v6119_v22  ;;  %v8379_v22 = vmul.f32 -1.442695, %v6025_v47  ;;  %v8377_v2 = vmul.f32 -1.442695, %v6023_v48 }
0x3300   : > { %10005 = vtanh.f32 %v6118_v4  ;;  %v6113_v0 = vpop.permute.xlu1 %6112  ;;  %v6027_v4 = vadd.f32 %v12066_v3, %v5910_v61 }
0x3301   : > { %v6121_v41 = vadd.f32 %v6113_v0, %v5912_v57  ;;  %v6111_v56 = vpop.permute.xlu0 %6110 }
0x3302   : > { %v6120_v51 = vadd.f32 %v6111_v56, %v5910_v61  ;;  %v6029_v56 = vadd.f32 %v12063_v54, %v5912_v57 }
0x3303   : > { %10007 = vtanh.f32 %v6121_v41  ;;  %v8381_v41 = vmul.f32 -1.442695, %v6027_v4 }
0x3304   : > { %10009 = vtanh.f32 %v6120_v51  ;;  %v8383_v0 = vmul.f32 -1.442695, %v6029_v56 }
0x3305   : > { %10011 = vpow2.f32 %v8379_v22 }
0x3306   : > { %10013 = vpow2.f32 %v8377_v2 }
0x3307   : > { %10015 = vpow2.f32 %v8383_v0 }
0x3308   : > { %10017 = vpow2.f32 %v8381_v41 }
0x3309   : > { %v10004_v24 = vpop.eup %10003 }
0x330a   : > { %v10006_v6 = vpop.eup %10005  ;;  %6136 = vrot.lane.b32.xlu1 %v10004_v24, %s10410_s29 }
0x330b   : > { %6134 = vrot.lane.b32.xlu0 %v10006_v6, %s10410_s29 }
0x330d   : > { %v10008_v59 = vpop.eup %10007 }
0x330e   : > { %v10010_v11 = vpop.eup %10009  ;;  %6140 = vrot.lane.b32.xlu1 %v10008_v59, %s10410_s29 }
0x330f   : > { %6138 = vrot.lane.b32.xlu0 %v10010_v11, %s10410_s29  ;;  %v10012_v51 = vpop.eup %10011 }
0x3310   : > { %v10014_v24 = vpop.eup %10013  ;;  %v6057_v6 = vadd.f32 1.0, %v10012_v51 }
0x3311   : > { %v10016_v59 = vpop.eup %10015  ;;  %v6055_v11 = vadd.f32 1.0, %v10014_v24 }
0x3312   : > { %v10018_v33 = vpop.eup %10017  ;;  %10019 = vrcp.f32 %v6057_v6  ;;  %v6061_v21 = vadd.f32 1.0, %v10016_v59 }
0x3313   : > { %10021 = vrcp.f32 %v6055_v11  ;;  %v6059_v49 = vadd.f32 1.0, %v10018_v33 }
0x3314   : > { %10023 = vrcp.f32 %v6061_v21 }
0x3315   : > { %10025 = vrcp.f32 %v6059_v49 }
0x331c   : > { %v10020_v54 = vpop.eup %10019 }
0x331d   : > { %v10022_v3 = vpop.eup %10021  ;;  %v6127_v36 = vsub.f32 1.0, %v10020_v54  ;;  %v6151_v0 = vmul.f32 %v10020_v54, %v12025_v63 }
0x331e   : > { %v10024_v57 = vpop.eup %10023  ;;  %v6126_v47 = vsub.f32 1.0, %v10022_v3  ;;  %v6150_v2 = vmul.f32 %v10022_v3, %v12023_v12 }
0x331f   : > { %v10026_v48 = vpop.eup %10025  ;;  %v6129_v41 = vsub.f32 1.0, %v10024_v57  ;;  %v6153_v3 = vmul.f32 %v10024_v57, %v12036_v38 }
0x3320   : > { %v6128_v6 = vsub.f32 1.0, %v10026_v48  ;;  %v6152_v21 = vmul.f32 %v10026_v48, %v12033_v20 }
0x337c   : > { %v6137_v61 = vpop.permute.xlu1 %6136 }
0x337d   : > { %v6147_v22 = vmul.f32 %v6137_v61, %v6127_v36  ;;  %v6135_v56 = vpop.permute.xlu0 %6134 }
0x337e   : > { %v6146_v4 = vmul.f32 %v6135_v56, %v6126_v47 }
0x337f   : > { %v12085_v59 = vadd.f32 %v6151_v0, %v6147_v22  ;;  %v6180_v0 = vld [vmem:[#allocation2 + $0x90] sm:$0xff] }
0x3380   : > { %v12083_v51 = vadd.f32 %v6150_v2, %v6146_v4  ;;  %v6141_v24 = vpop.permute.xlu1 %6140 }
0x3381   : > { %v6149_v11 = vmul.f32 %v6141_v24, %v6129_v41  ;;  %v6139_v33 = vpop.permute.xlu0 %6138 }
0x3382   : > { %v6148_v49 = vmul.f32 %v6139_v33, %v6128_v6  ;;  %8978 = vmatprep.mubr.msk.f32.mxu1 %vm564_vm0, %v12083_v51  ;;  %v6178_v6 = vld [vmem:[#allocation2 + $0x80] sm:$0xff] }
0x3383   : > { %8979 = vmatmul.mubr.msk.f32.vlgmr.msra.gmra.mrb[108].mxu1 %vm564_vm0, %v12085_v59  ;;  %v12096_v36 = vadd.f32 %v6153_v3, %v6149_v11  ;;  %v6184_v3 = vld [vmem:[#allocation2 + $0xb0] sm:$0xff] }
0x3384   : > { %v12093_v54 = vadd.f32 %v6152_v21, %v6148_v49  ;;  %9247 = vmatpush3.bf16.msra.mxu1 %v11500_v40 }
0x3385   : > { %9249 = vmatprep.subr.bf16.mxu1 %v11534_v26 }
0x3386   : > { %8981 = vmatprep.mubr.msk.f32.mxu1 %vm564_vm0, %v12093_v54 }
0x3387   : > { %8982 = vmatmul.mubr.msk.f32.gmra.mrb[110].mxu1 %vm564_vm0, %v12096_v36 }
0x3388   : > { %9251 = vmatpush3.bf16.msra.mxu1 %v11534_v26 }
0x3389   : > { %9253 = vmatprep.subr.bf16.mxu1 %v11500_v40 }
0x3456   : > { %v8980_v57 = vpop.f32.mrb[108].mxu1 }
0x3457   : > { %6285 = vrot.lane.b32.xlu1 %v8980_v57, %s10410_s29  ;;  %v6260_v61 = vpop.f32.mrb[109].mxu1  ;;  %v6352_v22 = vadd.f32 %v8980_v57, %v11565_v46 }
0x3458   : > { %6283 = vrot.lane.b32.xlu0 %v6260_v61, %s10410_s29  ;;  %v6351_v56 = vadd.f32 %v6260_v61, %v11565_v46 }
0x345a   : > { %v8983_v47 = vpop.f32.mrb[110].mxu1 }
0x345b   : > { %6289 = vrot.lane.b32.xlu1 %v8983_v47, %s10410_s29  ;;  %v6270_v48 = vpop.f32.mrb[111].mxu1  ;;  %v6354_v2 = vadd.f32 %v8983_v47, %v11565_v46  ;;  %v6182_v47 = vld [vmem:[#allocation2 + $0xa0] sm:$0xff] }
0x345c   : > { %6287 = vrot.lane.b32.xlu0 %v6270_v48, %s10410_s29  ;;  %v6353_v4 = vadd.f32 %v6270_v48, %v11565_v46 }
0x345f   : > { %6361 = vrot.lane.b32.xlu1 %v6352_v22, %s10411_s12 }
0x3460   : > { %6359 = vrot.lane.b32.xlu0 %v6351_v56, %s10411_s12 }
0x3463   : > { %6365 = vrot.lane.b32.xlu1 %v6354_v2, %s10411_s12 }
0x3464   : > { %6363 = vrot.lane.b32.xlu0 %v6353_v4, %s10411_s12 }
0x34c9   : > { %v12117_v41 = vpop.permute.xlu1 %6285 }
0x34ca   : > { %v6297_v24 = vadd.f32 %v12117_v41, %v6180_v0  ;;  %v12120_v11 = vpop.permute.xlu0 %6283 }
0x34cb   : > { %v6295_v33 = vadd.f32 %v12120_v11, %v6178_v6 }
0x34cc   : > { %v8390_v21 = vmul.f32 -1.442695, %v6297_v24 }
0x34cd   : > { %v8388_v49 = vmul.f32 -1.442695, %v6295_v33  ;;  %v12123_v57 = vpop.permute.xlu1 %6289 }
0x34ce   : > { %10027 = vpow2.f32 %v8390_v21  ;;  %v6301_v61 = vadd.f32 %v12123_v57, %v6184_v3  ;;  %v12126_v48 = vpop.permute.xlu0 %6287 }
0x34cf   : > { %10029 = vpow2.f32 %v8388_v49  ;;  %v6299_v22 = vadd.f32 %v12126_v48, %v6182_v47 }
0x34d0   : > { %v8394_v56 = vmul.f32 -1.442695, %v6301_v61 }
0x34d1   : > { %v8392_v2 = vmul.f32 -1.442695, %v6299_v22  ;;  %v6362_v44 = vpop.permute.xlu1 %6361 }
0x34d2   : > { %10031 = vpow2.f32 %v8394_v56  ;;  %v6360_v49 = vpop.permute.xlu0 %6359 }
0x34d3   : > { %10033 = vpow2.f32 %v8392_v2 }
0x34d5   : > { %v6366_v2 = vpop.permute.xlu1 %6365 }
0x34d8   : > { %v10028_v4 = vpop.eup %10027 }
0x34d9   : > { %v10030_v0 = vpop.eup %10029  ;;  %v6329_v24 = vadd.f32 1.0, %v10028_v4 }
0x34da   : > { %v6327_v6 = vadd.f32 1.0, %v10030_v0 }
0x34db   : > { %10035 = vrcp.f32 %v6329_v24  ;;  %v6364_v24 = vpop.permute.xlu0 %6363 }
0x34dc   : > { %v10032_v33 = vpop.eup %10031  ;;  %10037 = vrcp.f32 %v6327_v6 }
0x34dd   : > { %v10034_v21 = vpop.eup %10033  ;;  %v6333_v8 = vadd.f32 1.0, %v10032_v33 }
0x34de   : > { %v6331_v3 = vadd.f32 1.0, %v10034_v21 }
0x34df   : > { %10039 = vrcp.f32 %v6333_v8  ;;  %v6181_v8 = vld [vmem:[#allocation2 + $0x98] sm:$0xff] }
0x34e0   : > { %10041 = vrcp.f32 %v6331_v3  ;;  %v6179_v3 = vld [vmem:[#allocation2 + $0x88] sm:$0xff] }
0x34e5   : > { %v10036_v13 = vpop.eup %10035 }
0x34e6   : > { %v10038_v47 = vpop.eup %10037  ;;  %v6372_v61 = vmul.f32 %v10036_v13, %v6362_v44 }
0x34e7   : > { %v6371_v22 = vmul.f32 %v10038_v47, %v6360_v49  ;;  %v6185_v49 = vld [vmem:[#allocation2 + $0xb8] sm:$0xff] }
0x34e8   : > { %6381 = vrot.lane.b32.xlu1 %v6372_v61, %s10408_s21 }
0x34e9   : > { %v10040_v56 = vpop.eup %10039  ;;  %6379 = vrot.lane.b32.xlu0 %v6371_v22, %s10408_s21  ;;  %v6183_v22 = vld [vmem:[#allocation2 + $0xa8] sm:$0xff] }
0x34ea   : > { %v10042_v4 = vpop.eup %10041  ;;  %v6374_v0 = vmul.f32 %v10040_v56, %v6366_v2 }
0x34eb   : > { %v6373_v6 = vmul.f32 %v10042_v4, %v6364_v24 }
0x34ec   : > { %6385 = vrot.lane.b32.xlu1 %v6374_v0, %s10408_s21 }
0x34ed   : > { %6383 = vrot.lane.b32.xlu0 %v6373_v6, %s10408_s21  ;;  %v6298_v6 = vadd.f32 %v12117_v41, %v6181_v8 }
0x355a   : > { %v6382_v33 = vpop.permute.xlu1 %6381 }
0x355b   : > { %v6392_v21 = vadd.f32 %v6382_v33, %v6181_v8  ;;  %v6380_v44 = vpop.permute.xlu0 %6379  ;;  %v6296_v33 = vadd.f32 %v12120_v11, %v6179_v3 }
0x355c   : > { %v6391_v13 = vadd.f32 %v6380_v44, %v6179_v3 }
0x355d   : > { %10043 = vtanh.f32 %v6392_v21  ;;  %v8391_v21 = vmul.f32 -1.442695, %v6298_v6  ;;  %v8389_v44 = vmul.f32 -1.442695, %v6296_v33 }
0x355e   : > { %10045 = vtanh.f32 %v6391_v13  ;;  %v6386_v47 = vpop.permute.xlu1 %6385  ;;  %v6300_v13 = vadd.f32 %v12126_v48, %v6183_v22 }
0x355f   : > { %v6394_v61 = vadd.f32 %v6386_v47, %v6185_v49  ;;  %v6384_v39 = vpop.permute.xlu0 %6383 }
0x3560   : > { %v6393_v56 = vadd.f32 %v6384_v39, %v6183_v22  ;;  %v6302_v39 = vadd.f32 %v12123_v57, %v6185_v49 }
0x3561   : > { %10047 = vtanh.f32 %v6394_v61  ;;  %v8393_v61 = vmul.f32 -1.442695, %v6300_v13 }
0x3562   : > { %10049 = vtanh.f32 %v6393_v56  ;;  %v8395_v47 = vmul.f32 -1.442695, %v6302_v39 }
0x3563   : > { %10051 = vpow2.f32 %v8391_v21 }
0x3564   : > { %10053 = vpow2.f32 %v8389_v44 }
0x3565   : > { %10055 = vpow2.f32 %v8395_v47 }
0x3566   : > { %10057 = vpow2.f32 %v8393_v61 }
0x3567   : > { %v10044_v2 = vpop.eup %10043 }
0x3568   : > { %v10046_v4 = vpop.eup %10045  ;;  %6409 = vrot.lane.b32.xlu1 %v10044_v2, %s10410_s29 }
0x3569   : > { %6407 = vrot.lane.b32.xlu0 %v10046_v4, %s10410_s29 }
0x356b   : > { %v10048_v0 = vpop.eup %10047 }
0x356c   : > { %v10050_v24 = vpop.eup %10049  ;;  %6413 = vrot.lane.b32.xlu1 %v10048_v0, %s10410_s29 }
0x356d   : > { %6411 = vrot.lane.b32.xlu0 %v10050_v24, %s10410_s29  ;;  %v10052_v56 = vpop.eup %10051 }
0x356e   : > { %v10054_v2 = vpop.eup %10053  ;;  %v6330_v4 = vadd.f32 1.0, %v10052_v56 }
0x356f   : > { %v10056_v0 = vpop.eup %10055  ;;  %v6328_v24 = vadd.f32 1.0, %v10054_v2 }
0x3570   : > { %v10058_v41 = vpop.eup %10057  ;;  %10059 = vrcp.f32 %v6330_v4  ;;  %v6334_v11 = vadd.f32 1.0, %v10056_v0 }
0x3571   : > { %10061 = vrcp.f32 %v6328_v24  ;;  %v6332_v8 = vadd.f32 1.0, %v10058_v41 }
0x3572   : > { %10063 = vrcp.f32 %v6334_v11 }
0x3573   : > { %10065 = vrcp.f32 %v6332_v8 }
0x357a   : > { %v10060_v57 = vpop.eup %10059 }
0x357b   : > { %v10062_v48 = vpop.eup %10061  ;;  %v6400_v3 = vsub.f32 1.0, %v10060_v57  ;;  %v6424_v47 = vmul.f32 %v10060_v57, %v12085_v59 }
0x357c   : > { %v10064_v49 = vpop.eup %10063  ;;  %v6399_v6 = vsub.f32 1.0, %v10062_v48  ;;  %v6423_v44 = vmul.f32 %v10062_v48, %v12083_v51 }
0x357d   : > { %v10066_v33 = vpop.eup %10065  ;;  %v6402_v61 = vsub.f32 1.0, %v10064_v49  ;;  %v6426_v48 = vmul.f32 %v10064_v49, %v12096_v36 }
0x357e   : > { %v6401_v4 = vsub.f32 1.0, %v10066_v33  ;;  %v6425_v11 = vmul.f32 %v10066_v33, %v12093_v54 }
0x35da   : > { %v6410_v22 = vpop.permute.xlu1 %6409 }
0x35db   : > { %v6420_v21 = vmul.f32 %v6410_v22, %v6400_v3  ;;  %v6408_v39 = vpop.permute.xlu0 %6407 }
0x35dc   : > { %v6419_v13 = vmul.f32 %v6408_v39, %v6399_v6 }
0x35dd   : > { %v12145_v0 = vadd.f32 %v6424_v47, %v6420_v21 }
0x35de   : > { %v12143_v56 = vadd.f32 %v6423_v44, %v6419_v13  ;;  %v6414_v2 = vpop.permute.xlu1 %6413  ;;  %v6453_v44 = vld [vmem:[#allocation2 + $0x50] sm:$0xff] }
0x35df   : > { %v6422_v24 = vmul.f32 %v6414_v2, %v6402_v61  ;;  %v6412_v41 = vpop.permute.xlu0 %6411  ;;  %v6451_v61 = vld [vmem:[#allocation2 + $0x40] sm:$0xff] }
0x35e0   : > { %v6421_v8 = vmul.f32 %v6412_v41, %v6401_v4  ;;  %8992 = vmatprep.mubr.msk.f32.mxu1 %vm564_vm0, %v12143_v56 }
0x35e1   : > { %8993 = vmatmul.mubr.msk.f32.vlgmr.msra.gmra.mrb[112].mxu1 %vm564_vm0, %v12145_v0  ;;  %v12156_v3 = vadd.f32 %v6426_v48, %v6422_v24 }
0x35e2   : > { %v12153_v57 = vadd.f32 %v6425_v11, %v6421_v8  ;;  %9255 = vmatpush3.bf16.msra.mxu1 %v11500_v40  ;;  %v6457_v11 = vld [vmem:[#allocation2 + $0x70] sm:$0xff] }
0x35e3   : > { %9257 = vmatprep.subr.bf16.mxu1 %v11534_v26 }
0x35e4   : > { %8995 = vmatprep.mubr.msk.f32.mxu1 %vm564_vm0, %v12153_v57 }
0x35e5   : > { %8996 = vmatmul.mubr.msk.f32.gmra.mrb[114].mxu1 %vm564_vm0, %v12156_v3 }
0x35e6   : > { %9259 = vmatpush3.bf16.msra.mxu1 %v11534_v26 }
0x36b4   : > { %v8994_v49 = vpop.f32.mrb[112].mxu1 }
0x36b5   : > { %6558 = vrot.lane.b32.xlu1 %v8994_v49, %s10410_s29  ;;  %v6533_v22 = vpop.f32.mrb[113].mxu1  ;;  %v6625_v33 = vadd.f32 %v8994_v49, %v11565_v46  ;;  %v6455_v49 = vld [vmem:[#allocation2 + $0x60] sm:$0xff] }
0x36b6   : > { %6556 = vrot.lane.b32.xlu0 %v6533_v22, %s10410_s29  ;;  %v6624_v21 = vadd.f32 %v6533_v22, %v11565_v46 }
0x36b8   : > { %v8997_v6 = vpop.f32.mrb[114].mxu1 }
0x36b9   : > { %6562 = vrot.lane.b32.xlu1 %v8997_v6, %s10410_s29  ;;  %v6543_v40 = vpop.f32.mrb[115].mxu1  ;;  %v6627_v26 = vadd.f32 %v8997_v6, %v11565_v46 }
0x36ba   : > { %6560 = vrot.lane.b32.xlu0 %v6543_v40, %s10410_s29  ;;  %v6626_v39 = vadd.f32 %v6543_v40, %v11565_v46 }
0x36bd   : > { %6634 = vrot.lane.b32.xlu1 %v6625_v33, %s10411_s12 }
0x36be   : > { %6632 = vrot.lane.b32.xlu0 %v6624_v21, %s10411_s12 }
0x36c1   : > { %6638 = vrot.lane.b32.xlu1 %v6627_v26, %s10411_s12 }
0x36c2   : > { %6636 = vrot.lane.b32.xlu0 %v6626_v39, %s10411_s12 }
0x3727   : > { %v12176_v13 = vpop.permute.xlu1 %6558 }
0x3728   : > { %v6570_v47 = vadd.f32 %v12176_v13, %v6453_v44  ;;  %v12179_v2 = vpop.permute.xlu0 %6556 }
0x3729   : > { %v6568_v4 = vadd.f32 %v12179_v2, %v6451_v61 }
0x372a   : > { %v8402_v24 = vmul.f32 -1.442695, %v6570_v47 }
0x372b   : > { %v8400_v41 = vmul.f32 -1.442695, %v6568_v4  ;;  %v12182_v8 = vpop.permute.xlu1 %6562 }
0x372c   : > { %10067 = vpow2.f32 %v8402_v24  ;;  %v6574_v48 = vadd.f32 %v12182_v8, %v6457_v11  ;;  %v12185_v22 = vpop.permute.xlu0 %6560 }
0x372d   : > { %10069 = vpow2.f32 %v8400_v41  ;;  %v6572_v6 = vadd.f32 %v12185_v22, %v6455_v49 }
0x372e   : > { %v8406_v40 = vmul.f32 -1.442695, %v6574_v48 }
0x372f   : > { %v8404_v33 = vmul.f32 -1.442695, %v6572_v6  ;;  %v6635_v11 = vpop.permute.xlu1 %6634 }
0x3730   : > { %10071 = vpow2.f32 %v8406_v40  ;;  %v6633_v41 = vpop.permute.xlu0 %6632 }
0x3731   : > { %10073 = vpow2.f32 %v8404_v33 }
0x3733   : > { %v6639_v33 = vpop.permute.xlu1 %6638 }
0x3736   : > { %v10068_v21 = vpop.eup %10067 }
0x3737   : > { %v10070_v26 = vpop.eup %10069  ;;  %v6602_v39 = vadd.f32 1.0, %v10068_v21 }
0x3738   : > { %v6600_v44 = vadd.f32 1.0, %v10070_v26 }
0x3739   : > { %10075 = vrcp.f32 %v6602_v39  ;;  %v6637_v39 = vpop.permute.xlu0 %6636 }
0x373a   : > { %v10072_v47 = vpop.eup %10071  ;;  %10077 = vrcp.f32 %v6600_v44 }
0x373b   : > { %v10074_v61 = vpop.eup %10073  ;;  %v6606_v4 = vadd.f32 1.0, %v10072_v47  ;;  %v6454_v47 = vld [vmem:[#allocation2 + $0x58] sm:$0xff] }
0x373c   : > { %v6604_v24 = vadd.f32 1.0, %v10074_v61 }
0x373d   : > { %10079 = vrcp.f32 %v6606_v4 }
0x373e   : > { %10081 = vrcp.f32 %v6604_v24  ;;  %v6452_v24 = vld [vmem:[#allocation2 + $0x48] sm:$0xff] }
0x3743   : > { %v10076_v45 = vpop.eup %10075 }
0x3744   : > { %v10078_v49 = vpop.eup %10077  ;;  %v6645_v48 = vmul.f32 %v10076_v45, %v6635_v11 }
0x3745   : > { %v6644_v6 = vmul.f32 %v10078_v49, %v6633_v41  ;;  %v6458_v41 = vld [vmem:[#allocation2 + $0x78] sm:$0xff] }
0x3746   : > { %6654 = vrot.lane.b32.xlu1 %v6645_v48, %s10408_s21 }
0x3747   : > { %v10080_v40 = vpop.eup %10079  ;;  %6652 = vrot.lane.b32.xlu0 %v6644_v6, %s10408_s21  ;;  %v6456_v6 = vld [vmem:[#allocation2 + $0x68] sm:$0xff] }
0x3748   : > { %v10082_v21 = vpop.eup %10081  ;;  %v6647_v26 = vmul.f32 %v10080_v40, %v6639_v33 }
0x3749   : > { %v6646_v44 = vmul.f32 %v10082_v21, %v6637_v39 }
0x374a   : > { %6658 = vrot.lane.b32.xlu1 %v6647_v26, %s10408_s21 }
0x374b   : > { %6656 = vrot.lane.b32.xlu0 %v6646_v44, %s10408_s21  ;;  %v6571_v44 = vadd.f32 %v12176_v13, %v6454_v47 }
0x37b8   : > { %v6655_v61 = vpop.permute.xlu1 %6654 }
0x37b9   : > { %v6665_v4 = vadd.f32 %v6655_v61, %v6454_v47  ;;  %v6653_v45 = vpop.permute.xlu0 %6652  ;;  %v6569_v61 = vadd.f32 %v12179_v2, %v6452_v24 }
0x37ba   : > { %v6664_v11 = vadd.f32 %v6653_v45, %v6452_v24 }
0x37bb   : > { %10083 = vtanh.f32 %v6665_v4  ;;  %v8403_v4 = vmul.f32 -1.442695, %v6571_v44  ;;  %v8401_v45 = vmul.f32 -1.442695, %v6569_v61 }
0x37bc   : > { %10085 = vtanh.f32 %v6664_v11  ;;  %v6659_v49 = vpop.permute.xlu1 %6658  ;;  %v6573_v11 = vadd.f32 %v12185_v22, %v6456_v6 }
0x37bd   : > { %v6667_v48 = vadd.f32 %v6659_v49, %v6458_v41  ;;  %v6657_v30 = vpop.permute.xlu0 %6656 }
0x37be   : > { %v6666_v40 = vadd.f32 %v6657_v30, %v6456_v6  ;;  %v6575_v30 = vadd.f32 %v12182_v8, %v6458_v41 }
0x37bf   : > { %10087 = vtanh.f32 %v6667_v48  ;;  %v8405_v48 = vmul.f32 -1.442695, %v6573_v11 }
0x37c0   : > { %10089 = vtanh.f32 %v6666_v40  ;;  %v8407_v49 = vmul.f32 -1.442695, %v6575_v30 }
0x37c1   : > { %10091 = vpow2.f32 %v8403_v4 }
0x37c2   : > { %10093 = vpow2.f32 %v8401_v45 }
0x37c3   : > { %10095 = vpow2.f32 %v8407_v49 }
0x37c4   : > { %10097 = vpow2.f32 %v8405_v48 }
0x37c5   : > { %v10084_v33 = vpop.eup %10083 }
0x37c6   : > { %v10086_v21 = vpop.eup %10085  ;;  %6682 = vrot.lane.b32.xlu1 %v10084_v33, %s10410_s29 }
0x37c7   : > { %6680 = vrot.lane.b32.xlu0 %v10086_v21, %s10410_s29 }
0x37c9   : > { %v10088_v26 = vpop.eup %10087 }
0x37ca   : > { %v10090_v39 = vpop.eup %10089  ;;  %6686 = vrot.lane.b32.xlu1 %v10088_v26, %s10410_s29 }
0x37cb   : > { %6684 = vrot.lane.b32.xlu0 %v10090_v39, %s10410_s29  ;;  %v10092_v40 = vpop.eup %10091 }
0x37cc   : > { %v10094_v33 = vpop.eup %10093  ;;  %v6603_v21 = vadd.f32 1.0, %v10092_v40 }
0x37cd   : > { %v10096_v26 = vpop.eup %10095  ;;  %v6601_v39 = vadd.f32 1.0, %v10094_v33 }
0x37ce   : > { %v10098_v13 = vpop.eup %10097  ;;  %10099 = vrcp.f32 %v6603_v21  ;;  %v6607_v2 = vadd.f32 1.0, %v10096_v26 }
0x37cf   : > { %10101 = vrcp.f32 %v6601_v39  ;;  %v6605_v47 = vadd.f32 1.0, %v10098_v13 }
0x37d0   : > { %10103 = vrcp.f32 %v6607_v2 }
0x37d1   : > { %10105 = vrcp.f32 %v6605_v47 }
0x37d8   : > { %v10100_v8 = vpop.eup %10099 }
0x37d9   : > { %v10102_v22 = vpop.eup %10101  ;;  %v6673_v24 = vsub.f32 1.0, %v10100_v8  ;;  %v6697_v49 = vmul.f32 %v10100_v8, %v12145_v0 }
0x37da   : > { %v10104_v41 = vpop.eup %10103  ;;  %v6672_v44 = vsub.f32 1.0, %v10102_v22  ;;  %v6696_v45 = vmul.f32 %v10102_v22, %v12143_v56 }
0x37db   : > { %v10106_v61 = vpop.eup %10105  ;;  %v6675_v48 = vsub.f32 1.0, %v10104_v41  ;;  %v6699_v22 = vmul.f32 %v10104_v41, %v12156_v3 }
0x37dc   : > { %v6674_v21 = vsub.f32 1.0, %v10106_v61  ;;  %v6698_v2 = vmul.f32 %v10106_v61, %v12153_v57 }
0x3838   : > { %v6683_v6 = vpop.permute.xlu1 %6682 }
0x3839   : > { %v6693_v4 = vmul.f32 %v6683_v6, %v6673_v24  ;;  %v6681_v30 = vpop.permute.xlu0 %6680 }
0x383a   : > { %v6692_v11 = vmul.f32 %v6681_v30, %v6672_v44 }
0x383b   : > { %v12204_v26 = vadd.f32 %v6697_v49, %v6693_v4  ;;  %v6726_v49 = vld [vmem:[#allocation2 + $0x10] sm:$0xff] }
0x383c   : > { %v12202_v40 = vadd.f32 %v6696_v45, %v6692_v11  ;;  %v6687_v33 = vpop.permute.xlu1 %6686 }
0x383d   : > { %v6695_v39 = vmul.f32 %v6687_v33, %v6675_v48  ;;  %v6685_v13 = vpop.permute.xlu0 %6684 }
0x383e   : > { %v6694_v47 = vmul.f32 %v6685_v13, %v6674_v21  ;;  %9006 = vmatprep.mubr.msk.f32.mxu1 %vm564_vm0, %v12202_v40  ;;  %v6724_v21 = vld [vmem:[#allocation2] sm:$0xff] }
0x383f   : > { %9007 = vmatmul.mubr.msk.f32.vlgmr.msra.gmra.mrb[116].mxu1 %vm564_vm0, %v12204_v26  ;;  %v12214_v24 = vadd.f32 %v6699_v22, %v6695_v39  ;;  %v6730_v22 = vld [vmem:[#allocation2 + $0x30] sm:$0xff] }
0x3840   : > { %v12212_v8 = vadd.f32 %v6698_v2, %v6694_v47 }
0x3842   : > { %9009 = vmatprep.mubr.msk.f32.mxu1 %vm564_vm0, %v12212_v8 }
0x3843   : > { %9010 = vmatmul.mubr.msk.f32.gmra.mrb[118].mxu1 %vm564_vm0, %v12214_v24 }
0x3912   : > { %v9008_v6 = vpop.f32.mrb[116].mxu1 }
0x3913   : > { %6831 = vrot.lane.b32.xlu1 %v9008_v6, %s10410_s29  ;;  %v6806_v44 = vpop.f32.mrb[117].mxu1  ;;  %v6898_v4 = vadd.f32 %v9008_v6, %v11565_v46 }
0x3914   : > { %6829 = vrot.lane.b32.xlu0 %v6806_v44, %s10410_s29  ;;  %v6897_v30 = vadd.f32 %v6806_v44, %v11565_v46  ;;  %v6728_v44 = vld [vmem:[#allocation2 + $0x20] sm:$0xff] }
0x3916   : > { %v9011_v41 = vpop.f32.mrb[118].mxu1 }
0x3917   : > { %6835 = vrot.lane.b32.xlu1 %v9011_v41, %s10410_s29  ;;  %v6816_v61 = vpop.f32.mrb[119].mxu1  ;;  %v6900_v45 = vadd.f32 %v9011_v41, %v11565_v46 }
0x3918   : > { %6833 = vrot.lane.b32.xlu0 %v6816_v61, %s10410_s29  ;;  %v6899_v11 = vadd.f32 %v6816_v61, %v11565_v46 }
0x391b   : > { %6907 = vrot.lane.b32.xlu1 %v6898_v4, %s10411_s12 }
0x391c   : > { %6905 = vrot.lane.b32.xlu0 %v6897_v30, %s10411_s12 }
0x391f   : > { %6911 = vrot.lane.b32.xlu1 %v6900_v45, %s10411_s12 }
0x3920   : > { %6909 = vrot.lane.b32.xlu0 %v6899_v11, %s10411_s12 }
0x3985   : > { %v12232_v48 = vpop.permute.xlu1 %6831 }
0x3986   : > { %v6843_v33 = vadd.f32 %v12232_v48, %v6726_v49  ;;  %v12235_v39 = vpop.permute.xlu0 %6829 }
0x3987   : > { %v6841_v13 = vadd.f32 %v12235_v39, %v6724_v21 }
0x3988   : > { %v8414_v2 = vmul.f32 -1.442695, %v6843_v33 }
0x3989   : > { %v8412_v47 = vmul.f32 -1.442695, %v6841_v13  ;;  %v12238_v6 = vpop.permute.xlu1 %6835 }
0x398a   : > { %10107 = vpow2.f32 %v8414_v2  ;;  %v6847_v46 = vadd.f32 %v12238_v6, %v6730_v22  ;;  %v12241_v41 = vpop.permute.xlu0 %6833 }
0x398b   : > { %10109 = vpow2.f32 %v8412_v47  ;;  %v6845_v61 = vadd.f32 %v12241_v41, %v6728_v44 }
0x398c   : > { %v8418_v4 = vmul.f32 -1.442695, %v6847_v46 }
0x398d   : > { %v8416_v30 = vmul.f32 -1.442695, %v6845_v61  ;;  %v6908_v25 = vpop.permute.xlu1 %6907 }
0x398e   : > { %10111 = vpow2.f32 %v8418_v4  ;;  %v6906_v47 = vpop.permute.xlu0 %6905 }
0x398f   : > { %10113 = vpow2.f32 %v8416_v30 }
0x3991   : > { %v6912_v30 = vpop.permute.xlu1 %6911 }
0x3994   : > { %v10108_v45 = vpop.eup %10107 }
0x3995   : > { %v10110_v11 = vpop.eup %10109  ;;  %v6875_v49 = vadd.f32 1.0, %v10108_v45 }
0x3996   : > { %v6873_v33 = vadd.f32 1.0, %v10110_v11 }
0x3997   : > { %10115 = vrcp.f32 %v6875_v49  ;;  %v6910_v49 = vpop.permute.xlu0 %6909 }
0x3998   : > { %v10112_v21 = vpop.eup %10111  ;;  %10117 = vrcp.f32 %v6873_v33 }
0x3999   : > { %v10114_v13 = vpop.eup %10113  ;;  %v6879_v2 = vadd.f32 1.0, %v10112_v21  ;;  %v3616_v21 = vadd.f32 %v11555_v50, %v10674_v34 }
0x399a   : > { %v6877_v22 = vadd.f32 1.0, %v10114_v13  ;;  %v3617_v13 = vadd.f32 %v11561_v35, %v10674_v34 }
0x399b   : > { %10119 = vrcp.f32 %v6879_v2  ;;  %v12260_v2 = vld [vmem:[#allocation2 + $0x2d0] sm:$0xff] }
0x399c   : > { %10121 = vrcp.f32 %v6877_v22  ;;  %v3588_v22 = vadd.f32 %v12260_v2, %v11555_v50 }
0x39a1   : > { %v10116_v55 = vpop.eup %10115 }
0x39a2   : > { %v10118_v44 = vpop.eup %10117  ;;  %v6918_v46 = vmul.f32 %v10116_v55, %v6908_v25  ;;  %v3615_v25 = vadd.f32 %v11557_v52, %v10674_v34  ;;  %v3618_v55 = vadd.f32 %v11559_v53, %v10674_v34 }
0x39a3   : > { %v6917_v61 = vmul.f32 %v10118_v44, %v6906_v47  ;;  %v12264_v47 = vld [vmem:[#allocation2 + $0x2c0] sm:$0xff] }
0x39a4   : > { %6927 = vrot.lane.b32.xlu1 %v6918_v46, %s10408_s21  ;;  %v3587_v44 = vadd.f32 %v12264_v47, %v11557_v52  ;;  %v8276_v46 = vmul.f32 -1.442695, %v3588_v22 }
0x39a5   : > { %v10120_v4 = vpop.eup %10119  ;;  %6925 = vrot.lane.b32.xlu0 %v6917_v61, %s10408_s21  ;;  %v12268_v61 = vld [vmem:[#allocation2 + $0x2f0] sm:$0xff] }
0x39a6   : > { %v10122_v45 = vpop.eup %10121  ;;  %v6920_v11 = vmul.f32 %v10120_v4, %v6912_v30  ;;  %v3590_v34 = vadd.f32 %v12268_v61, %v11559_v53  ;;  %v8275_v4 = vmul.f32 -1.442695, %v3587_v44  ;;  %v12272_v30 = vld [vmem:[#allocation2 + $0x2e0] sm:$0xff]  ;;  %10123 = vpow2.f32 %v8276_v46 }
0x39a7   : > { %v6919_v33 = vmul.f32 %v10122_v45, %v6910_v49  ;;  %v3589_v45 = vadd.f32 %v12272_v30, %v11561_v35  ;;  %v12276_v49 = vld [vmem:[#allocation2 + $0x18] sm:$0xff] }
0x39a8   : > { %6931 = vrot.lane.b32.xlu1 %v6920_v11, %s10408_s21  ;;  %v8278_v11 = vmul.f32 -1.442695, %v3590_v34  ;;  %10125 = vpow2.f32 %v8275_v4  ;;  %v6731_v35 = vld [vmem:[#allocation2 + $0x38] sm:$0xff]  ;;  %v6729_v34 = vld [vmem:[#allocation2 + $0x28] sm:$0xff] }
0x39a9   : > { %6929 = vrot.lane.b32.xlu0 %v6919_v33, %s10408_s21  ;;  %v8277_v50 = vmul.f32 -1.442695, %v3589_v45 }
0x39aa   : > { %10127 = vpow2.f32 %v8278_v11 }
0x39ab   : > { %10129 = vpow2.f32 %v8277_v50 }
0x39ac   : > { %3625 = vrot.lane.b32.xlu1 %v3616_v21, %s10408_s21  ;;  %v12279_v21 = vld [vmem:[#allocation2 + $0x8] sm:$0xff] }
0x39ad   : > { %3623 = vrot.lane.b32.xlu0 %v3615_v25, %s10408_s21 }
0x39b0   : > { %3629 = vrot.lane.b32.xlu1 %v3618_v55, %s10408_s21  ;;  %v10124_v25 = vpop.eup %10123 }
0x39b1   : > { %3627 = vrot.lane.b32.xlu0 %v3617_v13, %s10408_s21  ;;  %v3604_v44 = vadd.f32 1.0, %v10124_v25 }
0x39b2   : > { %v10126_v13 = vpop.eup %10125 }
0x39b3   : > { %v3603_v11 = vadd.f32 1.0, %v10126_v13 }
0x39b4   : > { %v10128_v45 = vpop.eup %10127 }
0x39b5   : > { %v10130_v23 = vpop.eup %10129 }
0x39b6   : > { %v3605_v17 = vadd.f32 1.0, %v10130_v23 }
0x3a16   : > { %v6928_v52 = vpop.permute.xlu1 %6927 }
0x3a17   : > { %v6938_v33 = vadd.f32 %v6928_v52, %v12276_v49  ;;  %v6926_v53 = vpop.permute.xlu0 %6925  ;;  %v3606_v52 = vadd.f32 1.0, %v10128_v45 }
0x3a18   : > { %v6937_v55 = vadd.f32 %v6926_v53, %v12279_v21 }
0x3a19   : > { %10131 = vtanh.f32 %v6938_v33 }
0x3a1a   : > { %10133 = vtanh.f32 %v6937_v55  ;;  %v6932_v22 = vpop.permute.xlu1 %6931 }
0x3a1b   : > { %v6940_v46 = vadd.f32 %v6932_v22, %v6731_v35  ;;  %v6930_v4 = vpop.permute.xlu0 %6929 }
0x3a1c   : > { %v6939_v50 = vadd.f32 %v6930_v4, %v6729_v34 }
0x3a1d   : > { %10135 = vtanh.f32 %v6940_v46 }
0x3a1e   : > { %10137 = vtanh.f32 %v6939_v50  ;;  %v3626_v25 = vpop.permute.xlu1 %3625 }
0x3a1f   : > { %10139 = vrcp.f32 %v3604_v44  ;;  %v3624_v55 = vpop.permute.xlu0 %3623 }
0x3a20   : > { %10141 = vrcp.f32 %v3603_v11 }
0x3a21   : > { %10143 = vrcp.f32 %v3606_v52 }
0x3a22   : > { %10145 = vrcp.f32 %v3605_v17  ;;  %v3630_v4 = vpop.permute.xlu1 %3629 }
0x3a23   : > { %v10132_v53 = vpop.eup %10131  ;;  %v3628_v45 = vpop.permute.xlu0 %3627 }
0x3a24   : > { %v10134_v33 = vpop.eup %10133  ;;  %6955 = vrot.lane.b32.xlu1 %v10132_v53, %s10410_s29 }
0x3a25   : > { %6953 = vrot.lane.b32.xlu0 %v10134_v33, %s10410_s29  ;;  %v9399_v33 = vld [vmem:[%s12910_s7] sm:$0xff]  }
0x3a26   : > { %9012 = vmatprep.subr.bf16.mxu0 %v9399_v33 }
0x3a27   : > { %v10136_v22 = vpop.eup %10135  ;;  %9013 = vmatpush3.bf16.msra.mxu0 %v9399_v33 }
0x3a28   : > { %v10138_v13 = vpop.eup %10137  ;;  %6959 = vrot.lane.b32.xlu1 %v10136_v22, %s10410_s29  ;;  %v6846_v22 = vadd.f32 %v12241_v41, %v6729_v34 }
0x3a29   : > { %v12285_v46 = vpop.eup %10139  ;;  %6957 = vrot.lane.b32.xlu0 %v10138_v13, %s10410_s29 }
0x3a2a   : > { %v12288_v44 = vpop.eup %10141  ;;  %v3636_v23 = vmul.f32 %v12285_v46, %v3626_v25  ;;  %v9400_v25 = vld [vmem:[%s12910_s7 + $0x8] sm:$0xff]  }
0x3a2b   : > { %v3635_v17 = vmul.f32 %v12288_v44, %v3624_v55  ;;  %v12293_v11 = vpop.eup %10143  ;;  %9014 = vmatprep.subr.bf16.mxu0 %v9400_v25 }
0x3a2c   : > { %3645 = vrot.lane.b32.xlu1 %v3636_v23, %s10408_s21  ;;  %v12296_v50 = vpop.eup %10145  ;;  %v3638_v52 = vmul.f32 %v12293_v11, %v3630_v4  ;;  %9015 = vmatpush3.bf16.msra.mxu0 %v9400_v25  ;;  %v8417_v23 = vmul.f32 -1.442695, %v6846_v22 }
0x3a2d   : > { %3643 = vrot.lane.b32.xlu0 %v3635_v17, %s10408_s21  ;;  %v3637_v53 = vmul.f32 %v12296_v50, %v3628_v45 }
0x3a30   : > { %3649 = vrot.lane.b32.xlu1 %v3638_v52, %s10408_s21 }
0x3a31   : > { %3647 = vrot.lane.b32.xlu0 %v3637_v53, %s10408_s21 }
0x3a34   : > { %6710 = vrot.lane.b32.xlu1 %v12204_v26, %s10411_s12 }
0x3a35   : > { %6708 = vrot.lane.b32.xlu0 %v12202_v40, %s10411_s12 }
0x3a38   : > { %6714 = vrot.lane.b32.xlu1 %v12214_v24, %s10411_s12 }
0x3a39   : > { %6712 = vrot.lane.b32.xlu0 %v12212_v8, %s10411_s12 }
0x3a3c   : > { %6437 = vrot.lane.b32.xlu1 %v12145_v0, %s10411_s12  ;;  %v6842_v0 = vadd.f32 %v12235_v39, %v12279_v21 }
0x3a3d   : > { %6435 = vrot.lane.b32.xlu0 %v12143_v56, %s10411_s12  ;;  %v6844_v56 = vadd.f32 %v12232_v48, %v12276_v49 }
0x3a3e   : > { %v8413_v55 = vmul.f32 -1.442695, %v6842_v0 }
0x3a40   : > { %6441 = vrot.lane.b32.xlu1 %v12156_v3, %s10411_s12  ;;  %v8415_v3 = vmul.f32 -1.442695, %v6844_v56 }
0x3a41   : > { %6439 = vrot.lane.b32.xlu0 %v12153_v57, %s10411_s12  ;;  %v6848_v57 = vadd.f32 %v12238_v6, %v6731_v35  ;;  %v9401_v6 = vld [vmem:[%s12910_s7 + $0x10] sm:$0xff]  }
0x3a42   : > { %10147 = vpow2.f32 %v8415_v3  ;;  %9016 = vmatprep.subr.bf16.mxu0 %v9401_v6 }
0x3a43   : > { %v8419_v13 = vmul.f32 -1.442695, %v6848_v57  ;;  %10149 = vpow2.f32 %v8413_v55  ;;  %9017 = vmatpush3.bf16.msra.mxu0 %v9401_v6  ;;  %v9402_v55 = vld [vmem:[%s12910_s7 + $0x18] sm:$0xff]  }
0x3a44   : > { %9018 = vmatprep.subr.bf16.mxu0 %v9402_v55 }
0x3a45   : > { %10151 = vpow2.f32 %v8419_v13 }
0x3a46   : > { %10153 = vpow2.f32 %v8417_v23 }
0x3a47   : > { %9019 = vmatpush3.bf16.msra.mxu0 %v9402_v55 }
0x3a4c   : > { %v10148_v17 = vpop.eup %10147 }
0x3a4d   : > { %v10150_v4 = vpop.eup %10149  ;;  %v6876_v45 = vadd.f32 1.0, %v10148_v17 }
0x3a4e   : > { %v6874_v49 = vadd.f32 1.0, %v10150_v4 }
0x3a4f   : > { %v10152_v48 = vpop.eup %10151  ;;  %10155 = vrcp.f32 %v6876_v45 }
0x3a50   : > { %v10154_v52 = vpop.eup %10153  ;;  %v6880_v39 = vadd.f32 1.0, %v10152_v48  ;;  %10157 = vrcp.f32 %v6874_v49 }
0x3a51   : > { %v6878_v21 = vadd.f32 1.0, %v10154_v52 }
0x3a52   : > { %10159 = vrcp.f32 %v6880_v39 }
0x3a53   : > { %10161 = vrcp.f32 %v6878_v21 }
0x3a59   : > { %v10156_v41 = vpop.eup %10155 }
0x3a5a   : > { %v10158_v35 = vpop.eup %10157  ;;  %v6946_v34 = vsub.f32 1.0, %v10156_v41  ;;  %v6970_v0 = vmul.f32 %v10156_v41, %v12204_v26 }
0x3a5b   : > { %v6945_v25 = vsub.f32 1.0, %v10158_v35  ;;  %v6969_v22 = vmul.f32 %v10158_v35, %v12202_v40 }
0x3a5c   : > { %v10160_v53 = vpop.eup %10159 }
0x3a5d   : > { %v10162_v56 = vpop.eup %10161  ;;  %v6948_v17 = vsub.f32 1.0, %v10160_v53  ;;  %v6972_v49 = vmul.f32 %v10160_v53, %v12214_v24 }
0x3a5e   : > { %v6947_v48 = vsub.f32 1.0, %v10162_v56  ;;  %v6971_v39 = vmul.f32 %v10162_v56, %v12212_v8 }
0x3a96   : > { %v6956_v33 = vpop.permute.xlu1 %6955 }
0x3a97   : > { %v6966_v3 = vmul.f32 %v6956_v33, %v6946_v34  ;;  %v6954_v57 = vpop.permute.xlu0 %6953 }
0x3a98   : > { %v6965_v13 = vmul.f32 %v6954_v57, %v6945_v25 }
0x3a99   : > { %v6974_v23 = vadd.f32 %v6970_v0, %v6966_v3 }
0x3a9a   : > { %v6973_v4 = vadd.f32 %v6969_v22, %v6965_v13  ;;  %v6960_v45 = vpop.permute.xlu1 %6959 }
0x3a9b   : > { %v6968_v52 = vmul.f32 %v6960_v45, %v6948_v17  ;;  %v6958_v26 = vpop.permute.xlu0 %6957  ;;  %6983 = vrot.lane.b32.xlu1 %v6974_v23, %s10411_s12 }
0x3a9c   : > { %v6967_v21 = vmul.f32 %v6958_v26, %v6947_v48  ;;  %6981 = vrot.lane.b32.xlu0 %v6973_v4, %s10411_s12 }
0x3a9d   : > { %v6976_v40 = vadd.f32 %v6972_v49, %v6968_v52 }
0x3a9e   : > { %v6975_v6 = vadd.f32 %v6971_v39, %v6967_v21  ;;  %v3646_v41 = vpop.permute.xlu1 %3645 }
0x3a9f   : > { %v3656_v35 = vadd.f32 %v12260_v2, %v3646_v41  ;;  %v3644_v34 = vpop.permute.xlu0 %3643  ;;  %6987 = vrot.lane.b32.xlu1 %v6976_v40, %s10411_s12  ;;  %v3665_v40 = vsub.f32 1.0, %v12296_v50 }
0x3aa0   : > { %v3655_v33 = vadd.f32 %v12264_v47, %v3644_v34  ;;  %6985 = vrot.lane.b32.xlu0 %v6975_v6, %s10411_s12  ;;  %v12945_v6 = vld [vmem:[#allocation9_spill] sm:$0xff] }
0x3aa1   : > { %10163 = vtanh.f32 %v3656_v35  ;;  %v3690_v41 = vmul.f32 %v12293_v11, %v12945_v6 }
0x3aa2   : > { %10165 = vtanh.f32 %v3655_v33  ;;  %v3650_v24 = vpop.permute.xlu1 %3649  ;;  %v12946_v33 = vld [vmem:[#allocation10_spill] sm:$0xff] }
0x3aa3   : > { %v3648_v53 = vpop.permute.xlu0 %3647  ;;  %6164 = vrot.lane.b32.xlu1 %v12085_v59, %s10411_s12  ;;  %v3658_v8 = vadd.f32 %v12268_v61, %v3650_v24  ;;  %v3689_v24 = vmul.f32 %v12296_v50, %v12946_v33 }
0x3aa4   : > { %6162 = vrot.lane.b32.xlu0 %v12083_v51, %s10411_s12  ;;  %v3657_v2 = vadd.f32 %v12272_v30, %v3648_v53 }
0x3aa5   : > { %10167 = vtanh.f32 %v3658_v8 }
0x3aa6   : > { %v6711_v25 = vpop.permute.xlu1 %6710  ;;  %10169 = vtanh.f32 %v3657_v2 }
0x3aa7   : > { %6721 = vst.msk [vmem:[#allocation3 + $0x28] sm:$0xff] %vm3989_vm2, %v6711_v25  ;;  %v6709_v47 = vpop.permute.xlu0 %6708 }
0x3aa8   : > { %6720 = vst.msk [vmem:[#allocation3 + $0x20] sm:$0xff] %vm3989_vm2, %v6709_v47 }
0x3aaa   : > { %v6715_v56 = vpop.permute.xlu1 %6714 }
0x3aab   : > { %v10164_v0 = vpop.eup %10163  ;;  %6723 = vst.msk [vmem:[#allocation3 + $0x38] sm:$0xff] %vm3989_vm2, %v6715_v56  ;;  %v6713_v59 = vpop.permute.xlu0 %6712 }
0x3aac   : > { %v10166_v3 = vpop.eup %10165  ;;  %6722 = vst.msk [vmem:[#allocation3 + $0x30] sm:$0xff] %vm3989_vm2, %v6713_v59  ;;  %3673 = vrot.lane.b32.xlu1 %v10164_v0, %s10410_s29 }
0x3aad   : > { %3671 = vrot.lane.b32.xlu0 %v10166_v3, %s10410_s29 }
0x3aae   : > { %v6438_v51 = vpop.permute.xlu1 %6437 }
0x3aaf   : > { %6448 = vst.msk [vmem:[#allocation3 + $0x48] sm:$0xff] %vm3989_vm2, %v6438_v51  ;;  %v6436_v61 = vpop.permute.xlu0 %6435  ;;  %v10168_v57 = vpop.eup %10167 }
0x3ab0   : > { %6447 = vst.msk [vmem:[#allocation3 + $0x40] sm:$0xff] %vm3989_vm2, %v6436_v61  ;;  %6168 = vrot.lane.b32.xlu1 %v12096_v36, %s10411_s12  ;;  %v10170_v22 = vpop.eup %10169 }
0x3ab1   : > { %6166 = vrot.lane.b32.xlu0 %v12093_v54, %s10411_s12  ;;  %v12944_v54 = vld [vmem:[#allocation8_spill] sm:$0xff] }
0x3ab2   : > { %v6442_v30 = vpop.permute.xlu1 %6441  ;;  %v3687_v36 = vmul.f32 %v12288_v44, %v12944_v54  ;;  %v7014_v17 = vld [vmem:[#allocation3 + $0x38] sm:$0xff] }
0x3ab3   : > { %6450 = vst.msk [vmem:[#allocation3 + $0x58] sm:$0xff] %vm3989_vm2, %v6442_v30  ;;  %v6440_v55 = vpop.permute.xlu0 %6439  ;;  %v7013_v23 = vld [vmem:[#allocation3 + $0x30] sm:$0xff]  ;;  %v12947_v30 = vld [vmem:[#allocation12_spill] sm:$0xff] }
0x3ab4   : > { %6449 = vst.msk [vmem:[#allocation3 + $0x50] sm:$0xff] %vm3989_vm2, %v6440_v55  ;;  %3677 = vrot.lane.b32.xlu1 %v10168_v57, %s10410_s29  ;;  %v7058_v39 = vpack.c.bf16 %v7014_v17, %v7013_v23  ;;  %v12948_v57 = vld [vmem:[#allocation11_spill] sm:$0xff] }
0x3ab5   : > { %3675 = vrot.lane.b32.xlu0 %v10170_v22, %s10410_s29 }
0x3ab6   : > { %v7016_v48 = vld [vmem:[#allocation3 + $0x48] sm:$0xff] }
0x3ab7   : > { %v7015_v45 = vld [vmem:[#allocation3 + $0x40] sm:$0xff] }
0x3ab8   : > { %5891 = vrot.lane.b32.xlu1 %v12025_v63, %s10411_s12 }
0x3ab9   : > { %5889 = vrot.lane.b32.xlu0 %v12023_v12, %s10411_s12  ;;  %v12943_v12 = vld [vmem:[#allocation7_spill] sm:$0xff] }
0x3aba   : > { %v3688_v63 = vmul.f32 %v12285_v46, %v12943_v12  ;;  %v7018_v2 = vld [vmem:[#allocation3 + $0x58] sm:$0xff] }
0x3abb   : > { %v7017_v8 = vld [vmem:[#allocation3 + $0x50] sm:$0xff] }
0x3abc   : > { %5895 = vrot.lane.b32.xlu1 %v12036_v38, %s10411_s12  ;;  %v7060_v51 = vpack.c.bf16 %v7018_v2, %v7017_v8 }
0x3abd   : > { %5893 = vrot.lane.b32.xlu0 %v12033_v20, %s10411_s12 }
0x3ac0   : > { %5618 = vrot.lane.b32.xlu1 %v11965_v10, %s10411_s12  ;;  %v3664_v10 = vsub.f32 1.0, %v12285_v46  ;;  %v7059_v46 = vpack.c.bf16 %v7016_v48, %v7015_v45 }
0x3ac1   : > { %5616 = vrot.lane.b32.xlu0 %v11963_v28, %s10411_s12 }
0x3ac4   : > { %5622 = vrot.lane.b32.xlu1 %v11976_v37, %s10411_s12  ;;  %v3663_v37 = vsub.f32 1.0, %v12288_v44  ;;  %v3666_v44 = vsub.f32 1.0, %v12293_v11 }
0x3ac5   : > { %5620 = vrot.lane.b32.xlu0 %v11973_v14, %s10411_s12 }
0x3ac8   : > { %5345 = vrot.lane.b32.xlu1 %v11905_v27, %s10411_s12  ;;  %v7012_v27 = vld [vmem:[#allocation3 + $0x28] sm:$0xff] }
0x3ac9   : > { %5343 = vrot.lane.b32.xlu0 %v11903_v42, %s10411_s12  ;;  %v7011_v42 = vld [vmem:[#allocation3 + $0x20] sm:$0xff] }
0x3aca   : > { %v7057_v28 = vpack.c.bf16 %v7012_v27, %v7011_v42 }
0x3acc   : > { %5349 = vrot.lane.b32.xlu1 %v11916_v62, %s10411_s12 }
0x3acd   : > { %5347 = vrot.lane.b32.xlu0 %v11913_v58, %s10411_s12 }
0x3ad0   : > { %5072 = vrot.lane.b32.xlu1 %v11845_v31, %s10411_s12 }
0x3ad1   : > { %5070 = vrot.lane.b32.xlu0 %v11843_v18, %s10411_s12 }
0x3ad4   : > { %5076 = vrot.lane.b32.xlu1 %v11856_v1, %s10411_s12 }
0x3ad5   : > { %5074 = vrot.lane.b32.xlu0 %v11853_v32, %s10411_s12 }
0x3ad8   : > { %4799 = vrot.lane.b32.xlu1 %v11785_v9, %s10411_s12  ;;  %v12941_v9 = vld [vmem:[#allocation17_spill] sm:$0xff] }
0x3ad9   : > { %4797 = vrot.lane.b32.xlu0 %v11783_v19, %s10411_s12  ;;  %v12940_v19 = vld [vmem:[#allocation15_spill] sm:$0xff] }
0x3adc   : > { %4803 = vrot.lane.b32.xlu1 %v11796_v60, %s10411_s12 }
0x3add   : > { %4801 = vrot.lane.b32.xlu0 %v11793_v43, %s10411_s12 }
0x3ae0   : > { %4526 = vrot.lane.b32.xlu1 %v11725_v16, %s10411_s12  ;;  %v12942_v16 = vld [vmem:[#allocation16_spill] sm:$0xff] }
0x3ae1   : > { %4524 = vrot.lane.b32.xlu0 %v11723_v5, %s10411_s12 }
0x3ae4   : > { %4530 = vrot.lane.b32.xlu1 %v11736_v15, %s10411_s12 }
0x3ae5   : > { %4528 = vrot.lane.b32.xlu0 %v11733_v7, %s10411_s12 }
0x3ae8   : > { %4253 = vrot.lane.b32.xlu1 %v11665_v29, %s10411_s12 }
0x3ae9   : > { %4251 = vrot.lane.b32.xlu0 %v12940_v19, %s10411_s12 }
0x3aec   : > { %4257 = vrot.lane.b32.xlu1 %v12941_v9, %s10411_s12 }
0x3aed   : > { %4255 = vrot.lane.b32.xlu0 %v12942_v16, %s10411_s12 }
0x3b0d   : > { %v6984_v43 = vpop.permute.xlu1 %6983 }
0x3b0e   : > { %6994 = vst.msk [vmem:[#allocation3 + $0x8] sm:$0xff] %vm3989_vm2, %v6984_v43  ;;  %v6982_v5 = vpop.permute.xlu0 %6981  ;;  %v12949_v43 = vld [vmem:[#allocation14_spill] sm:$0xff] }
0x3b0f   : > { %6993 = vst.msk [vmem:[#allocation3] sm:$0xff] %vm3989_vm2, %v6982_v5 }
0x3b11   : > { %v6988_v15 = vpop.permute.xlu1 %6987 }
0x3b12   : > { %6996 = vst.msk [vmem:[#allocation3 + $0x18] sm:$0xff] %vm3989_vm2, %v6988_v15  ;;  %v6986_v7 = vpop.permute.xlu0 %6985 }
0x3b13   : > { %6995 = vst.msk [vmem:[#allocation3 + $0x10] sm:$0xff] %vm3989_vm2, %v6986_v7  ;;  %v12950_v7 = vld [vmem:[#allocation13_spill] sm:$0xff] }
0x3b15   : > { %v6165_v29 = vpop.permute.xlu1 %6164  ;;  %v7008_v60 = vld [vmem:[#allocation3 + $0x8] sm:$0xff] }
0x3b16   : > { %6175 = vst.msk [vmem:[#allocation3 + $0x68] sm:$0xff] %vm3989_vm2, %v6165_v29  ;;  %v6163_v18 = vpop.permute.xlu0 %6162  ;;  %v7007_v31 = vld [vmem:[#allocation3] sm:$0xff] }
0x3b17   : > { %6174 = vst.msk [vmem:[#allocation3 + $0x60] sm:$0xff] %vm3989_vm2, %v6163_v18  ;;  %v7055_v32 = vpack.c.bf16 %v7008_v60, %v7007_v31 }
0x3b19   : > { %9020 = vmatprep.mubr.msk.bf16.mxu0 %vm911_vm1, %v7055_v32  ;;  %v7010_v1 = vld [vmem:[#allocation3 + $0x18] sm:$0xff] }
0x3b1a   : > { %v7009_v58 = vld [vmem:[#allocation3 + $0x10] sm:$0xff] }
0x3b1b   : > { %v7056_v62 = vpack.c.bf16 %v7010_v1, %v7009_v58 }
0x3b1d   : > { %9021 = vmatmul.mubr.msk.bf16.vlgmr.msra.gmra.mrb[72].mxu0 %vm911_vm1, %v7056_v62  ;;  %v7020_v56 = vld [vmem:[#allocation3 + $0x68] sm:$0xff] }
0x3b1e   : > { %9024 = vmatprep.mubr.msk.bf16.mxu0 %vm911_vm1, %v7057_v28  ;;  %v3674_v14 = vpop.permute.xlu1 %3673  ;;  %v7019_v47 = vld [vmem:[#allocation3 + $0x60] sm:$0xff] }
0x3b1f   : > { %v3684_v20 = vmul.f32 %v3674_v14, %v3664_v10  ;;  %v3672_v38 = vpop.permute.xlu0 %3671  ;;  %v7061_v11 = vpack.c.bf16 %v7020_v56, %v7019_v47 }
0x3b20   : > { %v3683_v13 = vmul.f32 %v3672_v38, %v3663_v37 }
0x3b21   : > { %v3692_v4 = vadd.f32 %v3688_v63, %v3684_v20 }
0x3b22   : > { %v3691_v49 = vadd.f32 %v3687_v36, %v3683_v13  ;;  %v6169_v52 = vpop.permute.xlu1 %6168 }
0x3b23   : > { %6177 = vst.msk [vmem:[#allocation3 + $0x78] sm:$0xff] %vm3989_vm2, %v6169_v52  ;;  %v6167_v26 = vpop.permute.xlu0 %6166  ;;  %3701 = vrot.lane.b32.xlu1 %v3692_v4, %s10410_s29 }
0x3b24   : > { %6176 = vst.msk [vmem:[#allocation3 + $0x70] sm:$0xff] %vm3989_vm2, %v6167_v26  ;;  %3699 = vrot.lane.b32.xlu0 %v3691_v49, %s10410_s29 }
0x3b25   : > { %9025 = vmatmul.mubr.msk.bf16.gmra.mrb[76].mxu0 %vm911_vm1, %v7058_v39 }
0x3b26   : > { %9028 = vmatprep.mubr.msk.bf16.mxu0 %vm911_vm1, %v7059_v46  ;;  %v3678_v21 = vpop.permute.xlu1 %3677 }
0x3b27   : > { %v3686_v35 = vmul.f32 %v3678_v21, %v3666_v44  ;;  %v3676_v34 = vpop.permute.xlu0 %3675 }
0x3b28   : > { %v3685_v53 = vmul.f32 %v3676_v34, %v3665_v40 }
0x3b29   : > { %v3694_v25 = vadd.f32 %v3690_v41, %v3686_v35 }
0x3b2a   : > { %v3693_v0 = vadd.f32 %v3689_v24, %v3685_v53  ;;  %v5892_v59 = vpop.permute.xlu1 %5891  ;;  %v7022_v22 = vld [vmem:[#allocation3 + $0x78] sm:$0xff] }
0x3b2b   : > { %5902 = vst.msk [vmem:[#allocation3 + $0x88] sm:$0xff] %vm3989_vm2, %v5892_v59  ;;  %v5890_v3 = vpop.permute.xlu0 %5889  ;;  %3705 = vrot.lane.b32.xlu1 %v3694_v25, %s10410_s29  ;;  %v7021_v55 = vld [vmem:[#allocation3 + $0x70] sm:$0xff] }
0x3b2c   : > { %5901 = vst.msk [vmem:[#allocation3 + $0x80] sm:$0xff] %vm3989_vm2, %v5890_v3  ;;  %3703 = vrot.lane.b32.xlu0 %v3693_v0, %s10410_s29  ;;  %v7062_v5 = vpack.c.bf16 %v7022_v22, %v7021_v55  ;;  %s12854_s29 = scalar_lea.hbm %s12913_s10, %s8455_s26 }
0x3b2d   : > { %9029 = vmatmul.mubr.msk.bf16.gmra.mrb[80].mxu0 %vm911_vm1, %v7060_v51 }
0x3b2e   : > { %9032 = vmatprep.mubr.msk.bf16.mxu0 %vm911_vm1, %v7061_v11  ;;  %v5896_v50 = vpop.permute.xlu1 %5895 }
0x3b2f   : > { %5904 = vst.msk [vmem:[#allocation3 + $0x98] sm:$0xff] %vm3989_vm2, %v5896_v50  ;;  %v5894_v61 = vpop.permute.xlu0 %5893  ;;  %3979 = vrot.lane.b32.xlu1 %v12947_v30, %s10411_s12 }
0x3b30   : > { %5903 = vst.msk [vmem:[#allocation3 + $0x90] sm:$0xff] %vm3989_vm2, %v5894_v61  ;;  %3977 = vrot.lane.b32.xlu0 %v12948_v57, %s10411_s12 }
0x3b32   : > { %v5619_v19 = vpop.permute.xlu1 %5618  ;;  %v7024_v9 = vld [vmem:[#allocation3 + $0x88] sm:$0xff] }
0x3b33   : > { %5629 = vst.msk [vmem:[#allocation3 + $0xa8] sm:$0xff] %vm3989_vm2, %v5619_v19  ;;  %v5617_v16 = vpop.permute.xlu0 %5616  ;;  %3983 = vrot.lane.b32.xlu1 %v12949_v43, %s10411_s12  ;;  %v7023_v15 = vld [vmem:[#allocation3 + $0x80] sm:$0xff] }
0x3b34   : > { %5628 = vst.msk [vmem:[#allocation3 + $0xa0] sm:$0xff] %vm3989_vm2, %v5617_v16  ;;  %3981 = vrot.lane.b32.xlu0 %v12950_v7, %s10411_s12  ;;  %v7063_v29 = vpack.c.bf16 %v7024_v9, %v7023_v15  ;;  %s10423_s12 = smov [#allocation4]  }
0x3b35   : > { %9033 = vmatmul.mubr.msk.bf16.gmra.mrb[84].mxu0 %vm911_vm1, %v7062_v5  ;;  %s10347_s21 = sshll.u32 %s10423_s12, 4  ;;  %s10348_s21 = int_to_ptr.vmem [resolvable:$false] %s10347_s21 }
0x3b36   : > { %9036 = vmatprep.mubr.msk.bf16.mxu0 %vm911_vm1, %v7063_v29  ;;  %v5623_v60 = vpop.permute.xlu1 %5622  ;;  %v7026_v32 = vld [vmem:[#allocation3 + $0x98] sm:$0xff]  ;;  %s10349_s20 = scalar_lea.vmem %s10348_s21, 1024  ;;  %p10350_p0 = scmp.lt.s32.totalorder %s12856_s25, %s10348_s21 }
0x3b37   : > { %5631 = vst.msk [vmem:[#allocation3 + $0xb8] sm:$0xff] %vm3989_vm2, %v5623_v60  ;;  %v5621_v18 = vpop.permute.xlu0 %5620  ;;  %v7025_v31 = vld [vmem:[#allocation3 + $0x90] sm:$0xff]  ;;  %p10351_p1 = scmp.lt.s32.totalorder %s10349_s20, %s10343_s30 }
0x3b38   : > { %5630 = vst.msk [vmem:[#allocation3 + $0xb0] sm:$0xff] %vm3989_vm2, %v5621_v18  ;;  %v7064_v58 = vpack.c.bf16 %v7026_v32, %v7025_v31 }
0x3b39   : > { %p10352_p2 = por %p10351_p1, %p10350_p0 }
0x3b3a   : > { %v5346_v1 = vpop.permute.xlu1 %5345  ;;  %v7028_v42 = vld [vmem:[#allocation3 + $0xa8] sm:$0xff] }
0x3b3b   : > { %5356 = vst.msk [vmem:[#allocation3 + $0xc8] sm:$0xff] %vm3989_vm2, %v5346_v1  ;;  %v5344_v27 = vpop.permute.xlu0 %5343  ;;  %v7027_v62 = vld [vmem:[#allocation3 + $0xa0] sm:$0xff]  ;;  %p10353_p3 = pnand %p10352_p2, %p10346_p13 }
0x3b3c   : > { %5355 = vst.msk [vmem:[#allocation3 + $0xc0] sm:$0xff] %vm3989_vm2, %v5344_v27  ;;  %v7065_v28 = vpack.c.bf16 %v7028_v42, %v7027_v62 }
0x3b3d   : > { %9037 = vmatmul.mubr.msk.bf16.gmra.mrb[88].mxu0 %vm911_vm1, %v7064_v58 }
0x3b3e   : > { %9040 = vmatprep.mubr.msk.bf16.mxu0 %vm911_vm1, %v7065_v28  ;;  %v5350_v10 = vpop.permute.xlu1 %5349  ;;  %v7030_v12 = vld [vmem:[#allocation3 + $0xb8] sm:$0xff] }
0x3b3f   : > { %5358 = vst.msk [vmem:[#allocation3 + $0xd8] sm:$0xff] %vm3989_vm2, %v5350_v10  ;;  %v5348_v14 = vpop.permute.xlu0 %5347  ;;  %v7029_v37 = vld [vmem:[#allocation3 + $0xb0] sm:$0xff] }
0x3b40   : > { %5357 = vst.msk [vmem:[#allocation3 + $0xd0] sm:$0xff] %vm3989_vm2, %v5348_v14  ;;  %v7066_v54 = vpack.c.bf16 %v7030_v12, %v7029_v37  ;;  %v12519_v14 = vld [vmem:[%s12911_s8] ss:$0 sm:$0xff] }
0x3b42   : > { %v5073_v63 = vpop.permute.xlu1 %5072  ;;  %v7032_v20 = vld [vmem:[#allocation3 + $0xc8] sm:$0xff] }
0x3b43   : > { %5083 = vst.msk [vmem:[#allocation3 + $0xe8] sm:$0xff] %vm3989_vm2, %v5073_v63  ;;  %v5071_v38 = vpop.permute.xlu0 %5070  ;;  %v7031_v36 = vld [vmem:[#allocation3 + $0xc0] sm:$0xff] }
0x3b44   : > { %5082 = vst.msk [vmem:[#allocation3 + $0xe0] sm:$0xff] %vm3989_vm2, %v5071_v38  ;;  %v7067_v13 = vpack.c.bf16 %v7032_v20, %v7031_v36 }
0x3b45   : > { %9041 = vmatmul.mubr.msk.bf16.gmra.mrb[92].mxu0 %vm911_vm1, %v7066_v54 }
0x3b46   : > { %9044 = vmatprep.mubr.msk.bf16.mxu0 %vm911_vm1, %v7067_v13  ;;  %v5077_v23 = vpop.permute.xlu1 %5076  ;;  %v7034_v45 = vld [vmem:[#allocation3 + $0xd8] sm:$0xff] }
0x3b47   : > { %5085 = vst.msk [vmem:[#allocation3 + $0xf8] sm:$0xff] %vm3989_vm2, %v5077_v23  ;;  %v5075_v17 = vpop.permute.xlu0 %5074  ;;  %v7033_v4 = vld [vmem:[#allocation3 + $0xd0] sm:$0xff] }
0x3b48   : > { %5084 = vst.msk [vmem:[#allocation3 + $0xf0] sm:$0xff] %vm3989_vm2, %v5075_v17  ;;  %v7068_v26 = vpack.c.bf16 %v7034_v45, %v7033_v4 }
0x3b4a   : > { %v4800_v48 = vpop.permute.xlu1 %4799  ;;  %v7036_v49 = vld [vmem:[#allocation3 + $0xe8] sm:$0xff] }
0x3b4b   : > { %4810 = vst.msk [vmem:[#allocation3 + $0x108] sm:$0xff] %vm3989_vm2, %v4800_v48  ;;  %v4798_v52 = vpop.permute.xlu0 %4797  ;;  %v7035_v39 = vld [vmem:[#allocation3 + $0xe0] sm:$0xff] }
0x3b4c   : > { %4809 = vst.msk [vmem:[#allocation3 + $0x100] sm:$0xff] %vm3989_vm2, %v4798_v52  ;;  %v7069_v46 = vpack.c.bf16 %v7036_v49, %v7035_v39 }
0x3b4d   : > { %9045 = vmatmul.mubr.msk.bf16.gmra.mrb[96].mxu0 %vm911_vm1, %v7068_v26  ;;  %v12531_v26 = vld [vmem:[%s12912_s9] ss:$0 sm:$0xff] }
0x3b4e   : > { %9048 = vmatprep.mubr.msk.bf16.mxu0 %vm911_vm1, %v7069_v46  ;;  %v4804_v44 = vpop.permute.xlu1 %4803  ;;  %v7038_v6 = vld [vmem:[#allocation3 + $0xf8] sm:$0xff] }
0x3b4f   : > { %4812 = vst.msk [vmem:[#allocation3 + $0x118] sm:$0xff] %vm3989_vm2, %v4804_v44  ;;  %v4802_v21 = vpop.permute.xlu0 %4801  ;;  %v7037_v40 = vld [vmem:[#allocation3 + $0xf0] sm:$0xff] }
0x3b50   : > { %4811 = vst.msk [vmem:[#allocation3 + $0x110] sm:$0xff] %vm3989_vm2, %v4802_v21  ;;  %v7070_v33 = vpack.c.bf16 %v7038_v6, %v7037_v40 }
0x3b52   : > { %v4527_v41 = vpop.permute.xlu1 %4526  ;;  %v7040_v35 = vld [vmem:[#allocation3 + $0x108] sm:$0xff] }
0x3b53   : > { %4537 = vst.msk [vmem:[#allocation3 + $0x128] sm:$0xff] %vm3989_vm2, %v4527_v41  ;;  %v4525_v34 = vpop.permute.xlu0 %4524  ;;  %v7039_v24 = vld [vmem:[#allocation3 + $0x100] sm:$0xff] }
0x3b54   : > { %4536 = vst.msk [vmem:[#allocation3 + $0x120] sm:$0xff] %vm3989_vm2, %v4525_v34  ;;  %v7071_v53 = vpack.c.bf16 %v7040_v35, %v7039_v24 }
0x3b55   : > { %9049 = vmatmul.mubr.msk.bf16.gmra.mrb[100].mxu0 %vm911_vm1, %v7070_v33 }
0x3b56   : > { %9052 = vmatprep.mubr.msk.bf16.mxu0 %vm911_vm1, %v7071_v53  ;;  %v4531_v8 = vpop.permute.xlu1 %4530  ;;  %v7042_v47 = vld [vmem:[#allocation3 + $0x118] sm:$0xff] }
0x3b57   : > { %4539 = vst.msk [vmem:[#allocation3 + $0x138] sm:$0xff] %vm3989_vm2, %v4531_v8  ;;  %v4529_v2 = vpop.permute.xlu0 %4528  ;;  %v7041_v25 = vld [vmem:[#allocation3 + $0x110] sm:$0xff] }
0x3b58   : > { %4538 = vst.msk [vmem:[#allocation3 + $0x130] sm:$0xff] %vm3989_vm2, %v4529_v2  ;;  %v7072_v3 = vpack.c.bf16 %v7042_v47, %v7041_v25 }
0x3b5a   : > { %v4254_v56 = vpop.permute.xlu1 %4253  ;;  %v7044_v0 = vld [vmem:[#allocation3 + $0x128] sm:$0xff] }
0x3b5b   : > { %4264 = vst.msk [vmem:[#allocation3 + $0x148] sm:$0xff] %vm3989_vm2, %v4254_v56  ;;  %v4252_v59 = vpop.permute.xlu0 %4251  ;;  %v7043_v51 = vld [vmem:[#allocation3 + $0x120] sm:$0xff] }
0x3b5c   : > { %4263 = vst.msk [vmem:[#allocation3 + $0x140] sm:$0xff] %vm3989_vm2, %v4252_v59  ;;  %v7073_v11 = vpack.c.bf16 %v7044_v0, %v7043_v51 }
0x3b5d   : > { %9053 = vmatmul.mubr.msk.bf16.gmra.mrb[104].mxu0 %vm911_vm1, %v7072_v3 }
0x3b5e   : > { %9056 = vmatprep.mubr.msk.bf16.mxu0 %vm911_vm1, %v7073_v11  ;;  %v4258_v50 = vpop.permute.xlu1 %4257  ;;  %v7046_v57 = vld [vmem:[#allocation3 + $0x138] sm:$0xff] }
0x3b5f   : > { %4266 = vst.msk [vmem:[#allocation3 + $0x158] sm:$0xff] %vm3989_vm2, %v4258_v50  ;;  %v4256_v61 = vpop.permute.xlu0 %4255  ;;  %v7045_v30 = vld [vmem:[#allocation3 + $0x130] sm:$0xff] }
0x3b60   : > { %4265 = vst.msk [vmem:[#allocation3 + $0x150] sm:$0xff] %vm3989_vm2, %v4256_v61  ;;  %v7074_v22 = vpack.c.bf16 %v7046_v57, %v7045_v30 }
0x3b62   : > { %v7048_v55 = vld [vmem:[#allocation3 + $0x148] sm:$0xff] }
0x3b63   : > { %v7047_v19 = vld [vmem:[#allocation3 + $0x140] sm:$0xff] }
0x3b64   : > { %v7075_v9 = vpack.c.bf16 %v7048_v55, %v7047_v19 }
0x3b65   : > { %9057 = vmatmul.mubr.msk.bf16.gmra.mrb[108].mxu0 %vm911_vm1, %v7074_v22 }
0x3b66   : > { %9060 = vmatprep.mubr.msk.bf16.mxu0 %vm911_vm1, %v7075_v9  ;;  %v7050_v43 = vld [vmem:[#allocation3 + $0x158] sm:$0xff] }
0x3b67   : > { %v7049_v16 = vld [vmem:[#allocation3 + $0x150] sm:$0xff] }
0x3b68   : > { %v7076_v5 = vpack.c.bf16 %v7050_v43, %v7049_v16 }
0x3b6d   : > { %9061 = vmatmul.mubr.msk.bf16.gmra.mrb[112].mxu0 %vm911_vm1, %v7076_v5 }
0x3b95   : > { %v3702_v15 = vpop.permute.xlu1 %3701 }
0x3b96   : > { %3712 = vst.msk [vmem:[#allocation3 + $0x168] sm:$0xff] %vm564_vm0, %v3702_v15  ;;  %v3700_v7 = vpop.permute.xlu0 %3699 }
0x3b97   : > { %3711 = vst.msk [vmem:[#allocation3 + $0x160] sm:$0xff] %vm564_vm0, %v3700_v7 }
0x3b9d   : > { %v3706_v29 = vpop.permute.xlu1 %3705 }
0x3b9e   : > { %3714 = vst.msk [vmem:[#allocation3 + $0x178] sm:$0xff] %vm564_vm0, %v3706_v29  ;;  %v3704_v60 = vpop.permute.xlu0 %3703 }
0x3b9f   : > { %3713 = vst.msk [vmem:[#allocation3 + $0x170] sm:$0xff] %vm564_vm0, %v3704_v60 }
0x3ba1   : > { %v3980_v18 = vpop.permute.xlu1 %3979 }
0x3ba2   : > { %3991 = vst.msk [vmem:[#allocation3 + $0x168] sm:$0xff] %vm3989_vm2, %v3980_v18  ;;  %v3978_v31 = vpop.permute.xlu0 %3977 }
0x3ba3   : > { %3990 = vst.msk [vmem:[#allocation3 + $0x160] sm:$0xff] %vm3989_vm2, %v3978_v31 }
0x3ba5   : > { %v3984_v32 = vpop.permute.xlu1 %3983 }
0x3ba6   : > { %3993 = vst.msk [vmem:[#allocation3 + $0x178] sm:$0xff] %vm3989_vm2, %v3984_v32  ;;  %v3982_v1 = vpop.permute.xlu0 %3981 }
0x3ba7   : > { %3992 = vst.msk [vmem:[#allocation3 + $0x170] sm:$0xff] %vm3989_vm2, %v3982_v1 }
0x3ba9   : > { %v7052_v42 = vld [vmem:[#allocation3 + $0x168] sm:$0xff] }
0x3baa   : > { %v7051_v27 = vld [vmem:[#allocation3 + $0x160] sm:$0xff] }
0x3bab   : > { %v7077_v58 = vpack.c.bf16 %v7052_v42, %v7051_v27 }
0x3bad   : > { %9064 = vmatprep.mubr.msk.bf16.mxu0 %vm911_vm1, %v7077_v58  ;;  %v7054_v62 = vld [vmem:[#allocation3 + $0x178] sm:$0xff] }
0x3bae   : > { %v7053_v28 = vld [vmem:[#allocation3 + $0x170] sm:$0xff] }
0x3baf   : > { %v7078_v10 = vpack.c.bf16 %v7054_v62, %v7053_v28 }
0x3bb1   : > { %9065 = vmatmul.mubr.msk.bf16.gmra.mrb[116].mxu0 %vm911_vm1, %v7078_v10 }
0x3bf0   : > { %v9022_v37 = vpop.f32.mrb[72].mxu0 }
0x3bf1   : > { %v7224_v12 = vadd.f32 %v9022_v37, %v12519_v14  ;;  %v7215_v63 = vpop.f32.mrb[73].mxu0 }
0x3bf2   : > { %v7216_v20 = vadd.f32 %v12519_v14, %v7215_v63  ;;  %v9023_v38 = vpop.f32.mrb[74].mxu0 }
0x3bf3   : > { %10171 = vtanh.f32 %v7224_v12  ;;  %v7227_v54 = vadd.f32 %v9023_v38, %v12519_v14  ;;  %v7218_v36 = vpop.f32.mrb[75].mxu0 }
0x3bf4   : > { %10173 = vtanh.f32 %v7216_v20  ;;  %v7219_v13 = vadd.f32 %v12519_v14, %v7218_v36 }
0x3bf6   : > { %10175 = vtanh.f32 %v7219_v13 }
0x3bf7   : > { %10177 = vtanh.f32 %v7227_v54 }
0x3bf8   : > { %v9026_v23 = vpop.f32.mrb[76].mxu0 }
0x3bf9   : > { %v7240_v17 = vadd.f32 %v9026_v23, %v12519_v14  ;;  %v7231_v4 = vpop.f32.mrb[77].mxu0 }
0x3bfa   : > { %v7232_v45 = vadd.f32 %v12519_v14, %v7231_v4  ;;  %v9027_v48 = vpop.f32.mrb[78].mxu0 }
0x3bfb   : > { %10179 = vtanh.f32 %v7240_v17  ;;  %v7243_v49 = vadd.f32 %v9027_v48, %v12519_v14  ;;  %v7234_v52 = vpop.f32.mrb[79].mxu0 }
0x3bfc   : > { %10181 = vtanh.f32 %v7232_v45  ;;  %v7235_v39 = vadd.f32 %v12519_v14, %v7234_v52 }
0x3bfd   : > { %v10172_v46 = vpop.eup %10171  ;;  %10183 = vtanh.f32 %v7243_v49 }
0x3bfe   : > { %v10174_v44 = vpop.eup %10173  ;;  %v7462_v21 = vmul.f32 %v10172_v46, %v12531_v26  ;;  %10185 = vtanh.f32 %v7235_v39 }
0x3bff   : > { %v7460_v35 = vmul.f32 %v10174_v44, %v12531_v26 }
0x3c00   : > { %v10176_v40 = vpop.eup %10175  ;;  %v9030_v6 = vpop.f32.mrb[80].mxu0  ;;  %v7514_v41 = vsel %vm911_vm1, %v7462_v21, 0.0 }
0x3c01   : > { %v10178_v34 = vpop.eup %10177  ;;  %v7256_v33 = vadd.f32 %v9030_v6, %v12519_v14  ;;  %7515 = vadd.xlane.f32.xlu0 %v7514_v41  ;;  %v7247_v24 = vpop.f32.mrb[81].mxu0  ;;  %v7461_v53 = vmul.f32 %v10176_v40, %v12531_v26  ;;  %v7508_v59 = vsel %vm911_vm1, %v7460_v35, 0.0 }
0x3c02   : > { %v7248_v8 = vadd.f32 %v12519_v14, %v7247_v24  ;;  %v9031_v2 = vpop.f32.mrb[82].mxu0  ;;  %v7463_v3 = vmul.f32 %v10178_v34, %v12531_v26 }
0x3c03   : > { %10187 = vtanh.f32 %v7256_v33  ;;  %v7259_v25 = vadd.f32 %v9031_v2, %v12519_v14  ;;  %v7250_v47 = vpop.f32.mrb[83].mxu0  ;;  %v7511_v56 = vsel %vm911_vm1, %v7461_v53, 0.0 }
0x3c04   : > { %10189 = vtanh.f32 %v7248_v8  ;;  %v7251_v0 = vadd.f32 %v12519_v14, %v7250_v47  ;;  %7512 = vadd.xlane.f32.xlu1 %v7511_v56  ;;  %v7517_v55 = vsel %vm911_vm1, %v7463_v3, 0.0 }
0x3c05   : > { %v10180_v51 = vpop.eup %10179  ;;  %10191 = vtanh.f32 %v7259_v25  ;;  %7509 = vadd.xlane.f32.xlu0 %v7508_v59 }
0x3c06   : > { %v10182_v11 = vpop.eup %10181  ;;  %v7466_v50 = vmul.f32 %v10180_v51, %v12531_v26  ;;  %10193 = vtanh.f32 %v7251_v0 }
0x3c07   : > { %v10184_v61 = vpop.eup %10183  ;;  %v7464_v30 = vmul.f32 %v10182_v11, %v12531_v26 }
0x3c08   : > { %v9034_v57 = vpop.f32.mrb[84].mxu0  ;;  %v7526_v22 = vsel %vm911_vm1, %v7466_v50, 0.0  ;;  %v7467_v19 = vmul.f32 %v10184_v61, %v12531_v26  ;;  %v10186_v9 = vpop.eup %10185 }
0x3c09   : > { %v7272_v16 = vadd.f32 %v9034_v57, %v12519_v14  ;;  %7518 = vadd.xlane.f32.xlu0 %v7517_v55  ;;  %v7263_v43 = vpop.f32.mrb[85].mxu0  ;;  %7527 = vadd.xlane.f32.xlu1 %v7526_v22  ;;  %v7520_v60 = vsel %vm911_vm1, %v7464_v30, 0.0  ;;  %v7465_v32 = vmul.f32 %v10186_v9, %v12531_v26 }
0x3c0a   : > { %v7264_v5 = vadd.f32 %v12519_v14, %v7263_v43  ;;  %v9035_v15 = vpop.f32.mrb[86].mxu0  ;;  %v7529_v31 = vsel %vm911_vm1, %v7467_v19, 0.0 }
0x3c0b   : > { %10195 = vtanh.f32 %v7272_v16  ;;  %v7275_v7 = vadd.f32 %v9035_v15, %v12519_v14  ;;  %v7266_v29 = vpop.f32.mrb[87].mxu0  ;;  %v7523_v10 = vsel %vm911_vm1, %v7465_v32, 0.0 }
0x3c0c   : > { %10197 = vtanh.f32 %v7264_v5  ;;  %v7267_v18 = vadd.f32 %v12519_v14, %v7266_v29 }
0x3c0d   : > { %v10188_v1 = vpop.eup %10187  ;;  %10199 = vtanh.f32 %v7275_v7  ;;  %7530 = vadd.xlane.f32.xlu0 %v7529_v31  ;;  %7521 = vadd.xlane.f32.xlu1 %v7520_v60 }
0x3c0e   : > { %v10190_v42 = vpop.eup %10189  ;;  %v7470_v27 = vmul.f32 %v10188_v1, %v12531_v26  ;;  %10201 = vtanh.f32 %v7267_v18 }
0x3c0f   : > { %v10192_v58 = vpop.eup %10191  ;;  %v7468_v62 = vmul.f32 %v10190_v42, %v12531_v26 }
0x3c10   : > { %v9038_v28 = vpop.f32.mrb[88].mxu0  ;;  %v7538_v37 = vsel %vm911_vm1, %v7470_v27, 0.0  ;;  %v7471_v12 = vmul.f32 %v10192_v58, %v12531_v26  ;;  %v10194_v63 = vpop.eup %10193 }
0x3c11   : > { %v7288_v20 = vadd.f32 %v9038_v28, %v12519_v14  ;;  %7524 = vadd.xlane.f32.xlu0 %v7523_v10  ;;  %7539 = vadd.xlane.f32.xlu1 %v7538_v37  ;;  %v7279_v38 = vpop.f32.mrb[89].mxu0  ;;  %v7532_v17 = vsel %vm911_vm1, %v7468_v62, 0.0  ;;  %v7469_v48 = vmul.f32 %v10194_v63, %v12531_v26 }
0x3c12   : > { %v7280_v54 = vadd.f32 %v12519_v14, %v7279_v38  ;;  %v9039_v36 = vpop.f32.mrb[90].mxu0  ;;  %v7541_v45 = vsel %vm911_vm1, %v7471_v12, 0.0 }
0x3c13   : > { %10203 = vtanh.f32 %v7288_v20  ;;  %v7291_v13 = vadd.f32 %v9039_v36, %v12519_v14  ;;  %v7282_v23 = vpop.f32.mrb[91].mxu0  ;;  %v7535_v40 = vsel %vm911_vm1, %v7469_v48, 0.0 }
0x3c14   : > { %10205 = vtanh.f32 %v7280_v54  ;;  %v7283_v4 = vadd.f32 %v12519_v14, %v7282_v23 }
0x3c15   : > { %v10196_v49 = vpop.eup %10195  ;;  %10207 = vtanh.f32 %v7291_v13  ;;  %7542 = vadd.xlane.f32.xlu0 %v7541_v45  ;;  %7533 = vadd.xlane.f32.xlu1 %v7532_v17 }
0x3c16   : > { %v10198_v52 = vpop.eup %10197  ;;  %v7474_v39 = vmul.f32 %v10196_v49, %v12531_v26  ;;  %10209 = vtanh.f32 %v7283_v4 }
0x3c17   : > { %v10200_v46 = vpop.eup %10199  ;;  %v7472_v44 = vmul.f32 %v10198_v52, %v12531_v26 }
0x3c18   : > { %v9042_v21 = vpop.f32.mrb[92].mxu0  ;;  %v7550_v6 = vsel %vm911_vm1, %v7474_v39, 0.0  ;;  %v7475_v41 = vmul.f32 %v10200_v46, %v12531_v26  ;;  %v10202_v35 = vpop.eup %10201 }
0x3c19   : > { %v7304_v34 = vadd.f32 %v9042_v21, %v12519_v14  ;;  %7536 = vadd.xlane.f32.xlu0 %v7535_v40  ;;  %7551 = vadd.xlane.f32.xlu1 %v7550_v6  ;;  %v7295_v33 = vpop.f32.mrb[93].mxu0  ;;  %v7544_v25 = vsel %vm911_vm1, %v7472_v44, 0.0  ;;  %v7473_v0 = vmul.f32 %v10202_v35, %v12531_v26 }
0x3c1a   : > { %v7296_v24 = vadd.f32 %v12519_v14, %v7295_v33  ;;  %v9043_v53 = vpop.f32.mrb[94].mxu0  ;;  %v7553_v56 = vsel %vm911_vm1, %v7475_v41, 0.0 }
0x3c1b   : > { %10211 = vtanh.f32 %v7304_v34  ;;  %v7307_v8 = vadd.f32 %v9043_v53, %v12519_v14  ;;  %v7298_v2 = vpop.f32.mrb[95].mxu0  ;;  %v7547_v30 = vsel %vm911_vm1, %v7473_v0, 0.0 }
0x3c1c   : > { %10213 = vtanh.f32 %v7296_v24  ;;  %v7299_v47 = vadd.f32 %v12519_v14, %v7298_v2 }
0x3c1d   : > { %v10204_v59 = vpop.eup %10203  ;;  %10215 = vtanh.f32 %v7307_v8  ;;  %7554 = vadd.xlane.f32.xlu0 %v7553_v56  ;;  %7545 = vadd.xlane.f32.xlu1 %v7544_v25 }
0x3c1e   : > { %v10206_v3 = vpop.eup %10205  ;;  %v7478_v51 = vmul.f32 %v10204_v59, %v12531_v26  ;;  %10217 = vtanh.f32 %v7299_v47 }
0x3c1f   : > { %v10208_v11 = vpop.eup %10207  ;;  %v7476_v50 = vmul.f32 %v10206_v3, %v12531_v26 }
0x3c20   : > { %v9046_v61 = vpop.f32.mrb[96].mxu0  ;;  %v7562_v57 = vsel %vm911_vm1, %v7478_v51, 0.0  ;;  %v7479_v55 = vmul.f32 %v10208_v11, %v12531_v26  ;;  %v10210_v22 = vpop.eup %10209 }
0x3c21   : > { %v7320_v19 = vadd.f32 %v9046_v61, %v12519_v14  ;;  %7548 = vadd.xlane.f32.xlu0 %v7547_v30  ;;  %7563 = vadd.xlane.f32.xlu1 %v7562_v57  ;;  %v7311_v9 = vpop.f32.mrb[97].mxu0  ;;  %v7556_v7 = vsel %vm911_vm1, %v7476_v50, 0.0  ;;  %v7477_v18 = vmul.f32 %v10210_v22, %v12531_v26 }
0x3c22   : > { %v7312_v16 = vadd.f32 %v12519_v14, %v7311_v9  ;;  %v9047_v43 = vpop.f32.mrb[98].mxu0  ;;  %v7565_v60 = vsel %vm911_vm1, %v7479_v55, 0.0 }
0x3c23   : > { %10219 = vtanh.f32 %v7320_v19  ;;  %v7323_v5 = vadd.f32 %v9047_v43, %v12519_v14  ;;  %v7314_v15 = vpop.f32.mrb[99].mxu0  ;;  %v7559_v62 = vsel %vm911_vm1, %v7477_v18, 0.0 }
0x3c24   : > { %10221 = vtanh.f32 %v7312_v16  ;;  %v7315_v29 = vadd.f32 %v12519_v14, %v7314_v15 }
0x3c25   : > { %v10212_v31 = vpop.eup %10211  ;;  %10223 = vtanh.f32 %v7323_v5  ;;  %7566 = vadd.xlane.f32.xlu0 %v7565_v60  ;;  %7557 = vadd.xlane.f32.xlu1 %v7556_v7 }
0x3c26   : > { %v10214_v32 = vpop.eup %10213  ;;  %v7482_v1 = vmul.f32 %v10212_v31, %v12531_v26  ;;  %10225 = vtanh.f32 %v7315_v29 }
0x3c27   : > { %v10216_v42 = vpop.eup %10215  ;;  %v7480_v27 = vmul.f32 %v10214_v32, %v12531_v26 }
0x3c28   : > { %v9050_v58 = vpop.f32.mrb[100].mxu0  ;;  %v7574_v28 = vsel %vm911_vm1, %v7482_v1, 0.0  ;;  %v7483_v10 = vmul.f32 %v10216_v42, %v12531_v26  ;;  %v10218_v37 = vpop.eup %10217 }
0x3c29   : > { %v7336_v12 = vadd.f32 %v9050_v58, %v12519_v14  ;;  %7560 = vadd.xlane.f32.xlu0 %v7559_v62  ;;  %7575 = vadd.xlane.f32.xlu1 %v7574_v28  ;;  %v7327_v63 = vpop.f32.mrb[101].mxu0  ;;  %v7568_v13 = vsel %vm911_vm1, %v7480_v27, 0.0  ;;  %v7481_v4 = vmul.f32 %v10218_v37, %v12531_v26 }
0x3c2a   : > { %v7328_v20 = vadd.f32 %v12519_v14, %v7327_v63  ;;  %v9051_v38 = vpop.f32.mrb[102].mxu0  ;;  %v7577_v17 = vsel %vm911_vm1, %v7483_v10, 0.0 }
0x3c2b   : > { %10227 = vtanh.f32 %v7336_v12  ;;  %v7339_v54 = vadd.f32 %v9051_v38, %v12519_v14  ;;  %v7330_v36 = vpop.f32.mrb[103].mxu0  ;;  %v7571_v44 = vsel %vm911_vm1, %v7481_v4, 0.0 }
0x3c2c   : > { %10229 = vtanh.f32 %v7328_v20  ;;  %v7331_v23 = vadd.f32 %v12519_v14, %v7330_v36 }
0x3c2d   : > { %v10220_v45 = vpop.eup %10219  ;;  %10231 = vtanh.f32 %v7339_v54  ;;  %7578 = vadd.xlane.f32.xlu0 %v7577_v17  ;;  %7569 = vadd.xlane.f32.xlu1 %v7568_v13 }
0x3c2e   : > { %v10222_v48 = vpop.eup %10221  ;;  %v7486_v49 = vmul.f32 %v10220_v45, %v12531_v26  ;;  %10233 = vtanh.f32 %v7331_v23 }
0x3c2f   : > { %v10224_v52 = vpop.eup %10223  ;;  %v7484_v39 = vmul.f32 %v10222_v48, %v12531_v26 }
0x3c30   : > { %v9054_v46 = vpop.f32.mrb[104].mxu0  ;;  %v7586_v21 = vsel %vm911_vm1, %v7486_v49, 0.0  ;;  %v7487_v40 = vmul.f32 %v10224_v52, %v12531_v26  ;;  %v10226_v6 = vpop.eup %10225 }
0x3c31   : > { %v7352_v41 = vadd.f32 %v9054_v46, %v12519_v14  ;;  %7572 = vadd.xlane.f32.xlu0 %v7571_v44  ;;  %7587 = vadd.xlane.f32.xlu1 %v7586_v21  ;;  %v7343_v35 = vpop.f32.mrb[105].mxu0  ;;  %v7580_v8 = vsel %vm911_vm1, %v7484_v39, 0.0  ;;  %v7485_v47 = vmul.f32 %v10226_v6, %v12531_v26 }
0x3c32   : > { %v7344_v34 = vadd.f32 %v12519_v14, %v7343_v35  ;;  %v9055_v33 = vpop.f32.mrb[106].mxu0  ;;  %v7589_v25 = vsel %vm911_vm1, %v7487_v40, 0.0 }
0x3c33   : > { %10235 = vtanh.f32 %v7352_v41  ;;  %v7355_v24 = vadd.f32 %v9055_v33, %v12519_v14  ;;  %v7346_v53 = vpop.f32.mrb[107].mxu0  ;;  %v7583_v50 = vsel %vm911_vm1, %v7485_v47, 0.0 }
0x3c34   : > { %10237 = vtanh.f32 %v7344_v34  ;;  %v7347_v2 = vadd.f32 %v12519_v14, %v7346_v53 }
0x3c35   : > { %v10228_v56 = vpop.eup %10227  ;;  %10239 = vtanh.f32 %v7355_v24  ;;  %7590 = vadd.xlane.f32.xlu0 %v7589_v25  ;;  %7581 = vadd.xlane.f32.xlu1 %v7580_v8 }
0x3c36   : > { %v10230_v0 = vpop.eup %10229  ;;  %v7490_v59 = vmul.f32 %v10228_v56, %v12531_v26  ;;  %10241 = vtanh.f32 %v7347_v2 }
0x3c37   : > { %v10232_v3 = vpop.eup %10231  ;;  %v7488_v51 = vmul.f32 %v10230_v0, %v12531_v26 }
0x3c38   : > { %v9058_v11 = vpop.f32.mrb[108].mxu0  ;;  %v7598_v61 = vsel %vm911_vm1, %v7490_v59, 0.0  ;;  %v7491_v30 = vmul.f32 %v10232_v3, %v12531_v26  ;;  %v10234_v57 = vpop.eup %10233 }
0x3c39   : > { %v7368_v55 = vadd.f32 %v9058_v11, %v12519_v14  ;;  %7584 = vadd.xlane.f32.xlu0 %v7583_v50  ;;  %7599 = vadd.xlane.f32.xlu1 %v7598_v61  ;;  %v7359_v22 = vpop.f32.mrb[109].mxu0  ;;  %v7592_v5 = vsel %vm911_vm1, %v7488_v51, 0.0  ;;  %v7489_v29 = vmul.f32 %v10234_v57, %v12531_v26 }
0x3c3a   : > { %v7360_v19 = vadd.f32 %v12519_v14, %v7359_v22  ;;  %v9059_v9 = vpop.f32.mrb[110].mxu0  ;;  %v7601_v7 = vsel %vm911_vm1, %v7491_v30, 0.0 }
0x3c3b   : > { %10243 = vtanh.f32 %v7368_v55  ;;  %v7371_v16 = vadd.f32 %v9059_v9, %v12519_v14  ;;  %v7362_v43 = vpop.f32.mrb[111].mxu0  ;;  %v7595_v27 = vsel %vm911_vm1, %v7489_v29, 0.0 }
0x3c3c   : > { %10245 = vtanh.f32 %v7360_v19  ;;  %v7363_v15 = vadd.f32 %v12519_v14, %v7362_v43 }
0x3c3d   : > { %v10236_v60 = vpop.eup %10235  ;;  %10247 = vtanh.f32 %v7371_v16  ;;  %7602 = vadd.xlane.f32.xlu0 %v7601_v7  ;;  %7593 = vadd.xlane.f32.xlu1 %v7592_v5 }
0x3c3e   : > { %v10238_v18 = vpop.eup %10237  ;;  %v7494_v31 = vmul.f32 %v10236_v60, %v12531_v26  ;;  %10249 = vtanh.f32 %v7363_v15 }
0x3c3f   : > { %v10240_v32 = vpop.eup %10239  ;;  %v7492_v1 = vmul.f32 %v10238_v18, %v12531_v26 }
0x3c40   : > { %v9062_v42 = vpop.f32.mrb[112].mxu0  ;;  %v7610_v58 = vsel %vm911_vm1, %v7494_v31, 0.0  ;;  %v7495_v62 = vmul.f32 %v10240_v32, %v12531_v26  ;;  %v10242_v28 = vpop.eup %10241 }
0x3c41   : > { %v7384_v10 = vadd.f32 %v9062_v42, %v12519_v14  ;;  %7596 = vadd.xlane.f32.xlu0 %v7595_v27  ;;  %7611 = vadd.xlane.f32.xlu1 %v7610_v58  ;;  %v7375_v37 = vpop.f32.mrb[113].mxu0  ;;  %v7604_v54 = vsel %vm911_vm1, %v7492_v1, 0.0  ;;  %v7493_v23 = vmul.f32 %v10242_v28, %v12531_v26 }
0x3c42   : > { %v7376_v12 = vadd.f32 %v12519_v14, %v7375_v37  ;;  %v9063_v63 = vpop.f32.mrb[114].mxu0  ;;  %v7613_v13 = vsel %vm911_vm1, %v7495_v62, 0.0 }
0x3c43   : > { %10251 = vtanh.f32 %v7384_v10  ;;  %v7387_v20 = vadd.f32 %v9063_v63, %v12519_v14  ;;  %v7378_v38 = vpop.f32.mrb[115].mxu0  ;;  %v7607_v49 = vsel %vm911_vm1, %v7493_v23, 0.0 }
0x3c44   : > { %10253 = vtanh.f32 %v7376_v12  ;;  %v7379_v36 = vadd.f32 %v12519_v14, %v7378_v38 }
0x3c45   : > { %v10244_v17 = vpop.eup %10243  ;;  %10255 = vtanh.f32 %v7387_v20  ;;  %7614 = vadd.xlane.f32.xlu0 %v7613_v13  ;;  %7605 = vadd.xlane.f32.xlu1 %v7604_v54 }
0x3c46   : > { %v10246_v4 = vpop.eup %10245  ;;  %v7498_v45 = vmul.f32 %v10244_v17, %v12531_v26  ;;  %10257 = vtanh.f32 %v7379_v36 }
0x3c47   : > { %v10248_v48 = vpop.eup %10247  ;;  %v7496_v46 = vmul.f32 %v10246_v4, %v12531_v26 }
0x3c48   : > { %v7622_v52 = vsel %vm911_vm1, %v7498_v45, 0.0  ;;  %v7499_v39 = vmul.f32 %v10248_v48, %v12531_v26  ;;  %v10250_v44 = vpop.eup %10249 }
0x3c49   : > { %7608 = vadd.xlane.f32.xlu0 %v7607_v49  ;;  %7623 = vadd.xlane.f32.xlu1 %v7622_v52  ;;  %v7616_v40 = vsel %vm911_vm1, %v7496_v46, 0.0  ;;  %v7497_v6 = vmul.f32 %v10250_v44, %v12531_v26 }
0x3c4a   : > { %v7625_v21 = vsel %vm911_vm1, %v7499_v39, 0.0 }
0x3c4b   : > { %v7619_v24 = vsel %vm911_vm1, %v7497_v6, 0.0 }
0x3c4d   : > { %v10252_v41 = vpop.eup %10251  ;;  %7626 = vadd.xlane.f32.xlu0 %v7625_v21  ;;  %7617 = vadd.xlane.f32.xlu1 %v7616_v40 }
0x3c4e   : > { %v10254_v35 = vpop.eup %10253  ;;  %v7502_v34 = vmul.f32 %v10252_v41, %v12531_v26 }
0x3c4f   : > { %v10256_v33 = vpop.eup %10255  ;;  %v7500_v2 = vmul.f32 %v10254_v35, %v12531_v26 }
0x3c50   : > { %v7634_v53 = vsel %vm911_vm1, %v7502_v34, 0.0  ;;  %v7503_v8 = vmul.f32 %v10256_v33, %v12531_v26  ;;  %v10258_v25 = vpop.eup %10257 }
0x3c51   : > { %7620 = vadd.xlane.f32.xlu0 %v7619_v24  ;;  %7635 = vadd.xlane.f32.xlu1 %v7634_v53  ;;  %v7628_v56 = vsel %vm911_vm1, %v7500_v2, 0.0  ;;  %v7501_v0 = vmul.f32 %v10258_v25, %v12531_v26 }
0x3c52   : > { %v7637_v47 = vsel %vm911_vm1, %v7503_v8, 0.0 }
0x3c53   : > { %v7631_v59 = vsel %vm911_vm1, %v7501_v0, 0.0 }
0x3c55   : > { %7638 = vadd.xlane.f32.xlu0 %v7637_v47  ;;  %7629 = vadd.xlane.f32.xlu1 %v7628_v56 }
0x3c59   : > { %7632 = vadd.xlane.f32.xlu0 %v7631_v59 }
0x3c84   : > { %v9066_v3 = vpop.f32.mrb[116].mxu0 }
0x3c85   : > { %v7400_v51 = vadd.f32 %v9066_v3, %v12519_v14  ;;  %v7391_v11 = vpop.f32.mrb[117].mxu0 }
0x3c86   : > { %v7392_v50 = vadd.f32 %v12519_v14, %v7391_v11  ;;  %v9067_v61 = vpop.f32.mrb[118].mxu0 }
0x3c87   : > { %10259 = vtanh.f32 %v7400_v51  ;;  %v7403_v30 = vadd.f32 %v9067_v61, %v12519_v14  ;;  %v7394_v57 = vpop.f32.mrb[119].mxu0 }
0x3c88   : > { %10261 = vtanh.f32 %v7392_v50  ;;  %v7395_v55 = vadd.f32 %v12519_v14, %v7394_v57 }
0x3c89   : > { %10263 = vtanh.f32 %v7403_v30 }
0x3c8a   : > { %10265 = vtanh.f32 %v7395_v55 }
0x3c8e   : > { %v12662_v22 = vpop.xlane.xlu0 %7515 }
0x3c91   : > { %v10260_v19 = vpop.eup %10259  ;;  %v7513_v10 = vpop.xlane.xlu1 %7512 }
0x3c92   : > { %v10262_v9 = vpop.eup %10261  ;;  %v7510_v16 = vpop.xlane.xlu0 %7509  ;;  %v7506_v60 = vmul.f32 %v10260_v19, %v12531_v26 }
0x3c93   : > { %v10264_v43 = vpop.eup %10263  ;;  %v7504_v5 = vmul.f32 %v10262_v9, %v12531_v26 }
0x3c94   : > { %v10266_v15 = vpop.eup %10265  ;;  %v7507_v31 = vmul.f32 %v10264_v43, %v12531_v26  ;;  %v7646_v32 = vsel %vm911_vm1, %v7506_v60, 0.0 }
0x3c95   : > { %v7640_v7 = vsel %vm911_vm1, %v7504_v5, 0.0  ;;  %v7505_v29 = vmul.f32 %v10266_v15, %v12531_v26 }
0x3c96   : > { %v7519_v18 = vpop.xlane.xlu0 %7518  ;;  %7641 = vadd.xlane.f32.xlu1 %v7640_v7  ;;  %v7649_v27 = vsel %vm911_vm1, %v7507_v31, 0.0  ;;  %v7528_v37 = vpop.xlane.xlu1 %7527 }
0x3c97   : > { %v7643_v14 = vsel %vm911_vm1, %v7505_v29, 0.0  ;;  %v7655_v57 = vsel %vm7652_vm3, %v12662_v22, %v7528_v37 }
0x3c98   : > { %7644 = vadd.xlane.f32.xlu0 %v7643_v14 }
0x3c9a   : > { %v7531_v1 = vpop.xlane.xlu0 %7530  ;;  %7647 = vadd.xlane.f32.xlu1 %v7646_v32  ;;  %v7522_v26 = vpop.xlane.xlu1 %7521 }
0x3c9b   : > { %v7656_v42 = vsel %vm7652_vm3, %v7519_v18, %v7531_v1  ;;  %v7653_v59 = vsel %vm7652_vm3, %v7510_v16, %v7522_v26 }
0x3c9c   : > { %7650 = vadd.xlane.f32.xlu0 %v7649_v27 }
0x3c9e   : > { %v7525_v58 = vpop.xlane.xlu0 %7524  ;;  %v7540_v12 = vpop.xlane.xlu1 %7539 }
0x3c9f   : > { %v7654_v11 = vsel %vm7652_vm3, %v7513_v10, %v7525_v58  ;;  %v7660_v9 = vsel %vm7657_vm4, %v7655_v57, %v7540_v12 }
0x3ca2   : > { %v7543_v62 = vpop.xlane.xlu0 %7542  ;;  %v7534_v63 = vpop.xlane.xlu1 %7533 }
0x3ca3   : > { %v12674_v28 = vsel %vm7657_vm4, %v7656_v42, %v7543_v62  ;;  %v7658_v3 = vsel %vm7657_vm4, %v7653_v59, %v7534_v63 }
0x3ca6   : > { %v7537_v20 = vpop.xlane.xlu0 %7536  ;;  %v7552_v38 = vpop.xlane.xlu1 %7551 }
0x3ca7   : > { %v7659_v61 = vsel %vm7657_vm4, %v7654_v11, %v7537_v20  ;;  %v7665_v15 = vsel %vm7662_vm5, %v7660_v9, %v7552_v38 }
0x3caa   : > { %v7555_v54 = vpop.xlane.xlu0 %7554  ;;  %v7546_v36 = vpop.xlane.xlu1 %7545 }
0x3cab   : > { %v7663_v50 = vsel %vm7662_vm5, %v7658_v3, %v7546_v36  ;;  %v7666_v31 = vsel %vm7662_vm5, %v12674_v28, %v7555_v54 }
0x3cae   : > { %v7549_v13 = vpop.xlane.xlu0 %7548  ;;  %v7564_v23 = vpop.xlane.xlu1 %7563 }
0x3caf   : > { %v7664_v55 = vsel %vm7662_vm5, %v7659_v61, %v7549_v13  ;;  %v7670_v22 = vsel %vm7667_vm6, %v7665_v15, %v7564_v23 }
0x3cb2   : > { %v7567_v17 = vpop.xlane.xlu0 %7566  ;;  %v7558_v4 = vpop.xlane.xlu1 %7557 }
0x3cb3   : > { %v7668_v30 = vsel %vm7667_vm6, %v7663_v50, %v7558_v4  ;;  %v7671_v27 = vsel %vm7667_vm6, %v7666_v31, %v7567_v17  ;;  %v10414_v31 = vmov 1  }
0x3cb6   : > { %v7561_v45 = vpop.xlane.xlu0 %7560  ;;  %v7576_v48 = vpop.xlane.xlu1 %7575 }
0x3cb7   : > { %v7669_v16 = vsel %vm7667_vm6, %v7664_v55, %v7561_v45  ;;  %v7675_v32 = vsel %vm7672_vm7, %v7670_v22, %v7576_v48 }
0x3cba   : > { %v7579_v49 = vpop.xlane.xlu0 %7578  ;;  %v7570_v52 = vpop.xlane.xlu1 %7569 }
0x3cbb   : > { %v7673_v19 = vsel %vm7672_vm7, %v7668_v30, %v7570_v52  ;;  %v7676_v26 = vsel %vm7672_vm7, %v7671_v27, %v7579_v49  ;;  %v10417_v27 = vmov 8  }
0x3cbe   : > { %v7573_v39 = vpop.xlane.xlu0 %7572  ;;  %v7588_v46 = vpop.xlane.xlu1 %7587 }
0x3cbf   : > { %v7674_v7 = vsel %vm7672_vm7, %v7669_v16, %v7573_v39  ;;  %v7680_v58 = vsel %vm7677_vm8, %v7675_v32, %v7588_v46 }
0x3cc2   : > { %v7591_v44 = vpop.xlane.xlu0 %7590  ;;  %v7582_v21 = vpop.xlane.xlu1 %7581 }
0x3cc3   : > { %v7678_v43 = vsel %vm7677_vm8, %v7673_v19, %v7582_v21  ;;  %v7681_v20 = vsel %vm7677_vm8, %v7676_v26, %v7591_v44 }
0x3cc6   : > { %v7585_v40 = vpop.xlane.xlu0 %7584  ;;  %v7600_v6 = vpop.xlane.xlu1 %7599 }
0x3cc7   : > { %v7679_v60 = vsel %vm7677_vm8, %v7674_v7, %v7585_v40  ;;  %v7685_v12 = vsel %vm7682_vm9, %v7680_v58, %v7600_v6  ;;  %v10418_v58 = vmov 5  }
0x3cca   : > { %v7603_v41 = vpop.xlane.xlu0 %7602  ;;  %v7594_v35 = vpop.xlane.xlu1 %7593 }
0x3ccb   : > { %v7683_v29 = vsel %vm7682_vm9, %v7678_v43, %v7594_v35  ;;  %v7686_v13 = vsel %vm7682_vm9, %v7681_v20, %v7603_v41 }
0x3cce   : > { %v7597_v34 = vpop.xlane.xlu0 %7596  ;;  %v7612_v33 = vpop.xlane.xlu1 %7611 }
0x3ccf   : > { %v7684_v1 = vsel %vm7682_vm9, %v7679_v60, %v7597_v34  ;;  %v7690_v38 = vsel %vm7687_vm10, %v7685_v12, %v7612_v33  ;;  %v10420_v12 = vmov 7  }
0x3cd2   : > { %v7615_v24 = vpop.xlane.xlu0 %7614  ;;  %v7606_v53 = vpop.xlane.xlu1 %7605 }
0x3cd3   : > { %v7688_v18 = vsel %vm7687_vm10, %v7683_v29, %v7606_v53  ;;  %v7691_v4 = vsel %vm7687_vm10, %v7686_v13, %v7615_v24 }
0x3cd6   : > { %v7609_v8 = vpop.xlane.xlu0 %7608  ;;  %v7624_v2 = vpop.xlane.xlu1 %7623 }
0x3cd7   : > { %v7689_v62 = vsel %vm7687_vm10, %v7684_v1, %v7609_v8  ;;  %v7695_v23 = vsel %vm7692_vm11, %v7690_v38, %v7624_v2  ;;  %v10415_v1 = vmov 3   ;;  %v12951_v38 = vmov 0  }
0x3cda   : > { %v7627_v25 = vpop.xlane.xlu0 %7626  ;;  %v7618_v47 = vpop.xlane.xlu1 %7617 }
0x3cdb   : > { %v7693_v42 = vsel %vm7692_vm11, %v7688_v18, %v7618_v47  ;;  %v7696_v49 = vsel %vm7692_vm11, %v7691_v4, %v7627_v25 }
0x3cde   : > { %v7621_v56 = vpop.xlane.xlu0 %7620  ;;  %v7636_v0 = vpop.xlane.xlu1 %7635 }
0x3cdf   : > { %v7694_v28 = vsel %vm7692_vm11, %v7689_v62, %v7621_v56  ;;  %v7700_v45 = vsel %vm7697_vm12, %v7695_v23, %v7636_v0  ;;  %v10419_v62 = vmov 10  }
0x3ce2   : > { %v7639_v51 = vpop.xlane.xlu0 %7638  ;;  %v7630_v5 = vpop.xlane.xlu1 %7629 }
0x3ce3   : > { %v7698_v10 = vsel %vm7697_vm12, %v7693_v42, %v7630_v5  ;;  %v7701_v39 = vsel %vm7697_vm12, %v7696_v49, %v7639_v51  ;;  %v10412_v5 = vmov 2   ;;  %v10416_v42 = vmov 6   ;;  %v10297_v49 = vld [vmem:[#allocation3 + $0x50] sm:$0xff] }
0x3ce4   : > { %9324 = vset.pattern.permute.xlu0 %v10412_v5 }
0x3ce6   : > { %v7633_v14 = vpop.xlane.xlu0 %7632 }
0x3ce7   : > { %v7699_v54 = vsel %vm7697_vm12, %v7694_v28, %v7633_v14  ;;  %v10413_v14 = vmov 4   ;;  %v10421_v28 = vmov 9  }
0x3d23   : > { %v7642_v37 = vpop.xlane.xlu1 %7641 }
0x3d24   : > { %v7703_v63 = vsel %vm7702_vm13, %v7698_v10, %v7642_v37 }
0x3d25   : > { %10267 = vtanh.f32 %v7703_v63  ;;  %v7645_v36 = vpop.xlane.xlu0 %7644 }
0x3d26   : > { %v7704_v17 = vsel %vm7702_vm13, %v7699_v54, %v7645_v36  ;;  %v10422_v54 = vmov 11  }
0x3d27   : > { %10269 = vtanh.f32 %v7704_v17  ;;  %v7648_v48 = vpop.xlane.xlu1 %7647  ;;  %v10295_v17 = vld [vmem:[#allocation3 + $0x10] sm:$0xff] }
0x3d28   : > { %v7705_v52 = vsel %vm7702_vm13, %v7700_v45, %v7648_v48  ;;  %v10296_v45 = vld [vmem:[#allocation3 + $0x30] sm:$0xff] }
0x3d29   : > { %10271 = vtanh.f32 %v7705_v52  ;;  %v7651_v46 = vpop.xlane.xlu0 %7650 }
0x3d2a   : > { %v7706_v44 = vsel %vm7702_vm13, %v7701_v39, %v7651_v46 }
0x3d2b   : > { %10273 = vtanh.f32 %v7706_v44 }
0x3d2f   : > { %v10268_v21 = vpop.eup %10267 }
0x3d30   : > { %v7712_v40 = vsel %vm7711_vm14, %v10268_v21, -inf }
0x3d31   : > { %v10270_v6 = vpop.eup %10269  ;;  %7713 = vmax.xlane.f32.xlu1 %v7712_v40 }
0x3d32   : > { %v7715_v41 = vsel %vm7711_vm14, %v10270_v6, -inf }
0x3d33   : > { %v10272_v35 = vpop.eup %10271  ;;  %7716 = vmax.xlane.f32.xlu0 %v7715_v41 }
0x3d34   : > { %v7718_v34 = vsel %vm7711_vm14, %v10272_v35, -inf }
0x3d35   : > { %v10274_v33 = vpop.eup %10273  ;;  %7719 = vmax.xlane.f32.xlu1 %v7718_v34 }
0x3d36   : > { %v7721_v24 = vsel %vm7711_vm14, %v10274_v33, -inf }
0x3d37   : > { %7722 = vmax.xlane.f32.xlu0 %v7721_v24 }
0x3dbe   : > { %v7714_v53 = vpop.xlane.xlu1 %7713 }
0x3dbf   : > { %v7724_v8 = vsub.f32 %v10268_v21, %v7714_v53  ;;  %v10298_v21 = vld [vmem:[#allocation3 + $0x70] sm:$0xff] }
0x3dc0   : > { %v7717_v2 = vpop.xlane.xlu0 %7716  ;;  %v10300_v53 = vld [vmem:[#allocation3 + $0xb0] sm:$0xff] }
0x3dc1   : > { %v7725_v47 = vsub.f32 %v10270_v6, %v7717_v2  ;;  %v7728_v0 = vmul.f32 1.442695, %v7724_v8 }
0x3dc2   : > { %v7720_v25 = vpop.xlane.xlu1 %7719 }
0x3dc3   : > { %v7726_v56 = vsub.f32 %v10272_v35, %v7720_v25  ;;  %v7730_v11 = vmul.f32 1.442695, %v7725_v47  ;;  %v10299_v35 = vld [vmem:[#allocation3 + $0x90] sm:$0xff] }
0x3dc4   : > { %v7723_v59 = vpop.xlane.xlu0 %7722  ;;  %v10301_v47 = vld [vmem:[#allocation3 + $0xd0] sm:$0xff] }
0x3dc5   : > { %v7732_v3 = vmul.f32 1.442695, %v7726_v56  ;;  %v7727_v51 = vsub.f32 %v10274_v33, %v7723_v59 }
0x3dc7   : > { %10275 = vpow2.f32 %v7732_v3  ;;  %v7734_v50 = vmul.f32 1.442695, %v7727_v51  ;;  %v10302_v3 = vld [vmem:[#allocation3 + $0xf0] sm:$0xff] }
0x3dc8   : > { %10277 = vpow2.f32 %v7728_v0 }
0x3dc9   : > { %10279 = vpow2.f32 %v7734_v50 }
0x3dca   : > { %10281 = vpow2.f32 %v7730_v11 }
0x3dd1   : > { %v10276_v61 = vpop.eup %10275 }
0x3dd2   : > { %v10278_v30 = vpop.eup %10277  ;;  %v7742_v57 = vsel %vm7711_vm14, %v10276_v61, 0.0 }
0x3dd3   : > { %v10280_v55 = vpop.eup %10279  ;;  %7743 = vadd.xlane.f32.xlu1 %v7742_v57  ;;  %v7736_v16 = vsel %vm7711_vm14, %v10278_v30, 0.0 }
0x3dd4   : > { %v7745_v19 = vsel %vm7711_vm14, %v10280_v55, 0.0  ;;  %v12726_v9 = vpop.eup %10281 }
0x3dd5   : > { %7746 = vadd.xlane.f32.xlu0 %v7745_v19  ;;  %v7739_v43 = vsel %vm7711_vm14, %v12726_v9, 0.0  ;;  %v10304_v19 = vld [vmem:[#allocation3 + $0x130] sm:$0xff] }
0x3dd7   : > { %7737 = vadd.xlane.f32.xlu1 %v7736_v16 }
0x3dd9   : > { %7740 = vadd.xlane.f32.xlu0 %v7739_v43 }
0x3e60   : > { %v7744_v15 = vpop.xlane.xlu1 %7743 }
0x3e61   : > { %10283 = vrcp.f32 %v7744_v15 }
0x3e62   : > { %v7747_v32 = vpop.xlane.xlu0 %7746 }
0x3e64   : > { %v7738_v7 = vpop.xlane.xlu1 %7737 }
0x3e65   : > { %10285 = vrcp.f32 %v7738_v7 }
0x3e66   : > { %10287 = vrcp.f32 %v7747_v32  ;;  %v7741_v26 = vpop.xlane.xlu0 %7740  ;;  %v10307_v32 = vld [vmem:[#allocation3] sm:$0xff] }
0x3e67   : > { %10289 = vrcp.f32 %v7741_v26 }
0x3e6b   : > { %v10284_v29 = vpop.eup %10283 }
0x3e6c   : > { %v12732_v22 = vmul.f32 %v10284_v29, %v10276_v61  ;;  %v10303_v61 = vld [vmem:[#allocation3 + $0x110] sm:$0xff] }
0x3e6e   : > { %7817 = vperm.xlu0 %9324, %v12732_v22   ;;  %7768 = vperm.xlu1 %9322, %v12732_v22  }
0x3e6f   : > { %v10286_v60 = vpop.eup %10285 }
0x3e70   : > { %v12736_v18 = vmul.f32 %v10286_v60, %v10278_v30  ;;  %v10288_v10 = vpop.eup %10287  ;;  %v10306_v60 = vld [vmem:[#allocation3 + $0x20] sm:$0xff] }
0x3e71   : > { %v12754_v37 = vmul.f32 %v10288_v10, %v10280_v55  ;;  %v10290_v63 = vpop.eup %10289 }
0x3e72   : > { %9337 = vset.pattern.permute.xlu0 %v10413_v14  ;;  %9323 = vset.pattern.permute.xlu1 %v10414_v31  ;;  %v12771_v20 = vmul.f32 %v10290_v63, %v12726_v9 }
0x3e73   : > { %7793 = vperm.xlu1 %9323, %v12732_v22   ;;  %7857 = vperm.xlu0 %9337, %v12736_v18  }
0x3e77   : > { %9325 = vset.pattern.permute.xlu1 %v10415_v1  ;;  %9339 = vset.pattern.permute.xlu0 %v10416_v42 }
0x3e78   : > { %7841 = vperm.xlu1 %9325, %v12732_v22   ;;  %7905 = vperm.xlu0 %9339, %v12736_v18  }
0x3e7c   : > { %9326 = vset.pattern.permute.xlu1 %v10413_v14  ;;  %9341 = vset.pattern.permute.xlu0 %v10417_v27 }
0x3e7d   : > { %7865 = vperm.xlu1 %9326, %v12732_v22   ;;  %7953 = vperm.xlu0 %9341, %v12736_v18  }
0x3e81   : > { %9327 = vset.pattern.permute.xlu1 %v10418_v58  ;;  %9343 = vset.pattern.permute.xlu0 %v10419_v62 }
0x3e82   : > { %7889 = vperm.xlu1 %9327, %v12732_v22   ;;  %8001 = vperm.xlu0 %9343, %v12736_v18  }
0x3e86   : > { %9328 = vset.pattern.permute.xlu1 %v10416_v42  ;;  %9349 = vset.pattern.permute.xlu0 %v10413_v14 }
0x3e87   : > { %7913 = vperm.xlu1 %9328, %v12732_v22   ;;  %7869 = vperm.xlu0 %9349, %v12754_v37  }
0x3e8b   : > { %9329 = vset.pattern.permute.xlu1 %v10420_v12  ;;  %9351 = vset.pattern.permute.xlu0 %v10416_v42 }
0x3e8c   : > { %7937 = vperm.xlu1 %9329, %v12732_v22   ;;  %7917 = vperm.xlu0 %9351, %v12754_v37  }
0x3e90   : > { %9330 = vset.pattern.permute.xlu1 %v10417_v27  ;;  %9353 = vset.pattern.permute.xlu0 %v10417_v27 }
0x3e91   : > { %7961 = vperm.xlu1 %9330, %v12732_v22   ;;  %7965 = vperm.xlu0 %9353, %v12754_v37  }
0x3e95   : > { %9331 = vset.pattern.permute.xlu1 %v10421_v28  ;;  %9355 = vset.pattern.permute.xlu0 %v10419_v62 }
0x3e96   : > { %7985 = vperm.xlu1 %9331, %v12732_v22   ;;  %8013 = vperm.xlu0 %9355, %v12754_v37  }
0x3e9a   : > { %9332 = vset.pattern.permute.xlu1 %v10419_v62  ;;  %9356 = vset.pattern.permute.xlu0 %v12951_v38 }
0x3e9b   : > { %8009 = vperm.xlu1 %9332, %v12732_v22   ;;  %7763 = vperm.xlu0 %9356, %v12771_v20  }
0x3e9f   : > { %9333 = vset.pattern.permute.xlu1 %v12951_v38  ;;  %9359 = vset.pattern.permute.xlu0 %v10415_v1 }
0x3ea0   : > { %7837 = vperm.xlu0 %9359, %v12771_v20   ;;  %7758 = vperm.xlu1 %9333, %v12736_v18  }
0x3ea4   : > { %9361 = vset.pattern.permute.xlu0 %v10418_v58  ;;  %9334 = vset.pattern.permute.xlu1 %v10414_v31 }
0x3ea5   : > { %7885 = vperm.xlu0 %9361, %v12771_v20   ;;  %7785 = vperm.xlu1 %9334, %v12736_v18  }
0x3ea9   : > { %9363 = vset.pattern.permute.xlu0 %v10420_v12  ;;  %9335 = vset.pattern.permute.xlu1 %v10412_v5 }
0x3eaa   : > { %7933 = vperm.xlu0 %9363, %v12771_v20   ;;  %7809 = vperm.xlu1 %9335, %v12736_v18  }
0x3eae   : > { %9365 = vset.pattern.permute.xlu0 %v10421_v28  ;;  %9336 = vset.pattern.permute.xlu1 %v10415_v1 }
0x3eaf   : > { %7981 = vperm.xlu0 %9365, %v12771_v20   ;;  %7833 = vperm.xlu1 %9336, %v12736_v18  }
0x3eb3   : > { %9367 = vset.pattern.permute.xlu0 %v10422_v54  ;;  %9338 = vset.pattern.permute.xlu1 %v10418_v58 }
0x3eb4   : > { %8029 = vperm.xlu0 %9367, %v12771_v20   ;;  %7881 = vperm.xlu1 %9338, %v12736_v18  }
0x3eb8   : > { %9340 = vset.pattern.permute.xlu1 %v10420_v12 }
0x3eb9   : > { %7929 = vperm.xlu1 %9340, %v12736_v18  }
0x3ebd   : > { %9342 = vset.pattern.permute.xlu1 %v10421_v28 }
0x3ebe   : > { %7977 = vperm.xlu1 %9342, %v12736_v18  }
0x3ec2   : > { %9344 = vset.pattern.permute.xlu1 %v10422_v54 }
0x3ec3   : > { %8025 = vperm.xlu1 %9344, %v12736_v18  }
0x3ec7   : > { %9345 = vset.pattern.permute.xlu1 %v12951_v38 }
0x3ec8   : > { %7773 = vperm.xlu1 %9345, %v12754_v37  }
0x3ecc   : > { %9346 = vset.pattern.permute.xlu1 %v10414_v31 }
0x3ecd   : > { %7797 = vperm.xlu1 %9346, %v12754_v37  }
0x3ed1   : > { %9347 = vset.pattern.permute.xlu1 %v10412_v5 }
0x3ed2   : > { %7821 = vperm.xlu1 %9347, %v12754_v37  }
0x3ed6   : > { %9348 = vset.pattern.permute.xlu1 %v10415_v1 }
0x3ed7   : > { %7845 = vperm.xlu1 %9348, %v12754_v37  }
0x3edb   : > { %9350 = vset.pattern.permute.xlu1 %v10418_v58 }
0x3edc   : > { %7893 = vperm.xlu1 %9350, %v12754_v37  }
0x3ee0   : > { %9352 = vset.pattern.permute.xlu1 %v10420_v12  ;;  %v10310_v12 = vld [vmem:[#allocation3 + $0x80] sm:$0xff] }
0x3ee1   : > { %7941 = vperm.xlu1 %9352, %v12754_v37  }
0x3ee5   : > { %9354 = vset.pattern.permute.xlu1 %v10421_v28 }
0x3ee6   : > { %7989 = vperm.xlu1 %9354, %v12754_v37  }
0x3eea   : > { %9357 = vset.pattern.permute.xlu1 %v10414_v31 }
0x3eeb   : > { %7789 = vperm.xlu1 %9357, %v12771_v20  }
0x3eed   : > { %v7769_v36 = vpop.permute.xlu1 %7768  ;;  %v7818_v13 = vpop.permute.xlu0 %7817 }
0x3eee   : > { %v7778_v4 = vmul.f32 %v10295_v17, %v7769_v36  ;;  %v7826_v52 = vmul.f32 %v10297_v49, %v7818_v13  ;;  %v10311_v36 = vld [vmem:[#allocation3 + $0xa0] sm:$0xff] }
0x3eef   : > { %9358 = vset.pattern.permute.xlu1 %v10412_v5  ;;  %v10305_v5 = vld [vmem:[#allocation3 + $0x150] sm:$0xff] }
0x3ef0   : > { %7813 = vperm.xlu1 %9358, %v12771_v20  }
0x3ef2   : > { %v7794_v23 = vpop.permute.xlu1 %7793  ;;  %v7858_v31 = vpop.permute.xlu0 %7857 }
0x3ef3   : > { %v7802_v48 = vmul.f32 %v10296_v45, %v7794_v23  ;;  %v7872_v28 = vmul.f32 %v10310_v12, %v7858_v31  ;;  %v10312_v23 = vld [vmem:[#allocation3 + $0xc0] sm:$0xff] }
0x3ef4   : > { %9360 = vset.pattern.permute.xlu1 %v10413_v14 }
0x3ef5   : > { %v7806_v39 = vadd.f32 %v7802_v48, %v7778_v4  ;;  %7861 = vperm.xlu1 %9360, %v12771_v20  }
0x3ef7   : > { %v7830_v46 = vadd.f32 %v7826_v52, %v7806_v39  ;;  %v7842_v44 = vpop.permute.xlu1 %7841  ;;  %v7906_v63 = vpop.permute.xlu0 %7905  ;;  %v10313_v52 = vld [vmem:[#allocation3 + $0xe0] sm:$0xff] }
0x3ef8   : > { %v7850_v40 = vmul.f32 %v10298_v21, %v7842_v44  ;;  %v7920_v17 = vmul.f32 %v10312_v23, %v7906_v63 }
0x3ef9   : > { %9362 = vset.pattern.permute.xlu1 %v10416_v42  ;;  %v10308_v42 = vld [vmem:[#allocation3 + $0x40] sm:$0xff] }
0x3efa   : > { %v7854_v6 = vadd.f32 %v7850_v40, %v7830_v46  ;;  %7909 = vperm.xlu1 %9362, %v12771_v20   ;;  %v10314_v46 = vld [vmem:[#allocation3 + $0x100] sm:$0xff] }
0x3efc   : > { %v7866_v41 = vpop.permute.xlu1 %7865  ;;  %v7954_v45 = vpop.permute.xlu0 %7953 }
0x3efd   : > { %v7874_v34 = vmul.f32 %v10299_v35, %v7866_v41  ;;  %v7968_v44 = vmul.f32 %v10314_v46, %v7954_v45  ;;  %v10315_v35 = vld [vmem:[#allocation3 + $0x120] sm:$0xff]  ;;  %v10327_v45 = vld [vmem:[#allocation3 + $0xb8] sm:$0xff] }
0x3efe   : > { %9364 = vset.pattern.permute.xlu1 %v10417_v27 }
0x3eff   : > { %v7878_v33 = vadd.f32 %v7874_v34, %v7854_v6  ;;  %7957 = vperm.xlu1 %9364, %v12771_v20  }
0x3f01   : > { %v7890_v24 = vpop.permute.xlu1 %7889  ;;  %v8002_v40 = vpop.permute.xlu0 %8001 }
0x3f02   : > { %v7898_v8 = vmul.f32 %v10300_v53, %v7890_v24 }
0x3f03   : > { %9366 = vset.pattern.permute.xlu1 %v10419_v62 }
0x3f04   : > { %v7902_v2 = vadd.f32 %v7898_v8, %v7878_v33  ;;  %8005 = vperm.xlu1 %9366, %v12771_v20   ;;  %v10316_v33 = vld [vmem:[#allocation3 + $0x140] sm:$0xff] }
0x3f05   : > { %v8016_v24 = vmul.f32 %v10316_v33, %v8002_v40  ;;  %v10331_v33 = vld [vmem:[#allocation3 + $0xd8] sm:$0xff] }
0x3f06   : > { %v7914_v25 = vpop.permute.xlu1 %7913 }
0x3f07   : > { %v7922_v56 = vmul.f32 %v10301_v47, %v7914_v25  ;;  %v10317_v25 = vld [vmem:[#allocation3 + $0x160] sm:$0xff] }
0x3f08   : > { %9368 = vset.pattern.permute.xlu1 %v10422_v54 }
0x3f09   : > { %v7926_v0 = vadd.f32 %v7922_v56, %v7902_v2  ;;  %8033 = vperm.xlu1 %9368, %v12732_v22  }
0x3f0b   : > { %v7938_v59 = vpop.permute.xlu1 %7937 }
0x3f0c   : > { %v7946_v51 = vmul.f32 %v10302_v3, %v7938_v59  ;;  %v7870_v3 = vpop.permute.xlu0 %7869 }
0x3f0d   : > { %8037 = vperm.xlu1 %9368, %v12754_v37   ;;  %v10309_v37 = vld [vmem:[#allocation3 + $0x60] sm:$0xff] }
0x3f0e   : > { %v7950_v11 = vadd.f32 %v7946_v51, %v7926_v0 }
0x3f10   : > { %v7962_v50 = vpop.permute.xlu1 %7961 }
0x3f11   : > { %v7970_v30 = vmul.f32 %v10303_v61, %v7962_v50 }
0x3f13   : > { %v7974_v57 = vadd.f32 %v7970_v30, %v7950_v11  ;;  %v7918_v11 = vpop.permute.xlu0 %7917 }
0x3f15   : > { %v7986_v55 = vpop.permute.xlu1 %7985 }
0x3f16   : > { %v7994_v9 = vmul.f32 %v10304_v19, %v7986_v55 }
0x3f17   : > { %v12835_v61 = vpop.permute.xlu0 %7965 }
0x3f18   : > { %v7998_v16 = vadd.f32 %v7994_v9, %v7974_v57 }
0x3f1a   : > { %v8010_v43 = vpop.permute.xlu1 %8009 }
0x3f1b   : > { %v8018_v15 = vmul.f32 %v10305_v5, %v8010_v43  ;;  %v12837_v57 = vpop.permute.xlu0 %8013 }
0x3f1d   : > { %v12826_v7 = vadd.f32 %v8018_v15, %v7998_v16  ;;  %v10318_v16 = vld [vmem:[#allocation3 + $0x38] sm:$0xff] }
0x3f1f   : > { %v7759_v29 = vpop.permute.xlu1 %7758  ;;  %v7764_v19 = vpop.permute.xlu0 %7763 }
0x3f20   : > { %v7776_v1 = vmul.f32 %v10307_v32, %v7759_v29  ;;  %v10319_v29 = vld [vmem:[#allocation3 + $0x18] sm:$0xff] }
0x3f23   : > { %v7838_v15 = vpop.permute.xlu0 %7837 }
0x3f24   : > { %v7786_v22 = vpop.permute.xlu1 %7785 }
0x3f25   : > { %v7800_v18 = vmul.f32 %v10306_v60, %v7786_v22  ;;  %v10320_v60 = vld [vmem:[#allocation3 + $0x58] sm:$0xff] }
0x3f27   : > { %v7804_v58 = vadd.f32 %v7800_v18, %v7776_v1  ;;  %v10322_v1 = vld [vmem:[#allocation3 + $0x78] sm:$0xff] }
0x3f29   : > { %v7810_v14 = vpop.permute.xlu1 %7809 }
0x3f2a   : > { %v7824_v27 = vmul.f32 %v10308_v42, %v7810_v14  ;;  %v10321_v14 = vld [vmem:[#allocation3 + $0x28] sm:$0xff] }
0x3f2c   : > { %v7828_v10 = vadd.f32 %v7824_v27, %v7804_v58  ;;  %v10323_v27 = vld [vmem:[#allocation3 + $0x8] sm:$0xff] }
0x3f2d   : > { %v7777_v58 = vmul.f32 %v10323_v27, %v7764_v19 }
0x3f2e   : > { %v7834_v62 = vpop.permute.xlu1 %7833 }
0x3f2f   : > { %v7848_v26 = vmul.f32 %v10309_v37, %v7834_v62 }
0x3f31   : > { %v7852_v20 = vadd.f32 %v7848_v26, %v7828_v10  ;;  %v10324_v26 = vld [vmem:[#allocation3 + $0x48] sm:$0xff] }
0x3f33   : > { %v7876_v38 = vadd.f32 %v7872_v28, %v7852_v20  ;;  %v7882_v54 = vpop.permute.xlu1 %7881  ;;  %v7886_v28 = vpop.permute.xlu0 %7885  ;;  %v10325_v20 = vld [vmem:[#allocation3 + $0x68] sm:$0xff] }
0x3f34   : > { %v7896_v13 = vmul.f32 %v10311_v36, %v7882_v54  ;;  %v10326_v36 = vld [vmem:[#allocation3 + $0x98] sm:$0xff] }
0x3f36   : > { %v7900_v4 = vadd.f32 %v7896_v13, %v7876_v38  ;;  %v7849_v38 = vmul.f32 %v10325_v20, %v7838_v15  ;;  %v7875_v13 = vmul.f32 %v10326_v36, %v7870_v3 }
0x3f38   : > { %v7924_v48 = vadd.f32 %v7920_v17, %v7900_v4  ;;  %v7930_v49 = vpop.permute.xlu1 %7929 }
0x3f39   : > { %v7944_v39 = vmul.f32 %v10313_v52, %v7930_v49  ;;  %v10328_v49 = vld [vmem:[#allocation3 + $0x88] sm:$0xff] }
0x3f3b   : > { %v7948_v21 = vadd.f32 %v7944_v39, %v7924_v48  ;;  %v10329_v39 = vld [vmem:[#allocation3 + $0xa8] sm:$0xff] }
0x3f3c   : > { %v7897_v46 = vmul.f32 %v10329_v39, %v7886_v28 }
0x3f3d   : > { %v7972_v6 = vadd.f32 %v7968_v44, %v7948_v21  ;;  %v7978_v41 = vpop.permute.xlu1 %7977  ;;  %v7934_v44 = vpop.permute.xlu0 %7933 }
0x3f3e   : > { %v7992_v34 = vmul.f32 %v10315_v35, %v7978_v41  ;;  %v10330_v35 = vld [vmem:[#allocation3 + $0xc8] sm:$0xff] }
0x3f40   : > { %v7996_v53 = vadd.f32 %v7992_v34, %v7972_v6 }
0x3f42   : > { %v8020_v8 = vadd.f32 %v8016_v24, %v7996_v53  ;;  %v8026_v2 = vpop.permute.xlu1 %8025  ;;  %v7923_v24 = vmul.f32 %v10331_v33, %v7918_v11  ;;  %v10332_v53 = vld [vmem:[#allocation3 + $0xe8] sm:$0xff] }
0x3f43   : > { %v8040_v47 = vmul.f32 %v10317_v25, %v8026_v2  ;;  %v7982_v25 = vpop.permute.xlu0 %7981 }
0x3f45   : > { %v8044_v56 = vadd.f32 %v8040_v47, %v8020_v8  ;;  %v7945_v8 = vmul.f32 %v10332_v53, %v7934_v44 }
0x3f47   : > { %8048 = vst.msk [vmem:[%s12831_s11] sm:$0xff] %vm911_vm1, %v8044_v56  ;;  %v7774_v0 = vpop.permute.xlu1 %7773  ;;  %v10333_v56 = vld [vmem:[#allocation3 + $0xf8] sm:$0xff] }
0x3f48   : > { %v7779_v22 = vmul.f32 %v10319_v29, %v7774_v0  ;;  %v8030_v29 = vpop.permute.xlu0 %8029 }
0x3f4c   : > { %v7798_v59 = vpop.permute.xlu1 %7797 }
0x3f4d   : > { %v7803_v43 = vmul.f32 %v10318_v16, %v7798_v59 }
0x3f4f   : > { %v7807_v32 = vadd.f32 %v7803_v43, %v7779_v22 }
0x3f51   : > { %v7822_v51 = vpop.permute.xlu1 %7821 }
0x3f52   : > { %v7827_v18 = vmul.f32 %v10320_v60, %v7822_v51  ;;  %v10334_v51 = vld [vmem:[#allocation3 + $0x108] sm:$0xff] }
0x3f53   : > { %v10337_v60 = vld [vmem:[#allocation3 + $0x148] sm:$0xff] }
0x3f54   : > { %v7831_v62 = vadd.f32 %v7827_v18, %v7807_v32  ;;  %v10339_v32 = vld [vmem:[#allocation3 + $0x168] sm:$0xff] }
0x3f56   : > { %v7846_v50 = vpop.permute.xlu1 %7845 }
0x3f57   : > { %v7851_v42 = vmul.f32 %v10322_v1, %v7846_v50  ;;  %v8041_v1 = vmul.f32 %v10339_v32, %v8030_v29 }
0x3f59   : > { %v7855_v63 = vadd.f32 %v7851_v42, %v7831_v62 }
0x3f5b   : > { %v7894_v30 = vpop.permute.xlu1 %7893  ;;  %v7879_v4 = vadd.f32 %v7875_v13, %v7855_v63  ;;  %v10342_v63 = vld [vmem:[#allocation3 + $0x178] sm:$0xff] }
0x3f5c   : > { %v7899_v48 = vmul.f32 %v10327_v45, %v7894_v30  ;;  %v10335_v30 = vld [vmem:[#allocation3 + $0x128] sm:$0xff] }
0x3f5d   : > { %v7993_v19 = vmul.f32 %v10335_v30, %v7982_v25 }
0x3f5e   : > { %v7903_v40 = vadd.f32 %v7899_v48, %v7879_v4 }
0x3f60   : > { %v7942_v55 = vpop.permute.xlu1 %7941  ;;  %v7927_v47 = vadd.f32 %v7923_v24, %v7903_v40 }
0x3f61   : > { %v7947_v0 = vmul.f32 %v10333_v56, %v7942_v55  ;;  %v10338_v55 = vld [vmem:[#allocation3 + $0x138] sm:$0xff] }
0x3f63   : > { %v7951_v16 = vadd.f32 %v7947_v0, %v7927_v47 }
0x3f65   : > { %v12839_v9 = vpop.permute.xlu1 %7989 }
0x3f6a   : > { %v7790_v5 = vpop.permute.xlu1 %7789 }
0x3f6b   : > { %v7801_v31 = vmul.f32 %v10321_v14, %v7790_v5  ;;  %v10336_v5 = vld [vmem:[#allocation3 + $0x118] sm:$0xff] }
0x3f6c   : > { %v7971_v15 = vmul.f32 %v10336_v5, %v12835_v61  ;;  %v10340_v61 = vld [vmem:[#allocation3 + $0x170] sm:$0xff] }
0x3f6d   : > { %v7805_v37 = vadd.f32 %v7801_v31, %v7777_v58  ;;  %v7995_v31 = vmul.f32 %v10338_v55, %v12839_v9 }
0x3f6e   : > { %v7975_v14 = vadd.f32 %v7971_v15, %v7951_v16 }
0x3f6f   : > { %v7814_v10 = vpop.permute.xlu1 %7813 }
0x3f70   : > { %v7825_v12 = vmul.f32 %v10324_v26, %v7814_v10  ;;  %v7999_v62 = vadd.f32 %v7995_v31, %v7975_v14 }
0x3f72   : > { %v7829_v54 = vadd.f32 %v7825_v12, %v7805_v37  ;;  %v10341_v37 = vld [vmem:[#allocation3 + $0x158] sm:$0xff] }
0x3f73   : > { %v8019_v26 = vmul.f32 %v10341_v37, %v12837_v57 }
0x3f74   : > { %v7853_v23 = vadd.f32 %v7849_v38, %v7829_v54  ;;  %v7862_v17 = vpop.permute.xlu1 %7861 }
0x3f75   : > { %v7873_v52 = vmul.f32 %v10328_v49, %v7862_v17  ;;  %v8023_v28 = vadd.f32 %v8019_v26, %v7999_v62 }
0x3f77   : > { %v7877_v21 = vadd.f32 %v7873_v52, %v7853_v23 }
0x3f79   : > { %v7901_v6 = vadd.f32 %v7897_v46, %v7877_v21  ;;  %v7910_v41 = vpop.permute.xlu1 %7909 }
0x3f7a   : > { %v7921_v34 = vmul.f32 %v10330_v35, %v7910_v41 }
0x3f7c   : > { %v7925_v2 = vadd.f32 %v7921_v34, %v7901_v6 }
0x3f7e   : > { %v7949_v59 = vadd.f32 %v7945_v8, %v7925_v2  ;;  %v7958_v3 = vpop.permute.xlu1 %7957 }
0x3f7f   : > { %v7969_v50 = vmul.f32 %v10334_v51, %v7958_v3 }
0x3f81   : > { %v7973_v43 = vadd.f32 %v7969_v50, %v7949_v59 }
0x3f83   : > { %v7997_v11 = vadd.f32 %v7993_v19, %v7973_v43  ;;  %v8006_v22 = vpop.permute.xlu1 %8005 }
0x3f84   : > { %v8017_v18 = vmul.f32 %v10337_v60, %v8006_v22 }
0x3f86   : > { %v8021_v42 = vadd.f32 %v8017_v18, %v7997_v11 }
0x3f88   : > { %v8045_v27 = vadd.f32 %v8041_v1, %v8021_v42  ;;  %v8034_v58 = vpop.permute.xlu1 %8033 }
0x3f89   : > { %v8042_v10 = vmul.f32 %v10340_v61, %v8034_v58 }
0x3f8a   : > { %8049 = vst.msk [vmem:[%s12831_s11 + $0x8] sm:$0xff] %vm911_vm1, %v8045_v27 }
0x3f8b   : > { %v8046_v9 = vadd.f32 %v8042_v10, %v12826_v7 }
0x3f8c   : > { %v8038_v12 = vpop.permute.xlu1 %8037 }
0x3f8d   : > { %8050 = vst.msk [vmem:[%s12831_s11 + $0x10] sm:$0xff] %vm911_vm1, %v8046_v9  ;;  %v8043_v20 = vmul.f32 %v10342_v63, %v8038_v12 }
0x3f8f   : > { %v8047_v57 = vadd.f32 %v8043_v20, %v8023_v28 }
0x3f91   : > { %8051 = vst.msk [vmem:[%s12831_s11 + $0x18] sm:$0xff] %vm911_vm1, %v8047_v57 }
0x3f92   : > { %10356 = shalt.err (!%p10353_p3)
}
0x3f93   : > { %s10357_s18 = scalar_lea.hbm %s12854_s29, 512  ;;  %s10361_s27 = scalar_lea.hbm %s12913_s10, 1024 }
0x3f94   : > { %p10358_p4 = scmp.ne.s32.totalorder %s12854_s29, %s10357_s18  ;;  %p10362_p9 = scmp.lt.u32.totalorder %s12854_s29, %s12913_s10 }
0x3f95   : > { %p10363_p10 = scmp.lt.u32.totalorder %s10361_s27, %s10357_s18  ;;  %p10365_p12 = scmp.lt.u32.totalorder %s10357_s18, %s12854_s29 }
0x3f96   : > { %p10359_p7 = pnand %p10358_p4, %p10519_p5 }
0x3f97   : > { %p10364_p11 = por %p10363_p10, %p10362_p9 }
0x3f98   : > { %p10360_p8 = pneg %p10359_p7 }
0x3f99   : > { %p10366_p13 = por %p10365_p12, %p10364_p11 }
0x3f9b   : > { %p10367_p0 = pnand %p10366_p13, %p10360_p8 }
0x3f9d   : > { %10370 = shalt.err (!%p10367_p0)
}
0x3f9e   : > { %s10424_s30 = smov 128   ;;  %s10425_s21 = smov 8  }
0x3f9f   : > { %9265 = dma.vmem_to_hbm [thread:$0]  (%p10519_p5), %s12856_s25, 512, %s12854_s29, %s12862_s17, %s10424_s30, %s10424_s30, %s10425_s21  }
0x3fa0 PF: > { %p9271_p1 = scmp.ge.s32.totalorder %s10405_s16, 2  ;;  %s8081_s20 = sand.u32 1, %s10393_s13  }
0x3fa1   : > { %s8082_s18 = scalar_lea.sflag [#allocation5], %s8081_s20 }
0x3fa2   : > { %p9268_p2 = pnand %p9271_p1, %p10523_p6 }
0x3fa4   : > { %10388 = dma.done.wait (!%p9268_p2), %s8082_s18, 512  }
0x3fa5   : > { %10390 = vsyncadd (!%p9268_p2), %s8082_s18, 4294966784  ;;  %p20_p3 = scmp.ge.s32.totalorder %s10506_s19, 4   ;;  %s12952_s13 = smov %s10397_s14 }
0x3fa6   : > { %s12953_s14 = smov %s10401_s15  ;;  %s12954_s15 = smov %s10517_s22 }
0x3fa7   : > { %s12955_s16 = smov %s10506_s19  ;;  %22 = sbr.rel (!%p20_p3) target bundleno = 3 (0x3), region = 95 }
0x3fae   :  { %8087 = vsyncpa [#allocation5], 1 }
0x3faf   :  { %8089 = vsyncpa [#allocation5 + $0x1], 1 }

</bundles_post_ra>
